<compile_context>
chip_gen: v6e
topology: v6e:2x2x1
jax: 0.10.0
libtpu: 0.0.40
codegen_flags: <defaults>
</compile_context>

<pallas_src>
import functools
import math

import jax
import jax.numpy as jnp
from jax.experimental import pallas as pl
from jax.experimental.pallas import tpu as pltpu

_NUM_HEADS = 4
_LEAKY_SLOPE = 0.05
_EPS = 1e-5
_COMPUTE_DTYPE = jnp.bfloat16   # MXU operand dtype; accumulation + epilogue stay f32


# ---------------------------------------------------------------------------
# In-kernel helpers (operate on values; shared by both kernels)
# ---------------------------------------------------------------------------
def _layer_norm(x, eps):
    """F.layer_norm over the last (lane) axis, no affine."""
    mean = jnp.mean(x, axis=-1, keepdims=True)
    xc = x - mean
    var = jnp.mean(xc * xc, axis=-1, keepdims=True)
    return xc * jax.lax.rsqrt(var + eps)


def _leaky_relu(x, slope):
    return jnp.where(x >= 0, x, slope * x)


def _segment_shift(x, s, t_idx, T):
    """y[r] = x[r + s] when row r's time index t = r % T keeps t+s inside [0, T),
    else 0 (Conv1d zero padding).  Implemented as an XLU sublane roll plus a VPU
    mask — no (rows, rows) shift-matrix matmul."""
    rows = x.shape[0]
    rolled = pltpu.roll(x, (-s) % rows, axis=0)
    if s >= 0:
        mask = t_idx < (T - s)
    else:
        mask = t_idx >= (-s)
    return jnp.where(mask, rolled, 0.0)


def _mha(qn, kvn, wq, bq, wkv, bkv, wo, bo, *, bt, T, heads, cdt):
    """nn.MultiheadAttention forward (eval mode -> dropout identity).

    qn/kvn : (bt*T, E) f32, rows ordered (batch, time).
    wq     : (E, E)   pre-transposed query projection.
    wkv    : (E, 2E)  pre-transposed key|value projection.
    wo     : (heads, Dh, E) out-proj split per head -> per-head accumulation,
             so head outputs are never concatenated along lanes.
    Returns (bt*T, E) f32.
    """
    R, E = qn.shape
    Dh = E // heads
    scale = 1.0 / math.sqrt(Dh)
    q = jnp.dot(qn.astype(cdt), wq, preferred_element_type=jnp.float32) + bq
    kv = jnp.dot(kvn.astype(cdt), wkv, preferred_element_type=jnp.float32) + bkv
    q = q.astype(cdt)
    kv = kv.astype(cdt)
    out = jnp.zeros((R, E), jnp.float32)
    for h in range(heads):                       # static unroll over heads
        sl = slice(h * Dh, (h + 1) * Dh)
        qh = q[:, sl].reshape(bt, T, Dh)
        kh = kv[:, sl].reshape(bt, T, Dh)
        vh = kv[:, E + h * Dh:E + (h + 1) * Dh].reshape(bt, T, Dh)
        s = jnp.einsum("bqd,bkd->bqk", qh, kh,
                       preferred_element_type=jnp.float32) * scale
        s = s - jnp.max(s, axis=-1, keepdims=True)
        p = jnp.exp(s)
        p = p / jnp.sum(p, axis=-1, keepdims=True)        # exact divide (PyTorch parity)
        oh = jnp.einsum("bqk,bkd->bqd", p.astype(cdt), vh,
                        preferred_element_type=jnp.float32)
        out = out + jnp.dot(oh.reshape(R, Dh).astype(cdt), wo[h],
                            preferred_element_type=jnp.float32)
    return out + bo


# ---------------------------------------------------------------------------
# Kernel 1: the three CVA blocks, grid = (3, num_row_tiles)
# ---------------------------------------------------------------------------
def _cva_kernel(q_ref, kv_ref, wq_ref, bq_ref, wkv_ref, bkv_ref, wo_ref, bo_ref,
                o_ref, *, bt, T, heads, eps, cdt):
    """CVA: LN(q), LN(kv), cross-attention(q, kv, kv), + normalized-query residual."""
    qn = _layer_norm(q_ref[...].astype(jnp.float32), eps)
    kvn = _layer_norm(kv_ref[...].astype(jnp.float32), eps)
    out = _mha(qn, kvn,
               wq_ref[...], bq_ref[...].astype(jnp.float32),
               wkv_ref[...], bkv_ref[...].astype(jnp.float32),
               wo_ref[...], bo_ref[...].astype(jnp.float32),
               bt=bt, T=T, heads=heads, cdt=cdt)
    # Reference: `out1 = out1 + feature1` where feature1 is the LayerNorm'ed query.
    o_ref[...] = (out + qn).astype(o_ref.dtype)


# ---------------------------------------------------------------------------
# Kernel 2: the entire Aggregate module, grid = (num_row_tiles,)
# ---------------------------------------------------------------------------
def _aggregate_kernel(att_ref, w123_ref, b123_ref, bns_ref, bnt_ref, w4_ref,
                      awq_ref, abq_ref, awkv_ref, abkv_ref, awo_ref, abo_ref,
                      w5_ref, s5_ref, t5_ref, o_ref,
                      *, bt, T, heads, slope, eps, cdt):
    R = bt * T
    C = o_ref.shape[-1]
    t_idx = jax.lax.broadcasted_iota(jnp.int32, (R, 1), 0) % T

    a0 = att_ref[0]
    a1 = att_ref[1]
    a2 = att_ref[2]
    # residual = torch.mean(stack([x1, x2, x3]), dim=0); computed up front so the
    # raw inputs are dead after conv_4 (lower live-range / VMEM pressure).
    residual = (a0 + a1 + a2) * (1.0 / 3.0)

    def conv_branch(i, x, d):
        """Conv1d(k=3, dilation=d, padding=d) + bias -> LeakyReLU -> folded BatchNorm."""
        xc = x.astype(cdt)
        xm = _segment_shift(x, -d, t_idx, T).astype(cdt)
        xp = _segment_shift(x, d, t_idx, T).astype(cdt)
        acc = jnp.dot(xm, w123_ref[i, 0], preferred_element_type=jnp.float32)
        acc = acc + jnp.dot(xc, w123_ref[i, 1], preferred_element_type=jnp.float32)
        acc = acc + jnp.dot(xp, w123_ref[i, 2], preferred_element_type=jnp.float32)
        acc = acc + b123_ref[i]
        acc = _leaky_relu(acc, slope)
        return acc * bns_ref[i] + bnt_ref[i]

    o1 = conv_branch(0, a0, 1)        # (R, 512)
    o2 = conv_branch(1, a1, 2)
    o3 = conv_branch(2, a2, 4)

    # conv_4: k=1, no bias, on the channel-concat of the three inputs, + LeakyReLU
    o4 = jnp.dot(a0.astype(cdt), w4_ref[0], preferred_element_type=jnp.float32)
    o4 = o4 + jnp.dot(a1.astype(cdt), w4_ref[1], preferred_element_type=jnp.float32)
    o4 = o4 + jnp.dot(a2.astype(cdt), w4_ref[2], preferred_element_type=jnp.float32)
    o4 = _leaky_relu(o4, slope)

    # F.layer_norm + 4-head self-attention (eval-mode MHA)
    o4n = _layer_norm(o4, eps)
    attn = _mha(o4n, o4n,
                awq_ref[...], abq_ref[...], awkv_ref[...], abkv_ref[...],
                awo_ref[...], abo_ref[...], bt=bt, T=T, heads=heads, cdt=cdt)

    # conv_5 (k=3, d=1, no bias) on [o1|o2|o3|attn] -> LeakyReLU -> BN -> + residual.
    # Block-accumulated over the four 512-lane sources: the (R, 2048) concat and its
    # two shifted copies are never materialized.
    acc = jnp.zeros((R, C), jnp.float32)
    for blk, xb in enumerate((o1, o2, o3, attn)):
        xc = xb.astype(cdt)
        xm = _segment_shift(xb, -1, t_idx, T).astype(cdt)
        xp = _segment_shift(xb, 1, t_idx, T).astype(cdt)
        acc = acc + jnp.dot(xm, w5_ref[0, blk], preferred_element_type=jnp.float32)
        acc = acc + jnp.dot(xc, w5_ref[1, blk], preferred_element_type=jnp.float32)
        acc = acc + jnp.dot(xp, w5_ref[2, blk], preferred_element_type=jnp.float32)
    acc = _leaky_relu(acc, slope)
    acc = acc * s5_ref[...] + t5_ref[...]
    o_ref[...] = (acc + residual).astype(o_ref.dtype)


# ---------------------------------------------------------------------------
# pallas_call wrappers
# ---------------------------------------------------------------------------
def _pick_batch_tile(B, T, target_rows=128):
    """Largest batch tile whose rows (bt*T) hit ~target_rows, divides B, and keeps the
    row-block shape legal ((bt*T) % 8 == 0 or the full batch)."""
    cap = max(1, min(B, target_rows // max(T, 1)))
    for bt in range(cap, 0, -1):
        if B % bt == 0 and (bt == B or (bt * T) % 8 == 0):
            return bt
    return B


def _vmem_limit(arrays, out_shapes, headroom=16 * 1024 * 1024):
    """Explicit, computed scoped-VMEM limit (double-buffer upper bound + headroom),
    capped at 64 MiB so it is also valid on v7x."""
    total = sum(int(a.size) * jnp.dtype(a.dtype).itemsize for a in arrays)
    total += sum(math.prod(s.shape) * jnp.dtype(s.dtype).itemsize for s in out_shapes)
    return int(min(2 * total + headroom, 64 * 1024 * 1024))


def _cva3_call(f1, f2, f3, cva_p, bt):
    """Runs CVA1(f1,f2), CVA2(f2,f3), CVA3(f3,f1) in one grid=(3, B//bt) launch."""
    B, T, C = f1.shape
    R = bt * T
    n_bt = B // bt
    H, Dh = _NUM_HEADS, C // _NUM_HEADS
    feats = jnp.stack([f1, f2, f3]).reshape(3, B * T, C)   # single HBM materialization

    kernel = functools.partial(_cva_kernel, bt=bt, T=T, heads=H, eps=_EPS,
                               cdt=_COMPUTE_DTYPE)
    row_q = lambda i, j: (i, j, 0)
    row_kv = lambda i, j: ((i + 1) % 3, j, 0)   # kv re-uses the same stacked array
    w3 = lambda i, j: (i, 0, 0)
    w4 = lambda i, j: (i, 0, 0, 0)

    operands = (feats, feats, cva_p["wq"], cva_p["bq"], cva_p["wkv"],
                cva_p["bkv"], cva_p["wo"], cva_p["bo"])
    out_shape = jax.ShapeDtypeStruct((3, B * T, C), jnp.float32)
    return pl.pallas_call(
        kernel,
        grid=(3, n_bt),
        in_specs=[
            pl.BlockSpec((None, R, C), row_q),           # query rows
            pl.BlockSpec((None, R, C), row_kv),          # key/value rows
            pl.BlockSpec((None, C, C), w3),              # wq
            pl.BlockSpec((None, 1, C), w3),              # bq
            pl.BlockSpec((None, C, 2 * C), w3),          # wkv
            pl.BlockSpec((None, 1, 2 * C), w3),          # bkv
            pl.BlockSpec((None, H, Dh, C), w4),          # wo (per-head)
            pl.BlockSpec((None, 1, C), w3),              # bo
        ],
        out_specs=pl.BlockSpec((None, R, C), row_q),
        out_shape=out_shape,
        compiler_params=pltpu.CompilerParams(
            dimension_semantics=("parallel", "parallel"),
            vmem_limit_bytes=_vmem_limit(operands, [out_shape]),
        ),
    )(*operands)


def _aggregate_call(att, agg_p, B, T, bt):
    BT = B * T
    C = att.shape[-1]
    R = bt * T
    n_bt = B // bt
    kernel = functools.partial(_aggregate_kernel, bt=bt, T=T, heads=_NUM_HEADS,
                               slope=_LEAKY_SLOPE, eps=_EPS, cdt=_COMPUTE_DTYPE)

    def const_spec(a):       # whole weight array resident; constant across row tiles
        nd = a.ndim
        return pl.BlockSpec(a.shape, lambda j: (0,) * nd)

    operands = (att, agg_p["w123"], agg_p["b123"], agg_p["bn123_scale"],
                agg_p["bn123_shift"], agg_p["w4"],
                agg_p["attn_wq"], agg_p["attn_bq"], agg_p["attn_wkv"],
                agg_p["attn_bkv"], agg_p["attn_wo"], agg_p["attn_bo"],
                agg_p["w5"], agg_p["bn5_scale"], agg_p["bn5_shift"])
    in_specs = [pl.BlockSpec((3, R, C), lambda j: (0, j, 0))] + \
               [const_spec(a) for a in operands[1:]]
    out_shape = jax.ShapeDtypeStruct((BT, C), jnp.float32)
    out = pl.pallas_call(
        kernel,
        grid=(n_bt,),
        in_specs=in_specs,
        out_specs=pl.BlockSpec((R, C), lambda j: (j, 0)),
        out_shape=out_shape,
        compiler_params=pltpu.CompilerParams(
            dimension_semantics=("parallel",),
            vmem_limit_bytes=_vmem_limit(operands, [out_shape]),
        ),
    )(*operands)
    return out.reshape(B, T, C)


@jax.jit
def encoder_forward(f1, f2, f3, params):
    B, T, _ = f1.shape
    bt = _pick_batch_tile(B, T)
    att = _cva3_call(f1, f2, f3, params["cva"], bt)        # (3, B*T, C)
    return _aggregate_call(att, params["agg"], B, T, bt)   # (B, T, C)


# ---------------------------------------------------------------------------
# Parameters: PyTorch-layout init + one-time preparation (transpose / fold / stack)
# ---------------------------------------------------------------------------
def init_params(key, input_dim):
    """Deterministic parameters in PyTorch layouts (as the state_dict would hold)."""
    C = input_dim
    keys = iter(jax.random.split(key, 64))

    def nrm(shape, std=0.05):
        return std * jax.random.normal(next(keys), shape, dtype=jnp.float32)

    def mha(embed):
        return dict(in_w=nrm((3 * embed, embed)), in_b=nrm((3 * embed,)),
                    out_w=nrm((embed, embed)), out_b=nrm((embed,)))

    def bn(ch):
        return dict(gamma=1.0 + nrm((ch,)), beta=nrm((ch,)), mean=nrm((ch,)),
                    var=0.5 + jax.random.uniform(next(keys), (ch,), dtype=jnp.float32))

    return dict(
        cva1=mha(C), cva2=mha(C), cva3=mha(C),
        agg=dict(
            conv1_w=nrm((512, C, 3)), conv1_b=nrm((512,)), bn1=bn(512),
            conv2_w=nrm((512, C, 3)), conv2_b=nrm((512,)), bn2=bn(512),
            conv3_w=nrm((512, C, 3)), conv3_b=nrm((512,)), bn3=bn(512),
            conv4_w=nrm((512, 3 * C, 1)),
            attn=mha(512),
            conv5_w=nrm((C, 2048, 3)), bn5=bn(C),
        ),
    )


def prepare_params(params, eps=_EPS, compute_dtype=_COMPUTE_DTYPE):
    """One-time prep: pre-transpose every matmul weight to (in, out), split projections
    (q | kv) and per-head out-proj blocks, split conv kernels per tap, fold eval-mode
    BatchNorm stats, and stack the three CVA weight sets."""
    cdt = compute_dtype
    H = _NUM_HEADS

    def split_mha(p, embed):
        Dh = embed // H
        wq = jnp.transpose(p["in_w"][:embed]).astype(cdt)              # (E, E)
        wkv = jnp.transpose(p["in_w"][embed:]).astype(cdt)             # (E, 2E) = [K | V]
        bq = p["in_b"][:embed][None, :].astype(jnp.float32)            # (1, E)
        bkv = p["in_b"][embed:][None, :].astype(jnp.float32)           # (1, 2E)
        wo = jnp.transpose(p["out_w"]).reshape(H, Dh, embed).astype(cdt)  # (H, Dh, E)
        bo = p["out_b"][None, :].astype(jnp.float32)                   # (1, E)
        return wq, bq, wkv, bkv, wo, bo

    cvas = [params["cva1"], params["cva2"], params["cva3"]]
    parts = [split_mha(p, p["out_w"].shape[0]) for p in cvas]
    cva = dict(
        wq=jnp.stack([p[0] for p in parts]),     # (3, C, C)
        bq=jnp.stack([p[1] for p in parts]),     # (3, 1, C)
        wkv=jnp.stack([p[2] for p in parts]),    # (3, C, 2C)
        bkv=jnp.stack([p[3] for p in parts]),    # (3, 1, 2C)
        wo=jnp.stack([p[4] for p in parts]),     # (3, H, Dh, C)
        bo=jnp.stack([p[5] for p in parts]),     # (3, 1, C)
    )

    a = params["agg"]
    C = a["conv5_w"].shape[0]

    def fold(bn):
        scale = bn["gamma"] * jax.lax.rsqrt(bn["var"] + eps)
        return scale, bn["beta"] - bn["mean"] * scale

    s1, t1 = fold(a["bn1"]); s2, t2 = fold(a["bn2"])
    s3, t3 = fold(a["bn3"]); s5, t5 = fold(a["bn5"])

    w123 = jnp.stack([a["conv1_w"], a["conv2_w"], a["conv3_w"]])   # (3, 512, C, 3)
    w123 = jnp.transpose(w123, (0, 3, 2, 1)).astype(cdt)           # (3branch, 3tap, C, 512)
    w4 = a["conv4_w"][:, :, 0].reshape(512, 3, C)                  # (512, 3src, C)
    w4 = jnp.transpose(w4, (1, 2, 0)).astype(cdt)                  # (3src, C, 512)
    w5 = jnp.transpose(a["conv5_w"], (2, 1, 0))                    # (3tap, 2048, C)
    w5 = w5.reshape(3, 4, 512, C).astype(cdt)                      # (3tap, 4 source blocks, 512, C)

    awq, abq, awkv, abkv, awo, abo = split_mha(a["attn"], 512)

    agg = dict(
        w123=w123,
        b123=jnp.stack([a["conv1_b"], a["conv2_b"], a["conv3_b"]])[:, None, :].astype(jnp.float32),
        bn123_scale=jnp.stack([s1, s2, s3])[:, None, :].astype(jnp.float32),
        bn123_shift=jnp.stack([t1, t2, t3])[:, None, :].astype(jnp.float32),
        w4=w4,
        attn_wq=awq, attn_bq=abq, attn_wkv=awkv, attn_bkv=abkv,
        attn_wo=awo, attn_bo=abo,
        w5=w5,
        bn5_scale=s5[None, :].astype(jnp.float32),
        bn5_shift=t5[None, :].astype(jnp.float32),
    )
    return dict(cva=cva, agg=agg)


# ---------------------------------------------------------------------------
if __name__ == "__main__":
    B, T, C = 2, 8, 128   # batch, snippets (seg_num), input_dim (divisible by 4 heads)
    key = jax.random.PRNGKey(0)
    k1, k2, k3, kp = jax.random.split(key, 4)
    feature1 = jax.random.normal(k1, (B, T, C), dtype=jnp.float32)
    feature2 = jax.random.normal(k2, (B, T, C), dtype=jnp.float32)
    feature3 = jax.random.normal(k3, (B, T, C), dtype=jnp.float32)
    params = prepare_params(init_params(kp, C))

    out = jax.block_until_ready(encoder_forward(feature1, feature2, feature3, params))
    assert out.shape == (B, T, C), out.shape
    assert bool(jnp.all(jnp.isfinite(out)))
    print("KERNEL_OK")
</pallas_src>

<mosaic_0001>
module attributes {stable_mosaic.version = 11 : i64} {
  func.func @_cva_kernel(%arg0: i32, %arg1: i32, %arg2: memref<1x16x128xf32, #tpu.memory_space<vmem>>, %arg3: memref<1x16x128xf32, #tpu.memory_space<vmem>>, %arg4: memref<1x128x128xbf16, #tpu.memory_space<vmem>>, %arg5: memref<1x1x128xf32, #tpu.memory_space<vmem>>, %arg6: memref<1x128x256xbf16, #tpu.memory_space<vmem>>, %arg7: memref<1x1x256xf32, #tpu.memory_space<vmem>>, %arg8: memref<1x4x32x128xbf16, #tpu.memory_space<vmem>>, %arg9: memref<1x1x128xf32, #tpu.memory_space<vmem>>, %arg10: memref<1x16x128xf32, #tpu.memory_space<vmem>>) attributes {dimension_semantics = [#tpu.dimension_semantics<parallel>, #tpu.dimension_semantics<parallel>], iteration_bounds = array<i64: 3, 1>, scalar_prefetch = 0 : i64, scratch_operands = 0 : i64, tpu.core_type = #tpu.core_type<tc>, window_params = [{transform_indices = @transform_0, window_bounds = array<i64: 1, 16, 128>}, {transform_indices = @transform_1, window_bounds = array<i64: 1, 16, 128>}, {transform_indices = @transform_2, window_bounds = array<i64: 1, 128, 128>}, {transform_indices = @transform_3, window_bounds = array<i64: 1, 1, 128>}, {transform_indices = @transform_4, window_bounds = array<i64: 1, 128, 256>}, {transform_indices = @transform_5, window_bounds = array<i64: 1, 1, 256>}, {transform_indices = @transform_6, window_bounds = array<i64: 1, 4, 32, 128>}, {transform_indices = @transform_7, window_bounds = array<i64: 1, 1, 128>}, {transform_indices = @transform_8, window_bounds = array<i64: 1, 16, 128>}]} {
    %c0 = arith.constant 0 : index
    %c0_0 = arith.constant 0 : index
    %c0_1 = arith.constant 0 : index
    %0 = vector.load %arg2[%c0, %c0_0, %c0_1] : memref<1x16x128xf32, #tpu.memory_space<vmem>>, vector<1x16x128xf32>
    %1 = vector.shape_cast %0 : vector<1x16x128xf32> to vector<16x128xf32>
    %cst = arith.constant dense<0.000000e+00> : vector<16xf32>
    %2 = vector.multi_reduction <add>, %1, %cst [1] : vector<16x128xf32> to vector<16xf32>
    %3 = vector.shape_cast %2 : vector<16xf32> to vector<16x1xf32>
    %cst_2 = arith.constant 1.280000e+02 : f32
    %4 = vector.broadcast %cst_2 : f32 to vector<16x1xf32>
    %5 = arith.divf %3, %4 : vector<16x1xf32>
    %6 = vector.broadcast %5 : vector<16x1xf32> to vector<16x128xf32>
    %7 = arith.subf %1, %6 : vector<16x128xf32>
    %8 = arith.mulf %7, %7 : vector<16x128xf32>
    %cst_3 = arith.constant dense<0.000000e+00> : vector<16xf32>
    %9 = vector.multi_reduction <add>, %8, %cst_3 [1] : vector<16x128xf32> to vector<16xf32>
    %10 = vector.shape_cast %9 : vector<16xf32> to vector<16x1xf32>
    %cst_4 = arith.constant 1.280000e+02 : f32
    %11 = vector.broadcast %cst_4 : f32 to vector<16x1xf32>
    %12 = arith.divf %10, %11 : vector<16x1xf32>
    %cst_5 = arith.constant 9.99999974E-6 : f32
    %13 = vector.broadcast %cst_5 : f32 to vector<16x1xf32>
    %14 = arith.addf %12, %13 : vector<16x1xf32>
    %15 = math.rsqrt %14 : vector<16x1xf32>
    %16 = vector.broadcast %15 : vector<16x1xf32> to vector<16x128xf32>
    %17 = arith.mulf %7, %16 : vector<16x128xf32>
    %c0_6 = arith.constant 0 : index
    %c0_7 = arith.constant 0 : index
    %c0_8 = arith.constant 0 : index
    %18 = vector.load %arg3[%c0_6, %c0_7, %c0_8] : memref<1x16x128xf32, #tpu.memory_space<vmem>>, vector<1x16x128xf32>
    %19 = vector.shape_cast %18 : vector<1x16x128xf32> to vector<16x128xf32>
    %cst_9 = arith.constant dense<0.000000e+00> : vector<16xf32>
    %20 = vector.multi_reduction <add>, %19, %cst_9 [1] : vector<16x128xf32> to vector<16xf32>
    %21 = vector.shape_cast %20 : vector<16xf32> to vector<16x1xf32>
    %cst_10 = arith.constant 1.280000e+02 : f32
    %22 = vector.broadcast %cst_10 : f32 to vector<16x1xf32>
    %23 = arith.divf %21, %22 : vector<16x1xf32>
    %24 = vector.broadcast %23 : vector<16x1xf32> to vector<16x128xf32>
    %25 = arith.subf %19, %24 : vector<16x128xf32>
    %26 = arith.mulf %25, %25 : vector<16x128xf32>
    %cst_11 = arith.constant dense<0.000000e+00> : vector<16xf32>
    %27 = vector.multi_reduction <add>, %26, %cst_11 [1] : vector<16x128xf32> to vector<16xf32>
    %28 = vector.shape_cast %27 : vector<16xf32> to vector<16x1xf32>
    %cst_12 = arith.constant 1.280000e+02 : f32
    %29 = vector.broadcast %cst_12 : f32 to vector<16x1xf32>
    %30 = arith.divf %28, %29 : vector<16x1xf32>
    %cst_13 = arith.constant 9.99999974E-6 : f32
    %31 = vector.broadcast %cst_13 : f32 to vector<16x1xf32>
    %32 = arith.addf %30, %31 : vector<16x1xf32>
    %33 = math.rsqrt %32 : vector<16x1xf32>
    %34 = vector.broadcast %33 : vector<16x1xf32> to vector<16x128xf32>
    %35 = arith.mulf %25, %34 : vector<16x128xf32>
    %c0_14 = arith.constant 0 : index
    %c0_15 = arith.constant 0 : index
    %c0_16 = arith.constant 0 : index
    %36 = vector.load %arg4[%c0_14, %c0_15, %c0_16] : memref<1x128x128xbf16, #tpu.memory_space<vmem>>, vector<1x128x128xbf16>
    %37 = vector.shape_cast %36 : vector<1x128x128xbf16> to vector<128x128xbf16>
    %c0_17 = arith.constant 0 : index
    %c0_18 = arith.constant 0 : index
    %c0_19 = arith.constant 0 : index
    %38 = vector.load %arg5[%c0_17, %c0_18, %c0_19] : memref<1x1x128xf32, #tpu.memory_space<vmem>>, vector<1x1x128xf32>
    %39 = vector.shape_cast %38 : vector<1x1x128xf32> to vector<1x128xf32>
    %c0_20 = arith.constant 0 : index
    %c0_21 = arith.constant 0 : index
    %c0_22 = arith.constant 0 : index
    %40 = vector.load %arg6[%c0_20, %c0_21, %c0_22] : memref<1x128x256xbf16, #tpu.memory_space<vmem>>, vector<1x128x256xbf16>
    %41 = vector.shape_cast %40 : vector<1x128x256xbf16> to vector<128x256xbf16>
    %c0_23 = arith.constant 0 : index
    %c0_24 = arith.constant 0 : index
    %c0_25 = arith.constant 0 : index
    %42 = vector.load %arg7[%c0_23, %c0_24, %c0_25] : memref<1x1x256xf32, #tpu.memory_space<vmem>>, vector<1x1x256xf32>
    %43 = vector.shape_cast %42 : vector<1x1x256xf32> to vector<1x256xf32>
    %c0_26 = arith.constant 0 : index
    %c0_27 = arith.constant 0 : index
    %c0_28 = arith.constant 0 : index
    %c0_29 = arith.constant 0 : index
    %44 = vector.load %arg8[%c0_26, %c0_27, %c0_28, %c0_29] : memref<1x4x32x128xbf16, #tpu.memory_space<vmem>>, vector<1x4x32x128xbf16>
    %45 = vector.shape_cast %44 : vector<1x4x32x128xbf16> to vector<4x32x128xbf16>
    %c0_30 = arith.constant 0 : index
    %c0_31 = arith.constant 0 : index
    %c0_32 = arith.constant 0 : index
    %46 = vector.load %arg9[%c0_30, %c0_31, %c0_32] : memref<1x1x128xf32, #tpu.memory_space<vmem>>, vector<1x1x128xf32>
    %47 = vector.shape_cast %46 : vector<1x1x128xf32> to vector<1x128xf32>
    %48 = arith.truncf %17 : vector<16x128xf32> to vector<16x128xbf16>
    %cst_33 = arith.constant dense<0.000000e+00> : vector<16x128xf32>
    %49 = tpu.matmul %48, %37, %cst_33 {dimension_numbers = #tpu.dot_dimension_numbers<[1], [0], [0], [1], [0, 0, 1, 1], [], []>} : vector<16x128xbf16>, vector<128x128xbf16>, vector<16x128xf32> -> vector<16x128xf32>
    %50 = vector.broadcast %39 : vector<1x128xf32> to vector<16x128xf32>
    %51 = arith.addf %49, %50 : vector<16x128xf32>
    %52 = arith.truncf %35 : vector<16x128xf32> to vector<16x128xbf16>
    %cst_34 = arith.constant dense<0.000000e+00> : vector<16x256xf32>
    %53 = tpu.matmul %52, %41, %cst_34 {dimension_numbers = #tpu.dot_dimension_numbers<[1], [0], [0], [1], [0, 0, 1, 1], [], []>} : vector<16x128xbf16>, vector<128x256xbf16>, vector<16x256xf32> -> vector<16x256xf32>
    %54 = vector.broadcast %43 : vector<1x256xf32> to vector<16x256xf32>
    %55 = arith.addf %53, %54 : vector<16x256xf32>
    %56 = arith.truncf %51 : vector<16x128xf32> to vector<16x128xbf16>
    %57 = arith.truncf %55 : vector<16x256xf32> to vector<16x256xbf16>
    %cst_35 = arith.constant 0.000000e+00 : f32
    %58 = vector.broadcast %cst_35 : f32 to vector<16x128xf32>
    %59 = vector.extract_strided_slice %56 {offsets = [0, 0], sizes = [16, 32], strides = [1, 1]} : vector<16x128xbf16> to vector<16x32xbf16>
    %60 = vector.shape_cast %59 : vector<16x32xbf16> to vector<2x8x32xbf16>
    %61 = vector.extract_strided_slice %57 {offsets = [0, 0], sizes = [16, 32], strides = [1, 1]} : vector<16x256xbf16> to vector<16x32xbf16>
    %62 = vector.shape_cast %61 : vector<16x32xbf16> to vector<2x8x32xbf16>
    %63 = vector.extract_strided_slice %57 {offsets = [0, 128], sizes = [16, 32], strides = [1, 1]} : vector<16x256xbf16> to vector<16x32xbf16>
    %64 = vector.shape_cast %63 : vector<16x32xbf16> to vector<2x8x32xbf16>
    "tpu.trace_start"() <{level = 10 : i32, message = "bqd,bkd->bqk"}> : () -> ()
    %cst_36 = arith.constant dense<0.000000e+00> : vector<2x8x8xf32>
    %65 = tpu.matmul %60, %62, %cst_36 {dimension_numbers = #tpu.dot_dimension_numbers<[2], [2], [1], [1], [0, 0, 0, 1, 1, 1], [0], [0]>} : vector<2x8x32xbf16>, vector<2x8x32xbf16>, vector<2x8x8xf32> -> vector<2x8x8xf32>
    "tpu.trace_stop"() : () -> ()
    %cst_37 = arith.constant 0.176776692 : f32
    %66 = vector.broadcast %cst_37 : f32 to vector<2x8x8xf32>
    %67 = arith.mulf %65, %66 : vector<2x8x8xf32>
    %cst_38 = arith.constant dense<0xFF800000> : vector<2x8xf32>
    %68 = vector.multi_reduction <maximumf>, %67, %cst_38 [2] : vector<2x8x8xf32> to vector<2x8xf32>
    %69 = vector.shape_cast %68 : vector<2x8xf32> to vector<2x8x1xf32>
    %70 = vector.broadcast %69 : vector<2x8x1xf32> to vector<2x8x8xf32>
    %71 = arith.subf %67, %70 : vector<2x8x8xf32>
    %72 = math.exp %71 : vector<2x8x8xf32>
    %cst_39 = arith.constant dense<0.000000e+00> : vector<2x8xf32>
    %73 = vector.multi_reduction <add>, %72, %cst_39 [2] : vector<2x8x8xf32> to vector<2x8xf32>
    %74 = vector.shape_cast %73 : vector<2x8xf32> to vector<2x8x1xf32>
    %75 = vector.broadcast %74 : vector<2x8x1xf32> to vector<2x8x8xf32>
    %76 = arith.divf %72, %75 : vector<2x8x8xf32>
    %77 = arith.truncf %76 : vector<2x8x8xf32> to vector<2x8x8xbf16>
    "tpu.trace_start"() <{level = 10 : i32, message = "bqk,bkd->bqd"}> : () -> ()
    %cst_40 = arith.constant dense<0.000000e+00> : vector<2x8x32xf32>
    %78 = tpu.matmul %77, %64, %cst_40 {dimension_numbers = #tpu.dot_dimension_numbers<[2], [1], [1], [2], [0, 0, 0, 1, 1, 2], [0], [0]>} : vector<2x8x8xbf16>, vector<2x8x32xbf16>, vector<2x8x32xf32> -> vector<2x8x32xf32>
    "tpu.trace_stop"() : () -> ()
    %79 = vector.shape_cast %78 : vector<2x8x32xf32> to vector<16x32xf32>
    %80 = arith.truncf %79 : vector<16x32xf32> to vector<16x32xbf16>
    %81 = vector.extract_strided_slice %45 {offsets = [0, 0, 0], sizes = [1, 32, 128], strides = [1, 1, 1]} : vector<4x32x128xbf16> to vector<1x32x128xbf16>
    %82 = vector.shape_cast %81 : vector<1x32x128xbf16> to vector<32x128xbf16>
    %cst_41 = arith.constant dense<0.000000e+00> : vector<16x128xf32>
    %83 = tpu.matmul %80, %82, %cst_41 {dimension_numbers = #tpu.dot_dimension_numbers<[1], [0], [0], [1], [0, 0, 1, 1], [], []>} : vector<16x32xbf16>, vector<32x128xbf16>, vector<16x128xf32> -> vector<16x128xf32>
    %84 = arith.addf %58, %83 : vector<16x128xf32>
    %85 = vector.extract_strided_slice %56 {offsets = [0, 32], sizes = [16, 32], strides = [1, 1]} : vector<16x128xbf16> to vector<16x32xbf16>
    %86 = vector.shape_cast %85 : vector<16x32xbf16> to vector<2x8x32xbf16>
    %87 = vector.extract_strided_slice %57 {offsets = [0, 32], sizes = [16, 32], strides = [1, 1]} : vector<16x256xbf16> to vector<16x32xbf16>
    %88 = vector.shape_cast %87 : vector<16x32xbf16> to vector<2x8x32xbf16>
    %89 = vector.extract_strided_slice %57 {offsets = [0, 160], sizes = [16, 32], strides = [1, 1]} : vector<16x256xbf16> to vector<16x32xbf16>
    %90 = vector.shape_cast %89 : vector<16x32xbf16> to vector<2x8x32xbf16>
    "tpu.trace_start"() <{level = 10 : i32, message = "bqd,bkd->bqk"}> : () -> ()
    %cst_42 = arith.constant dense<0.000000e+00> : vector<2x8x8xf32>
    %91 = tpu.matmul %86, %88, %cst_42 {dimension_numbers = #tpu.dot_dimension_numbers<[2], [2], [1], [1], [0, 0, 0, 1, 1, 1], [0], [0]>} : vector<2x8x32xbf16>, vector<2x8x32xbf16>, vector<2x8x8xf32> -> vector<2x8x8xf32>
    "tpu.trace_stop"() : () -> ()
    %cst_43 = arith.constant 0.176776692 : f32
    %92 = vector.broadcast %cst_43 : f32 to vector<2x8x8xf32>
    %93 = arith.mulf %91, %92 : vector<2x8x8xf32>
    %cst_44 = arith.constant dense<0xFF800000> : vector<2x8xf32>
    %94 = vector.multi_reduction <maximumf>, %93, %cst_44 [2] : vector<2x8x8xf32> to vector<2x8xf32>
    %95 = vector.shape_cast %94 : vector<2x8xf32> to vector<2x8x1xf32>
    %96 = vector.broadcast %95 : vector<2x8x1xf32> to vector<2x8x8xf32>
    %97 = arith.subf %93, %96 : vector<2x8x8xf32>
    %98 = math.exp %97 : vector<2x8x8xf32>
    %cst_45 = arith.constant dense<0.000000e+00> : vector<2x8xf32>
    %99 = vector.multi_reduction <add>, %98, %cst_45 [2] : vector<2x8x8xf32> to vector<2x8xf32>
    %100 = vector.shape_cast %99 : vector<2x8xf32> to vector<2x8x1xf32>
    %101 = vector.broadcast %100 : vector<2x8x1xf32> to vector<2x8x8xf32>
    %102 = arith.divf %98, %101 : vector<2x8x8xf32>
    %103 = arith.truncf %102 : vector<2x8x8xf32> to vector<2x8x8xbf16>
    "tpu.trace_start"() <{level = 10 : i32, message = "bqk,bkd->bqd"}> : () -> ()
    %cst_46 = arith.constant dense<0.000000e+00> : vector<2x8x32xf32>
    %104 = tpu.matmul %103, %90, %cst_46 {dimension_numbers = #tpu.dot_dimension_numbers<[2], [1], [1], [2], [0, 0, 0, 1, 1, 2], [0], [0]>} : vector<2x8x8xbf16>, vector<2x8x32xbf16>, vector<2x8x32xf32> -> vector<2x8x32xf32>
    "tpu.trace_stop"() : () -> ()
    %105 = vector.shape_cast %104 : vector<2x8x32xf32> to vector<16x32xf32>
    %106 = arith.truncf %105 : vector<16x32xf32> to vector<16x32xbf16>
    %107 = vector.extract_strided_slice %45 {offsets = [1, 0, 0], sizes = [1, 32, 128], strides = [1, 1, 1]} : vector<4x32x128xbf16> to vector<1x32x128xbf16>
    %108 = vector.shape_cast %107 : vector<1x32x128xbf16> to vector<32x128xbf16>
    %cst_47 = arith.constant dense<0.000000e+00> : vector<16x128xf32>
    %109 = tpu.matmul %106, %108, %cst_47 {dimension_numbers = #tpu.dot_dimension_numbers<[1], [0], [0], [1], [0, 0, 1, 1], [], []>} : vector<16x32xbf16>, vector<32x128xbf16>, vector<16x128xf32> -> vector<16x128xf32>
    %110 = arith.addf %84, %109 : vector<16x128xf32>
    %111 = vector.extract_strided_slice %56 {offsets = [0, 64], sizes = [16, 32], strides = [1, 1]} : vector<16x128xbf16> to vector<16x32xbf16>
    %112 = vector.shape_cast %111 : vector<16x32xbf16> to vector<2x8x32xbf16>
    %113 = vector.extract_strided_slice %57 {offsets = [0, 64], sizes = [16, 32], strides = [1, 1]} : vector<16x256xbf16> to vector<16x32xbf16>
    %114 = vector.shape_cast %113 : vector<16x32xbf16> to vector<2x8x32xbf16>
    %115 = vector.extract_strided_slice %57 {offsets = [0, 192], sizes = [16, 32], strides = [1, 1]} : vector<16x256xbf16> to vector<16x32xbf16>
    %116 = vector.shape_cast %115 : vector<16x32xbf16> to vector<2x8x32xbf16>
    "tpu.trace_start"() <{level = 10 : i32, message = "bqd,bkd->bqk"}> : () -> ()
    %cst_48 = arith.constant dense<0.000000e+00> : vector<2x8x8xf32>
    %117 = tpu.matmul %112, %114, %cst_48 {dimension_numbers = #tpu.dot_dimension_numbers<[2], [2], [1], [1], [0, 0, 0, 1, 1, 1], [0], [0]>} : vector<2x8x32xbf16>, vector<2x8x32xbf16>, vector<2x8x8xf32> -> vector<2x8x8xf32>
    "tpu.trace_stop"() : () -> ()
    %cst_49 = arith.constant 0.176776692 : f32
    %118 = vector.broadcast %cst_49 : f32 to vector<2x8x8xf32>
    %119 = arith.mulf %117, %118 : vector<2x8x8xf32>
    %cst_50 = arith.constant dense<0xFF800000> : vector<2x8xf32>
    %120 = vector.multi_reduction <maximumf>, %119, %cst_50 [2] : vector<2x8x8xf32> to vector<2x8xf32>
    %121 = vector.shape_cast %120 : vector<2x8xf32> to vector<2x8x1xf32>
    %122 = vector.broadcast %121 : vector<2x8x1xf32> to vector<2x8x8xf32>
    %123 = arith.subf %119, %122 : vector<2x8x8xf32>
    %124 = math.exp %123 : vector<2x8x8xf32>
    %cst_51 = arith.constant dense<0.000000e+00> : vector<2x8xf32>
    %125 = vector.multi_reduction <add>, %124, %cst_51 [2] : vector<2x8x8xf32> to vector<2x8xf32>
    %126 = vector.shape_cast %125 : vector<2x8xf32> to vector<2x8x1xf32>
    %127 = vector.broadcast %126 : vector<2x8x1xf32> to vector<2x8x8xf32>
    %128 = arith.divf %124, %127 : vector<2x8x8xf32>
    %129 = arith.truncf %128 : vector<2x8x8xf32> to vector<2x8x8xbf16>
    "tpu.trace_start"() <{level = 10 : i32, message = "bqk,bkd->bqd"}> : () -> ()
    %cst_52 = arith.constant dense<0.000000e+00> : vector<2x8x32xf32>
    %130 = tpu.matmul %129, %116, %cst_52 {dimension_numbers = #tpu.dot_dimension_numbers<[2], [1], [1], [2], [0, 0, 0, 1, 1, 2], [0], [0]>} : vector<2x8x8xbf16>, vector<2x8x32xbf16>, vector<2x8x32xf32> -> vector<2x8x32xf32>
    "tpu.trace_stop"() : () -> ()
    %131 = vector.shape_cast %130 : vector<2x8x32xf32> to vector<16x32xf32>
    %132 = arith.truncf %131 : vector<16x32xf32> to vector<16x32xbf16>
    %133 = vector.extract_strided_slice %45 {offsets = [2, 0, 0], sizes = [1, 32, 128], strides = [1, 1, 1]} : vector<4x32x128xbf16> to vector<1x32x128xbf16>
    %134 = vector.shape_cast %133 : vector<1x32x128xbf16> to vector<32x128xbf16>
    %cst_53 = arith.constant dense<0.000000e+00> : vector<16x128xf32>
    %135 = tpu.matmul %132, %134, %cst_53 {dimension_numbers = #tpu.dot_dimension_numbers<[1], [0], [0], [1], [0, 0, 1, 1], [], []>} : vector<16x32xbf16>, vector<32x128xbf16>, vector<16x128xf32> -> vector<16x128xf32>
    %136 = arith.addf %110, %135 : vector<16x128xf32>
    %137 = vector.extract_strided_slice %56 {offsets = [0, 96], sizes = [16, 32], strides = [1, 1]} : vector<16x128xbf16> to vector<16x32xbf16>
    %138 = vector.shape_cast %137 : vector<16x32xbf16> to vector<2x8x32xbf16>
    %139 = vector.extract_strided_slice %57 {offsets = [0, 96], sizes = [16, 32], strides = [1, 1]} : vector<16x256xbf16> to vector<16x32xbf16>
    %140 = vector.shape_cast %139 : vector<16x32xbf16> to vector<2x8x32xbf16>
    %141 = vector.extract_strided_slice %57 {offsets = [0, 224], sizes = [16, 32], strides = [1, 1]} : vector<16x256xbf16> to vector<16x32xbf16>
    %142 = vector.shape_cast %141 : vector<16x32xbf16> to vector<2x8x32xbf16>
    "tpu.trace_start"() <{level = 10 : i32, message = "bqd,bkd->bqk"}> : () -> ()
    %cst_54 = arith.constant dense<0.000000e+00> : vector<2x8x8xf32>
    %143 = tpu.matmul %138, %140, %cst_54 {dimension_numbers = #tpu.dot_dimension_numbers<[2], [2], [1], [1], [0, 0, 0, 1, 1, 1], [0], [0]>} : vector<2x8x32xbf16>, vector<2x8x32xbf16>, vector<2x8x8xf32> -> vector<2x8x8xf32>
    "tpu.trace_stop"() : () -> ()
    %cst_55 = arith.constant 0.176776692 : f32
    %144 = vector.broadcast %cst_55 : f32 to vector<2x8x8xf32>
    %145 = arith.mulf %143, %144 : vector<2x8x8xf32>
    %cst_56 = arith.constant dense<0xFF800000> : vector<2x8xf32>
    %146 = vector.multi_reduction <maximumf>, %145, %cst_56 [2] : vector<2x8x8xf32> to vector<2x8xf32>
    %147 = vector.shape_cast %146 : vector<2x8xf32> to vector<2x8x1xf32>
    %148 = vector.broadcast %147 : vector<2x8x1xf32> to vector<2x8x8xf32>
    %149 = arith.subf %145, %148 : vector<2x8x8xf32>
    %150 = math.exp %149 : vector<2x8x8xf32>
    %cst_57 = arith.constant dense<0.000000e+00> : vector<2x8xf32>
    %151 = vector.multi_reduction <add>, %150, %cst_57 [2] : vector<2x8x8xf32> to vector<2x8xf32>
    %152 = vector.shape_cast %151 : vector<2x8xf32> to vector<2x8x1xf32>
    %153 = vector.broadcast %152 : vector<2x8x1xf32> to vector<2x8x8xf32>
    %154 = arith.divf %150, %153 : vector<2x8x8xf32>
    %155 = arith.truncf %154 : vector<2x8x8xf32> to vector<2x8x8xbf16>
    "tpu.trace_start"() <{level = 10 : i32, message = "bqk,bkd->bqd"}> : () -> ()
    %cst_58 = arith.constant dense<0.000000e+00> : vector<2x8x32xf32>
    %156 = tpu.matmul %155, %142, %cst_58 {dimension_numbers = #tpu.dot_dimension_numbers<[2], [1], [1], [2], [0, 0, 0, 1, 1, 2], [0], [0]>} : vector<2x8x8xbf16>, vector<2x8x32xbf16>, vector<2x8x32xf32> -> vector<2x8x32xf32>
    "tpu.trace_stop"() : () -> ()
    %157 = vector.shape_cast %156 : vector<2x8x32xf32> to vector<16x32xf32>
    %158 = arith.truncf %157 : vector<16x32xf32> to vector<16x32xbf16>
    %159 = vector.extract_strided_slice %45 {offsets = [3, 0, 0], sizes = [1, 32, 128], strides = [1, 1, 1]} : vector<4x32x128xbf16> to vector<1x32x128xbf16>
    %160 = vector.shape_cast %159 : vector<1x32x128xbf16> to vector<32x128xbf16>
    %cst_59 = arith.constant dense<0.000000e+00> : vector<16x128xf32>
    %161 = tpu.matmul %158, %160, %cst_59 {dimension_numbers = #tpu.dot_dimension_numbers<[1], [0], [0], [1], [0, 0, 1, 1], [], []>} : vector<16x32xbf16>, vector<32x128xbf16>, vector<16x128xf32> -> vector<16x128xf32>
    %162 = arith.addf %136, %161 : vector<16x128xf32>
    %163 = vector.broadcast %47 : vector<1x128xf32> to vector<16x128xf32>
    %164 = arith.addf %162, %163 : vector<16x128xf32>
    %165 = arith.addf %164, %17 : vector<16x128xf32>
    %c0_60 = arith.constant 0 : index
    %c0_61 = arith.constant 0 : index
    %c0_62 = arith.constant 0 : index
    %166 = vector.load %arg10[%c0_60, %c0_61, %c0_62] : memref<1x16x128xf32, #tpu.memory_space<vmem>>, vector<1x16x128xf32>
    %167 = vector.shape_cast %166 : vector<1x16x128xf32> to vector<16x128xf32>
    %168 = vector.shape_cast %165 : vector<16x128xf32> to vector<1x16x128xf32>
    tpu.vector_store %arg10[%c0_60, %c0_61, %c0_62], %168 {strides = array<i32>} : memref<1x16x128xf32, #tpu.memory_space<vmem>>, vector<1x16x128xf32>,
    return
  }
  func.func @transform_0(%arg0: i32, %arg1: i32) -> (i32, i32, i32) {
    %c0_i32 = arith.constant 0 : i32
    %c0_i32_0 = arith.constant 0 : i32
    return %arg0, %arg1, %c0_i32 : i32, i32, i32
  }
  func.func @transform_1(%arg0: i32, %arg1: i32) -> (i32, i32, i32) {
    %c1_i32 = arith.constant 1 : i32
    %0 = arith.addi %arg0, %c1_i32 : i32
    %c3_i32 = arith.constant 3 : i32
    %c0_i32 = arith.constant 0 : i32
    %1 = arith.cmpi eq, %c3_i32, %c0_i32 : i32
    %c1_i32_0 = arith.constant 1 : i32
    %2 = arith.select %1, %c1_i32_0, %c3_i32 : i32
    %3 = arith.remsi %0, %2 : i32
    %c0_i32_1 = arith.constant 0 : i32
    %4 = arith.cmpi ne, %3, %c0_i32_1 : i32
    %c0_i32_2 = arith.constant 0 : i32
    %5 = arith.cmpi slt, %3, %c0_i32_2 : i32
    %c0_i32_3 = arith.constant 0 : i32
    %6 = arith.cmpi slt, %2, %c0_i32_3 : i32
    %7 = arith.xori %5, %6 : i1
    %8 = arith.andi %7, %4 : i1
    %9 = arith.addi %3, %2 : i32
    %10 = arith.select %8, %9, %3 : i32
    %c0_i32_4 = arith.constant 0 : i32
    %c0_i32_5 = arith.constant 0 : i32
    return %10, %arg1, %c0_i32_4 : i32, i32, i32
  }
  func.func @transform_2(%arg0: i32, %arg1: i32) -> (i32, i32, i32) {
    %c0_i32 = arith.constant 0 : i32
    %c0_i32_0 = arith.constant 0 : i32
    %c0_i32_1 = arith.constant 0 : i32
    return %arg0, %c0_i32, %c0_i32_0 : i32, i32, i32
  }
  func.func @transform_3(%arg0: i32, %arg1: i32) -> (i32, i32, i32) {
    %c0_i32 = arith.constant 0 : i32
    %c0_i32_0 = arith.constant 0 : i32
    %c0_i32_1 = arith.constant 0 : i32
    return %arg0, %c0_i32, %c0_i32_0 : i32, i32, i32
  }
  func.func @transform_4(%arg0: i32, %arg1: i32) -> (i32, i32, i32) {
    %c0_i32 = arith.constant 0 : i32
    %c0_i32_0 = arith.constant 0 : i32
    %c0_i32_1 = arith.constant 0 : i32
    return %arg0, %c0_i32, %c0_i32_0 : i32, i32, i32
  }
  func.func @transform_5(%arg0: i32, %arg1: i32) -> (i32, i32, i32) {
    %c0_i32 = arith.constant 0 : i32
    %c0_i32_0 = arith.constant 0 : i32
    %c0_i32_1 = arith.constant 0 : i32
    return %arg0, %c0_i32, %c0_i32_0 : i32, i32, i32
  }
  func.func @transform_6(%arg0: i32, %arg1: i32) -> (i32, i32, i32, i32) {
    %c0_i32 = arith.constant 0 : i32
    %c0_i32_0 = arith.constant 0 : i32
    %c0_i32_1 = arith.constant 0 : i32
    %c0_i32_2 = arith.constant 0 : i32
    return %arg0, %c0_i32, %c0_i32_0, %c0_i32_1 : i32, i32, i32, i32
  }
  func.func @transform_7(%arg0: i32, %arg1: i32) -> (i32, i32, i32) {
    %c0_i32 = arith.constant 0 : i32
    %c0_i32_0 = arith.constant 0 : i32
    %c0_i32_1 = arith.constant 0 : i32
    return %arg0, %c0_i32, %c0_i32_0 : i32, i32, i32
  }
  func.func @transform_8(%arg0: i32, %arg1: i32) -> (i32, i32, i32) {
    %c0_i32 = arith.constant 0 : i32
    %c0_i32_0 = arith.constant 0 : i32
    return %arg0, %arg1, %c0_i32 : i32, i32, i32
  }
}

module attributes {stable_mosaic.version = 11 : i64} {
  func.func @_aggregate_kernel(%arg0: i32, %arg1: memref<3x16x128xf32, #tpu.memory_space<vmem>>, %arg2: memref<3x3x128x512xbf16, #tpu.memory_space<vmem>>, %arg3: memref<3x1x512xf32, #tpu.memory_space<vmem>>, %arg4: memref<3x1x512xf32, #tpu.memory_space<vmem>>, %arg5: memref<3x1x512xf32, #tpu.memory_space<vmem>>, %arg6: memref<3x128x512xbf16, #tpu.memory_space<vmem>>, %arg7: memref<512x512xbf16, #tpu.memory_space<vmem>>, %arg8: memref<1x512xf32, #tpu.memory_space<vmem>>, %arg9: memref<512x1024xbf16, #tpu.memory_space<vmem>>, %arg10: memref<1x1024xf32, #tpu.memory_space<vmem>>, %arg11: memref<4x128x512xbf16, #tpu.memory_space<vmem>>, %arg12: memref<1x512xf32, #tpu.memory_space<vmem>>, %arg13: memref<3x4x512x128xbf16, #tpu.memory_space<vmem>>, %arg14: memref<1x128xf32, #tpu.memory_space<vmem>>, %arg15: memref<1x128xf32, #tpu.memory_space<vmem>>, %arg16: memref<16x128xf32, #tpu.memory_space<vmem>>) attributes {dimension_semantics = [#tpu.dimension_semantics<parallel>], iteration_bounds = array<i64: 1>, scalar_prefetch = 0 : i64, scratch_operands = 0 : i64, tpu.core_type = #tpu.core_type<tc>, window_params = [{transform_indices = @transform_0, window_bounds = array<i64: 3, 16, 128>}, {pipeline_mode = #tpu.pipeline_mode<synchronous>, transform_indices = @transform_1, window_bounds = array<i64: 3, 3, 128, 512>}, {pipeline_mode = #tpu.pipeline_mode<synchronous>, transform_indices = @transform_2, window_bounds = array<i64: 3, 1, 512>}, {pipeline_mode = #tpu.pipeline_mode<synchronous>, transform_indices = @transform_3, window_bounds = array<i64: 3, 1, 512>}, {pipeline_mode = #tpu.pipeline_mode<synchronous>, transform_indices = @transform_4, window_bounds = array<i64: 3, 1, 512>}, {pipeline_mode = #tpu.pipeline_mode<synchronous>, transform_indices = @transform_5, window_bounds = array<i64: 3, 128, 512>}, {pipeline_mode = #tpu.pipeline_mode<synchronous>, transform_indices = @transform_6, window_bounds = array<i64: 512, 512>}, {pipeline_mode = #tpu.pipeline_mode<synchronous>, transform_indices = @transform_7, window_bounds = array<i64: 1, 512>}, {pipeline_mode = #tpu.pipeline_mode<synchronous>, transform_indices = @transform_8, window_bounds = array<i64: 512, 1024>}, {pipeline_mode = #tpu.pipeline_mode<synchronous>, transform_indices = @transform_9, window_bounds = array<i64: 1, 1024>}, {pipeline_mode = #tpu.pipeline_mode<synchronous>, transform_indices = @transform_10, window_bounds = array<i64: 4, 128, 512>}, {pipeline_mode = #tpu.pipeline_mode<synchronous>, transform_indices = @transform_11, window_bounds = array<i64: 1, 512>}, {pipeline_mode = #tpu.pipeline_mode<synchronous>, transform_indices = @transform_12, window_bounds = array<i64: 3, 4, 512, 128>}, {pipeline_mode = #tpu.pipeline_mode<synchronous>, transform_indices = @transform_13, window_bounds = array<i64: 1, 128>}, {pipeline_mode = #tpu.pipeline_mode<synchronous>, transform_indices = @transform_14, window_bounds = array<i64: 1, 128>}, {transform_indices = @transform_15, window_bounds = array<i64: 16, 128>}]} {
    %0 = tpu.iota {dimensions = array<i32: 0>} : vector<16x1xi32>
    %c8_i32 = arith.constant 8 : i32
    %c0_i32 = arith.constant 0 : i32
    %1 = arith.cmpi eq, %c8_i32, %c0_i32 : i32
    %c1_i32 = arith.constant 1 : i32
    %2 = arith.select %1, %c1_i32, %c8_i32 : i32
    %3 = vector.broadcast %2 : i32 to vector<16x1xi32>
    %4 = arith.remsi %0, %3 : vector<16x1xi32>
    %c0_i32_0 = arith.constant 0 : i32
    %5 = vector.broadcast %c0_i32_0 : i32 to vector<16x1xi32>
    %6 = arith.cmpi ne, %4, %5 : vector<16x1xi32>
    %c0_i32_1 = arith.constant 0 : i32
    %7 = vector.broadcast %c0_i32_1 : i32 to vector<16x1xi32>
    %8 = arith.cmpi slt, %4, %7 : vector<16x1xi32>
    %c0_i32_2 = arith.constant 0 : i32
    %9 = arith.cmpi slt, %2, %c0_i32_2 : i32
    %10 = vector.broadcast %9 : i1 to vector<16x1xi1>
    %11 = vector.broadcast %10 : vector<16x1xi1> to vector<16x1xi1>
    %12 = arith.xori %8, %11 : vector<16x1xi1>
    %13 = arith.andi %12, %6 : vector<16x1xi1>
    %14 = vector.broadcast %2 : i32 to vector<16x1xi32>
    %15 = arith.addi %4, %14 : vector<16x1xi32>
    %16 = arith.select %13, %15, %4 : vector<16x1xi1>, vector<16x1xi32>
    %c0 = arith.constant 0 : index
    %c0_3 = arith.constant 0 : index
    %c0_4 = arith.constant 0 : index
    %17 = vector.load %arg1[%c0, %c0_3, %c0_4] : memref<3x16x128xf32, #tpu.memory_space<vmem>>, vector<1x16x128xf32>
    %18 = vector.shape_cast %17 : vector<1x16x128xf32> to vector<16x128xf32>
    %c1 = arith.constant 1 : index
    %c0_5 = arith.constant 0 : index
    %c0_6 = arith.constant 0 : index
    %19 = vector.load %arg1[%c1, %c0_5, %c0_6] : memref<3x16x128xf32, #tpu.memory_space<vmem>>, vector<1x16x128xf32>
    %20 = vector.shape_cast %19 : vector<1x16x128xf32> to vector<16x128xf32>
    %c2 = arith.constant 2 : index
    %c0_7 = arith.constant 0 : index
    %c0_8 = arith.constant 0 : index
    %21 = vector.load %arg1[%c2, %c0_7, %c0_8] : memref<3x16x128xf32, #tpu.memory_space<vmem>>, vector<1x16x128xf32>
    %22 = vector.shape_cast %21 : vector<1x16x128xf32> to vector<16x128xf32>
    %23 = arith.addf %18, %20 : vector<16x128xf32>
    %24 = arith.addf %23, %22 : vector<16x128xf32>
    %cst = arith.constant 0.333333343 : f32
    %25 = vector.broadcast %cst : f32 to vector<16x128xf32>
    %26 = arith.mulf %24, %25 : vector<16x128xf32>
    %27 = arith.truncf %18 : vector<16x128xf32> to vector<16x128xbf16>
    %c1_i32_9 = arith.constant 1 : i32
    %28 = tpu.dynamic_rotate %18 by %c1_i32_9 dim 0 : vector<16x128xf32>, i32 -> vector<16x128xf32>
    %c1_i32_10 = arith.constant 1 : i32
    %29 = vector.broadcast %c1_i32_10 : i32 to vector<16x1xi32>
    %30 = arith.cmpi sge, %16, %29 : vector<16x1xi32>
    %cst_11 = arith.constant 0.000000e+00 : f32
    %31 = vector.shape_cast %30 : vector<16x1xi1> to vector<16x1xi1>
    %32 = vector.broadcast %31 : vector<16x1xi1> to vector<16x128xi1>
    %33 = vector.broadcast %cst_11 : f32 to vector<16x128xf32>
    %34 = arith.select %32, %28, %33 : vector<16x128xi1>, vector<16x128xf32>
    %35 = arith.truncf %34 : vector<16x128xf32> to vector<16x128xbf16>
    %c15_i32 = arith.constant 15 : i32
    %36 = tpu.dynamic_rotate %18 by %c15_i32 dim 0 : vector<16x128xf32>, i32 -> vector<16x128xf32>
    %c7_i32 = arith.constant 7 : i32
    %37 = vector.broadcast %c7_i32 : i32 to vector<16x1xi32>
    %38 = arith.cmpi slt, %16, %37 : vector<16x1xi32>
    %cst_12 = arith.constant 0.000000e+00 : f32
    %39 = vector.shape_cast %38 : vector<16x1xi1> to vector<16x1xi1>
    %40 = vector.broadcast %39 : vector<16x1xi1> to vector<16x128xi1>
    %41 = vector.broadcast %cst_12 : f32 to vector<16x128xf32>
    %42 = arith.select %40, %36, %41 : vector<16x128xi1>, vector<16x128xf32>
    %43 = arith.truncf %42 : vector<16x128xf32> to vector<16x128xbf16>
    %c0_13 = arith.constant 0 : index
    %c0_14 = arith.constant 0 : index
    %c0_15 = arith.constant 0 : index
    %c0_16 = arith.constant 0 : index
    %44 = vector.load %arg2[%c0_13, %c0_14, %c0_15, %c0_16] : memref<3x3x128x512xbf16, #tpu.memory_space<vmem>>, vector<1x1x128x512xbf16>
    %45 = vector.shape_cast %44 : vector<1x1x128x512xbf16> to vector<128x512xbf16>
    %cst_17 = arith.constant dense<0.000000e+00> : vector<16x512xf32>
    %46 = tpu.matmul %35, %45, %cst_17 {dimension_numbers = #tpu.dot_dimension_numbers<[1], [0], [0], [1], [0, 0, 1, 1], [], []>} : vector<16x128xbf16>, vector<128x512xbf16>, vector<16x512xf32> -> vector<16x512xf32>
    %c0_18 = arith.constant 0 : index
    %c1_19 = arith.constant 1 : index
    %c0_20 = arith.constant 0 : index
    %c0_21 = arith.constant 0 : index
    %47 = vector.load %arg2[%c0_18, %c1_19, %c0_20, %c0_21] : memref<3x3x128x512xbf16, #tpu.memory_space<vmem>>, vector<1x1x128x512xbf16>
    %48 = vector.shape_cast %47 : vector<1x1x128x512xbf16> to vector<128x512xbf16>
    %cst_22 = arith.constant dense<0.000000e+00> : vector<16x512xf32>
    %49 = tpu.matmul %27, %48, %cst_22 {dimension_numbers = #tpu.dot_dimension_numbers<[1], [0], [0], [1], [0, 0, 1, 1], [], []>} : vector<16x128xbf16>, vector<128x512xbf16>, vector<16x512xf32> -> vector<16x512xf32>
    %50 = arith.addf %46, %49 : vector<16x512xf32>
    %c0_23 = arith.constant 0 : index
    %c2_24 = arith.constant 2 : index
    %c0_25 = arith.constant 0 : index
    %c0_26 = arith.constant 0 : index
    %51 = vector.load %arg2[%c0_23, %c2_24, %c0_25, %c0_26] : memref<3x3x128x512xbf16, #tpu.memory_space<vmem>>, vector<1x1x128x512xbf16>
    %52 = vector.shape_cast %51 : vector<1x1x128x512xbf16> to vector<128x512xbf16>
    %cst_27 = arith.constant dense<0.000000e+00> : vector<16x512xf32>
    %53 = tpu.matmul %43, %52, %cst_27 {dimension_numbers = #tpu.dot_dimension_numbers<[1], [0], [0], [1], [0, 0, 1, 1], [], []>} : vector<16x128xbf16>, vector<128x512xbf16>, vector<16x512xf32> -> vector<16x512xf32>
    %54 = arith.addf %50, %53 : vector<16x512xf32>
    %c0_28 = arith.constant 0 : index
    %c0_29 = arith.constant 0 : index
    %c0_30 = arith.constant 0 : index
    %55 = vector.load %arg3[%c0_28, %c0_29, %c0_30] : memref<3x1x512xf32, #tpu.memory_space<vmem>>, vector<1x1x512xf32>
    %56 = vector.shape_cast %55 : vector<1x1x512xf32> to vector<1x512xf32>
    %57 = vector.broadcast %56 : vector<1x512xf32> to vector<16x512xf32>
    %58 = arith.addf %54, %57 : vector<16x512xf32>
    %cst_31 = arith.constant 0.000000e+00 : f32
    %59 = vector.broadcast %cst_31 : f32 to vector<16x512xf32>
    %60 = arith.cmpf oge, %58, %59 : vector<16x512xf32>
    %cst_32 = arith.constant 5.000000e-02 : f32
    %61 = vector.broadcast %cst_32 : f32 to vector<16x512xf32>
    %62 = arith.mulf %61, %58 : vector<16x512xf32>
    %63 = arith.select %60, %58, %62 : vector<16x512xi1>, vector<16x512xf32>
    %c0_33 = arith.constant 0 : index
    %c0_34 = arith.constant 0 : index
    %c0_35 = arith.constant 0 : index
    %64 = vector.load %arg4[%c0_33, %c0_34, %c0_35] : memref<3x1x512xf32, #tpu.memory_space<vmem>>, vector<1x1x512xf32>
    %65 = vector.shape_cast %64 : vector<1x1x512xf32> to vector<1x512xf32>
    %66 = vector.broadcast %65 : vector<1x512xf32> to vector<16x512xf32>
    %67 = arith.mulf %63, %66 : vector<16x512xf32>
    %c0_36 = arith.constant 0 : index
    %c0_37 = arith.constant 0 : index
    %c0_38 = arith.constant 0 : index
    %68 = vector.load %arg5[%c0_36, %c0_37, %c0_38] : memref<3x1x512xf32, #tpu.memory_space<vmem>>, vector<1x1x512xf32>
    %69 = vector.shape_cast %68 : vector<1x1x512xf32> to vector<1x512xf32>
    %70 = vector.broadcast %69 : vector<1x512xf32> to vector<16x512xf32>
    %71 = arith.addf %67, %70 : vector<16x512xf32>
    %72 = arith.truncf %20 : vector<16x128xf32> to vector<16x128xbf16>
    %c2_i32 = arith.constant 2 : i32
    %73 = tpu.dynamic_rotate %20 by %c2_i32 dim 0 : vector<16x128xf32>, i32 -> vector<16x128xf32>
    %c2_i32_39 = arith.constant 2 : i32
    %74 = vector.broadcast %c2_i32_39 : i32 to vector<16x1xi32>
    %75 = arith.cmpi sge, %16, %74 : vector<16x1xi32>
    %cst_40 = arith.constant 0.000000e+00 : f32
    %76 = vector.shape_cast %75 : vector<16x1xi1> to vector<16x1xi1>
    %77 = vector.broadcast %76 : vector<16x1xi1> to vector<16x128xi1>
    %78 = vector.broadcast %cst_40 : f32 to vector<16x128xf32>
    %79 = arith.select %77, %73, %78 : vector<16x128xi1>, vector<16x128xf32>
    %80 = arith.truncf %79 : vector<16x128xf32> to vector<16x128xbf16>
    %c14_i32 = arith.constant 14 : i32
    %81 = tpu.dynamic_rotate %20 by %c14_i32 dim 0 : vector<16x128xf32>, i32 -> vector<16x128xf32>
    %c6_i32 = arith.constant 6 : i32
    %82 = vector.broadcast %c6_i32 : i32 to vector<16x1xi32>
    %83 = arith.cmpi slt, %16, %82 : vector<16x1xi32>
    %cst_41 = arith.constant 0.000000e+00 : f32
    %84 = vector.shape_cast %83 : vector<16x1xi1> to vector<16x1xi1>
    %85 = vector.broadcast %84 : vector<16x1xi1> to vector<16x128xi1>
    %86 = vector.broadcast %cst_41 : f32 to vector<16x128xf32>
    %87 = arith.select %85, %81, %86 : vector<16x128xi1>, vector<16x128xf32>
    %88 = arith.truncf %87 : vector<16x128xf32> to vector<16x128xbf16>
    %c1_42 = arith.constant 1 : index
    %c0_43 = arith.constant 0 : index
    %c0_44 = arith.constant 0 : index
    %c0_45 = arith.constant 0 : index
    %89 = vector.load %arg2[%c1_42, %c0_43, %c0_44, %c0_45] : memref<3x3x128x512xbf16, #tpu.memory_space<vmem>>, vector<1x1x128x512xbf16>
    %90 = vector.shape_cast %89 : vector<1x1x128x512xbf16> to vector<128x512xbf16>
    %cst_46 = arith.constant dense<0.000000e+00> : vector<16x512xf32>
    %91 = tpu.matmul %80, %90, %cst_46 {dimension_numbers = #tpu.dot_dimension_numbers<[1], [0], [0], [1], [0, 0, 1, 1], [], []>} : vector<16x128xbf16>, vector<128x512xbf16>, vector<16x512xf32> -> vector<16x512xf32>
    %c1_47 = arith.constant 1 : index
    %c1_48 = arith.constant 1 : index
    %c0_49 = arith.constant 0 : index
    %c0_50 = arith.constant 0 : index
    %92 = vector.load %arg2[%c1_47, %c1_48, %c0_49, %c0_50] : memref<3x3x128x512xbf16, #tpu.memory_space<vmem>>, vector<1x1x128x512xbf16>
    %93 = vector.shape_cast %92 : vector<1x1x128x512xbf16> to vector<128x512xbf16>
    %cst_51 = arith.constant dense<0.000000e+00> : vector<16x512xf32>
    %94 = tpu.matmul %72, %93, %cst_51 {dimension_numbers = #tpu.dot_dimension_numbers<[1], [0], [0], [1], [0, 0, 1, 1], [], []>} : vector<16x128xbf16>, vector<128x512xbf16>, vector<16x512xf32> -> vector<16x512xf32>
    %95 = arith.addf %91, %94 : vector<16x512xf32>
    %c1_52 = arith.constant 1 : index
    %c2_53 = arith.constant 2 : index
    %c0_54 = arith.constant 0 : index
    %c0_55 = arith.constant 0 : index
    %96 = vector.load %arg2[%c1_52, %c2_53, %c0_54, %c0_55] : memref<3x3x128x512xbf16, #tpu.memory_space<vmem>>, vector<1x1x128x512xbf16>
    %97 = vector.shape_cast %96 : vector<1x1x128x512xbf16> to vector<128x512xbf16>
    %cst_56 = arith.constant dense<0.000000e+00> : vector<16x512xf32>
    %98 = tpu.matmul %88, %97, %cst_56 {dimension_numbers = #tpu.dot_dimension_numbers<[1], [0], [0], [1], [0, 0, 1, 1], [], []>} : vector<16x128xbf16>, vector<128x512xbf16>, vector<16x512xf32> -> vector<16x512xf32>
    %99 = arith.addf %95, %98 : vector<16x512xf32>
    %c1_57 = arith.constant 1 : index
    %c0_58 = arith.constant 0 : index
    %c0_59 = arith.constant 0 : index
    %100 = vector.load %arg3[%c1_57, %c0_58, %c0_59] : memref<3x1x512xf32, #tpu.memory_space<vmem>>, vector<1x1x512xf32>
    %101 = vector.shape_cast %100 : vector<1x1x512xf32> to vector<1x512xf32>
    %102 = vector.broadcast %101 : vector<1x512xf32> to vector<16x512xf32>
    %103 = arith.addf %99, %102 : vector<16x512xf32>
    %cst_60 = arith.constant 0.000000e+00 : f32
    %104 = vector.broadcast %cst_60 : f32 to vector<16x512xf32>
    %105 = arith.cmpf oge, %103, %104 : vector<16x512xf32>
    %cst_61 = arith.constant 5.000000e-02 : f32
    %106 = vector.broadcast %cst_61 : f32 to vector<16x512xf32>
    %107 = arith.mulf %106, %103 : vector<16x512xf32>
    %108 = arith.select %105, %103, %107 : vector<16x512xi1>, vector<16x512xf32>
    %c1_62 = arith.constant 1 : index
    %c0_63 = arith.constant 0 : index
    %c0_64 = arith.constant 0 : index
    %109 = vector.load %arg4[%c1_62, %c0_63, %c0_64] : memref<3x1x512xf32, #tpu.memory_space<vmem>>, vector<1x1x512xf32>
    %110 = vector.shape_cast %109 : vector<1x1x512xf32> to vector<1x512xf32>
    %111 = vector.broadcast %110 : vector<1x512xf32> to vector<16x512xf32>
    %112 = arith.mulf %108, %111 : vector<16x512xf32>
    %c1_65 = arith.constant 1 : index
    %c0_66 = arith.constant 0 : index
    %c0_67 = arith.constant 0 : index
    %113 = vector.load %arg5[%c1_65, %c0_66, %c0_67] : memref<3x1x512xf32, #tpu.memory_space<vmem>>, vector<1x1x512xf32>
    %114 = vector.shape_cast %113 : vector<1x1x512xf32> to vector<1x512xf32>
    %115 = vector.broadcast %114 : vector<1x512xf32> to vector<16x512xf32>
    %116 = arith.addf %112, %115 : vector<16x512xf32>
    %117 = arith.truncf %22 : vector<16x128xf32> to vector<16x128xbf16>
    %c4_i32 = arith.constant 4 : i32
    %118 = tpu.dynamic_rotate %22 by %c4_i32 dim 0 : vector<16x128xf32>, i32 -> vector<16x128xf32>
    %c4_i32_68 = arith.constant 4 : i32
    %119 = vector.broadcast %c4_i32_68 : i32 to vector<16x1xi32>
    %120 = arith.cmpi sge, %16, %119 : vector<16x1xi32>
    %cst_69 = arith.constant 0.000000e+00 : f32
    %121 = vector.shape_cast %120 : vector<16x1xi1> to vector<16x1xi1>
    %122 = vector.broadcast %121 : vector<16x1xi1> to vector<16x128xi1>
    %123 = vector.broadcast %cst_69 : f32 to vector<16x128xf32>
    %124 = arith.select %122, %118, %123 : vector<16x128xi1>, vector<16x128xf32>
    %125 = arith.truncf %124 : vector<16x128xf32> to vector<16x128xbf16>
    %c12_i32 = arith.constant 12 : i32
    %126 = tpu.dynamic_rotate %22 by %c12_i32 dim 0 : vector<16x128xf32>, i32 -> vector<16x128xf32>
    %c4_i32_70 = arith.constant 4 : i32
    %127 = vector.broadcast %c4_i32_70 : i32 to vector<16x1xi32>
    %128 = arith.cmpi slt, %16, %127 : vector<16x1xi32>
    %cst_71 = arith.constant 0.000000e+00 : f32
    %129 = vector.shape_cast %128 : vector<16x1xi1> to vector<16x1xi1>
    %130 = vector.broadcast %129 : vector<16x1xi1> to vector<16x128xi1>
    %131 = vector.broadcast %cst_71 : f32 to vector<16x128xf32>
    %132 = arith.select %130, %126, %131 : vector<16x128xi1>, vector<16x128xf32>
    %133 = arith.truncf %132 : vector<16x128xf32> to vector<16x128xbf16>
    %c2_72 = arith.constant 2 : index
    %c0_73 = arith.constant 0 : index
    %c0_74 = arith.constant 0 : index
    %c0_75 = arith.constant 0 : index
    %134 = vector.load %arg2[%c2_72, %c0_73, %c0_74, %c0_75] : memref<3x3x128x512xbf16, #tpu.memory_space<vmem>>, vector<1x1x128x512xbf16>
    %135 = vector.shape_cast %134 : vector<1x1x128x512xbf16> to vector<128x512xbf16>
    %cst_76 = arith.constant dense<0.000000e+00> : vector<16x512xf32>
    %136 = tpu.matmul %125, %135, %cst_76 {dimension_numbers = #tpu.dot_dimension_numbers<[1], [0], [0], [1], [0, 0, 1, 1], [], []>} : vector<16x128xbf16>, vector<128x512xbf16>, vector<16x512xf32> -> vector<16x512xf32>
    %c2_77 = arith.constant 2 : index
    %c1_78 = arith.constant 1 : index
    %c0_79 = arith.constant 0 : index
    %c0_80 = arith.constant 0 : index
    %137 = vector.load %arg2[%c2_77, %c1_78, %c0_79, %c0_80] : memref<3x3x128x512xbf16, #tpu.memory_space<vmem>>, vector<1x1x128x512xbf16>
    %138 = vector.shape_cast %137 : vector<1x1x128x512xbf16> to vector<128x512xbf16>
    %cst_81 = arith.constant dense<0.000000e+00> : vector<16x512xf32>
    %139 = tpu.matmul %117, %138, %cst_81 {dimension_numbers = #tpu.dot_dimension_numbers<[1], [0], [0], [1], [0, 0, 1, 1], [], []>} : vector<16x128xbf16>, vector<128x512xbf16>, vector<16x512xf32> -> vector<16x512xf32>
    %140 = arith.addf %136, %139 : vector<16x512xf32>
    %c2_82 = arith.constant 2 : index
    %c2_83 = arith.constant 2 : index
    %c0_84 = arith.constant 0 : index
    %c0_85 = arith.constant 0 : index
    %141 = vector.load %arg2[%c2_82, %c2_83, %c0_84, %c0_85] : memref<3x3x128x512xbf16, #tpu.memory_space<vmem>>, vector<1x1x128x512xbf16>
    %142 = vector.shape_cast %141 : vector<1x1x128x512xbf16> to vector<128x512xbf16>
    %cst_86 = arith.constant dense<0.000000e+00> : vector<16x512xf32>
    %143 = tpu.matmul %133, %142, %cst_86 {dimension_numbers = #tpu.dot_dimension_numbers<[1], [0], [0], [1], [0, 0, 1, 1], [], []>} : vector<16x128xbf16>, vector<128x512xbf16>, vector<16x512xf32> -> vector<16x512xf32>
    %144 = arith.addf %140, %143 : vector<16x512xf32>
    %c2_87 = arith.constant 2 : index
    %c0_88 = arith.constant 0 : index
    %c0_89 = arith.constant 0 : index
    %145 = vector.load %arg3[%c2_87, %c0_88, %c0_89] : memref<3x1x512xf32, #tpu.memory_space<vmem>>, vector<1x1x512xf32>
    %146 = vector.shape_cast %145 : vector<1x1x512xf32> to vector<1x512xf32>
    %147 = vector.broadcast %146 : vector<1x512xf32> to vector<16x512xf32>
    %148 = arith.addf %144, %147 : vector<16x512xf32>
    %cst_90 = arith.constant 0.000000e+00 : f32
    %149 = vector.broadcast %cst_90 : f32 to vector<16x512xf32>
    %150 = arith.cmpf oge, %148, %149 : vector<16x512xf32>
    %cst_91 = arith.constant 5.000000e-02 : f32
    %151 = vector.broadcast %cst_91 : f32 to vector<16x512xf32>
    %152 = arith.mulf %151, %148 : vector<16x512xf32>
    %153 = arith.select %150, %148, %152 : vector<16x512xi1>, vector<16x512xf32>
    %c2_92 = arith.constant 2 : index
    %c0_93 = arith.constant 0 : index
    %c0_94 = arith.constant 0 : index
    %154 = vector.load %arg4[%c2_92, %c0_93, %c0_94] : memref<3x1x512xf32, #tpu.memory_space<vmem>>, vector<1x1x512xf32>
    %155 = vector.shape_cast %154 : vector<1x1x512xf32> to vector<1x512xf32>
    %156 = vector.broadcast %155 : vector<1x512xf32> to vector<16x512xf32>
    %157 = arith.mulf %153, %156 : vector<16x512xf32>
    %c2_95 = arith.constant 2 : index
    %c0_96 = arith.constant 0 : index
    %c0_97 = arith.constant 0 : index
    %158 = vector.load %arg5[%c2_95, %c0_96, %c0_97] : memref<3x1x512xf32, #tpu.memory_space<vmem>>, vector<1x1x512xf32>
    %159 = vector.shape_cast %158 : vector<1x1x512xf32> to vector<1x512xf32>
    %160 = vector.broadcast %159 : vector<1x512xf32> to vector<16x512xf32>
    %161 = arith.addf %157, %160 : vector<16x512xf32>
    %162 = arith.truncf %18 : vector<16x128xf32> to vector<16x128xbf16>
    %c0_98 = arith.constant 0 : index
    %c0_99 = arith.constant 0 : index
    %c0_100 = arith.constant 0 : index
    %163 = vector.load %arg6[%c0_98, %c0_99, %c0_100] : memref<3x128x512xbf16, #tpu.memory_space<vmem>>, vector<1x128x512xbf16>
    %164 = vector.shape_cast %163 : vector<1x128x512xbf16> to vector<128x512xbf16>
    %cst_101 = arith.constant dense<0.000000e+00> : vector<16x512xf32>
    %165 = tpu.matmul %162, %164, %cst_101 {dimension_numbers = #tpu.dot_dimension_numbers<[1], [0], [0], [1], [0, 0, 1, 1], [], []>} : vector<16x128xbf16>, vector<128x512xbf16>, vector<16x512xf32> -> vector<16x512xf32>
    %166 = arith.truncf %20 : vector<16x128xf32> to vector<16x128xbf16>
    %c1_102 = arith.constant 1 : index
    %c0_103 = arith.constant 0 : index
    %c0_104 = arith.constant 0 : index
    %167 = vector.load %arg6[%c1_102, %c0_103, %c0_104] : memref<3x128x512xbf16, #tpu.memory_space<vmem>>, vector<1x128x512xbf16>
    %168 = vector.shape_cast %167 : vector<1x128x512xbf16> to vector<128x512xbf16>
    %cst_105 = arith.constant dense<0.000000e+00> : vector<16x512xf32>
    %169 = tpu.matmul %166, %168, %cst_105 {dimension_numbers = #tpu.dot_dimension_numbers<[1], [0], [0], [1], [0, 0, 1, 1], [], []>} : vector<16x128xbf16>, vector<128x512xbf16>, vector<16x512xf32> -> vector<16x512xf32>
    %170 = arith.addf %165, %169 : vector<16x512xf32>
    %171 = arith.truncf %22 : vector<16x128xf32> to vector<16x128xbf16>
    %c2_106 = arith.constant 2 : index
    %c0_107 = arith.constant 0 : index
    %c0_108 = arith.constant 0 : index
    %172 = vector.load %arg6[%c2_106, %c0_107, %c0_108] : memref<3x128x512xbf16, #tpu.memory_space<vmem>>, vector<1x128x512xbf16>
    %173 = vector.shape_cast %172 : vector<1x128x512xbf16> to vector<128x512xbf16>
    %cst_109 = arith.constant dense<0.000000e+00> : vector<16x512xf32>
    %174 = tpu.matmul %171, %173, %cst_109 {dimension_numbers = #tpu.dot_dimension_numbers<[1], [0], [0], [1], [0, 0, 1, 1], [], []>} : vector<16x128xbf16>, vector<128x512xbf16>, vector<16x512xf32> -> vector<16x512xf32>
    %175 = arith.addf %170, %174 : vector<16x512xf32>
    %cst_110 = arith.constant 0.000000e+00 : f32
    %176 = vector.broadcast %cst_110 : f32 to vector<16x512xf32>
    %177 = arith.cmpf oge, %175, %176 : vector<16x512xf32>
    %cst_111 = arith.constant 5.000000e-02 : f32
    %178 = vector.broadcast %cst_111 : f32 to vector<16x512xf32>
    %179 = arith.mulf %178, %175 : vector<16x512xf32>
    %180 = arith.select %177, %175, %179 : vector<16x512xi1>, vector<16x512xf32>
    %cst_112 = arith.constant dense<0.000000e+00> : vector<16xf32>
    %181 = vector.multi_reduction <add>, %180, %cst_112 [1] : vector<16x512xf32> to vector<16xf32>
    %182 = vector.shape_cast %181 : vector<16xf32> to vector<16x1xf32>
    %cst_113 = arith.constant 5.120000e+02 : f32
    %183 = vector.broadcast %cst_113 : f32 to vector<16x1xf32>
    %184 = arith.divf %182, %183 : vector<16x1xf32>
    %185 = vector.broadcast %184 : vector<16x1xf32> to vector<16x512xf32>
    %186 = arith.subf %180, %185 : vector<16x512xf32>
    %187 = arith.mulf %186, %186 : vector<16x512xf32>
    %cst_114 = arith.constant dense<0.000000e+00> : vector<16xf32>
    %188 = vector.multi_reduction <add>, %187, %cst_114 [1] : vector<16x512xf32> to vector<16xf32>
    %189 = vector.shape_cast %188 : vector<16xf32> to vector<16x1xf32>
    %cst_115 = arith.constant 5.120000e+02 : f32
    %190 = vector.broadcast %cst_115 : f32 to vector<16x1xf32>
    %191 = arith.divf %189, %190 : vector<16x1xf32>
    %cst_116 = arith.constant 9.99999974E-6 : f32
    %192 = vector.broadcast %cst_116 : f32 to vector<16x1xf32>
    %193 = arith.addf %191, %192 : vector<16x1xf32>
    %194 = math.rsqrt %193 : vector<16x1xf32>
    %195 = vector.broadcast %194 : vector<16x1xf32> to vector<16x512xf32>
    %196 = arith.mulf %186, %195 : vector<16x512xf32>
    %c0_117 = arith.constant 0 : index
    %c0_118 = arith.constant 0 : index
    %197 = vector.load %arg7[%c0_117, %c0_118] : memref<512x512xbf16, #tpu.memory_space<vmem>>, vector<512x512xbf16>
    %c0_119 = arith.constant 0 : index
    %c0_120 = arith.constant 0 : index
    %198 = vector.load %arg8[%c0_119, %c0_120] : memref<1x512xf32, #tpu.memory_space<vmem>>, vector<1x512xf32>
    %c0_121 = arith.constant 0 : index
    %c0_122 = arith.constant 0 : index
    %199 = vector.load %arg9[%c0_121, %c0_122] : memref<512x1024xbf16, #tpu.memory_space<vmem>>, vector<512x1024xbf16>
    %c0_123 = arith.constant 0 : index
    %c0_124 = arith.constant 0 : index
    %200 = vector.load %arg10[%c0_123, %c0_124] : memref<1x1024xf32, #tpu.memory_space<vmem>>, vector<1x1024xf32>
    %c0_125 = arith.constant 0 : index
    %c0_126 = arith.constant 0 : index
    %c0_127 = arith.constant 0 : index
    %201 = vector.load %arg11[%c0_125, %c0_126, %c0_127] : memref<4x128x512xbf16, #tpu.memory_space<vmem>>, vector<4x128x512xbf16>
    %c0_128 = arith.constant 0 : index
    %c0_129 = arith.constant 0 : index
    %202 = vector.load %arg12[%c0_128, %c0_129] : memref<1x512xf32, #tpu.memory_space<vmem>>, vector<1x512xf32>
    %203 = arith.truncf %196 : vector<16x512xf32> to vector<16x512xbf16>
    %cst_130 = arith.constant dense<0.000000e+00> : vector<16x512xf32>
    %204 = tpu.matmul %203, %197, %cst_130 {dimension_numbers = #tpu.dot_dimension_numbers<[1], [0], [0], [1], [0, 0, 1, 1], [], []>} : vector<16x512xbf16>, vector<512x512xbf16>, vector<16x512xf32> -> vector<16x512xf32>
    %205 = vector.broadcast %198 : vector<1x512xf32> to vector<16x512xf32>
    %206 = arith.addf %204, %205 : vector<16x512xf32>
    %207 = arith.truncf %196 : vector<16x512xf32> to vector<16x512xbf16>
    %cst_131 = arith.constant dense<0.000000e+00> : vector<16x1024xf32>
    %208 = tpu.matmul %207, %199, %cst_131 {dimension_numbers = #tpu.dot_dimension_numbers<[1], [0], [0], [1], [0, 0, 1, 1], [], []>} : vector<16x512xbf16>, vector<512x1024xbf16>, vector<16x1024xf32> -> vector<16x1024xf32>
    %209 = vector.broadcast %200 : vector<1x1024xf32> to vector<16x1024xf32>
    %210 = arith.addf %208, %209 : vector<16x1024xf32>
    %211 = arith.truncf %206 : vector<16x512xf32> to vector<16x512xbf16>
    %212 = arith.truncf %210 : vector<16x1024xf32> to vector<16x1024xbf16>
    %cst_132 = arith.constant 0.000000e+00 : f32
    %213 = vector.broadcast %cst_132 : f32 to vector<16x512xf32>
    %214 = vector.extract_strided_slice %211 {offsets = [0, 0], sizes = [16, 128], strides = [1, 1]} : vector<16x512xbf16> to vector<16x128xbf16>
    %215 = vector.shape_cast %214 : vector<16x128xbf16> to vector<2x8x128xbf16>
    %216 = vector.extract_strided_slice %212 {offsets = [0, 0], sizes = [16, 128], strides = [1, 1]} : vector<16x1024xbf16> to vector<16x128xbf16>
    %217 = vector.shape_cast %216 : vector<16x128xbf16> to vector<2x8x128xbf16>
    %218 = vector.extract_strided_slice %212 {offsets = [0, 512], sizes = [16, 128], strides = [1, 1]} : vector<16x1024xbf16> to vector<16x128xbf16>
    %219 = vector.shape_cast %218 : vector<16x128xbf16> to vector<2x8x128xbf16>
    "tpu.trace_start"() <{level = 10 : i32, message = "bqd,bkd->bqk"}> : () -> ()
    %cst_133 = arith.constant dense<0.000000e+00> : vector<2x8x8xf32>
    %220 = tpu.matmul %215, %217, %cst_133 {dimension_numbers = #tpu.dot_dimension_numbers<[2], [2], [1], [1], [0, 0, 0, 1, 1, 1], [0], [0]>} : vector<2x8x128xbf16>, vector<2x8x128xbf16>, vector<2x8x8xf32> -> vector<2x8x8xf32>
    "tpu.trace_stop"() : () -> ()
    %cst_134 = arith.constant 0.0883883461 : f32
    %221 = vector.broadcast %cst_134 : f32 to vector<2x8x8xf32>
    %222 = arith.mulf %220, %221 : vector<2x8x8xf32>
    %cst_135 = arith.constant dense<0xFF800000> : vector<2x8xf32>
    %223 = vector.multi_reduction <maximumf>, %222, %cst_135 [2] : vector<2x8x8xf32> to vector<2x8xf32>
    %224 = vector.shape_cast %223 : vector<2x8xf32> to vector<2x8x1xf32>
    %225 = vector.broadcast %224 : vector<2x8x1xf32> to vector<2x8x8xf32>
    %226 = arith.subf %222, %225 : vector<2x8x8xf32>
    %227 = math.exp %226 : vector<2x8x8xf32>
    %cst_136 = arith.constant dense<0.000000e+00> : vector<2x8xf32>
    %228 = vector.multi_reduction <add>, %227, %cst_136 [2] : vector<2x8x8xf32> to vector<2x8xf32>
    %229 = vector.shape_cast %228 : vector<2x8xf32> to vector<2x8x1xf32>
    %230 = vector.broadcast %229 : vector<2x8x1xf32> to vector<2x8x8xf32>
    %231 = arith.divf %227, %230 : vector<2x8x8xf32>
    %232 = arith.truncf %231 : vector<2x8x8xf32> to vector<2x8x8xbf16>
    "tpu.trace_start"() <{level = 10 : i32, message = "bqk,bkd->bqd"}> : () -> ()
    %cst_137 = arith.constant dense<0.000000e+00> : vector<2x8x128xf32>
    %233 = tpu.matmul %232, %219, %cst_137 {dimension_numbers = #tpu.dot_dimension_numbers<[2], [1], [1], [2], [0, 0, 0, 1, 1, 2], [0], [0]>} : vector<2x8x8xbf16>, vector<2x8x128xbf16>, vector<2x8x128xf32> -> vector<2x8x128xf32>
    "tpu.trace_stop"() : () -> ()
    %234 = vector.shape_cast %233 : vector<2x8x128xf32> to vector<16x128xf32>
    %235 = arith.truncf %234 : vector<16x128xf32> to vector<16x128xbf16>
    %236 = vector.extract_strided_slice %201 {offsets = [0, 0, 0], sizes = [1, 128, 512], strides = [1, 1, 1]} : vector<4x128x512xbf16> to vector<1x128x512xbf16>
    %237 = vector.shape_cast %236 : vector<1x128x512xbf16> to vector<128x512xbf16>
    %cst_138 = arith.constant dense<0.000000e+00> : vector<16x512xf32>
    %238 = tpu.matmul %235, %237, %cst_138 {dimension_numbers = #tpu.dot_dimension_numbers<[1], [0], [0], [1], [0, 0, 1, 1], [], []>} : vector<16x128xbf16>, vector<128x512xbf16>, vector<16x512xf32> -> vector<16x512xf32>
    %239 = arith.addf %213, %238 : vector<16x512xf32>
    %240 = vector.extract_strided_slice %211 {offsets = [0, 128], sizes = [16, 128], strides = [1, 1]} : vector<16x512xbf16> to vector<16x128xbf16>
    %241 = vector.shape_cast %240 : vector<16x128xbf16> to vector<2x8x128xbf16>
    %242 = vector.extract_strided_slice %212 {offsets = [0, 128], sizes = [16, 128], strides = [1, 1]} : vector<16x1024xbf16> to vector<16x128xbf16>
    %243 = vector.shape_cast %242 : vector<16x128xbf16> to vector<2x8x128xbf16>
    %244 = vector.extract_strided_slice %212 {offsets = [0, 640], sizes = [16, 128], strides = [1, 1]} : vector<16x1024xbf16> to vector<16x128xbf16>
    %245 = vector.shape_cast %244 : vector<16x128xbf16> to vector<2x8x128xbf16>
    "tpu.trace_start"() <{level = 10 : i32, message = "bqd,bkd->bqk"}> : () -> ()
    %cst_139 = arith.constant dense<0.000000e+00> : vector<2x8x8xf32>
    %246 = tpu.matmul %241, %243, %cst_139 {dimension_numbers = #tpu.dot_dimension_numbers<[2], [2], [1], [1], [0, 0, 0, 1, 1, 1], [0], [0]>} : vector<2x8x128xbf16>, vector<2x8x128xbf16>, vector<2x8x8xf32> -> vector<2x8x8xf32>
    "tpu.trace_stop"() : () -> ()
    %cst_140 = arith.constant 0.0883883461 : f32
    %247 = vector.broadcast %cst_140 : f32 to vector<2x8x8xf32>
    %248 = arith.mulf %246, %247 : vector<2x8x8xf32>
    %cst_141 = arith.constant dense<0xFF800000> : vector<2x8xf32>
    %249 = vector.multi_reduction <maximumf>, %248, %cst_141 [2] : vector<2x8x8xf32> to vector<2x8xf32>
    %250 = vector.shape_cast %249 : vector<2x8xf32> to vector<2x8x1xf32>
    %251 = vector.broadcast %250 : vector<2x8x1xf32> to vector<2x8x8xf32>
    %252 = arith.subf %248, %251 : vector<2x8x8xf32>
    %253 = math.exp %252 : vector<2x8x8xf32>
    %cst_142 = arith.constant dense<0.000000e+00> : vector<2x8xf32>
    %254 = vector.multi_reduction <add>, %253, %cst_142 [2] : vector<2x8x8xf32> to vector<2x8xf32>
    %255 = vector.shape_cast %254 : vector<2x8xf32> to vector<2x8x1xf32>
    %256 = vector.broadcast %255 : vector<2x8x1xf32> to vector<2x8x8xf32>
    %257 = arith.divf %253, %256 : vector<2x8x8xf32>
    %258 = arith.truncf %257 : vector<2x8x8xf32> to vector<2x8x8xbf16>
    "tpu.trace_start"() <{level = 10 : i32, message = "bqk,bkd->bqd"}> : () -> ()
    %cst_143 = arith.constant dense<0.000000e+00> : vector<2x8x128xf32>
    %259 = tpu.matmul %258, %245, %cst_143 {dimension_numbers = #tpu.dot_dimension_numbers<[2], [1], [1], [2], [0, 0, 0, 1, 1, 2], [0], [0]>} : vector<2x8x8xbf16>, vector<2x8x128xbf16>, vector<2x8x128xf32> -> vector<2x8x128xf32>
    "tpu.trace_stop"() : () -> ()
    %260 = vector.shape_cast %259 : vector<2x8x128xf32> to vector<16x128xf32>
    %261 = arith.truncf %260 : vector<16x128xf32> to vector<16x128xbf16>
    %262 = vector.extract_strided_slice %201 {offsets = [1, 0, 0], sizes = [1, 128, 512], strides = [1, 1, 1]} : vector<4x128x512xbf16> to vector<1x128x512xbf16>
    %263 = vector.shape_cast %262 : vector<1x128x512xbf16> to vector<128x512xbf16>
    %cst_144 = arith.constant dense<0.000000e+00> : vector<16x512xf32>
    %264 = tpu.matmul %261, %263, %cst_144 {dimension_numbers = #tpu.dot_dimension_numbers<[1], [0], [0], [1], [0, 0, 1, 1], [], []>} : vector<16x128xbf16>, vector<128x512xbf16>, vector<16x512xf32> -> vector<16x512xf32>
    %265 = arith.addf %239, %264 : vector<16x512xf32>
    %266 = vector.extract_strided_slice %211 {offsets = [0, 256], sizes = [16, 128], strides = [1, 1]} : vector<16x512xbf16> to vector<16x128xbf16>
    %267 = vector.shape_cast %266 : vector<16x128xbf16> to vector<2x8x128xbf16>
    %268 = vector.extract_strided_slice %212 {offsets = [0, 256], sizes = [16, 128], strides = [1, 1]} : vector<16x1024xbf16> to vector<16x128xbf16>
    %269 = vector.shape_cast %268 : vector<16x128xbf16> to vector<2x8x128xbf16>
    %270 = vector.extract_strided_slice %212 {offsets = [0, 768], sizes = [16, 128], strides = [1, 1]} : vector<16x1024xbf16> to vector<16x128xbf16>
    %271 = vector.shape_cast %270 : vector<16x128xbf16> to vector<2x8x128xbf16>
    "tpu.trace_start"() <{level = 10 : i32, message = "bqd,bkd->bqk"}> : () -> ()
    %cst_145 = arith.constant dense<0.000000e+00> : vector<2x8x8xf32>
    %272 = tpu.matmul %267, %269, %cst_145 {dimension_numbers = #tpu.dot_dimension_numbers<[2], [2], [1], [1], [0, 0, 0, 1, 1, 1], [0], [0]>} : vector<2x8x128xbf16>, vector<2x8x128xbf16>, vector<2x8x8xf32> -> vector<2x8x8xf32>
    "tpu.trace_stop"() : () -> ()
    %cst_146 = arith.constant 0.0883883461 : f32
    %273 = vector.broadcast %cst_146 : f32 to vector<2x8x8xf32>
    %274 = arith.mulf %272, %273 : vector<2x8x8xf32>
    %cst_147 = arith.constant dense<0xFF800000> : vector<2x8xf32>
    %275 = vector.multi_reduction <maximumf>, %274, %cst_147 [2] : vector<2x8x8xf32> to vector<2x8xf32>
    %276 = vector.shape_cast %275 : vector<2x8xf32> to vector<2x8x1xf32>
    %277 = vector.broadcast %276 : vector<2x8x1xf32> to vector<2x8x8xf32>
    %278 = arith.subf %274, %277 : vector<2x8x8xf32>
    %279 = math.exp %278 : vector<2x8x8xf32>
    %cst_148 = arith.constant dense<0.000000e+00> : vector<2x8xf32>
    %280 = vector.multi_reduction <add>, %279, %cst_148 [2] : vector<2x8x8xf32> to vector<2x8xf32>
    %281 = vector.shape_cast %280 : vector<2x8xf32> to vector<2x8x1xf32>
    %282 = vector.broadcast %281 : vector<2x8x1xf32> to vector<2x8x8xf32>
    %283 = arith.divf %279, %282 : vector<2x8x8xf32>
    %284 = arith.truncf %283 : vector<2x8x8xf32> to vector<2x8x8xbf16>
    "tpu.trace_start"() <{level = 10 : i32, message = "bqk,bkd->bqd"}> : () -> ()
    %cst_149 = arith.constant dense<0.000000e+00> : vector<2x8x128xf32>
    %285 = tpu.matmul %284, %271, %cst_149 {dimension_numbers = #tpu.dot_dimension_numbers<[2], [1], [1], [2], [0, 0, 0, 1, 1, 2], [0], [0]>} : vector<2x8x8xbf16>, vector<2x8x128xbf16>, vector<2x8x128xf32> -> vector<2x8x128xf32>
    "tpu.trace_stop"() : () -> ()
    %286 = vector.shape_cast %285 : vector<2x8x128xf32> to vector<16x128xf32>
    %287 = arith.truncf %286 : vector<16x128xf32> to vector<16x128xbf16>
    %288 = vector.extract_strided_slice %201 {offsets = [2, 0, 0], sizes = [1, 128, 512], strides = [1, 1, 1]} : vector<4x128x512xbf16> to vector<1x128x512xbf16>
    %289 = vector.shape_cast %288 : vector<1x128x512xbf16> to vector<128x512xbf16>
    %cst_150 = arith.constant dense<0.000000e+00> : vector<16x512xf32>
    %290 = tpu.matmul %287, %289, %cst_150 {dimension_numbers = #tpu.dot_dimension_numbers<[1], [0], [0], [1], [0, 0, 1, 1], [], []>} : vector<16x128xbf16>, vector<128x512xbf16>, vector<16x512xf32> -> vector<16x512xf32>
    %291 = arith.addf %265, %290 : vector<16x512xf32>
    %292 = vector.extract_strided_slice %211 {offsets = [0, 384], sizes = [16, 128], strides = [1, 1]} : vector<16x512xbf16> to vector<16x128xbf16>
    %293 = vector.shape_cast %292 : vector<16x128xbf16> to vector<2x8x128xbf16>
    %294 = vector.extract_strided_slice %212 {offsets = [0, 384], sizes = [16, 128], strides = [1, 1]} : vector<16x1024xbf16> to vector<16x128xbf16>
    %295 = vector.shape_cast %294 : vector<16x128xbf16> to vector<2x8x128xbf16>
    %296 = vector.extract_strided_slice %212 {offsets = [0, 896], sizes = [16, 128], strides = [1, 1]} : vector<16x1024xbf16> to vector<16x128xbf16>
    %297 = vector.shape_cast %296 : vector<16x128xbf16> to vector<2x8x128xbf16>
    "tpu.trace_start"() <{level = 10 : i32, message = "bqd,bkd->bqk"}> : () -> ()
    %cst_151 = arith.constant dense<0.000000e+00> : vector<2x8x8xf32>
    %298 = tpu.matmul %293, %295, %cst_151 {dimension_numbers = #tpu.dot_dimension_numbers<[2], [2], [1], [1], [0, 0, 0, 1, 1, 1], [0], [0]>} : vector<2x8x128xbf16>, vector<2x8x128xbf16>, vector<2x8x8xf32> -> vector<2x8x8xf32>
    "tpu.trace_stop"() : () -> ()
    %cst_152 = arith.constant 0.0883883461 : f32
    %299 = vector.broadcast %cst_152 : f32 to vector<2x8x8xf32>
    %300 = arith.mulf %298, %299 : vector<2x8x8xf32>
    %cst_153 = arith.constant dense<0xFF800000> : vector<2x8xf32>
    %301 = vector.multi_reduction <maximumf>, %300, %cst_153 [2] : vector<2x8x8xf32> to vector<2x8xf32>
    %302 = vector.shape_cast %301 : vector<2x8xf32> to vector<2x8x1xf32>
    %303 = vector.broadcast %302 : vector<2x8x1xf32> to vector<2x8x8xf32>
    %304 = arith.subf %300, %303 : vector<2x8x8xf32>
    %305 = math.exp %304 : vector<2x8x8xf32>
    %cst_154 = arith.constant dense<0.000000e+00> : vector<2x8xf32>
    %306 = vector.multi_reduction <add>, %305, %cst_154 [2] : vector<2x8x8xf32> to vector<2x8xf32>
    %307 = vector.shape_cast %306 : vector<2x8xf32> to vector<2x8x1xf32>
    %308 = vector.broadcast %307 : vector<2x8x1xf32> to vector<2x8x8xf32>
    %309 = arith.divf %305, %308 : vector<2x8x8xf32>
    %310 = arith.truncf %309 : vector<2x8x8xf32> to vector<2x8x8xbf16>
    "tpu.trace_start"() <{level = 10 : i32, message = "bqk,bkd->bqd"}> : () -> ()
    %cst_155 = arith.constant dense<0.000000e+00> : vector<2x8x128xf32>
    %311 = tpu.matmul %310, %297, %cst_155 {dimension_numbers = #tpu.dot_dimension_numbers<[2], [1], [1], [2], [0, 0, 0, 1, 1, 2], [0], [0]>} : vector<2x8x8xbf16>, vector<2x8x128xbf16>, vector<2x8x128xf32> -> vector<2x8x128xf32>
    "tpu.trace_stop"() : () -> ()
    %312 = vector.shape_cast %311 : vector<2x8x128xf32> to vector<16x128xf32>
    %313 = arith.truncf %312 : vector<16x128xf32> to vector<16x128xbf16>
    %314 = vector.extract_strided_slice %201 {offsets = [3, 0, 0], sizes = [1, 128, 512], strides = [1, 1, 1]} : vector<4x128x512xbf16> to vector<1x128x512xbf16>
    %315 = vector.shape_cast %314 : vector<1x128x512xbf16> to vector<128x512xbf16>
    %cst_156 = arith.constant dense<0.000000e+00> : vector<16x512xf32>
    %316 = tpu.matmul %313, %315, %cst_156 {dimension_numbers = #tpu.dot_dimension_numbers<[1], [0], [0], [1], [0, 0, 1, 1], [], []>} : vector<16x128xbf16>, vector<128x512xbf16>, vector<16x512xf32> -> vector<16x512xf32>
    %317 = arith.addf %291, %316 : vector<16x512xf32>
    %318 = vector.broadcast %202 : vector<1x512xf32> to vector<16x512xf32>
    %319 = arith.addf %317, %318 : vector<16x512xf32>
    %cst_157 = arith.constant 0.000000e+00 : f32
    %320 = vector.broadcast %cst_157 : f32 to vector<16x128xf32>
    %321 = arith.truncf %71 : vector<16x512xf32> to vector<16x512xbf16>
    %c1_i32_158 = arith.constant 1 : i32
    %322 = tpu.dynamic_rotate %71 by %c1_i32_158 dim 0 : vector<16x512xf32>, i32 -> vector<16x512xf32>
    %c1_i32_159 = arith.constant 1 : i32
    %323 = vector.broadcast %c1_i32_159 : i32 to vector<16x1xi32>
    %324 = arith.cmpi sge, %16, %323 : vector<16x1xi32>
    %cst_160 = arith.constant 0.000000e+00 : f32
    %325 = vector.shape_cast %324 : vector<16x1xi1> to vector<16x1xi1>
    %326 = vector.broadcast %325 : vector<16x1xi1> to vector<16x512xi1>
    %327 = vector.broadcast %cst_160 : f32 to vector<16x512xf32>
    %328 = arith.select %326, %322, %327 : vector<16x512xi1>, vector<16x512xf32>
    %329 = arith.truncf %328 : vector<16x512xf32> to vector<16x512xbf16>
    %c15_i32_161 = arith.constant 15 : i32
    %330 = tpu.dynamic_rotate %71 by %c15_i32_161 dim 0 : vector<16x512xf32>, i32 -> vector<16x512xf32>
    %c7_i32_162 = arith.constant 7 : i32
    %331 = vector.broadcast %c7_i32_162 : i32 to vector<16x1xi32>
    %332 = arith.cmpi slt, %16, %331 : vector<16x1xi32>
    %cst_163 = arith.constant 0.000000e+00 : f32
    %333 = vector.shape_cast %332 : vector<16x1xi1> to vector<16x1xi1>
    %334 = vector.broadcast %333 : vector<16x1xi1> to vector<16x512xi1>
    %335 = vector.broadcast %cst_163 : f32 to vector<16x512xf32>
    %336 = arith.select %334, %330, %335 : vector<16x512xi1>, vector<16x512xf32>
    %337 = arith.truncf %336 : vector<16x512xf32> to vector<16x512xbf16>
    %c0_164 = arith.constant 0 : index
    %c0_165 = arith.constant 0 : index
    %c0_166 = arith.constant 0 : index
    %c0_167 = arith.constant 0 : index
    %338 = vector.load %arg13[%c0_164, %c0_165, %c0_166, %c0_167] : memref<3x4x512x128xbf16, #tpu.memory_space<vmem>>, vector<1x1x512x128xbf16>
    %339 = vector.shape_cast %338 : vector<1x1x512x128xbf16> to vector<512x128xbf16>
    %cst_168 = arith.constant dense<0.000000e+00> : vector<16x128xf32>
    %340 = tpu.matmul %329, %339, %cst_168 {dimension_numbers = #tpu.dot_dimension_numbers<[1], [0], [0], [1], [0, 0, 1, 1], [], []>} : vector<16x512xbf16>, vector<512x128xbf16>, vector<16x128xf32> -> vector<16x128xf32>
    %341 = arith.addf %320, %340 : vector<16x128xf32>
    %c1_169 = arith.constant 1 : index
    %c0_170 = arith.constant 0 : index
    %c0_171 = arith.constant 0 : index
    %c0_172 = arith.constant 0 : index
    %342 = vector.load %arg13[%c1_169, %c0_170, %c0_171, %c0_172] : memref<3x4x512x128xbf16, #tpu.memory_space<vmem>>, vector<1x1x512x128xbf16>
    %343 = vector.shape_cast %342 : vector<1x1x512x128xbf16> to vector<512x128xbf16>
    %cst_173 = arith.constant dense<0.000000e+00> : vector<16x128xf32>
    %344 = tpu.matmul %321, %343, %cst_173 {dimension_numbers = #tpu.dot_dimension_numbers<[1], [0], [0], [1], [0, 0, 1, 1], [], []>} : vector<16x512xbf16>, vector<512x128xbf16>, vector<16x128xf32> -> vector<16x128xf32>
    %345 = arith.addf %341, %344 : vector<16x128xf32>
    %c2_174 = arith.constant 2 : index
    %c0_175 = arith.constant 0 : index
    %c0_176 = arith.constant 0 : index
    %c0_177 = arith.constant 0 : index
    %346 = vector.load %arg13[%c2_174, %c0_175, %c0_176, %c0_177] : memref<3x4x512x128xbf16, #tpu.memory_space<vmem>>, vector<1x1x512x128xbf16>
    %347 = vector.shape_cast %346 : vector<1x1x512x128xbf16> to vector<512x128xbf16>
    %cst_178 = arith.constant dense<0.000000e+00> : vector<16x128xf32>
    %348 = tpu.matmul %337, %347, %cst_178 {dimension_numbers = #tpu.dot_dimension_numbers<[1], [0], [0], [1], [0, 0, 1, 1], [], []>} : vector<16x512xbf16>, vector<512x128xbf16>, vector<16x128xf32> -> vector<16x128xf32>
    %349 = arith.addf %345, %348 : vector<16x128xf32>
    %350 = arith.truncf %116 : vector<16x512xf32> to vector<16x512xbf16>
    %c1_i32_179 = arith.constant 1 : i32
    %351 = tpu.dynamic_rotate %116 by %c1_i32_179 dim 0 : vector<16x512xf32>, i32 -> vector<16x512xf32>
    %c1_i32_180 = arith.constant 1 : i32
    %352 = vector.broadcast %c1_i32_180 : i32 to vector<16x1xi32>
    %353 = arith.cmpi sge, %16, %352 : vector<16x1xi32>
    %cst_181 = arith.constant 0.000000e+00 : f32
    %354 = vector.shape_cast %353 : vector<16x1xi1> to vector<16x1xi1>
    %355 = vector.broadcast %354 : vector<16x1xi1> to vector<16x512xi1>
    %356 = vector.broadcast %cst_181 : f32 to vector<16x512xf32>
    %357 = arith.select %355, %351, %356 : vector<16x512xi1>, vector<16x512xf32>
    %358 = arith.truncf %357 : vector<16x512xf32> to vector<16x512xbf16>
    %c15_i32_182 = arith.constant 15 : i32
    %359 = tpu.dynamic_rotate %116 by %c15_i32_182 dim 0 : vector<16x512xf32>, i32 -> vector<16x512xf32>
    %c7_i32_183 = arith.constant 7 : i32
    %360 = vector.broadcast %c7_i32_183 : i32 to vector<16x1xi32>
    %361 = arith.cmpi slt, %16, %360 : vector<16x1xi32>
    %cst_184 = arith.constant 0.000000e+00 : f32
    %362 = vector.shape_cast %361 : vector<16x1xi1> to vector<16x1xi1>
    %363 = vector.broadcast %362 : vector<16x1xi1> to vector<16x512xi1>
    %364 = vector.broadcast %cst_184 : f32 to vector<16x512xf32>
    %365 = arith.select %363, %359, %364 : vector<16x512xi1>, vector<16x512xf32>
    %366 = arith.truncf %365 : vector<16x512xf32> to vector<16x512xbf16>
    %c0_185 = arith.constant 0 : index
    %c1_186 = arith.constant 1 : index
    %c0_187 = arith.constant 0 : index
    %c0_188 = arith.constant 0 : index
    %367 = vector.load %arg13[%c0_185, %c1_186, %c0_187, %c0_188] : memref<3x4x512x128xbf16, #tpu.memory_space<vmem>>, vector<1x1x512x128xbf16>
    %368 = vector.shape_cast %367 : vector<1x1x512x128xbf16> to vector<512x128xbf16>
    %cst_189 = arith.constant dense<0.000000e+00> : vector<16x128xf32>
    %369 = tpu.matmul %358, %368, %cst_189 {dimension_numbers = #tpu.dot_dimension_numbers<[1], [0], [0], [1], [0, 0, 1, 1], [], []>} : vector<16x512xbf16>, vector<512x128xbf16>, vector<16x128xf32> -> vector<16x128xf32>
    %370 = arith.addf %349, %369 : vector<16x128xf32>
    %c1_190 = arith.constant 1 : index
    %c1_191 = arith.constant 1 : index
    %c0_192 = arith.constant 0 : index
    %c0_193 = arith.constant 0 : index
    %371 = vector.load %arg13[%c1_190, %c1_191, %c0_192, %c0_193] : memref<3x4x512x128xbf16, #tpu.memory_space<vmem>>, vector<1x1x512x128xbf16>
    %372 = vector.shape_cast %371 : vector<1x1x512x128xbf16> to vector<512x128xbf16>
    %cst_194 = arith.constant dense<0.000000e+00> : vector<16x128xf32>
    %373 = tpu.matmul %350, %372, %cst_194 {dimension_numbers = #tpu.dot_dimension_numbers<[1], [0], [0], [1], [0, 0, 1, 1], [], []>} : vector<16x512xbf16>, vector<512x128xbf16>, vector<16x128xf32> -> vector<16x128xf32>
    %374 = arith.addf %370, %373 : vector<16x128xf32>
    %c2_195 = arith.constant 2 : index
    %c1_196 = arith.constant 1 : index
    %c0_197 = arith.constant 0 : index
    %c0_198 = arith.constant 0 : index
    %375 = vector.load %arg13[%c2_195, %c1_196, %c0_197, %c0_198] : memref<3x4x512x128xbf16, #tpu.memory_space<vmem>>, vector<1x1x512x128xbf16>
    %376 = vector.shape_cast %375 : vector<1x1x512x128xbf16> to vector<512x128xbf16>
    %cst_199 = arith.constant dense<0.000000e+00> : vector<16x128xf32>
    %377 = tpu.matmul %366, %376, %cst_199 {dimension_numbers = #tpu.dot_dimension_numbers<[1], [0], [0], [1], [0, 0, 1, 1], [], []>} : vector<16x512xbf16>, vector<512x128xbf16>, vector<16x128xf32> -> vector<16x128xf32>
    %378 = arith.addf %374, %377 : vector<16x128xf32>
    %379 = arith.truncf %161 : vector<16x512xf32> to vector<16x512xbf16>
    %c1_i32_200 = arith.constant 1 : i32
    %380 = tpu.dynamic_rotate %161 by %c1_i32_200 dim 0 : vector<16x512xf32>, i32 -> vector<16x512xf32>
    %c1_i32_201 = arith.constant 1 : i32
    %381 = vector.broadcast %c1_i32_201 : i32 to vector<16x1xi32>
    %382 = arith.cmpi sge, %16, %381 : vector<16x1xi32>
    %cst_202 = arith.constant 0.000000e+00 : f32
    %383 = vector.shape_cast %382 : vector<16x1xi1> to vector<16x1xi1>
    %384 = vector.broadcast %383 : vector<16x1xi1> to vector<16x512xi1>
    %385 = vector.broadcast %cst_202 : f32 to vector<16x512xf32>
    %386 = arith.select %384, %380, %385 : vector<16x512xi1>, vector<16x512xf32>
    %387 = arith.truncf %386 : vector<16x512xf32> to vector<16x512xbf16>
    %c15_i32_203 = arith.constant 15 : i32
    %388 = tpu.dynamic_rotate %161 by %c15_i32_203 dim 0 : vector<16x512xf32>, i32 -> vector<16x512xf32>
    %c7_i32_204 = arith.constant 7 : i32
    %389 = vector.broadcast %c7_i32_204 : i32 to vector<16x1xi32>
    %390 = arith.cmpi slt, %16, %389 : vector<16x1xi32>
    %cst_205 = arith.constant 0.000000e+00 : f32
    %391 = vector.shape_cast %390 : vector<16x1xi1> to vector<16x1xi1>
    %392 = vector.broadcast %391 : vector<16x1xi1> to vector<16x512xi1>
    %393 = vector.broadcast %cst_205 : f32 to vector<16x512xf32>
    %394 = arith.select %392, %388, %393 : vector<16x512xi1>, vector<16x512xf32>
    %395 = arith.truncf %394 : vector<16x512xf32> to vector<16x512xbf16>
    %c0_206 = arith.constant 0 : index
    %c2_207 = arith.constant 2 : index
    %c0_208 = arith.constant 0 : index
    %c0_209 = arith.constant 0 : index
    %396 = vector.load %arg13[%c0_206, %c2_207, %c0_208, %c0_209] : memref<3x4x512x128xbf16, #tpu.memory_space<vmem>>, vector<1x1x512x128xbf16>
    %397 = vector.shape_cast %396 : vector<1x1x512x128xbf16> to vector<512x128xbf16>
    %cst_210 = arith.constant dense<0.000000e+00> : vector<16x128xf32>
    %398 = tpu.matmul %387, %397, %cst_210 {dimension_numbers = #tpu.dot_dimension_numbers<[1], [0], [0], [1], [0, 0, 1, 1], [], []>} : vector<16x512xbf16>, vector<512x128xbf16>, vector<16x128xf32> -> vector<16x128xf32>
    %399 = arith.addf %378, %398 : vector<16x128xf32>
    %c1_211 = arith.constant 1 : index
    %c2_212 = arith.constant 2 : index
    %c0_213 = arith.constant 0 : index
    %c0_214 = arith.constant 0 : index
    %400 = vector.load %arg13[%c1_211, %c2_212, %c0_213, %c0_214] : memref<3x4x512x128xbf16, #tpu.memory_space<vmem>>, vector<1x1x512x128xbf16>
    %401 = vector.shape_cast %400 : vector<1x1x512x128xbf16> to vector<512x128xbf16>
    %cst_215 = arith.constant dense<0.000000e+00> : vector<16x128xf32>
    %402 = tpu.matmul %379, %401, %cst_215 {dimension_numbers = #tpu.dot_dimension_numbers<[1], [0], [0], [1], [0, 0, 1, 1], [], []>} : vector<16x512xbf16>, vector<512x128xbf16>, vector<16x128xf32> -> vector<16x128xf32>
    %403 = arith.addf %399, %402 : vector<16x128xf32>
    %c2_216 = arith.constant 2 : index
    %c2_217 = arith.constant 2 : index
    %c0_218 = arith.constant 0 : index
    %c0_219 = arith.constant 0 : index
    %404 = vector.load %arg13[%c2_216, %c2_217, %c0_218, %c0_219] : memref<3x4x512x128xbf16, #tpu.memory_space<vmem>>, vector<1x1x512x128xbf16>
    %405 = vector.shape_cast %404 : vector<1x1x512x128xbf16> to vector<512x128xbf16>
    %cst_220 = arith.constant dense<0.000000e+00> : vector<16x128xf32>
    %406 = tpu.matmul %395, %405, %cst_220 {dimension_numbers = #tpu.dot_dimension_numbers<[1], [0], [0], [1], [0, 0, 1, 1], [], []>} : vector<16x512xbf16>, vector<512x128xbf16>, vector<16x128xf32> -> vector<16x128xf32>
    %407 = arith.addf %403, %406 : vector<16x128xf32>
    %408 = arith.truncf %319 : vector<16x512xf32> to vector<16x512xbf16>
    %c1_i32_221 = arith.constant 1 : i32
    %409 = tpu.dynamic_rotate %319 by %c1_i32_221 dim 0 : vector<16x512xf32>, i32 -> vector<16x512xf32>
    %c1_i32_222 = arith.constant 1 : i32
    %410 = vector.broadcast %c1_i32_222 : i32 to vector<16x1xi32>
    %411 = arith.cmpi sge, %16, %410 : vector<16x1xi32>
    %cst_223 = arith.constant 0.000000e+00 : f32
    %412 = vector.shape_cast %411 : vector<16x1xi1> to vector<16x1xi1>
    %413 = vector.broadcast %412 : vector<16x1xi1> to vector<16x512xi1>
    %414 = vector.broadcast %cst_223 : f32 to vector<16x512xf32>
    %415 = arith.select %413, %409, %414 : vector<16x512xi1>, vector<16x512xf32>
    %416 = arith.truncf %415 : vector<16x512xf32> to vector<16x512xbf16>
    %c15_i32_224 = arith.constant 15 : i32
    %417 = tpu.dynamic_rotate %319 by %c15_i32_224 dim 0 : vector<16x512xf32>, i32 -> vector<16x512xf32>
    %c7_i32_225 = arith.constant 7 : i32
    %418 = vector.broadcast %c7_i32_225 : i32 to vector<16x1xi32>
    %419 = arith.cmpi slt, %16, %418 : vector<16x1xi32>
    %cst_226 = arith.constant 0.000000e+00 : f32
    %420 = vector.shape_cast %419 : vector<16x1xi1> to vector<16x1xi1>
    %421 = vector.broadcast %420 : vector<16x1xi1> to vector<16x512xi1>
    %422 = vector.broadcast %cst_226 : f32 to vector<16x512xf32>
    %423 = arith.select %421, %417, %422 : vector<16x512xi1>, vector<16x512xf32>
    %424 = arith.truncf %423 : vector<16x512xf32> to vector<16x512xbf16>
    %c0_227 = arith.constant 0 : index
    %c3 = arith.constant 3 : index
    %c0_228 = arith.constant 0 : index
    %c0_229 = arith.constant 0 : index
    %425 = vector.load %arg13[%c0_227, %c3, %c0_228, %c0_229] : memref<3x4x512x128xbf16, #tpu.memory_space<vmem>>, vector<1x1x512x128xbf16>
    %426 = vector.shape_cast %425 : vector<1x1x512x128xbf16> to vector<512x128xbf16>
    %cst_230 = arith.constant dense<0.000000e+00> : vector<16x128xf32>
    %427 = tpu.matmul %416, %426, %cst_230 {dimension_numbers = #tpu.dot_dimension_numbers<[1], [0], [0], [1], [0, 0, 1, 1], [], []>} : vector<16x512xbf16>, vector<512x128xbf16>, vector<16x128xf32> -> vector<16x128xf32>
    %428 = arith.addf %407, %427 : vector<16x128xf32>
    %c1_231 = arith.constant 1 : index
    %c3_232 = arith.constant 3 : index
    %c0_233 = arith.constant 0 : index
    %c0_234 = arith.constant 0 : index
    %429 = vector.load %arg13[%c1_231, %c3_232, %c0_233, %c0_234] : memref<3x4x512x128xbf16, #tpu.memory_space<vmem>>, vector<1x1x512x128xbf16>
    %430 = vector.shape_cast %429 : vector<1x1x512x128xbf16> to vector<512x128xbf16>
    %cst_235 = arith.constant dense<0.000000e+00> : vector<16x128xf32>
    %431 = tpu.matmul %408, %430, %cst_235 {dimension_numbers = #tpu.dot_dimension_numbers<[1], [0], [0], [1], [0, 0, 1, 1], [], []>} : vector<16x512xbf16>, vector<512x128xbf16>, vector<16x128xf32> -> vector<16x128xf32>
    %432 = arith.addf %428, %431 : vector<16x128xf32>
    %c2_236 = arith.constant 2 : index
    %c3_237 = arith.constant 3 : index
    %c0_238 = arith.constant 0 : index
    %c0_239 = arith.constant 0 : index
    %433 = vector.load %arg13[%c2_236, %c3_237, %c0_238, %c0_239] : memref<3x4x512x128xbf16, #tpu.memory_space<vmem>>, vector<1x1x512x128xbf16>
    %434 = vector.shape_cast %433 : vector<1x1x512x128xbf16> to vector<512x128xbf16>
    %cst_240 = arith.constant dense<0.000000e+00> : vector<16x128xf32>
    %435 = tpu.matmul %424, %434, %cst_240 {dimension_numbers = #tpu.dot_dimension_numbers<[1], [0], [0], [1], [0, 0, 1, 1], [], []>} : vector<16x512xbf16>, vector<512x128xbf16>, vector<16x128xf32> -> vector<16x128xf32>
    %436 = arith.addf %432, %435 : vector<16x128xf32>
    %cst_241 = arith.constant 0.000000e+00 : f32
    %437 = vector.broadcast %cst_241 : f32 to vector<16x128xf32>
    %438 = arith.cmpf oge, %436, %437 : vector<16x128xf32>
    %cst_242 = arith.constant 5.000000e-02 : f32
    %439 = vector.broadcast %cst_242 : f32 to vector<16x128xf32>
    %440 = arith.mulf %439, %436 : vector<16x128xf32>
    %441 = arith.select %438, %436, %440 : vector<16x128xi1>, vector<16x128xf32>
    %c0_243 = arith.constant 0 : index
    %c0_244 = arith.constant 0 : index
    %442 = vector.load %arg14[%c0_243, %c0_244] : memref<1x128xf32, #tpu.memory_space<vmem>>, vector<1x128xf32>
    %443 = vector.broadcast %442 : vector<1x128xf32> to vector<16x128xf32>
    %444 = arith.mulf %441, %443 : vector<16x128xf32>
    %c0_245 = arith.constant 0 : index
    %c0_246 = arith.constant 0 : index
    %445 = vector.load %arg15[%c0_245, %c0_246] : memref<1x128xf32, #tpu.memory_space<vmem>>, vector<1x128xf32>
    %446 = vector.broadcast %445 : vector<1x128xf32> to vector<16x128xf32>
    %447 = arith.addf %444, %446 : vector<16x128xf32>
    %448 = arith.addf %447, %26 : vector<16x128xf32>
    %c0_247 = arith.constant 0 : index
    %c0_248 = arith.constant 0 : index
    %449 = vector.load %arg16[%c0_247, %c0_248] : memref<16x128xf32, #tpu.memory_space<vmem>>, vector<16x128xf32>
    tpu.vector_store %arg16[%c0_247, %c0_248], %448 {strides = array<i32>} : memref<16x128xf32, #tpu.memory_space<vmem>>, vector<16x128xf32>,
    return
  }
  func.func @transform_0(%arg0: i32) -> (i32, i32, i32) {
    %c0_i32 = arith.constant 0 : i32
    %c0_i32_0 = arith.constant 0 : i32
    %c0_i32_1 = arith.constant 0 : i32
    return %c0_i32, %arg0, %c0_i32_0 : i32, i32, i32
  }
  func.func @transform_1(%arg0: i32) -> (i32, i32, i32, i32) {
    %c0_i32 = arith.constant 0 : i32
    %c0_i32_0 = arith.constant 0 : i32
    %c0_i32_1 = arith.constant 0 : i32
    %c0_i32_2 = arith.constant 0 : i32
    %c0_i32_3 = arith.constant 0 : i32
    return %c0_i32, %c0_i32_0, %c0_i32_1, %c0_i32_2 : i32, i32, i32, i32
  }
  func.func @transform_2(%arg0: i32) -> (i32, i32, i32) {
    %c0_i32 = arith.constant 0 : i32
    %c0_i32_0 = arith.constant 0 : i32
    %c0_i32_1 = arith.constant 0 : i32
    %c0_i32_2 = arith.constant 0 : i32
    return %c0_i32, %c0_i32_0, %c0_i32_1 : i32, i32, i32
  }
  func.func @transform_3(%arg0: i32) -> (i32, i32, i32) {
    %c0_i32 = arith.constant 0 : i32
    %c0_i32_0 = arith.constant 0 : i32
    %c0_i32_1 = arith.constant 0 : i32
    %c0_i32_2 = arith.constant 0 : i32
    return %c0_i32, %c0_i32_0, %c0_i32_1 : i32, i32, i32
  }
  func.func @transform_4(%arg0: i32) -> (i32, i32, i32) {
    %c0_i32 = arith.constant 0 : i32
    %c0_i32_0 = arith.constant 0 : i32
    %c0_i32_1 = arith.constant 0 : i32
    %c0_i32_2 = arith.constant 0 : i32
    return %c0_i32, %c0_i32_0, %c0_i32_1 : i32, i32, i32
  }
  func.func @transform_5(%arg0: i32) -> (i32, i32, i32) {
    %c0_i32 = arith.constant 0 : i32
    %c0_i32_0 = arith.constant 0 : i32
    %c0_i32_1 = arith.constant 0 : i32
    %c0_i32_2 = arith.constant 0 : i32
    return %c0_i32, %c0_i32_0, %c0_i32_1 : i32, i32, i32
  }
  func.func @transform_6(%arg0: i32) -> (i32, i32) {
    %c0_i32 = arith.constant 0 : i32
    %c0_i32_0 = arith.constant 0 : i32
    %c0_i32_1 = arith.constant 0 : i32
    return %c0_i32, %c0_i32_0 : i32, i32
  }
  func.func @transform_7(%arg0: i32) -> (i32, i32) {
    %c0_i32 = arith.constant 0 : i32
    %c0_i32_0 = arith.constant 0 : i32
    %c0_i32_1 = arith.constant 0 : i32
    return %c0_i32, %c0_i32_0 : i32, i32
  }
  func.func @transform_8(%arg0: i32) -> (i32, i32) {
    %c0_i32 = arith.constant 0 : i32
    %c0_i32_0 = arith.constant 0 : i32
    %c0_i32_1 = arith.constant 0 : i32
    return %c0_i32, %c0_i32_0 : i32, i32
  }
  func.func @transform_9(%arg0: i32) -> (i32, i32) {
    %c0_i32 = arith.constant 0 : i32
    %c0_i32_0 = arith.constant 0 : i32
    %c0_i32_1 = arith.constant 0 : i32
    return %c0_i32, %c0_i32_0 : i32, i32
  }
  func.func @transform_10(%arg0: i32) -> (i32, i32, i32) {
    %c0_i32 = arith.constant 0 : i32
    %c0_i32_0 = arith.constant 0 : i32
    %c0_i32_1 = arith.constant 0 : i32
    %c0_i32_2 = arith.constant 0 : i32
    return %c0_i32, %c0_i32_0, %c0_i32_1 : i32, i32, i32
  }
  func.func @transform_11(%arg0: i32) -> (i32, i32) {
    %c0_i32 = arith.constant 0 : i32
    %c0_i32_0 = arith.constant 0 : i32
    %c0_i32_1 = arith.constant 0 : i32
    return %c0_i32, %c0_i32_0 : i32, i32
  }
  func.func @transform_12(%arg0: i32) -> (i32, i32, i32, i32) {
    %c0_i32 = arith.constant 0 : i32
    %c0_i32_0 = arith.constant 0 : i32
    %c0_i32_1 = arith.constant 0 : i32
    %c0_i32_2 = arith.constant 0 : i32
    %c0_i32_3 = arith.constant 0 : i32
    return %c0_i32, %c0_i32_0, %c0_i32_1, %c0_i32_2 : i32, i32, i32, i32
  }
  func.func @transform_13(%arg0: i32) -> (i32, i32) {
    %c0_i32 = arith.constant 0 : i32
    %c0_i32_0 = arith.constant 0 : i32
    %c0_i32_1 = arith.constant 0 : i32
    return %c0_i32, %c0_i32_0 : i32, i32
  }
  func.func @transform_14(%arg0: i32) -> (i32, i32) {
    %c0_i32 = arith.constant 0 : i32
    %c0_i32_0 = arith.constant 0 : i32
    %c0_i32_1 = arith.constant 0 : i32
    return %c0_i32, %c0_i32_0 : i32, i32
  }
  func.func @transform_15(%arg0: i32) -> (i32, i32) {
    %c0_i32 = arith.constant 0 : i32
    %c0_i32_0 = arith.constant 0 : i32
    return %arg0, %c0_i32 : i32, i32
  }
}

</mosaic_0001>

<bundles_post_ra>
// kernel: encoder_forward.2
= control target key start
LH: loop header
LB: loop body
LE: loop exit
PB: predicated region body
PF: predicated region fallthrough
CT: control target
= control target key end

     0   :  { %s3677_s0 = inlined_call_operand.vmem [shape: f32[3,16,128], index: 0, kind: input, shape index: {}, may-alias: {0,1}]   ;;  %s3678_s1 = inlined_call_operand.vmem [shape: f32[3,16,128], index: 1, kind: input, shape index: {}, may-alias: {0,1}]   ;;  %s3679_s2 = inlined_call_operand.hbm [shape: bf16[3,128,128], index: 2, kind: input, shape index: {}]   ;;  %s3680_s3 = inlined_call_operand.hbm [shape: f32[3,1,128], index: 3, kind: input, shape index: {}]   ;;  %s3681_s4 = inlined_call_operand.hbm [shape: bf16[3,128,256], index: 4, kind: input, shape index: {}]   ;;  %s3682_s5 = inlined_call_operand.hbm [shape: f32[3,1,256], index: 5, kind: input, shape index: {}]   ;;  %s3683_s6 = inlined_call_operand.hbm [shape: bf16[3,4,32,128], index: 6, kind: input, shape index: {}]   ;;  %s3684_s7 = inlined_call_operand.hbm [shape: f32[3,1,128], index: 7, kind: input, shape index: {}]   ;;  %s3685_s8 = inlined_call_operand.vmem [shape: f32[3,16,128], index: 8, kind: output, shape index: {}]  }
   0x1   :  { %3695 = sst [smem:[#allocation22_spill]] %s3677_s0 }
   0x2   :  { %3696 = sst [smem:[#allocation23_spill]] %s3678_s1 }
   0x3   :  { %3697 = sst [smem:[#allocation24_spill]] %s3679_s2 }
   0x4   :  { %3698 = sst [smem:[#allocation25_spill]] %s3680_s3 }
   0x5   :  { %3699 = sst [smem:[#allocation26_spill]] %s3682_s5 }
   0x6   :  { %3700 = sst [smem:[#allocation27_spill]] %s3685_s8 }
   0x7   :  { %13 = vsyncpa [#allocation3], 0 }
   0x8   :  { %15 = vsyncpa [#allocation3 + $0x1], 0 }
   0x9   :  { %16 = vsyncpa [#allocation5], 0 }
   0xa   :  { %18 = vsyncpa [#allocation5 + $0x1], 0 }
   0xb   :  { %19 = vsyncpa [#allocation8], 0 }
   0xc   :  { %21 = vsyncpa [#allocation8 + $0x1], 0 }
   0xd   :  { %22 = vsyncpa [#allocation11], 0 }
   0xe   :  { %24 = vsyncpa [#allocation11 + $0x1], 0  ;;  %s3183_s27 = smov 0   ;;  %s3185_s28 = smov 0  }
   0xf   :  { %s3187_s29 = smov 0   ;;  %s3189_s30 = smov 0  }
  0x10   :  { %s3191_s9 = smov 0   ;;  %s3193_s10 = smov 0  }
  0x11 LB: > { %3701 = sst [smem:[#allocation16_spill]] %s3108_s29  ;;  %s3686_s11 = sadd.s32 4294967295, %s3120_s10   ;;  %s3120_s10 = sphi %s3193_s10, %s30_s10   ;;  %s3116_s9 = sphi %s3191_s9, %s3730_s9   ;;  %s3112_s30 = sphi %s3189_s30, %s3729_s30   ;;  %s3108_s29 = sphi %s3187_s29, %s3725_s29   ;;  %s3104_s28 = sphi %s3185_s28, %s3728_s28   ;;  %s3100_s27 = sphi %s3183_s27, %s3727_s27  }
  0x12   : > { %3702 = sst [smem:[#allocation17_spill]] %s3112_s30  ;;  %s42_s12 = sadd.s32 1, %s3116_s9 }
  0x13   : > { %3703 = sst [smem:[#allocation18_spill]] %s3120_s10  ;;  %p44_p0 = scmp.ge.s32.totalorder %s42_s12, 3 }
  0x14   : > { %s133_s13 = sadd.s32 1, %s3108_s29  ;;  %p140_p1 = scmp.ne.s32.totalorder %s3108_s29, %s3104_s28 }
  0x15   : > { %p141_p2 = scmp.eq.s32.totalorder %s3120_s10, 0  ;;  %s3732_s12 = smov (%p44_p0, %s42_s12), 0 }
  0x16   : > { %3704 = sst [smem:[#allocation19_spill]] %s3732_s12  ;;  %p146_p4 = scmp.ne.s32.totalorder %s3104_s28, %s3100_s27 }
  0x17   : > { %p142_p3 = por %p141_p2, %p140_p1  ;;  %s130_s14 = ssub.s32 %s3116_s9, %s3732_s12 }
  0x18   : > { %p147_p5 = scmp.eq.s32.totalorder %s3686_s11, 0  ;;  %p131_p6 = scmp.eq.s32.totalorder %s130_s14, 0 }
  0x19   : > { %p2748_p8 = scmp.lt.s32.totalorder %s3120_s10, 3  ;;  %s3233_s17 = sand.u32 1, %s3108_s29  }
  0x1a   : > { %p3224_p7 = por %p147_p5, %p146_p4  ;;  %s3688_s19 = sand.u32 1, %s3120_s10  }
  0x1b   : > { %s3230_s16 = scalar_select %p131_p6, %s3108_s29, %s133_s13  }
  0x1c   : > { %s3705_s15 = scalar_select %p3224_p7, 1, 0 }
  0x1d   : > { %3707 = sst [smem:[#allocation21_spill]] %s3230_s16  ;;  %p3235_p9 = pnand %p2748_p8, %p142_p3 }
  0x1e   : > { %3706 = sst [smem:[#allocation20_spill]] %s3705_s15  ;;  %s3687_s20 = sshll.u32 %s3116_s9, 4 }
  0x1f   : > { %s406_s21 = scalar_lea.vmem [#allocation4], %s3233_s17  ;;  %s3709_s3 = sld [smem:[#allocation25_spill]] }
  0x20   : > { %s413_s22 = sshll.u32 %s406_s21, 4  ;;  %s3249_s26 = scalar_lea.sflag [#allocation5], %s3688_s19  ;;  %s414_s22 = int_to_ptr.vmem [resolvable:$true] %s413_s22 }
  0x21   : > { %p3253_p10 = pneg %p3235_p9  ;;  %s2903_s13 = scalar_lea.vmem %s414_s22, 16 }
  0x22   : > { %p2904_p11 = scmp.ne.s32.totalorder %s414_s22, %s2903_s13  ;;  %s3122_s14 = smov [#allocation4]  }
  0x23   : > { %s2908_s21 = sshll.u32 %s3122_s14, 4  ;;  %s2909_s21 = int_to_ptr.vmem [resolvable:$false] %s2908_s21 }
  0x24   : > { %p2906_p12 = pnand %p2904_p11, %p3253_p10  ;;  %s2910_s23 = scalar_lea.vmem %s2909_s21, 32 }
  0x25   : > { %s411_s25 = scalar_lea.hbm %s3709_s3, %s3687_s20  ;;  %p2911_p0 = scmp.lt.s32.totalorder %s414_s22, %s2909_s21 }
  0x26   : > { %p2907_p13 = pneg %p2906_p12  ;;  %p2912_p1 = scmp.lt.s32.totalorder %s2910_s23, %s2903_s13 }
  0x28   : > { %p2913_p2 = por %p2912_p1, %p2911_p0 }
  0x2a   : > { %p2914_p3 = pnand %p2913_p2, %p2907_p13 }
  0x2c   : > { %2917 = shalt.err (!%p2914_p3)
}
  0x2d   : > { %2735 = dma.hbm_to_vmem [thread:$0]  (!%p3235_p9), %s411_s25, 16, %s414_s22, %s3249_s26  }
  0x2e   : > { %p2427_p4 = scmp.ge.s32.totalorder %s3120_s10, 1  ;;  %p496_p5 = scmp.lt.s32.totalorder %s3120_s10, 4 }
  0x2f   : > { %s2420_s24 = sshll.u32 %s3233_s17, 1  ;;  %s2505_s13 = sshll.u32 %s3116_s9, 5 }
  0x30   : > { %p3265_p6 = pnand %p2427_p4, %p496_p5  ;;  %s445_s21 = scalar_lea.vmem [#allocation7], %s2420_s24 }
  0x31   : > { %s453_s23 = sshll.u32 %s445_s21, 4  ;;  %s3712_s5 = sld [smem:[#allocation26_spill]]  ;;  %s454_s23 = int_to_ptr.vmem [resolvable:$true] %s453_s23 }
  0x32   : > { %s3713_s3 = sand.u32 1, %s3120_s10   ;;  %s2931_s16 = scalar_lea.vmem %s454_s23, 32 }
  0x33   : > { %s3275_s12 = scalar_lea.sflag [#allocation8], %s3713_s3  ;;  %p2932_p8 = scmp.ne.s32.totalorder %s454_s23, %s2931_s16 }
  0x34   : > { %s3123_s22 = smov [#allocation7]  }
  0x35   : > { %p2934_p11 = pnand %p2932_p8, %p3253_p10  ;;  %s2936_s25 = sshll.u32 %s3123_s22, 4  ;;  %s2937_s25 = int_to_ptr.vmem [resolvable:$false] %s2936_s25 }
  0x36   : > { %s2938_s29 = scalar_lea.vmem %s2937_s25, 64  ;;  %p2939_p13 = scmp.lt.s32.totalorder %s454_s23, %s2937_s25 }
  0x37   : > { %s451_s19 = scalar_lea.hbm %s3712_s5, %s2505_s13  ;;  %p2935_p12 = pneg %p2934_p11 }
  0x38   : > { %p2940_p0 = scmp.lt.s32.totalorder %s2938_s29, %s2931_s16 }
  0x3a   : > { %p2941_p1 = por %p2940_p0, %p2939_p13 }
  0x3c   : > { %p2942_p2 = pnand %p2941_p1, %p2935_p12 }
  0x3e   : > { %2945 = shalt.err (!%p2942_p2)
}
  0x3f   : > { %2741 = dma.hbm_to_vmem [thread:$0]  (!%p3235_p9), %s451_s19, 32, %s454_s23, %s3275_s12  }
  0x40   : > { %s2413_s3 = sshll.u32 %s3233_s17, 6  ;;  %s2503_s11 = sshll.u32 %s3116_s9, 10 }
  0x41   : > { %s3714_s2 = sld [smem:[#allocation24_spill]]  ;;  %s386_s21 = scalar_lea.vmem [#allocation2], %s2413_s3 }
  0x42   : > { %s393_s22 = sshll.u32 %s386_s21, 4  ;;  %s383_s29 = scalar_lea.sflag [#allocation3], %s3233_s17  ;;  %s394_s22 = int_to_ptr.vmem [resolvable:$true] %s393_s22 }
  0x43   : > { %s2959_s16 = scalar_lea.vmem %s394_s22, 1024  ;;  %s3124_s25 = smov [#allocation2]  }
  0x44   : > { %p2960_p3 = scmp.ne.s32.totalorder %s394_s22, %s2959_s16  ;;  %s2964_s5 = sshll.u32 %s3124_s25, 4  ;;  %s2965_s5 = int_to_ptr.vmem [resolvable:$false] %s2964_s5 }
  0x45   : > { %s2966_s8 = scalar_lea.vmem %s2965_s5, 2048  ;;  %p2967_p8 = scmp.lt.s32.totalorder %s394_s22, %s2965_s5 }
  0x46   : > { %p2962_p4 = pnand %p2960_p3, %p3253_p10  ;;  %p2968_p11 = scmp.lt.s32.totalorder %s2966_s8, %s2959_s16 }
  0x47   : > { %s392_s13 = scalar_lea.hbm %s3714_s2, %s2503_s11 }
  0x48   : > { %p2963_p5 = pneg %p2962_p4  ;;  %p2969_p12 = por %p2968_p11, %p2967_p8 }
  0x4a   : > { %p2970_p13 = pnand %p2969_p12, %p2963_p5 }
  0x4c   : > { %2973 = shalt.err (!%p2970_p13)
}
  0x4d   : > { %s3125_s19 = smov 64   ;;  %s3126_s23 = smov 4  }
  0x4e   : > { %2732 = dma.hbm_to_vmem [thread:$0]  (!%p3235_p9), %s392_s13, 1024, %s394_s22, %s383_s29, %s3125_s19, %s3125_s19, %s3126_s23  }
  0x4f   : > { %s3298_s21 = scalar_lea.hbm %s3683_s6, %s2503_s11  ;;  %s464_s5 = scalar_lea.vmem [#allocation9], %s2413_s3 }
  0x50   : > { %s471_s8 = sshll.u32 %s464_s5, 4  ;;  %s2417_s16 = sshll.u32 %s3233_s17, 7  ;;  %s3300_s8 = int_to_ptr.vmem [resolvable:$true] %s471_s8 }
  0x51   : > { %s2504_s25 = sshll.u32 %s3116_s9, 11  ;;  %s424_s30 = scalar_lea.vmem [#allocation6], %s2417_s16 }
  0x52   : > { %s430_s0 = scalar_lea.hbm %s3681_s4, %s2504_s25  ;;  %s431_s10 = sshll.u32 %s424_s30, 4  ;;  %s432_s10 = int_to_ptr.vmem [resolvable:$true] %s431_s10 }
  0x53   : > { %s2987_s15 = scalar_lea.vmem %s432_s10, 2048  ;;  %s3127_s11 = smov [#allocation6]  }
  0x54   : > { %p2988_p0 = scmp.ne.s32.totalorder %s432_s10, %s2987_s15  ;;  %s2992_s13 = sshll.u32 %s3127_s11, 4  ;;  %s2993_s13 = int_to_ptr.vmem [resolvable:$false] %s2992_s13 }
  0x55   : > { %s2994_s3 = scalar_lea.vmem %s2993_s13, 4096  ;;  %p2995_p3 = scmp.lt.s32.totalorder %s432_s10, %s2993_s13 }
  0x56   : > { %p2990_p1 = pnand %p2988_p0, %p3253_p10  ;;  %p2996_p4 = scmp.lt.s32.totalorder %s2994_s3, %s2987_s15 }
  0x58   : > { %p2991_p2 = pneg %p2990_p1  ;;  %p2997_p5 = por %p2996_p4, %p2995_p3 }
  0x5a   : > { %p2998_p8 = pnand %p2997_p5, %p2991_p2 }
  0x5c   : > { %3001 = shalt.err (!%p2998_p8)
}
  0x5d   : > { %s3128_s22 = smov 128   ;;  %s3129_s1 = smov 8  }
  0x5e   : > { %2738 = dma.hbm_to_vmem [thread:$0]  (!%p3235_p9), %s430_s0, 2048, %s432_s10, %s3249_s26, %s3128_s22, %s3128_s22, %s3129_s1  }
  0x5f   : > { %s3015_s2 = scalar_lea.vmem %s3300_s8, 1024  ;;  %s3130_s30 = smov [#allocation9]  }
  0x60   : > { %p3016_p11 = scmp.ne.s32.totalorder %s3300_s8, %s3015_s2  ;;  %s3020_s15 = sshll.u32 %s3130_s30, 4  ;;  %s3021_s15 = int_to_ptr.vmem [resolvable:$false] %s3020_s15 }
  0x61   : > { %s3022_s29 = scalar_lea.vmem %s3021_s15, 2048  ;;  %p3023_p0 = scmp.lt.s32.totalorder %s3300_s8, %s3021_s15 }
  0x62   : > { %p3018_p12 = pnand %p3016_p11, %p3253_p10  ;;  %p3024_p1 = scmp.lt.s32.totalorder %s3022_s29, %s3015_s2 }
  0x64   : > { %p3019_p13 = pneg %p3018_p12  ;;  %p3025_p2 = por %p3024_p1, %p3023_p0 }
  0x66   : > { %p3026_p3 = pnand %p3025_p2, %p3019_p13 }
  0x68   : > { %3029 = shalt.err (!%p3026_p3)
}
  0x69   : > { %2744 = dma.hbm_to_vmem [thread:$0]  (!%p3235_p9), %s3298_s21, 1024, %s3300_s8, %s3275_s12, %s3125_s19, %s3125_s19, %s3126_s23  }
  0x6a   : > { %s3715_s0 = sshll.u32 %s3116_s9, 4  ;;  %s484_s24 = scalar_lea.vmem [#allocation10], %s3233_s17 }
  0x6b   : > { %s489_s20 = scalar_lea.hbm %s3684_s7, %s3715_s0  ;;  %s491_s5 = sshll.u32 %s484_s24, 4  ;;  %s492_s5 = int_to_ptr.vmem [resolvable:$true] %s491_s5 }
  0x6c   : > { %s482_s16 = scalar_lea.sflag [#allocation11], %s3233_s17  ;;  %s3043_s25 = scalar_lea.vmem %s492_s5, 16 }
  0x6d   : > { %p3044_p4 = scmp.ne.s32.totalorder %s492_s5, %s3043_s25  ;;  %s3131_s11 = smov [#allocation10]  }
  0x6e   : > { %s3048_s13 = sshll.u32 %s3131_s11, 4  ;;  %s3049_s13 = int_to_ptr.vmem [resolvable:$false] %s3048_s13 }
  0x6f   : > { %p3046_p5 = pnand %p3044_p4, %p3253_p10  ;;  %s3050_s3 = scalar_lea.vmem %s3049_s13, 32 }
  0x70   : > { %p3051_p11 = scmp.lt.s32.totalorder %s492_s5, %s3049_s13  ;;  %p3052_p12 = scmp.lt.s32.totalorder %s3050_s3, %s3043_s25 }
  0x71   : > { %p3047_p8 = pneg %p3046_p5 }
  0x72   : > { %p3053_p13 = por %p3052_p12, %p3051_p11 }
  0x74   : > { %p3054_p0 = pnand %p3053_p13, %p3047_p8 }
  0x76   : > { %3057 = shalt.err (!%p3054_p0)
}
  0x77   : > { %2747 = dma.hbm_to_vmem [thread:$0]  (!%p3235_p9), %s489_s20, 16, %s492_s5, %s482_s16  }
  0x78   : > { %500 = sbr.rel (%p3265_p6) target bundleno = 3539 (0xdd3), region = 52  ;;  %s3339_s17 = sand.u32 (!%p3265_p6), 1, %s3104_s28  }
  0x79   : > { %s2428_s27 = sshll.u32 (!%p3265_p6), %s3339_s17, 6  ;;  %s503_s19 = scalar_lea.sflag (!%p3265_p6), [#allocation3], %s3339_s17 }
  0x7a   : > { %s3343_s23 = scalar_lea.vmem (!%p3265_p6), [#allocation2], %s2428_s27 }
  0x7d   : > { %3083 = dma.done.wait (%p3224_p7), %s503_s19, 1024  }
  0x7e   : > { %3085 = vsyncadd (%p3224_p7), %s503_s19, 4294966272  ;;  %s3717_s18 = sld [smem:[#allocation18_spill]]  ;;  %s514_s22 = scalar_lea.vmem [#allocation4], %s3339_s17 }
  0x84   : > { %s3718_s21 = sadd.s32 4294967295, %s3717_s18  }
  0x85   : > { %s511_s14 = sand.u32 1, %s3718_s21  }
  0x86   : > { %s512_s8 = scalar_lea.sflag [#allocation5], %s511_s14 }
  0x87   : > { %3087 = dma.done.wait (%p3224_p7), %s512_s8, 2064  }
  0x88   : > { %3089 = vsyncadd (%p3224_p7), %s512_s8, 4294965232  ;;  %s2429_s1 = sshll.u32 %s3339_s17, 7  ;;  %s2430_s2 = sshll.u32 %s3339_s17, 1 }
  0x89   : > { %s3358_s30 = scalar_lea.vmem [#allocation6], %s2429_s1  ;;  %s529_s15 = scalar_lea.sflag [#allocation8], %s511_s14 }
  0x8a   : > { %s3360_s29 = scalar_lea.vmem [#allocation7], %s2430_s2 }
  0x8b   : > { %3091 = dma.done.wait (%p3224_p7), %s529_s15, 1056  }
  0x8c   : > { %3093 = vsyncadd (%p3224_p7), %s529_s15, 4294966240  ;;  %s3366_s0 = scalar_lea.vmem [#allocation9], %s2428_s27  ;;  %s547_s10 = scalar_lea.sflag [#allocation11], %s3339_s17 }
  0x8d   : > { %s549_s26 = scalar_lea.vmem [#allocation10], %s3339_s17 }
  0x8e   : > { %3095 = dma.done.wait (%p3224_p7), %s547_s10, 16  }
  0x8f   : > { %3097 = vsyncadd (%p3224_p7), %s547_s10, 4294967280  ;;  %s3719_s20 = sld [smem:[#allocation17_spill]]  ;;  %v2808_v4 = vld [vmem:[%s3358_s30 + $0x74] ss:$8 sps:$4 sm:$0xff]   ;;  %v2810_v5 = vld [vmem:[%s3358_s30 + $0x70] ss:$8 sps:$4 sm:$0xff]  }
  0x90   : > { %s3720_s3 = sld [smem:[#allocation22_spill]]  ;;  %v2813_v6 = vld [vmem:[%s3343_s23 + $0x38] sm:$0xff]   ;;  %v3132_v7 = vmov 0.0   ;;  %v2811_v8 = vld [vmem:[%s3358_s30 + $0x64] ss:$8 sps:$4 sm:$0xff]   ;;  %988 = vmatprep.subr.bf16.mxu1 %v2808_v4  ;;  %v3133_v39 = vmov 0   ;;  %v898_v4 = vlaneseq }
  0x91   : > { %s3721_s1 = sld [smem:[#allocation23_spill]]  ;;  %2569 = vmatprep.subr.bf16.mxu0 %v3132_v7  ;;  %989 = vmatpush1.bf16.msra.mxu1 %v2810_v5  ;;  %v2814_v9 = vld [vmem:[%s3358_s30 + $0x60] ss:$8 sps:$4 sm:$0xff]   ;;  %v2815_v26 = vld [vmem:[%s3358_s30 + $0x54] ss:$8 sps:$4 sm:$0xff]   ;;  %vm3134_vm0 = vmmov 0  }
  0x92   : > { %2570 = vmatpush3.bf16.msra.mxu0 %v2813_v6  ;;  %990 = vmatprep.subr.bf16.mxu1 %v2811_v8  ;;  %v2817_v27 = vld [vmem:[%s3343_s23 + $0x30] sm:$0xff]   ;;  %v2821_v30 = vld [vmem:[%s3343_s23 + $0x28] sm:$0xff]   ;;  %v2825_v33 = vld [vmem:[%s3343_s23 + $0x20] sm:$0xff]   ;;  %v899_v5 = vshrl.u32 %v898_v4, 7  ;;  %vm1049_vm1 = vcmask 261120   ;;  %vm1172_vm2 = vcmask 1043456  }
  0x93   : > { %2571 = vmatprep.subr.bf16.mxu0 %v3132_v7  ;;  %v2818_v28 = vld [vmem:[%s3358_s30 + $0x50] ss:$8 sps:$4 sm:$0xff]   ;;  %v2819_v29 = vld [vmem:[%s3358_s30 + $0x44] ss:$8 sps:$4 sm:$0xff]   ;;  %v2822_v31 = vld [vmem:[%s3358_s30 + $0x40] ss:$8 sps:$4 sm:$0xff]   ;;  %1020 = vmatprep.mubr.bf16.mxu1 %v3133_v39 }
  0x94   : > { %v2823_v32 = vld [vmem:[%s3358_s30 + $0x34] ss:$8 sps:$4 sm:$0xff]   ;;  %v2826_v34 = vld [vmem:[%s3358_s30 + $0x30] ss:$8 sps:$4 sm:$0xff]   ;;  %v2827_v35 = vld [vmem:[%s3358_s30 + $0x24] ss:$8 sps:$4 sm:$0xff]   ;;  %2585 = vmatprep.mubr.msk.bf16.mxu0 %vm3134_vm0, %v3132_v7 }
  0x95   : > { %s651_s24 = sadd.s32 1, %s3719_s20  ;;  %p642_p9 = scmp.lt.s32.totalorder %s3719_s20, 2  ;;  %991 = vmatpush1.bf16.msra.mxu1 %v2814_v9  ;;  %v2829_v36 = vld [vmem:[%s3343_s23 + $0x18] sm:$0xff]   ;;  %v2830_v37 = vld [vmem:[%s3358_s30 + $0x20] ss:$8 sps:$4 sm:$0xff]   ;;  %v2833_v40 = vld [vmem:[%s3343_s23 + $0x10] sm:$0xff]  }
  0x96   : > { %s653_s5 = ssub.s32 0, %s651_s24  ;;  %p652_p7 = scmp.lt.s32.totalorder %s651_s24, 0  ;;  %992 = vmatprep.subr.bf16.mxu1 %v2815_v26  ;;  %2572 = vmatpush3.bf16.msra.mxu0 %v2817_v27  ;;  %v2831_v38 = vld [vmem:[%s3358_s30 + $0x14] ss:$8 sps:$4 sm:$0xff]   ;;  %v2834_v41 = vld [vmem:[%s3358_s30 + $0x10] ss:$8 sps:$4 sm:$0xff]  }
  0x97   : > { %s2434_s16 = smin.u32 %s653_s5, %s651_s24  ;;  %s3734_s20 = smov (!%p642_p9, %s3719_s20), 2  ;;  %2573 = vmatprep.subr.bf16.mxu0 %v3132_v7  ;;  %v2835_v42 = vld [vmem:[%s3358_s30 + $0x4] ss:$8 sps:$4 sm:$0xff]   ;;  %v2838_v44 = vld [vmem:[%s3358_s30] ss:$8 sps:$4 sm:$0xff]   ;;  %v900_v6 = vsub.s32 0, %v899_v5 }
  0x98   : > { %2848 = sdivrem.u32 %s2434_s16, 3  ;;  %s2507_s25 = sshll.u32 %s3734_s20, 4  ;;  %v2837_v43 = vld [vmem:[%s3343_s23 + $0x8] sm:$0xff]   ;;  %v2839_v45 = vld [vmem:[%s3343_s23] sm:$0xff]   ;;  %vm1144_vm3 = vcmask 64512  }
  0x99   : > { %s649_s27 = scalar_lea.vmem %s3720_s3, %s2507_s25  ;;  %993 = vmatpush1.bf16.msra.mxu1 %v2818_v28  ;;  %v782_v8 = vld [vmem:[%s3360_s29] sm:$0x3]  ;;  %s3135_s23 = smov 96  }
  0x9a   : > { %v700_v0 = vld [vmem:[%s649_s27] sm:$0xff]  ;;  %v701_v1 = vld [vmem:[%s649_s27 + $0x8] sm:$0xff]  ;;  %994 = vmatprep.subr.bf16.mxu1 %v2819_v29  ;;  %2574 = vmatpush3.bf16.msra.mxu0 %v2821_v30  ;;  %v901_v9 = vrot.slane %v782_v8, %v900_v6  ;;  %s3137_s30 = smov 32  }
  0x9b   : > { %702 = vadd.xlane.f32.xlu1 %v700_v0  ;;  %2575 = vmatprep.subr.bf16.mxu0 %v3132_v7 }
  0x9d   : > { %995 = vmatpush1.bf16.msra.mxu1 %v2822_v31 }
  0x9e   : > { %996 = vmatprep.subr.bf16.mxu1 %v2823_v32  ;;  %2576 = vmatpush3.bf16.msra.mxu0 %v2825_v33 }
  0x9f   : > { %704 = vadd.xlane.f32.xlu1 %v701_v1  ;;  %2577 = vmatprep.subr.bf16.mxu0 %v3132_v7 }
  0xa1   : > { %s2849_s12 = spop.drf %2848  ;;  %997 = vmatpush1.bf16.msra.mxu1 %v2826_v34 }
  0xa2   : > { %s657_s19 = ssub.s32 0, %s2849_s12  ;;  %998 = vmatprep.subr.bf16.mxu1 %v2827_v35  ;;  %2578 = vmatpush3.bf16.msra.mxu0 %v2829_v36 }
  0xa3   : > { %s3736_s19 = smov (!%p652_p7, %s657_s19), %s2849_s12  ;;  %2579 = vmatprep.subr.bf16.mxu0 %v3132_v7 }
  0xa4   : > { %p2436_p10 = scmp.lt.s32.totalorder %s3736_s19, 0  ;;  %s663_s18 = sadd.s32 3, %s3736_s19 }
  0xa5   : > { %999 = vmatpush1.bf16.msra.mxu1 %v2830_v37 }
  0xa6   : > { %s3738_s18 = smov (!%p2436_p10, %s663_s18), %s3736_s19  ;;  %1000 = vmatprep.subr.bf16.mxu1 %v2831_v38  ;;  %2580 = vmatpush3.bf16.msra.mxu0 %v2833_v40 }
  0xa7   : > { %p666_p6 = scmp.lt.s32.totalorder %s3738_s18, 2  ;;  %2581 = vmatprep.subr.bf16.mxu0 %v3132_v7 }
  0xa9   : > { %s3740_s18 = smov (!%p666_p6, %s3738_s18), 2  ;;  %1001 = vmatpush1.bf16.msra.mxu1 %v2834_v41 }
  0xaa   : > { %s2508_s21 = sshll.u32 %s3740_s18, 4  ;;  %1002 = vmatprep.subr.bf16.mxu1 %v2835_v42  ;;  %2582 = vmatpush3.bf16.msra.mxu0 %v2837_v43 }
  0xab   : > { %s673_s2 = scalar_lea.vmem %s3721_s1, %s2508_s21  ;;  %2583 = vmatprep.subr.bf16.mxu0 %v3132_v7 }
  0xac   : > { %v725_v2 = vld [vmem:[%s673_s2] sm:$0xff]  ;;  %v726_v3 = vld [vmem:[%s673_s2 + $0x8] sm:$0xff] }
  0xad   : > { %727 = vadd.xlane.f32.xlu0 %v725_v2  ;;  %1003 = vmatpush1.bf16.msra.mxu1 %v2838_v44 }
  0xae   : > { %2595 = vmatprep.subr.bf16.mxu1 %v3132_v7  ;;  %2584 = vmatpush3.bf16.msra.mxu0 %v2839_v45 }
  0xaf   : > { %2589 = vmatprep.subr.bf16.mxu0 %v3132_v7 }
  0xb1   : > { %729 = vadd.xlane.f32.xlu0 %v726_v3 }
 0x124   : > { %v703_v10 = vpop.xlane.xlu1 %702 }
 0x125   : > { %v707_v11 = vmul.f32 0.0078125, %v703_v10  ;;  %v904_v10 = vsub.s32 1, %v899_v5 }
 0x127   : > { %v3397_v16 = vsub.f32 %v700_v0, %v707_v11 }
 0x128   : > { %v705_v13 = vpop.xlane.xlu1 %704 }
 0x129   : > { %v708_v17 = vmul.f32 0.0078125, %v705_v13  ;;  %v711_v23 = vmul.f32 %v3397_v16, %v3397_v16  ;;  %v905_v13 = vrot.slane %v782_v8, %v904_v10 }
 0x12b   : > { %v3403_v22 = vsub.f32 %v701_v1, %v708_v17  ;;  %v2441_v17 = vld [vmem:[%s514_s22] ss:$0 sm:$0xff]  ;;  %s3136_s22 = smov 64  }
 0x12d   : > { %v712_v25 = vmul.f32 %v3403_v22, %v3403_v22 }
 0x136   : > { %v728_v12 = vpop.xlane.xlu0 %727 }
 0x137   : > { %v731_v14 = vmul.f32 0.0078125, %v728_v12 }
 0x139   : > { %v3395_v15 = vsub.f32 %v725_v2, %v731_v14 }
 0x13a   : > { %v730_v18 = vpop.xlane.xlu0 %729 }
 0x13b   : > { %v732_v19 = vmul.f32 0.0078125, %v730_v18  ;;  %v735_v20 = vmul.f32 %v3395_v15, %v3395_v15 }
 0x13d   : > { %v3401_v21 = vsub.f32 %v726_v3, %v732_v19  ;;  %737 = vadd.xlane.f32.xlu0 %v735_v20 }
 0x13f   : > { %v736_v24 = vmul.f32 %v3401_v21, %v3401_v21 }
 0x141   : > { %739 = vadd.xlane.f32.xlu1 %v736_v24  ;;  %713 = vadd.xlane.f32.xlu0 %v711_v23 }
 0x145   : > { %715 = vadd.xlane.f32.xlu1 %v712_v25 }
 0x1c6   : > { %v738_v46 = vpop.xlane.xlu0 %737 }
 0x1c7   : > { %v741_v47 = vmul.f32 0.0078125, %v738_v46 }
 0x1c9   : > { %v743_v48 = vadd.f32 1e-05, %v741_v47 }
 0x1ca   : > { %v714_v49 = vpop.xlane.xlu0 %713  ;;  %v740_v50 = vpop.xlane.xlu1 %739 }
 0x1cb   : > { %v717_v51 = vmul.f32 0.0078125, %v714_v49  ;;  %v742_v52 = vmul.f32 0.0078125, %v740_v50  ;;  %2850 = vrsqrt.f32 %v743_v48 }
 0x1cd   : > { %v719_v53 = vadd.f32 1e-05, %v717_v51  ;;  %v744_v54 = vadd.f32 1e-05, %v742_v52 }
 0x1ce   : > { %v716_v55 = vpop.xlane.xlu1 %715 }
 0x1cf   : > { %v718_v56 = vmul.f32 0.0078125, %v716_v55  ;;  %2852 = vrsqrt.f32 %v744_v54 }
 0x1d0   : > { %2854 = vrsqrt.f32 %v719_v53 }
 0x1d1   : > { %v720_v57 = vadd.f32 1e-05, %v718_v56 }
 0x1d3   : > { %2856 = vrsqrt.f32 %v720_v57 }
 0x1d8   : > { %v2851_v58 = vpop.eup %2850 }
 0x1d9   : > { %v747_v61 = vmul.f32 %v2851_v58, %v3395_v15 }
 0x1dc   : > { %v2853_v59 = vpop.eup %2852 }
 0x1dd   : > { %v2855_v60 = vpop.eup %2854  ;;  %v748_v62 = vmul.f32 %v2853_v59, %v3401_v21 }
 0x1de   : > { %v3443_v1 = vmul.f32 %v2855_v60, %v3397_v16 }
 0x1df   : > { %v896_v0 = vpack.c.bf16 %v748_v62, %v747_v61 }
 0x1e0   : > { %v2857_v63 = vpop.eup %2856 }
 0x1e1   : > { %v3446_v2 = vmul.f32 %v2857_v63, %v3403_v22  ;;  %1021 = vmatmul.mubr.bf16.vlgmr.msra.gmra.mxu1 %v896_v0 }
 0x1e2   : > { %2597 = vmatprep.mubr.msk.bf16.mxu1 %vm3134_vm0, %v3132_v7 }
 0x1e3   : > { %v800_v3 = vpack.c.bf16 %v3446_v2, %v3443_v1 }
 0x1e5   : > { %2586 = vmatmul.mubr.bf16.vlgmr.msra.gmra.mxu0 %v800_v3 }
 0x1e6   : > { %2591 = vmatprep.mubr.msk.bf16.mxu0 %vm3134_vm0, %v3132_v7 }
 0x2a1   : > { %v1022_v11 = vpop.f32.mrf.mxu1 }
 0x2a2   : > { %v1023_v12 = vadd.f32 %v1022_v11, %v901_v9 }
 0x2a3   : > { %v1024_v14 = vpop.f32.mrf.mxu1 }
 0x2a4   : > { %v3455_v15 = vpack.c.bf16 %v1023_v12, %v1023_v12  ;;  %v1025_v19 = vadd.f32 %v1024_v14, %v905_v13 }
 0x2a5   : > { %v889_v16 = vpop.f32.mrf.mxu0  ;;  %v1026_v18 = vpop.f32.mrf.mxu1 }
 0x2a6   : > { %v1027_v20 = vadd.f32 %v1026_v18, %v901_v9  ;;  %v1054_v22 = vsel %vm1049_vm1, %v3455_v15, 0  ;;  %v890_v24 = vadd.f32 %v2441_v17, %v889_v16  ;;  %v3464_v27 = vpack.c.bf16 %v1025_v19, %v1025_v19 }
 0x2a7   : > { %v2587_v21 = vpop.f32.mrf.mxu0  ;;  %v1028_v23 = vpop.f32.mrf.mxu1  ;;  %2590 = vmatpush3.bf16.xpose.msra.mxu0 %v1054_v22 }
 0x2a8   : > { %v3461_v25 = vpack.c.bf16 %v1027_v20, %v1027_v20  ;;  %2601 = vmatprep.subr.bf16.mxu0 %v3132_v7  ;;  %v1029_v28 = vadd.f32 %v1028_v23, %v905_v13  ;;  %v3468_v31 = vpack.c.bf16 %v890_v24, %v890_v24  ;;  %v1174_v34 = vsel %vm1172_vm2, %v3464_v27, 0 }
 0x2a9   : > { %v892_v26 = vpop.f32.mrf.mxu0 }
 0x2aa   : > { %v1100_v30 = vsel %vm1049_vm1, %v3461_v25, 0  ;;  %v893_v32 = vadd.f32 %v2441_v17, %v892_v26  ;;  %v3471_v33 = vpack.c.bf16 %v1029_v28, %v1029_v28 }
 0x2ab   : > { %v2588_v29 = vpop.f32.mrf.mxu0  ;;  %2596 = vmatpush3.bf16.xpose.msra.mxu1 %v1100_v30 }
 0x2ac   : > { %2607 = vmatprep.subr.bf16.mxu1 %v3132_v7  ;;  %v3479_v35 = vpack.c.bf16 %v893_v32, %v893_v32  ;;  %v1220_v36 = vsel %vm1172_vm2, %v3471_v33, 0 }
 0x2ae   : > { %2592 = vmatmul.mubr.msk.bf16.vlgmr.msra.gmra.mxu0 %vm1049_vm1, %v3468_v31 }
 0x2af   : > { %2602 = vmatpush3.bf16.msra.mxu0 %v1174_v34  ;;  %2603 = vmatprep.mubr.msk.bf16.mxu0 %vm3134_vm0, %v3132_v7 }
 0x2b0   : > { %2613 = vmatprep.subr.bf16.mxu0 %v3132_v7 }
 0x2b2   : > { %2598 = vmatmul.mubr.msk.bf16.vlgmr.msra.gmra.mxu1 %vm1049_vm1, %v3479_v35 }
 0x2b3   : > { %2608 = vmatpush3.bf16.msra.mxu1 %v1220_v36  ;;  %2609 = vmatprep.mubr.msk.bf16.mxu1 %vm3134_vm0, %v3132_v7 }
 0x2b4   : > { %2619 = vmatprep.subr.bf16.mxu1 %v3132_v7 }
 0x36e   : > { %v1090_v37 = vpop.f32.mrf.mxu0 }
 0x36f   : > { %v1142_v38 = vmul.f32 0.17677669, %v1090_v37 }
 0x370   : > { %v2593_v39 = vpop.f32.mrf.mxu0 }
 0x371   : > { %v1145_v40 = vsel %vm1144_vm3, %v1142_v38, -inf }
 0x372   : > { %v1136_v41 = vpop.f32.mrf.mxu1  ;;  %1146 = vmax.xlane.f32.xlu0 %v1145_v40  ;;  %v1093_v42 = vpop.f32.mrf.mxu0 }
 0x373   : > { %v1143_v43 = vmul.f32 0.17677669, %v1136_v41 }
 0x374   : > { %v2594_v44 = vpop.f32.mrf.mxu0  ;;  %v2599_v45 = vpop.f32.mrf.mxu1 }
 0x375   : > { %v1148_v46 = vsel %vm1144_vm3, %v1143_v43, -inf }
 0x376   : > { %1149 = vmax.xlane.f32.xlu1 %v1148_v46  ;;  %v1139_v47 = vpop.f32.mrf.mxu1 }
 0x378   : > { %v2600_v48 = vpop.f32.mrf.mxu1 }
 0x387   : > { %1315 = vrot.lane.b32.xlu1 %v3461_v25, %s3135_s23 }
 0x3fb   : > { %v1147_v49 = vpop.xlane.xlu0 %1146 }
 0x3fc   : > { %v1151_v50 = vsub.f32 %v1142_v38, %v1147_v49 }
 0x3fe   : > { %v1153_v51 = vmul.f32 1.442695, %v1151_v50 }
 0x3ff   : > { %v1150_v52 = vpop.xlane.xlu1 %1149 }
 0x400   : > { %2858 = vpow2.f32 %v1153_v51  ;;  %v1152_v53 = vsub.f32 %v1143_v43, %v1150_v52 }
 0x402   : > { %v1155_v54 = vmul.f32 1.442695, %v1152_v53 }
 0x403   : > { %v1316_v59 = vpop.permute.xlu1 %1315 }
 0x404   : > { %2860 = vpow2.f32 %v1155_v54  ;;  %v1321_v9 = vsel %vm1049_vm1, %v1316_v59, 0 }
 0x40d   : > { %v2859_v55 = vpop.eup %2858 }
 0x40e   : > { %v1157_v56 = vsel %vm1144_vm3, %v2859_v55, 0.0 }
 0x40f   : > { %1158 = vadd.xlane.f32.xlu0 %v1157_v56 }
 0x411   : > { %v2861_v57 = vpop.eup %2860 }
 0x412   : > { %v1160_v58 = vsel %vm1144_vm3, %v2861_v57, 0.0 }
 0x413   : > { %1161 = vadd.xlane.f32.xlu1 %v1160_v58 }
 0x424   : > { %1263 = vrot.lane.b32.xlu1 %v3468_v31, %s3135_s23 }
 0x425   : > { %1265 = vrot.lane.b32.xlu0 %v3455_v15, %s3135_s23 }
 0x428   : > { %1313 = vrot.lane.b32.xlu1 %v3479_v35, %s3135_s23 }
 0x498   : > { %v1159_v60 = vpop.xlane.xlu0 %1158 }
 0x499   : > { %2862 = vrcp.f32 %v1159_v60 }
 0x49c   : > { %v1162_v61 = vpop.xlane.xlu1 %1161  ;;  %v1266_v0 = vpop.permute.xlu0 %1265 }
 0x49d   : > { %2864 = vrcp.f32 %v1162_v61  ;;  %v1271_v5 = vsel %vm1049_vm1, %v1266_v0, 0  ;;  %v2840_v61 = vld [vmem:[%s3366_s0 + $0x8] sm:$0xff]   ;;  %v2841_v0 = vld [vmem:[%s3366_s0] sm:$0xff]  }
 0x4a0   : > { %v1264_v10 = vpop.permute.xlu1 %1263 }
 0x4a4   : > { %v1314_v11 = vpop.permute.xlu1 %1313 }
 0x4a6   : > { %v2863_v62 = vpop.eup %2862 }
 0x4a7   : > { %v1164_v63 = vmul.f32 %v2863_v62, %v2859_v55 }
 0x4a9   : > { %v1167_v3 = vpack.c.bf16 %v1164_v63, %v1164_v63 }
 0x4aa   : > { %v2865_v4 = vpop.eup %2864 }
 0x4ab   : > { %2604 = vmatmul.mubr.msk.bf16.vlgmr.msra.gmra.mxu0 %vm1144_vm3, %v1167_v3  ;;  %v1166_v6 = vmul.f32 %v2865_v4, %v2861_v57  ;;  %v2842_v57 = vld [vmem:[%s3366_s0 + $0x18] sm:$0xff]  }
 0x4ac   : > { %2614 = vmatpush3.bf16.xpose.msra.mxu0 %v1271_v5  ;;  %2615 = vmatprep.mubr.msk.bf16.mxu0 %vm3134_vm0, %v3132_v7 }
 0x4ad   : > { %v1168_v8 = vpack.c.bf16 %v1166_v6, %v1166_v6  ;;  %2625 = vmatprep.subr.bf16.mxu0 %v3132_v7  ;;  %v2843_v6 = vld [vmem:[%s3366_s0 + $0x10] sm:$0xff]  }
 0x4af   : > { %2610 = vmatmul.mubr.msk.bf16.vlgmr.msra.gmra.mxu1 %vm1144_vm3, %v1168_v8 }
 0x4b0   : > { %2620 = vmatpush3.bf16.xpose.msra.mxu1 %v1321_v9  ;;  %2621 = vmatprep.mubr.msk.bf16.mxu1 %vm3134_vm0, %v3132_v7 }
 0x4b1   : > { %2631 = vmatprep.subr.bf16.mxu1 %v3132_v7 }
 0x4b3   : > { %2616 = vmatmul.mubr.msk.bf16.vlgmr.msra.gmra.mxu0 %vm1049_vm1, %v1264_v10 }
 0x4b4   : > { %2627 = vmatprep.mubr.msk.bf16.mxu0 %vm3134_vm0, %v3132_v7 }
 0x4b7   : > { %2622 = vmatmul.mubr.msk.bf16.vlgmr.msra.gmra.mxu1 %vm1049_vm1, %v1314_v11 }
 0x4b8   : > { %2633 = vmatprep.mubr.msk.bf16.mxu1 %vm3134_vm0, %v3132_v7 }
 0x56b   : > { %v3517_v12 = vpop.f32.mrf.mxu0 }
 0x56d   : > { %v2605_v13 = vpop.f32.mrf.mxu0 }
 0x56f   : > { %v1213_v14 = vpop.f32.mrf.mxu0  ;;  %v3519_v16 = vpop.f32.mrf.mxu1 }
 0x570   : > { %v1262_v17 = vpack.c.bf16 %v3519_v16, %v3517_v12 }
 0x571   : > { %v2606_v18 = vpop.f32.mrf.mxu0  ;;  %v2611_v19 = vpop.f32.mrf.mxu1 }
 0x573   : > { %v1259_v20 = vpop.f32.mrf.mxu1  ;;  %v1307_v21 = vpop.f32.mrf.mxu0 }
 0x574   : > { %v1363_v22 = vmul.f32 0.17677669, %v1307_v21 }
 0x575   : > { %v2612_v23 = vpop.f32.mrf.mxu1  ;;  %v2617_v24 = vpop.f32.mrf.mxu0 }
 0x576   : > { %v1365_v26 = vsel %vm1144_vm3, %v1363_v22, -inf }
 0x577   : > { %v1357_v28 = vpop.f32.mrf.mxu1  ;;  %1366 = vmax.xlane.f32.xlu0 %v1365_v26  ;;  %v1310_v29 = vpop.f32.mrf.mxu0 }
 0x578   : > { %v1364_v30 = vmul.f32 0.17677669, %v1357_v28 }
 0x579   : > { %v2618_v32 = vpop.f32.mrf.mxu0  ;;  %v2623_v34 = vpop.f32.mrf.mxu1 }
 0x57a   : > { %v1368_v36 = vsel %vm1144_vm3, %v1364_v30, -inf }
 0x57b   : > { %1369 = vmax.xlane.f32.xlu1 %v1368_v36  ;;  %v1360_v37 = vpop.f32.mrf.mxu1 }
 0x57d   : > { %v2624_v38 = vpop.f32.mrf.mxu1 }
 0x58c   : > { %1437 = vrot.lane.b32.xlu1 %v3471_v33, %s3135_s23 }
 0x590   : > { %1600 = vrot.lane.b32.xlu1 %v3455_v15, %s3136_s22 }
 0x594   : > { %1650 = vrot.lane.b32.xlu1 %v3461_v25, %s3136_s22 }
 0x598   : > { %1648 = vrot.lane.b32.xlu1 %v3479_v35, %s3136_s22 }
 0x600   : > { %v1367_v39 = vpop.xlane.xlu0 %1366 }
 0x601   : > { %v1371_v40 = vsub.f32 %v1363_v22, %v1367_v39 }
 0x603   : > { %v1373_v41 = vmul.f32 1.442695, %v1371_v40 }
 0x604   : > { %v1370_v42 = vpop.xlane.xlu1 %1369 }
 0x605   : > { %2866 = vpow2.f32 %v1373_v41  ;;  %v1372_v43 = vsub.f32 %v1364_v30, %v1370_v42 }
 0x607   : > { %v1375_v44 = vmul.f32 1.442695, %v1372_v43 }
 0x608   : > { %v1438_v45 = vpop.permute.xlu1 %1437 }
 0x609   : > { %2868 = vpow2.f32 %v1375_v44  ;;  %v1443_v46 = vsel %vm1172_vm2, %v1438_v45, 0 }
 0x60a   : > { %2632 = vmatpush3.bf16.msra.mxu1 %v1443_v46 }
 0x60b   : > { %2645 = vmatprep.subr.bf16.mxu1 %v3132_v7 }
 0x60c   : > { %v1601_v63 = vpop.permute.xlu1 %1600 }
 0x60d   : > { %v1606_v16 = vsel %vm1049_vm1, %v1601_v63, 0 }
 0x610   : > { %v1651_v3 = vpop.permute.xlu1 %1650 }
 0x611   : > { %v1656_v4 = vsel %vm1049_vm1, %v1651_v3, 0 }
 0x612   : > { %v2867_v47 = vpop.eup %2866 }
 0x613   : > { %v1377_v48 = vsel %vm1144_vm3, %v2867_v47, 0.0 }
 0x614   : > { %1378 = vadd.xlane.f32.xlu0 %v1377_v48  ;;  %v1649_v5 = vpop.permute.xlu1 %1648 }
 0x616   : > { %v2869_v49 = vpop.eup %2868 }
 0x617   : > { %v1380_v50 = vsel %vm1144_vm3, %v2869_v49, 0.0 }
 0x618   : > { %1381 = vadd.xlane.f32.xlu0 %v1380_v50 }
 0x62e   : > { %1389 = vrot.lane.b32.xlu0 %v3464_v27, %s3135_s23 }
 0x632   : > { %1598 = vrot.lane.b32.xlu0 %v3468_v31, %s3136_s22 }
 0x69d   : > { %v1379_v51 = vpop.xlane.xlu0 %1378 }
 0x69e   : > { %2870 = vrcp.f32 %v1379_v51 }
 0x6a1   : > { %v1382_v52 = vpop.xlane.xlu0 %1381 }
 0x6a2   : > { %2872 = vrcp.f32 %v1382_v52 }
 0x6a5   : > { %v1390_v53 = vpop.permute.xlu0 %1389 }
 0x6a6   : > { %v1395_v54 = vsel %vm1172_vm2, %v1390_v53, 0 }
 0x6a7   : > { %2626 = vmatpush3.bf16.msra.mxu0 %v1395_v54 }
 0x6a8   : > { %2637 = vmatprep.subr.bf16.mxu0 %v3132_v7 }
 0x6a9   : > { %v1599_v20 = vpop.permute.xlu0 %1598 }
 0x6ab   : > { %v2871_v55 = vpop.eup %2870 }
 0x6ac   : > { %v1384_v56 = vmul.f32 %v2871_v55, %v2867_v47 }
 0x6ae   : > { %v1387_v58 = vpack.c.bf16 %v1384_v56, %v1384_v56 }
 0x6af   : > { %v2873_v59 = vpop.eup %2872 }
 0x6b0   : > { %2628 = vmatmul.mubr.msk.bf16.vlgmr.msra.gmra.mxu0 %vm1144_vm3, %v1387_v58  ;;  %v1386_v60 = vmul.f32 %v2873_v59, %v2869_v49 }
 0x6b1   : > { %2638 = vmatpush3.bf16.msra.mxu0 %v2842_v57  ;;  %2641 = vmatprep.mubr.msk.bf16.mxu0 %vm3134_vm0, %v3132_v7 }
 0x6b2   : > { %v1388_v62 = vpack.c.bf16 %v1386_v60, %v1386_v60  ;;  %2639 = vmatprep.subr.bf16.mxu0 %v3132_v7 }
 0x6b4   : > { %2634 = vmatmul.mubr.msk.bf16.vlgmr.msra.gmra.mxu1 %vm1144_vm3, %v1388_v62 }
 0x6b5   : > { %2646 = vmatpush3.bf16.msra.mxu1 %v2840_v61  ;;  %2649 = vmatprep.mubr.msk.bf16.mxu1 %vm3134_vm0, %v3132_v7 }
 0x6b6   : > { %2647 = vmatprep.subr.bf16.mxu1 %v3132_v7  ;;  %2640 = vmatpush3.bf16.msra.mxu0 %v2843_v6 }
 0x6b7   : > { %2653 = vmatprep.subr.bf16.mxu0 %v3132_v7 }
 0x6b9   : > { %2648 = vmatpush3.bf16.msra.mxu1 %v2841_v0 }
 0x6ba   : > { %2659 = vmatprep.subr.bf16.mxu1 %v3132_v7 }
 0x6bc   : > { %2650 = vmatmul.mubr.msk.bf16.vlgmr.msra.gmra.mxu1 %vm1049_vm1, %v1262_v17 }
 0x6bd   : > { %2660 = vmatpush3.bf16.xpose.msra.mxu1 %v1656_v4  ;;  %2661 = vmatprep.mubr.msk.bf16.mxu1 %vm3134_vm0, %v3132_v7 }
 0x6be   : > { %2671 = vmatprep.subr.bf16.mxu1 %v3132_v7 }
 0x6c4   : > { %2662 = vmatmul.mubr.msk.bf16.vlgmr.msra.gmra.mxu1 %vm1049_vm1, %v1649_v5 }
 0x6c5   : > { %2673 = vmatprep.mubr.msk.bf16.mxu1 %vm3134_vm0, %v3132_v7 }
 0x770   : > { %v1431_v8 = vpop.f32.mrf.mxu0 }
 0x772   : > { %v2629_v9 = vpop.f32.mrf.mxu0 }
 0x773   : > { %v2844_v9 = vld [vmem:[%s3366_s0 + $0x28] sm:$0xff]  }
 0x774   : > { %v1434_v10 = vpop.f32.mrf.mxu0  ;;  %v1479_v11 = vpop.f32.mrf.mxu1 }
 0x775   : > { %v1485_v12 = vpack.c.bf16 %v1479_v11, %v1431_v8  ;;  %v2845_v10 = vld [vmem:[%s3366_s0 + $0x20] sm:$0xff]  }
 0x776   : > { %v2630_v13 = vpop.f32.mrf.mxu0  ;;  %v2635_v14 = vpop.f32.mrf.mxu1 }
 0x777   : > { %2642 = vmatmul.mubr.msk.bf16.vlgmr.msra.gmra.mxu0 %vm1049_vm1, %v1485_v12 }
 0x778   : > { %2654 = vmatpush3.bf16.xpose.msra.mxu0 %v1606_v16  ;;  %v1482_v17 = vpop.f32.mrf.mxu1  ;;  %2655 = vmatprep.mubr.msk.bf16.mxu0 %vm3134_vm0, %v3132_v7 }
 0x779   : > { %2665 = vmatprep.subr.bf16.mxu0 %v3132_v7 }
 0x77a   : > { %v2636_v18 = vpop.f32.mrf.mxu1 }
 0x77c   : > { %v3573_v19 = vpop.f32.mrf.mxu1 }
 0x77e   : > { %v2651_v21 = vpop.f32.mrf.mxu1 }
 0x77f   : > { %2656 = vmatmul.mubr.msk.bf16.vlgmr.msra.gmra.mxu0 %vm1049_vm1, %v1599_v20 }
 0x780   : > { %v3576_v22 = vpop.f32.mrf.mxu1  ;;  %2667 = vmatprep.mubr.msk.bf16.mxu0 %vm3134_vm0, %v3132_v7 }
 0x782   : > { %v2652_v23 = vpop.f32.mrf.mxu1 }
 0x784   : > { %v1692_v24 = vpop.f32.mrf.mxu1 }
 0x785   : > { %v1699_v26 = vmul.f32 0.17677669, %v1692_v24 }
 0x786   : > { %v2663_v28 = vpop.f32.mrf.mxu1 }
 0x787   : > { %v1703_v29 = vsel %vm1144_vm3, %v1699_v26, -inf }
 0x788   : > { %1704 = vmax.xlane.f32.xlu1 %v1703_v29  ;;  %v1695_v30 = vpop.f32.mrf.mxu1 }
 0x78a   : > { %v2664_v32 = vpop.f32.mrf.mxu1 }
 0x799   : > { %1772 = vrot.lane.b32.xlu1 %v3471_v33, %s3136_s22 }
 0x79d   : > { %1881 = vrot.lane.b32.xlu1 %v3455_v15, %s3137_s30 }
 0x7a1   : > { %1931 = vrot.lane.b32.xlu1 %v3461_v25, %s3137_s30 }
 0x7a5   : > { %1929 = vrot.lane.b32.xlu1 %v3479_v35, %s3137_s30 }
 0x811   : > { %v1705_v34 = vpop.xlane.xlu1 %1704 }
 0x812   : > { %v1707_v38 = vsub.f32 %v1699_v26, %v1705_v34 }
 0x814   : > { %v1710_v39 = vmul.f32 1.442695, %v1707_v38 }
 0x815   : > { %v1773_v36 = vpop.permute.xlu1 %1772 }
 0x816   : > { %v1778_v37 = vsel %vm1172_vm2, %v1773_v36, 0  ;;  %2874 = vpow2.f32 %v1710_v39 }
 0x817   : > { %2672 = vmatpush3.bf16.msra.mxu1 %v1778_v37 }
 0x818   : > { %2685 = vmatprep.subr.bf16.mxu1 %v3132_v7 }
 0x819   : > { %v1882_v57 = vpop.permute.xlu1 %1881 }
 0x81a   : > { %v1887_v59 = vsel %vm1049_vm1, %v1882_v57, 0 }
 0x81d   : > { %v1932_v18 = vpop.permute.xlu1 %1931 }
 0x81e   : > { %v1937_v24 = vsel %vm1049_vm1, %v1932_v18, 0 }
 0x821   : > { %v1930_v29 = vpop.permute.xlu1 %1929 }
 0x823   : > { %v2875_v45 = vpop.eup %2874 }
 0x824   : > { %v1715_v48 = vsel %vm1144_vm3, %v2875_v45, 0.0 }
 0x837   : > { %v3591_v40 = vpop.f32.mrf.mxu0 }
 0x838   : > { %v1592_v38 = vadd.f32 %v3573_v19, %v3591_v40 }
 0x839   : > { %v2643_v41 = vpop.f32.mrf.mxu0 }
 0x83b   : > { %v3593_v15 = vpop.f32.mrf.mxu0 }
 0x83d   : > { %v2644_v42 = vpop.f32.mrf.mxu0 }
 0x83f   : > { %v1642_v25 = vpop.f32.mrf.mxu0 }
 0x840   : > { %v1698_v43 = vmul.f32 0.17677669, %v1642_v25  ;;  %v1595_v25 = vadd.f32 %v3576_v22, %v3593_v15 }
 0x841   : > { %v2657_v44 = vpop.f32.mrf.mxu0 }
 0x842   : > { %v1700_v35 = vsel %vm1144_vm3, %v1698_v43, -inf }
 0x843   : > { %1701 = vmax.xlane.f32.xlu0 %v1700_v35  ;;  %v1645_v46 = vpop.f32.mrf.mxu0 }
 0x845   : > { %v2658_v47 = vpop.f32.mrf.mxu0 }
 0x847   : > { %1716 = vadd.xlane.f32.xlu0 %v1715_v48 }
 0x8cc   : > { %v1702_v49 = vpop.xlane.xlu0 %1701 }
 0x8cd   : > { %v1706_v50 = vsub.f32 %v1698_v43, %v1702_v49 }
 0x8cf   : > { %v1708_v51 = vmul.f32 1.442695, %v1706_v50 }
 0x8d0   : > { %v1717_v52 = vpop.xlane.xlu0 %1716 }
 0x8d1   : > { %2876 = vpow2.f32 %v1708_v51 }
 0x8d2   : > { %2878 = vrcp.f32 %v1717_v52 }
 0x8de   : > { %v2877_v53 = vpop.eup %2876 }
 0x8df   : > { %v2879_v54 = vpop.eup %2878  ;;  %v1712_v55 = vsel %vm1144_vm3, %v2877_v53, 0.0 }
 0x8e0   : > { %1713 = vadd.xlane.f32.xlu0 %v1712_v55  ;;  %v1721_v56 = vmul.f32 %v2879_v54, %v2875_v45 }
 0x8e2   : > { %v1723_v58 = vpack.c.bf16 %v1721_v56, %v1721_v56 }
 0x8e4   : > { %2674 = vmatmul.mubr.msk.bf16.vlgmr.msra.gmra.mxu1 %vm1144_vm3, %v1723_v58 }
 0x8e5   : > { %2686 = vmatpush3.bf16.xpose.msra.mxu1 %v1887_v59  ;;  %2687 = vmatprep.mubr.msk.bf16.mxu1 %vm3134_vm0, %v3132_v7 }
 0x8e6   : > { %2697 = vmatprep.subr.bf16.mxu1 %v3132_v7 }
 0x8f6   : > { %1724 = vrot.lane.b32.xlu0 %v3464_v27, %s3136_s22 }
 0x8fa   : > { %1879 = vrot.lane.b32.xlu0 %v3468_v31, %s3137_s30 }
 0x969   : > { %v1714_v60 = vpop.xlane.xlu0 %1713 }
 0x96a   : > { %2880 = vrcp.f32 %v1714_v60 }
 0x96d   : > { %v1725_v61 = vpop.permute.xlu0 %1724 }
 0x96e   : > { %v1730_v62 = vsel %vm1172_vm2, %v1725_v61, 0 }
 0x96f   : > { %2666 = vmatpush3.bf16.msra.mxu0 %v1730_v62  ;;  %v2846_v62 = vld [vmem:[%s3366_s0 + $0x38] sm:$0xff]  }
 0x970   : > { %2677 = vmatprep.subr.bf16.mxu0 %v3132_v7 }
 0x971   : > { %v1880_v63 = vpop.permute.xlu0 %1879 }
 0x972   : > { %2688 = vmatmul.mubr.msk.bf16.vlgmr.msra.gmra.mxu1 %vm1049_vm1, %v1880_v63  ;;  %v2847_v63 = vld [vmem:[%s3366_s0 + $0x30] sm:$0xff]   ;;  %s3722_s0 = sld [smem:[#allocation27_spill]] }
 0x973   : > { %2699 = vmatprep.mubr.msk.bf16.mxu1 %vm3134_vm0, %v3132_v7 }
 0x977   : > { %v2881_v0 = vpop.eup %2880 }
 0x978   : > { %v1719_v3 = vmul.f32 %v2881_v0, %v2877_v53  ;;  %s697_s10 = scalar_lea.vmem %s3722_s0, %s2507_s25 }
 0x97a   : > { %v1722_v4 = vpack.c.bf16 %v1719_v3, %v1719_v3 }
 0x97c   : > { %2668 = vmatmul.mubr.msk.bf16.vlgmr.msra.gmra.mxu0 %vm1144_vm3, %v1722_v4 }
 0x97d   : > { %2681 = vmatprep.mubr.msk.bf16.mxu0 %vm3134_vm0, %v3132_v7  ;;  %2678 = vmatpush3.bf16.msra.mxu0 %v2844_v9 }
 0x97e   : > { %2679 = vmatprep.subr.bf16.mxu0 %v3132_v7 }
 0x981   : > { %2680 = vmatpush3.bf16.msra.mxu0 %v2845_v10 }
 0x982   : > { %2691 = vmatprep.subr.bf16.mxu0 %v3132_v7 }
 0x9a4   : > { %v1814_v31 = vpop.f32.mrf.mxu1 }
 0x9a6   : > { %v2675_v5 = vpop.f32.mrf.mxu1 }
 0x9a8   : > { %v1817_v6 = vpop.f32.mrf.mxu1 }
 0x9aa   : > { %v2676_v8 = vpop.f32.mrf.mxu1 }
 0xa32   : > { %v1923_v11 = vpop.f32.mrf.mxu1 }
 0xa33   : > { %v1979_v12 = vmul.f32 0.17677669, %v1923_v11  ;;  %v2500_v11 = vld [vmem:[%s549_s26] ss:$0 sm:$0xff] }
 0xa34   : > { %v2689_v13 = vpop.f32.mrf.mxu1 }
 0xa35   : > { %v1981_v14 = vsel %vm1144_vm3, %v1979_v12, -inf }
 0xa36   : > { %1982 = vmax.xlane.f32.xlu0 %v1981_v14  ;;  %v1926_v16 = vpop.f32.mrf.mxu1 }
 0xa38   : > { %v2690_v17 = vpop.f32.mrf.mxu1 }
 0xa3c   : > { %v1766_v20 = vpop.f32.mrf.mxu0 }
 0xa3d   : > { %v1820_v21 = vpack.c.bf16 %v1814_v31, %v1766_v20 }
 0xa3e   : > { %v2669_v23 = vpop.f32.mrf.mxu0 }
 0xa3f   : > { %2682 = vmatmul.mubr.msk.bf16.vlgmr.msra.gmra.mxu0 %vm1049_vm1, %v1820_v21 }
 0xa40   : > { %2692 = vmatpush3.bf16.xpose.msra.mxu0 %v1937_v24  ;;  %v1769_v26 = vpop.f32.mrf.mxu0  ;;  %2693 = vmatprep.mubr.msk.bf16.mxu0 %vm3134_vm0, %v3132_v7 }
 0xa41   : > { %2703 = vmatprep.subr.bf16.mxu0 %v3132_v7 }
 0xa42   : > { %v2670_v28 = vpop.f32.mrf.mxu0 }
 0xa47   : > { %2694 = vmatmul.mubr.msk.bf16.vlgmr.msra.gmra.mxu0 %vm1049_vm1, %v1930_v29 }
 0xa48   : > { %2705 = vmatprep.mubr.msk.bf16.mxu0 %vm3134_vm0, %v3132_v7 }
 0xabf   : > { %v1983_v30 = vpop.xlane.xlu0 %1982 }
 0xac0   : > { %v1987_v32 = vsub.f32 %v1979_v12, %v1983_v30 }
 0xac2   : > { %v1989_v34 = vmul.f32 1.442695, %v1987_v32 }
 0xac4   : > { %2882 = vpow2.f32 %v1989_v34 }
 0xad1   : > { %v2883_v36 = vpop.eup %2882 }
 0xad2   : > { %v1993_v37 = vsel %vm1144_vm3, %v2883_v36, 0.0 }
 0xad3   : > { %1994 = vadd.xlane.f32.xlu0 %v1993_v37 }
 0xaff   : > { %v1870_v39 = vpop.f32.mrf.mxu0 }
 0xb00   : > { %v1877_v41 = vadd.f32 %v1870_v39, %v1592_v38 }
 0xb01   : > { %v2683_v42 = vpop.f32.mrf.mxu0 }
 0xb03   : > { %v1873_v43 = vpop.f32.mrf.mxu0 }
 0xb04   : > { %v1878_v44 = vadd.f32 %v1873_v43, %v1595_v25 }
 0xb05   : > { %v2684_v35 = vpop.f32.mrf.mxu0 }
 0xb07   : > { %v1973_v45 = vpop.f32.mrf.mxu0 }
 0xb08   : > { %v1980_v46 = vmul.f32 0.17677669, %v1973_v45 }
 0xb09   : > { %v2695_v47 = vpop.f32.mrf.mxu0 }
 0xb0a   : > { %v1984_v48 = vsel %vm1144_vm3, %v1980_v46, -inf }
 0xb0b   : > { %1985 = vmax.xlane.f32.xlu1 %v1984_v48  ;;  %v1976_v49 = vpop.f32.mrf.mxu0 }
 0xb0d   : > { %v2696_v50 = vpop.f32.mrf.mxu0 }
 0xb1c   : > { %2053 = vrot.lane.b32.xlu1 %v3471_v33, %s3137_s30 }
 0xb5c   : > { %v1995_v54 = vpop.xlane.xlu0 %1994 }
 0xb94   : > { %v1986_v19 = vpop.xlane.xlu1 %1985 }
 0xb95   : > { %v1988_v40 = vsub.f32 %v1980_v46, %v1986_v19 }
 0xb97   : > { %v1991_v51 = vmul.f32 1.442695, %v1988_v40 }
 0xb98   : > { %v2054_v52 = vpop.permute.xlu1 %2053 }
 0xb99   : > { %2884 = vpow2.f32 %v1991_v51  ;;  %v2059_v22 = vsel %vm1172_vm2, %v2054_v52, 0 }
 0xb9a   : > { %2704 = vmatpush3.bf16.msra.mxu0 %v2059_v22  ;;  %2886 = vrcp.f32 %v1995_v54 }
 0xba6   : > { %v2885_v15 = vpop.eup %2884 }
 0xba7   : > { %v1996_v53 = vsel %vm1144_vm3, %v2885_v15, 0.0  ;;  %v2887_v55 = vpop.eup %2886 }
 0xba8   : > { %1997 = vadd.xlane.f32.xlu0 %v1996_v53  ;;  %v2000_v56 = vmul.f32 %v2887_v55, %v2883_v36 }
 0xbaa   : > { %v2003_v59 = vpack.c.bf16 %v2000_v56, %v2000_v56 }
 0xbbe   : > { %2005 = vrot.lane.b32.xlu0 %v3464_v27, %s3137_s30 }
 0xc31   : > { %v1998_v33 = vpop.xlane.xlu0 %1997 }
 0xc32   : > { %2888 = vrcp.f32 %v1998_v33 }
 0xc35   : > { %v2006_v57 = vpop.permute.xlu0 %2005 }
 0xc36   : > { %v2011_v58 = vsel %vm1172_vm2, %v2006_v57, 0 }
 0xc37   : > { %2698 = vmatpush3.bf16.msra.mxu1 %v2011_v58 }
 0xc38   : > { %2709 = vmatprep.subr.bf16.mxu1 %v3132_v7 }
 0xc3a   : > { %2700 = vmatmul.mubr.msk.bf16.vlgmr.msra.gmra.mxu1 %vm1144_vm3, %v2003_v59 }
 0xc3b   : > { %2713 = vmatprep.mubr.msk.bf16.mxu1 %vm3134_vm0, %v3132_v7  ;;  %2710 = vmatpush3.bf16.msra.mxu1 %v2846_v62 }
 0xc3c   : > { %2711 = vmatprep.subr.bf16.mxu1 %v3132_v7 }
 0xc3f   : > { %v2889_v27 = vpop.eup %2888  ;;  %2712 = vmatpush3.bf16.msra.mxu1 %v2847_v63 }
 0xc40   : > { %v2002_v60 = vmul.f32 %v2889_v27, %v2885_v15 }
 0xc42   : > { %v2004_v61 = vpack.c.bf16 %v2002_v60, %v2002_v60 }
 0xc44   : > { %2706 = vmatmul.mubr.msk.bf16.vlgmr.msra.gmra.mxu0 %vm1144_vm3, %v2004_v61 }
 0xcfa   : > { %v2047_v0 = vpop.f32.mrf.mxu1 }
 0xcfc   : > { %v2701_v3 = vpop.f32.mrf.mxu1 }
 0xcfe   : > { %v2050_v4 = vpop.f32.mrf.mxu1 }
 0xd00   : > { %v2702_v31 = vpop.f32.mrf.mxu1 }
 0xd04   : > { %v2095_v5 = vpop.f32.mrf.mxu0 }
 0xd05   : > { %v2101_v6 = vpack.c.bf16 %v2095_v5, %v2047_v0 }
 0xd06   : > { %v2707_v8 = vpop.f32.mrf.mxu0 }
 0xd07   : > { %2714 = vmatmul.mubr.msk.bf16.vlgmr.msra.gmra.mxu1 %vm1049_vm1, %v2101_v6 }
 0xd08   : > { %v2098_v9 = vpop.f32.mrf.mxu0 }
 0xd0a   : > { %v2708_v10 = vpop.f32.mrf.mxu0 }
 0xdc7   : > { %v2151_v12 = vpop.f32.mrf.mxu1 }
 0xdc8   : > { %v2158_v13 = vadd.f32 %v2151_v12, %v1877_v41 }
 0xdc9   : > { %v2715_v14 = vpop.f32.mrf.mxu1 }
 0xdca   : > { %v2166_v7 = vadd.f32 %v2500_v11, %v2158_v13 }
 0xdcb   : > { %v2154_v16 = vpop.f32.mrf.mxu1 }
 0xdcc   : > { %v2168_v17 = vadd.f32 %v2166_v7, %v3443_v1  ;;  %v2159_v18 = vadd.f32 %v2154_v16, %v1878_v44 }
 0xdcd   : > { %v2716_v20 = vpop.f32.mrf.mxu1 }
 0xdce   : > { %2170 = vst [vmem:[%s697_s10] sm:$0xff] %v2168_v17  ;;  %v2167_v21 = vadd.f32 %v2500_v11, %v2159_v18 }
 0xdd0   : > { %v2169_v23 = vadd.f32 %v2167_v21, %v3446_v2 }
 0xdd2   : > { %2171 = vst [vmem:[%s697_s10 + $0x8] sm:$0xff] %v2169_v23 }
 0xdd3 PF: > { %s3723_s17 = sld [smem:[#allocation18_spill]]  ;;  %s3727_s27 = smov %s3104_s28 }
 0xdd4   : > { %s3724_s26 = sld [smem:[#allocation16_spill]]  ;;  %s3729_s30 = smov %s3116_s9 }
 0xdd5   : > { %s3725_s29 = sld [smem:[#allocation21_spill]] }
 0xdd6   : > { %s3726_s20 = sld [smem:[#allocation19_spill]] }
 0xdd9   : > { %s30_s10 = sadd.s32 1, %s3723_s17  }
 0xdda   : > { %p27_p1 = scmp.ge.s32.totalorder %s30_s10, 5   ;;  %s3728_s28 = smov %s3724_s26 }
 0xddc   : > { %s3730_s9 = smov %s3726_s20  ;;  %29 = sbr.rel (!%p27_p1) target bundleno = 17 (0x11), region = 159 }
 0xde1   :  { %2202 = vsyncpa [#allocation3], 1 }
 0xde2   :  { %2204 = vsyncpa [#allocation3 + $0x1], 1 }
 0xde3   :  { %2205 = vsyncpa [#allocation5], 1 }
 0xde4   :  { %2207 = vsyncpa [#allocation5 + $0x1], 1 }
 0xde5   :  { %2208 = vsyncpa [#allocation8], 1 }
 0xde6   :  { %2210 = vsyncpa [#allocation8 + $0x1], 1 }
 0xde7   :  { %2211 = vsyncpa [#allocation11], 1 }
 0xde8   :  { %2213 = vsyncpa [#allocation11 + $0x1], 1 }

// kernel: encoder_forward.3
= control target key start
LH: loop header
LB: loop body
LE: loop exit
PB: predicated region body
PF: predicated region fallthrough
CT: control target
= control target key end

     0   :  { %20 = vsyncpa [#allocation3], 0  ;;  %s18878_s0 = inlined_call_operand.vmem [shape: f32[3,16,128], index: 0, kind: input, shape index: {}]   ;;  %s18879_s1 = inlined_call_operand.hbm [shape: bf16[3,3,128,512], index: 1, kind: input, shape index: {}]   ;;  %s18880_s2 = inlined_call_operand.hbm [shape: f32[3,1,512], index: 2, kind: input, shape index: {}]   ;;  %s18881_s3 = inlined_call_operand.hbm [shape: f32[3,1,512], index: 3, kind: input, shape index: {}]   ;;  %s18882_s4 = inlined_call_operand.hbm [shape: f32[3,1,512], index: 4, kind: input, shape index: {}]   ;;  %s18883_s5 = inlined_call_operand.hbm [shape: bf16[3,128,512], index: 5, kind: input, shape index: {}]   ;;  %s18884_s6 = inlined_call_operand.hbm [shape: bf16[512,512], index: 6, kind: input, shape index: {}]   ;;  %s18885_s7 = inlined_call_operand.hbm [shape: f32[1,512], index: 7, kind: input, shape index: {}]   ;;  %s18886_s8 = inlined_call_operand.hbm [shape: bf16[512,1024], index: 8, kind: input, shape index: {}]   ;;  %s18887_s9 = inlined_call_operand.hbm [shape: f32[1,1024], index: 9, kind: input, shape index: {}]   ;;  %s18888_s10 = inlined_call_operand.hbm [shape: bf16[4,128,512], index: 10, kind: input, shape index: {}]   ;;  %s18889_s11 = inlined_call_operand.hbm [shape: f32[1,512], index: 11, kind: input, shape index: {}]   ;;  %s18890_s12 = inlined_call_operand.hbm [shape: bf16[3,4,512,128], index: 12, kind: input, shape index: {}]   ;;  %s18891_s13 = inlined_call_operand.hbm [shape: f32[1,128], index: 13, kind: input, shape index: {}]   ;;  %s18892_s14 = inlined_call_operand.hbm [shape: f32[1,128], index: 14, kind: input, shape index: {}]   ;;  %s18893_s15 = inlined_call_operand.hbm [shape: f32[16,128], index: 15, kind: output, shape index: {}]  }
   0x1   :  { %21 = vsyncpa [#allocation6], 0 }
   0x2   :  { %22 = vsyncpa [#allocation9], 0 }
   0x3   :  { %23 = vsyncpa [#allocation12], 0 }
   0x4   :  { %24 = vsyncpa [#allocation15], 0 }
   0x5   :  { %25 = vsyncpa [#allocation18], 0 }
   0x6   :  { %26 = vsyncpa [#allocation21], 0 }
   0x7   :  { %27 = vsyncpa [#allocation24], 0 }
   0x8   :  { %28 = vsyncpa [#allocation4], 0  ;;  %s17326_s18 = smov [#allocation5]  }
   0x9   :  { %s48_s19 = sshll.u32 %s17326_s18, 4  ;;  %s49_s19 = int_to_ptr.vmem [resolvable:$true] %s48_s19 }
   0xa   :  { %s17016_s20 = scalar_lea.vmem %s49_s19, 192  ;;  %p17021_p1 = scmp.lt.s32.totalorder %s49_s19, %s49_s19 }
   0xb   :  { %p17017_p0 = scmp.ne.s32.totalorder %s49_s19, %s17016_s20  ;;  %p17022_p2 = scmp.lt.s32.totalorder %s17016_s20, %s17016_s20 }
   0xd   :  { %p17023_p3 = por %p17022_p2, %p17021_p1 }
   0xf   :  { %p17024_p4 = pnand %p17023_p3, %p17017_p0 }
  0x11   :  { %17027 = shalt.err (!%p17024_p4)
}
  0x12   :  { %s17327_s21 = smov 64   ;;  %s17328_s22 = smov 4  }
  0x13   :  { %54 = dma.hbm_to_vmem [thread:$0]  %s18880_s2, 192, %s49_s19, [#allocation6], %s17327_s21, %s17327_s21, %s17328_s22  }
  0x14   :  { %s17329_s25 = smov [#allocation8]  }
  0x15   :  { %s72_s26 = sshll.u32 %s17329_s25, 4  ;;  %s73_s26 = int_to_ptr.vmem [resolvable:$true] %s72_s26 }
  0x16   :  { %s17036_s27 = scalar_lea.vmem %s73_s26, 192  ;;  %p17041_p6 = scmp.lt.s32.totalorder %s73_s26, %s73_s26 }
  0x17   :  { %p17037_p5 = scmp.ne.s32.totalorder %s73_s26, %s17036_s27  ;;  %p17042_p7 = scmp.lt.s32.totalorder %s17036_s27, %s17036_s27 }
  0x19   :  { %p17043_p8 = por %p17042_p7, %p17041_p6 }
  0x1b   :  { %p17044_p9 = pnand %p17043_p8, %p17037_p5 }
  0x1d   :  { %17047 = shalt.err (!%p17044_p9)
}
  0x1e   :  { %78 = dma.hbm_to_vmem [thread:$0]  %s18882_s4, 192, %s73_s26, [#allocation9], %s17327_s21, %s17327_s21, %s17328_s22  }
  0x1f   :  { %s17330_s30 = smov [#allocation11]   ;;  %s17331_s2 = smov [#allocation14]  }
  0x20   :  { %s96_s16 = sshll.u32 %s17330_s30, 4  ;;  %s118_s17 = sshll.u32 %s17331_s2, 4  ;;  %s97_s16 = int_to_ptr.vmem [resolvable:$true] %s96_s16  ;;  %s119_s17 = int_to_ptr.vmem [resolvable:$true] %s118_s17 }
  0x21   :  { %s17056_s18 = scalar_lea.vmem %s97_s16, 16384  ;;  %p17061_p11 = scmp.lt.s32.totalorder %s97_s16, %s97_s16 }
  0x22   :  { %p17057_p10 = scmp.ne.s32.totalorder %s97_s16, %s17056_s18  ;;  %p17062_p12 = scmp.lt.s32.totalorder %s17056_s18, %s17056_s18 }
  0x24   :  { %p17063_p13 = por %p17062_p12, %p17061_p11 }
  0x26   :  { %p17064_p0 = pnand %p17063_p13, %p17057_p10 }
  0x28   :  { %17067 = shalt.err (!%p17064_p0)
}
  0x29   :  { %s17332_s19 = smov 256   ;;  %s17333_s20 = smov 16  }
  0x2a   :  { %102 = dma.hbm_to_vmem [thread:$0]  %s18884_s6, 16384, %s97_s16, [#allocation12], %s17332_s19, %s17332_s19, %s17333_s20  }
  0x2b   :  { %s17076_s24 = scalar_lea.vmem %s119_s17, 32768  ;;  %p17081_p2 = scmp.lt.s32.totalorder %s119_s17, %s119_s17 }
  0x2c   :  { %p17077_p1 = scmp.ne.s32.totalorder %s119_s17, %s17076_s24  ;;  %p17082_p3 = scmp.lt.s32.totalorder %s17076_s24, %s17076_s24 }
  0x2e   :  { %p17083_p4 = por %p17082_p3, %p17081_p2 }
  0x30   :  { %p17084_p5 = pnand %p17083_p4, %p17077_p1 }
  0x32   :  { %17087 = shalt.err (!%p17084_p5)
}
  0x33   :  { %s17334_s25 = smov 512   ;;  %s17335_s26 = smov 32  }
  0x34   :  { %124 = dma.hbm_to_vmem [thread:$0]  %s18886_s8, 32768, %s119_s17, [#allocation15], %s17334_s25, %s17334_s25, %s17335_s26  }
  0x35   :  { %s17336_s29 = smov [#allocation17]   ;;  %s17337_s2 = smov [#allocation20]  }
  0x36   :  { %s140_s30 = sshll.u32 %s17336_s29, 4  ;;  %s162_s18 = sshll.u32 %s17337_s2, 4  ;;  %s141_s30 = int_to_ptr.vmem [resolvable:$true] %s140_s30  ;;  %s163_s18 = int_to_ptr.vmem [resolvable:$true] %s162_s18 }
  0x37   :  { %s17096_s6 = scalar_lea.vmem %s141_s30, 16384  ;;  %p17101_p7 = scmp.lt.s32.totalorder %s141_s30, %s141_s30 }
  0x38   :  { %p17097_p6 = scmp.ne.s32.totalorder %s141_s30, %s17096_s6  ;;  %p17102_p8 = scmp.lt.s32.totalorder %s17096_s6, %s17096_s6 }
  0x3a   :  { %p17103_p9 = por %p17102_p8, %p17101_p7 }
  0x3c   :  { %p17104_p10 = pnand %p17103_p9, %p17097_p6 }
  0x3e   :  { %17107 = shalt.err (!%p17104_p10)
}
  0x3f   :  { %146 = dma.hbm_to_vmem [thread:$0]  %s18888_s10, 16384, %s141_s30, [#allocation18], %s17332_s19, %s17332_s19, %s17333_s20  }
  0x40   :  { %s17116_s8 = scalar_lea.vmem %s163_s18, 49152  ;;  %p17121_p12 = scmp.lt.s32.totalorder %s163_s18, %s163_s18 }
  0x41   :  { %p17117_p11 = scmp.ne.s32.totalorder %s163_s18, %s17116_s8  ;;  %p17122_p13 = scmp.lt.s32.totalorder %s17116_s8, %s17116_s8 }
  0x43   :  { %p17123_p0 = por %p17122_p13, %p17121_p12 }
  0x45   :  { %p17124_p1 = pnand %p17123_p0, %p17117_p11 }
  0x47   :  { %17127 = shalt.err (!%p17124_p1)
}
  0x48   :  { %168 = dma.hbm_to_vmem [thread:$0]  %s18890_s12, 49152, %s163_s18, [#allocation21], %s17327_s21, %s17327_s21, %s17328_s22  }
  0x49   :  { %s17338_s24 = smov [#allocation2]   ;;  %s17339_s26 = smov [#allocation7]  }
  0x4a   :  { %s36_s25 = sshll.u32 %s17338_s24, 4  ;;  %s60_s27 = sshll.u32 %s17339_s26, 4  ;;  %s37_s25 = int_to_ptr.vmem [resolvable:$true] %s36_s25  ;;  %s61_s27 = int_to_ptr.vmem [resolvable:$true] %s60_s27 }
  0x4b   :  { %s17136_s10 = scalar_lea.vmem %s37_s25, 36864  ;;  %p17141_p3 = scmp.lt.s32.totalorder %s37_s25, %s37_s25 }
  0x4c   :  { %p17137_p2 = scmp.ne.s32.totalorder %s37_s25, %s17136_s10  ;;  %p17142_p4 = scmp.lt.s32.totalorder %s17136_s10, %s17136_s10 }
  0x4e   :  { %p17143_p5 = por %p17142_p4, %p17141_p3 }
  0x50   :  { %p17144_p6 = pnand %p17143_p5, %p17137_p2 }
  0x52   :  { %17147 = shalt.err (!%p17144_p6)
}
  0x53   :  { %42 = dma.hbm_to_vmem [thread:$0]  %s18879_s1, 36864, %s37_s25, [#allocation3], %s17332_s19, %s17332_s19, %s17333_s20  }
  0x54   :  { %s17156_s12 = scalar_lea.vmem %s61_s27, 192  ;;  %p17161_p8 = scmp.lt.s32.totalorder %s61_s27, %s61_s27 }
  0x55   :  { %p17157_p7 = scmp.ne.s32.totalorder %s61_s27, %s17156_s12  ;;  %p17162_p9 = scmp.lt.s32.totalorder %s17156_s12, %s17156_s12 }
  0x57   :  { %p17163_p10 = por %p17162_p9, %p17161_p8 }
  0x59   :  { %p17164_p11 = pnand %p17163_p10, %p17157_p7 }
  0x5b   :  { %17167 = shalt.err (!%p17164_p11)
}
  0x5c   :  { %66 = dma.hbm_to_vmem [thread:$0]  %s18881_s3, 192, %s61_s27, [#allocation6], %s17327_s21, %s17327_s21, %s17328_s22  }
  0x5d   :  { %s17340_s18 = smov [#allocation10]   ;;  %s17341_s16 = smov [#allocation13]  }
  0x5e   :  { %s84_s6 = sshll.u32 %s17340_s18, 4  ;;  %s109_s23 = sshll.u32 %s17341_s16, 4  ;;  %s85_s6 = int_to_ptr.vmem [resolvable:$true] %s84_s6  ;;  %s110_s23 = int_to_ptr.vmem [resolvable:$true] %s109_s23 }
  0x5f   :  { %s17176_s1 = scalar_lea.vmem %s85_s6, 12288  ;;  %p17181_p13 = scmp.lt.s32.totalorder %s85_s6, %s85_s6 }
  0x60   :  { %p17177_p12 = scmp.ne.s32.totalorder %s85_s6, %s17176_s1  ;;  %p17182_p0 = scmp.lt.s32.totalorder %s17176_s1, %s17176_s1 }
  0x62   :  { %p17183_p1 = por %p17182_p0, %p17181_p13 }
  0x64   :  { %p17184_p2 = pnand %p17183_p1, %p17177_p12 }
  0x66   :  { %17187 = shalt.err (!%p17184_p2)
}
  0x67   :  { %90 = dma.hbm_to_vmem [thread:$0]  %s18883_s5, 12288, %s85_s6, [#allocation9], %s17332_s19, %s17332_s19, %s17333_s20  }
  0x68   :  { %s17196_s3 = scalar_lea.vmem %s110_s23, 64  ;;  %p17201_p4 = scmp.lt.s32.totalorder %s110_s23, %s110_s23 }
  0x69   :  { %p17197_p3 = scmp.ne.s32.totalorder %s110_s23, %s17196_s3  ;;  %p17202_p5 = scmp.lt.s32.totalorder %s17196_s3, %s17196_s3 }
  0x6b   :  { %p17203_p6 = por %p17202_p5, %p17201_p4 }
  0x6d   :  { %p17204_p7 = pnand %p17203_p6, %p17197_p3 }
  0x6f   :  { %17207 = shalt.err (!%p17204_p7)
}
  0x70   :  { %112 = dma.hbm_to_vmem [thread:$0]  %s18885_s7, 64, %s110_s23, [#allocation12]  }
  0x71   :  { %s17342_s4 = smov [#allocation16]   ;;  %s17343_s25 = smov [#allocation19]  }
  0x72   :  { %s131_s24 = sshll.u32 %s17342_s4, 4  ;;  %s153_s26 = sshll.u32 %s17343_s25, 4  ;;  %s132_s24 = int_to_ptr.vmem [resolvable:$true] %s131_s24  ;;  %s154_s26 = int_to_ptr.vmem [resolvable:$true] %s153_s26 }
  0x73   :  { %s17216_s27 = scalar_lea.vmem %s132_s24, 128  ;;  %p17221_p9 = scmp.lt.s32.totalorder %s132_s24, %s132_s24 }
  0x74   :  { %p17217_p8 = scmp.ne.s32.totalorder %s132_s24, %s17216_s27  ;;  %p17222_p10 = scmp.lt.s32.totalorder %s17216_s27, %s17216_s27 }
  0x76   :  { %p17223_p11 = por %p17222_p10, %p17221_p9 }
  0x78   :  { %p17224_p12 = pnand %p17223_p11, %p17217_p8 }
  0x7a   :  { %17227 = shalt.err (!%p17224_p12)
}
  0x7b   :  { %134 = dma.hbm_to_vmem [thread:$0]  %s18887_s9, 128, %s132_s24, [#allocation15]  }
  0x7c   :  { %s17236_s20 = scalar_lea.vmem %s154_s26, 64  ;;  %p17241_p0 = scmp.lt.s32.totalorder %s154_s26, %s154_s26 }
  0x7d   :  { %p17237_p13 = scmp.ne.s32.totalorder %s154_s26, %s17236_s20  ;;  %p17242_p1 = scmp.lt.s32.totalorder %s17236_s20, %s17236_s20 }
  0x7f   :  { %p17243_p2 = por %p17242_p1, %p17241_p0 }
  0x81   :  { %p17244_p3 = pnand %p17243_p2, %p17237_p13 }
  0x83   :  { %17247 = shalt.err (!%p17244_p3)
}
  0x84   :  { %156 = dma.hbm_to_vmem [thread:$0]  %s18889_s11, 64, %s154_s26, [#allocation18]  }
  0x85   :  { %s17344_s28 = smov [#allocation22]   ;;  %s17345_s12 = smov [#allocation23]  }
  0x86   :  { %s175_s29 = sshll.u32 %s17344_s28, 4  ;;  %s185_s30 = sshll.u32 %s17345_s12, 4  ;;  %s176_s29 = int_to_ptr.vmem [resolvable:$true] %s175_s29  ;;  %s186_s30 = int_to_ptr.vmem [resolvable:$true] %s185_s30 }
  0x87   :  { %s17256_s2 = scalar_lea.vmem %s176_s29, 16  ;;  %s17260_s9 = scalar_lea.vmem %s176_s29, 32 }
  0x88   :  { %p17257_p4 = scmp.ne.s32.totalorder %s176_s29, %s17256_s2  ;;  %p17261_p5 = scmp.lt.s32.totalorder %s176_s29, %s176_s29 }
  0x89   :  { %p17262_p6 = scmp.lt.s32.totalorder %s17260_s9, %s17256_s2 }
  0x8b   :  { %p17263_p7 = por %p17262_p6, %p17261_p5 }
  0x8d   :  { %p17264_p8 = pnand %p17263_p7, %p17257_p4 }
  0x8f   :  { %17267 = shalt.err (!%p17264_p8)
}
  0x90   :  { %178 = dma.hbm_to_vmem [thread:$0]  %s18891_s13, 16, %s176_s29, [#allocation21]  }
  0x91   :  { %s17276_s16 = scalar_lea.vmem %s186_s30, 16  ;;  %s17280_s11 = scalar_lea.vmem %s186_s30, 32 }
  0x92   :  { %p17277_p9 = scmp.ne.s32.totalorder %s186_s30, %s17276_s16  ;;  %p17281_p10 = scmp.lt.s32.totalorder %s186_s30, %s186_s30 }
  0x93   :  { %p17282_p11 = scmp.lt.s32.totalorder %s17280_s11, %s17276_s16 }
  0x95   :  { %p17283_p12 = por %p17282_p11, %p17281_p10 }
  0x97   :  { %p17284_p13 = pnand %p17283_p12, %p17277_p9 }
  0x99   :  { %17287 = shalt.err (!%p17284_p13)
}
  0x9a   :  { %188 = dma.hbm_to_vmem [thread:$0]  %s18892_s14, 16, %s186_s30, [#allocation24]  }
  0x9b   :  { %17308 = dma.done.wait [#allocation3], 36864  }
  0x9c   :  { %17309 = vsyncadd [#allocation3], 4294930432 }
  0x9d   :  { %17310 = dma.done.wait [#allocation6], 384  }
  0x9e   :  { %17311 = vsyncadd [#allocation6], 4294966912 }
  0x9f   :  { %17312 = dma.done.wait [#allocation9], 12480  }
  0xa0   :  { %17313 = vsyncadd [#allocation9], 4294954816 }
  0xa1   :  { %17314 = dma.done.wait [#allocation12], 16448  }
  0xa2   :  { %17315 = vsyncadd [#allocation12], 4294950848 }
  0xa3   :  { %17316 = dma.done.wait [#allocation15], 32896  }
  0xa4   :  { %17317 = vsyncadd [#allocation15], 4294934400 }
  0xa5   :  { %17318 = dma.done.wait [#allocation18], 16448  }
  0xa6   :  { %17319 = vsyncadd [#allocation18], 4294950848 }
  0xa7   :  { %17320 = dma.done.wait [#allocation21], 49168  }
  0xa8   :  { %17321 = vsyncadd [#allocation21], 4294918128 }
  0xa9   :  { %17322 = dma.done.wait [#allocation24], 16  }
  0xaa   :  { %17323 = vsyncadd [#allocation24], 4294967280  ;;  %v18894_v0 = vmov 0   ;;  %v15625_v1 = vld [vmem:[#allocation2 + $0x1e4] ss:$16 sps:$4 sm:$0xff]   ;;  %v17508_v34 = vld [vmem:[%s18878_s0 + $0x8] sm:$0xff]  ;;  %v232_v51 = vlaneseq }
  0xab   :  { %559 = vmatprep.mubr.bf16.mxu0 %v18894_v0  ;;  %602 = vmatprep.mubr.bf16.mxu1 %v18894_v0  ;;  %v15627_v2 = vld [vmem:[#allocation2 + $0x1ec] ss:$16 sps:$4 sm:$0xff]   ;;  %v15629_v3 = vld [vmem:[#allocation2 + $0x1e0] ss:$16 sps:$4 sm:$0xff]   ;;  %v15630_v4 = vld [vmem:[#allocation2 + $0x1e8] ss:$16 sps:$4 sm:$0xff]  }
  0xac   :  { %527 = vmatprep.subr.bf16.mxu0 %v15625_v1  ;;  %570 = vmatprep.subr.bf16.mxu1 %v15627_v2  ;;  %v15631_v5 = vld [vmem:[#allocation2 + $0x1c4] ss:$16 sps:$4 sm:$0xff]   ;;  %v15633_v6 = vld [vmem:[#allocation2 + $0x1cc] ss:$16 sps:$4 sm:$0xff]   ;;  %v15635_v7 = vld [vmem:[#allocation2 + $0x1c0] ss:$16 sps:$4 sm:$0xff]  }
  0xad   :  { %528 = vmatpush1.bf16.msra.mxu0 %v15629_v3  ;;  %571 = vmatpush1.bf16.msra.mxu1 %v15630_v4  ;;  %v15636_v8 = vld [vmem:[#allocation2 + $0x1c8] ss:$16 sps:$4 sm:$0xff]   ;;  %v15637_v9 = vld [vmem:[#allocation2 + $0x1a4] ss:$16 sps:$4 sm:$0xff]   ;;  %v15639_v10 = vld [vmem:[#allocation2 + $0x1ac] ss:$16 sps:$4 sm:$0xff]  }
  0xae   :  { %529 = vmatprep.subr.bf16.mxu0 %v15631_v5  ;;  %572 = vmatprep.subr.bf16.mxu1 %v15633_v6  ;;  %v15641_v11 = vld [vmem:[#allocation2 + $0x1a0] ss:$16 sps:$4 sm:$0xff]   ;;  %v15642_v12 = vld [vmem:[#allocation2 + $0x1a8] ss:$16 sps:$4 sm:$0xff]   ;;  %v15643_v13 = vld [vmem:[#allocation2 + $0x184] ss:$16 sps:$4 sm:$0xff]  }
  0xaf   :  { %v15645_v14 = vld [vmem:[#allocation2 + $0x18c] ss:$16 sps:$4 sm:$0xff]   ;;  %v15647_v15 = vld [vmem:[#allocation2 + $0x180] ss:$16 sps:$4 sm:$0xff]   ;;  %v15648_v16 = vld [vmem:[#allocation2 + $0x188] ss:$16 sps:$4 sm:$0xff]  }
  0xb0   :  { %v15649_v17 = vld [vmem:[#allocation2 + $0x164] ss:$16 sps:$4 sm:$0xff]   ;;  %v15651_v18 = vld [vmem:[#allocation2 + $0x16c] ss:$16 sps:$4 sm:$0xff]   ;;  %v15653_v19 = vld [vmem:[#allocation2 + $0x160] ss:$16 sps:$4 sm:$0xff]  }
  0xb1   :  { %530 = vmatpush1.bf16.msra.mxu0 %v15635_v7  ;;  %573 = vmatpush1.bf16.msra.mxu1 %v15636_v8  ;;  %v15654_v20 = vld [vmem:[#allocation2 + $0x168] ss:$16 sps:$4 sm:$0xff]   ;;  %v15655_v21 = vld [vmem:[#allocation2 + $0x144] ss:$16 sps:$4 sm:$0xff]   ;;  %v15657_v22 = vld [vmem:[#allocation2 + $0x14c] ss:$16 sps:$4 sm:$0xff]  }
  0xb2   :  { %531 = vmatprep.subr.bf16.mxu0 %v15637_v9  ;;  %574 = vmatprep.subr.bf16.mxu1 %v15639_v10  ;;  %v15659_v23 = vld [vmem:[#allocation2 + $0x140] ss:$16 sps:$4 sm:$0xff]   ;;  %v15660_v24 = vld [vmem:[#allocation2 + $0x148] ss:$16 sps:$4 sm:$0xff]   ;;  %v15661_v25 = vld [vmem:[#allocation2 + $0x124] ss:$16 sps:$4 sm:$0xff]  }
  0xb3   :  { %v15663_v26 = vld [vmem:[#allocation2 + $0x12c] ss:$16 sps:$4 sm:$0xff]   ;;  %v15665_v27 = vld [vmem:[#allocation2 + $0x120] ss:$16 sps:$4 sm:$0xff]   ;;  %v15666_v28 = vld [vmem:[#allocation2 + $0x128] ss:$16 sps:$4 sm:$0xff]  }
  0xb4   :  { %v15667_v29 = vld [vmem:[#allocation2 + $0x104] ss:$16 sps:$4 sm:$0xff]   ;;  %v15669_v30 = vld [vmem:[#allocation2 + $0x10c] ss:$16 sps:$4 sm:$0xff]   ;;  %v15671_v31 = vld [vmem:[#allocation2 + $0x100] ss:$16 sps:$4 sm:$0xff]  }
  0xb5   :  { %532 = vmatpush1.bf16.msra.mxu0 %v15641_v11  ;;  %575 = vmatpush1.bf16.msra.mxu1 %v15642_v12  ;;  %v15672_v32 = vld [vmem:[#allocation2 + $0x108] ss:$16 sps:$4 sm:$0xff]   ;;  %v17503_v33 = vld [vmem:[%s18878_s0] sm:$0xff]  ;;  %v15678_v36 = vld [vmem:[#allocation2 + $0xec] ss:$16 sps:$4 sm:$0xff]   ;;  %v17518_v56 = vshrl.u32 %v232_v51, 7 }
  0xb6   :  { %533 = vmatprep.subr.bf16.mxu0 %v15643_v13  ;;  %576 = vmatprep.subr.bf16.mxu1 %v15645_v14  ;;  %v15675_v35 = vld [vmem:[#allocation2 + $0xe4] ss:$16 sps:$4 sm:$0xff]   ;;  %v17512_v37 = vpack.c.bf16 %v17508_v34, %v17503_v33  ;;  %v15673_v38 = vld [vmem:[#allocation2 + $0xe0] ss:$16 sps:$4 sm:$0xff]   ;;  %v15676_v39 = vld [vmem:[#allocation2 + $0xe8] ss:$16 sps:$4 sm:$0xff]  }
  0xb7   :  { %v15681_v40 = vld [vmem:[#allocation2 + $0xc4] ss:$16 sps:$4 sm:$0xff]   ;;  %v15684_v41 = vld [vmem:[#allocation2 + $0xcc] ss:$16 sps:$4 sm:$0xff]   ;;  %v15679_v42 = vld [vmem:[#allocation2 + $0xc0] ss:$16 sps:$4 sm:$0xff]  }
  0xb8   :  { %v15682_v43 = vld [vmem:[#allocation2 + $0xc8] ss:$16 sps:$4 sm:$0xff]   ;;  %v15687_v44 = vld [vmem:[#allocation2 + $0xa4] ss:$16 sps:$4 sm:$0xff]   ;;  %v15690_v45 = vld [vmem:[#allocation2 + $0xac] ss:$16 sps:$4 sm:$0xff]  }
  0xb9   :  { %534 = vmatpush1.bf16.msra.mxu0 %v15647_v15  ;;  %577 = vmatpush1.bf16.msra.mxu1 %v15648_v16  ;;  %v15685_v46 = vld [vmem:[#allocation2 + $0xa0] ss:$16 sps:$4 sm:$0xff]   ;;  %v15688_v47 = vld [vmem:[#allocation2 + $0xa8] ss:$16 sps:$4 sm:$0xff]   ;;  %v15693_v48 = vld [vmem:[#allocation2 + $0x84] ss:$16 sps:$4 sm:$0xff]  }
  0xba   :  { %535 = vmatprep.subr.bf16.mxu0 %v15649_v17  ;;  %578 = vmatprep.subr.bf16.mxu1 %v15651_v18  ;;  %v15696_v49 = vld [vmem:[#allocation2 + $0x8c] ss:$16 sps:$4 sm:$0xff]   ;;  %v15691_v50 = vld [vmem:[#allocation2 + $0x80] ss:$16 sps:$4 sm:$0xff]   ;;  %v15694_v52 = vld [vmem:[#allocation2 + $0x88] ss:$16 sps:$4 sm:$0xff]  }
  0xbb   :  { %v15699_v53 = vld [vmem:[#allocation2 + $0x64] ss:$16 sps:$4 sm:$0xff]   ;;  %v15702_v54 = vld [vmem:[#allocation2 + $0x6c] ss:$16 sps:$4 sm:$0xff]   ;;  %v15697_v55 = vld [vmem:[#allocation2 + $0x60] ss:$16 sps:$4 sm:$0xff]  }
  0xbc   :  { %v15700_v57 = vld [vmem:[#allocation2 + $0x68] ss:$16 sps:$4 sm:$0xff]   ;;  %v15705_v58 = vld [vmem:[#allocation2 + $0x44] ss:$16 sps:$4 sm:$0xff]   ;;  %v15708_v59 = vld [vmem:[#allocation2 + $0x4c] ss:$16 sps:$4 sm:$0xff]  }
  0xbd   :  { %536 = vmatpush1.bf16.msra.mxu0 %v15653_v19  ;;  %579 = vmatpush1.bf16.msra.mxu1 %v15654_v20  ;;  %v15703_v60 = vld [vmem:[#allocation2 + $0x40] ss:$16 sps:$4 sm:$0xff]   ;;  %v234_v61 = vadd.s32 8, %v17518_v56  ;;  %v15706_v62 = vld [vmem:[#allocation2 + $0x48] ss:$16 sps:$4 sm:$0xff]   ;;  %v274_v2 = vrot.slane %v17503_v33, 7 }
  0xbe   :  { %537 = vmatprep.subr.bf16.mxu0 %v15655_v21  ;;  %580 = vmatprep.subr.bf16.mxu1 %v15657_v22  ;;  %v15711_v63 = vld [vmem:[#allocation2 + $0x24] ss:$16 sps:$4 sm:$0xff]   ;;  %v15714_v1 = vld [vmem:[#allocation2 + $0x2c] ss:$16 sps:$4 sm:$0xff]   ;;  %v15709_v3 = vld [vmem:[#allocation2 + $0x20] ss:$16 sps:$4 sm:$0xff]  }
  0xbf   :  { %v17523_v4 = vand.u32 7, %v17518_v56  ;;  %v17525_v5 = vand.u32 7, %v234_v61  ;;  %v275_v6 = vrot.slane %v17508_v34, 7  ;;  %v15712_v7 = vld [vmem:[#allocation2 + $0x28] ss:$16 sps:$4 sm:$0xff]   ;;  %vm276_vm0 = vcmp.lt.s32.totalorder %v17518_v56, 1 }
  0xc0   :  { %v15717_v8 = vld [vmem:[#allocation2 + $0x4] ss:$16 sps:$4 sm:$0xff]   ;;  %v15720_v9 = vld [vmem:[#allocation2 + $0xc] ss:$16 sps:$4 sm:$0xff]   ;;  %v15715_v10 = vld [vmem:[#allocation2] ss:$16 sps:$4 sm:$0xff]  }
  0xc1   :  { %538 = vmatpush1.bf16.msra.mxu0 %v15659_v23  ;;  %581 = vmatpush1.bf16.msra.mxu1 %v15660_v24  ;;  %vm279_vm1 = vcmp.ge.s32.totalorder %v17523_v4, 1  ;;  %v15718_v11 = vld [vmem:[#allocation2 + $0x8] ss:$16 sps:$4 sm:$0xff]   ;;  %v277_v12 = vsel %vm276_vm0, %v274_v2, %v275_v6  ;;  %v278_v13 = vsel %vm276_vm0, %v275_v6, %v274_v2  ;;  %vm280_vm2 = vcmp.ge.s32.totalorder %v17525_v5, 1  ;;  %v15723_v14 = vld [vmem:[#allocation2 + $0x2e4] ss:$16 sps:$4 sm:$0xff]  }
  0xc2   :  { %539 = vmatprep.subr.bf16.mxu0 %v15661_v25  ;;  %582 = vmatprep.subr.bf16.mxu1 %v15663_v26  ;;  %v15726_v15 = vld [vmem:[#allocation2 + $0x2ec] ss:$16 sps:$4 sm:$0xff]   ;;  %vm17535_vm3 = vmpackc.low %vm280_vm2, %vm279_vm1  ;;  %v13538_v17 = vpack.c.bf16 %v277_v12, %v278_v13  ;;  %v15721_v18 = vld [vmem:[#allocation2 + $0x2e0] ss:$16 sps:$4 sm:$0xff]   ;;  %vm290_vm4 = vcmp.lt.s32.totalorder %v17518_v56, 7  ;;  %vm293_vm5 = vcmp.lt.s32.totalorder %v17523_v4, 7 }
  0xc3   :  { %v15724_v19 = vld [vmem:[#allocation2 + $0x2e8] ss:$16 sps:$4 sm:$0xff]   ;;  %v15729_v20 = vld [vmem:[#allocation2 + $0x2c4] ss:$16 sps:$4 sm:$0xff]   ;;  %v15732_v21 = vld [vmem:[#allocation2 + $0x2cc] ss:$16 sps:$4 sm:$0xff]  }
  0xc4   :  { %v15727_v22 = vld [vmem:[#allocation2 + $0x2c0] ss:$16 sps:$4 sm:$0xff]   ;;  %v15730_v23 = vld [vmem:[#allocation2 + $0x2c8] ss:$16 sps:$4 sm:$0xff]   ;;  %v15735_v24 = vld [vmem:[#allocation2 + $0x2a4] ss:$16 sps:$4 sm:$0xff]  }
  0xc5   :  { %540 = vmatpush1.bf16.msra.mxu0 %v15665_v27  ;;  %583 = vmatpush1.bf16.msra.mxu1 %v15666_v28  ;;  %v15738_v25 = vld [vmem:[#allocation2 + $0x2ac] ss:$16 sps:$4 sm:$0xff]   ;;  %v15733_v26 = vld [vmem:[#allocation2 + $0x2a0] ss:$16 sps:$4 sm:$0xff]   ;;  %v15736_v27 = vld [vmem:[#allocation2 + $0x2a8] ss:$16 sps:$4 sm:$0xff]  }
  0xc6   :  { %541 = vmatprep.subr.bf16.mxu0 %v15667_v29  ;;  %584 = vmatprep.subr.bf16.mxu1 %v15669_v30  ;;  %v15741_v28 = vld [vmem:[#allocation2 + $0x284] ss:$16 sps:$4 sm:$0xff]   ;;  %v15744_v29 = vld [vmem:[#allocation2 + $0x28c] ss:$16 sps:$4 sm:$0xff]   ;;  %v15739_v30 = vld [vmem:[#allocation2 + $0x280] ss:$16 sps:$4 sm:$0xff]  }
  0xc7   :  { %v15763_v51 = vld [vmem:[#allocation2 + $0x200] ss:$16 sps:$4 sm:$0xff]   ;;  %vm294_vm6 = vcmp.lt.s32.totalorder %v17525_v5, 7  ;;  %v15772_v61 = vld [vmem:[#allocation2 + $0x4e8] ss:$16 sps:$4 sm:$0xff]   ;;  %vm1263_vm8 = vcmp.lt.s32.totalorder %v17518_v56, 2 }
  0xc8   :  { %vm17554_vm7 = vmpackc.low %vm294_vm6, %vm293_vm5  ;;  %v15778_v2 = vld [vmem:[#allocation2 + $0x4c8] ss:$16 sps:$4 sm:$0xff]   ;;  %v15786_v6 = vld [vmem:[#allocation2 + $0x4ac] ss:$16 sps:$4 sm:$0xff]   ;;  %vm1266_vm9 = vcmp.ge.s32.totalorder %v17523_v4, 2  ;;  %vm1267_vm10 = vcmp.ge.s32.totalorder %v17525_v5, 2 }
  0xc9   :  { %542 = vmatpush1.bf16.msra.mxu0 %v15671_v31  ;;  %585 = vmatpush1.bf16.msra.mxu1 %v15672_v32  ;;  %v15742_v31 = vld [vmem:[#allocation2 + $0x288] ss:$16 sps:$4 sm:$0xff]   ;;  %v15747_v32 = vld [vmem:[#allocation2 + $0x264] ss:$16 sps:$4 sm:$0xff]   ;;  %vm13645_vm11 = vmpackc.low %vm1267_vm10, %vm1266_vm9  ;;  %vm1277_vm12 = vcmp.lt.s32.totalorder %v17518_v56, 6  ;;  %vm1280_vm13 = vcmp.lt.s32.totalorder %v17523_v4, 6 }
  0xca   :  { %773 = vmatprep.subr.bf16.mxu0 %v15675_v35  ;;  %816 = vmatprep.subr.bf16.mxu1 %v15678_v36  ;;  %v15750_v35 = vld [vmem:[#allocation2 + $0x26c] ss:$16 sps:$4 sm:$0xff]   ;;  %v15745_v36 = vld [vmem:[#allocation2 + $0x260] ss:$16 sps:$4 sm:$0xff]   ;;  %v15790_v12 = vld [vmem:[#allocation2 + $0x488] ss:$16 sps:$4 sm:$0xff]  }
  0xcb   :  { %v15795_v13 = vld [vmem:[#allocation2 + $0x464] ss:$16 sps:$4 sm:$0xff]   ;;  %vm1281_vm14 = vcmp.lt.s32.totalorder %v17525_v5, 6  ;;  %vm2254_vm1 = vcmp.lt.s32.totalorder %v17518_v56, 4  ;;  %vm2257_vm2 = vcmp.ge.s32.totalorder %v17523_v4, 4  ;;  %vm2258_vm5 = vcmp.ge.s32.totalorder %v17525_v5, 4 }
  0xcc   :  { %560 = vmatmul.mubr.bf16.vlgmr.msra.gmra.mxu0 %v17512_v37  ;;  %603 = vmatmul.mubr.bf16.vlgmr.msra.gmra.mxu1 %v17512_v37  ;;  %vm13683_vm15 = vmpackc.low %vm1281_vm14, %vm1280_vm13  ;;  %vm2267_vm9 = vcmp.lt.s32.totalorder %v17525_v5, 4  ;;  %v17660_v5 = vsub.s32 0, %v17518_v56  ;;  %v16916_v16 = vld [vmem:[#allocation20 + $0x7a8] sm:$0xff]  }
  0xcd   :  { %774 = vmatpush1.bf16.msra.mxu0 %v15673_v38  ;;  %817 = vmatpush1.bf16.msra.mxu1 %v15676_v39  ;;  %v15748_v38 = vld [vmem:[#allocation2 + $0x268] ss:$16 sps:$4 sm:$0xff]   ;;  %v15753_v39 = vld [vmem:[#allocation2 + $0x244] ss:$16 sps:$4 sm:$0xff]   ;;  %vm13753_vm6 = vmpackc.low %vm2258_vm5, %vm2257_vm2 }
  0xce   :  { %775 = vmatprep.subr.bf16.mxu0 %v15681_v40  ;;  %818 = vmatprep.subr.bf16.mxu1 %v15684_v41  ;;  %v15756_v40 = vld [vmem:[#allocation2 + $0x24c] ss:$16 sps:$4 sm:$0xff]   ;;  %v15751_v41 = vld [vmem:[#allocation2 + $0x240] ss:$16 sps:$4 sm:$0xff]  }
  0xcf   :  { %805 = vmatprep.mubr.bf16.mxu0 %v18894_v0  ;;  %848 = vmatprep.mubr.bf16.mxu1 %v18894_v0 }
  0xd1   :  { %776 = vmatpush1.bf16.msra.mxu0 %v15679_v42  ;;  %819 = vmatpush1.bf16.msra.mxu1 %v15682_v43  ;;  %v15754_v42 = vld [vmem:[#allocation2 + $0x248] ss:$16 sps:$4 sm:$0xff]   ;;  %v15759_v43 = vld [vmem:[#allocation2 + $0x224] ss:$16 sps:$4 sm:$0xff]  }
  0xd2   :  { %777 = vmatprep.subr.bf16.mxu0 %v15687_v44  ;;  %820 = vmatprep.subr.bf16.mxu1 %v15690_v45  ;;  %v15762_v44 = vld [vmem:[#allocation2 + $0x22c] ss:$16 sps:$4 sm:$0xff]   ;;  %v288_v45 = vrot.slane %v17503_v33, 1 }
  0xd5   :  { %778 = vmatpush1.bf16.msra.mxu0 %v15685_v46  ;;  %821 = vmatpush1.bf16.msra.mxu1 %v15688_v47  ;;  %v289_v46 = vrot.slane %v17508_v34, 1  ;;  %v15757_v47 = vld [vmem:[#allocation2 + $0x220] ss:$16 sps:$4 sm:$0xff]  }
  0xd6   :  { %779 = vmatprep.subr.bf16.mxu0 %v15693_v48  ;;  %822 = vmatprep.subr.bf16.mxu1 %v15696_v49  ;;  %v15760_v48 = vld [vmem:[#allocation2 + $0x228] ss:$16 sps:$4 sm:$0xff]   ;;  %v15765_v49 = vld [vmem:[#allocation2 + $0x204] ss:$16 sps:$4 sm:$0xff]  }
  0xd9   :  { %780 = vmatpush1.bf16.msra.mxu0 %v15691_v50  ;;  %823 = vmatpush1.bf16.msra.mxu1 %v15694_v52  ;;  %v15768_v50 = vld [vmem:[#allocation2 + $0x20c] ss:$16 sps:$4 sm:$0xff]   ;;  %v15766_v52 = vld [vmem:[#allocation2 + $0x208] ss:$16 sps:$4 sm:$0xff]  }
  0xda   :  { %781 = vmatprep.subr.bf16.mxu0 %v15699_v53  ;;  %824 = vmatprep.subr.bf16.mxu1 %v15702_v54  ;;  %v291_v53 = vsel %vm290_vm4, %v288_v45, %v289_v46  ;;  %v292_v54 = vsel %vm290_vm4, %v289_v46, %v288_v45  ;;  %v15834_v45 = vld [vmem:[#allocation2 + $0x3ac] ss:$16 sps:$4 sm:$0xff]   ;;  %v15829_v46 = vld [vmem:[#allocation2 + $0x3a0] ss:$16 sps:$4 sm:$0xff]  }
  0xdd   :  { %782 = vmatpush1.bf16.msra.mxu0 %v15697_v55  ;;  %825 = vmatpush1.bf16.msra.mxu1 %v15700_v57  ;;  %v15771_v55 = vld [vmem:[#allocation2 + $0x4e4] ss:$16 sps:$4 sm:$0xff]   ;;  %v15774_v57 = vld [vmem:[#allocation2 + $0x4ec] ss:$16 sps:$4 sm:$0xff]  }
  0xde   :  { %783 = vmatprep.subr.bf16.mxu0 %v15705_v58  ;;  %826 = vmatprep.subr.bf16.mxu1 %v15708_v59  ;;  %v18952_v58 = vmov 0  ;;  %v13576_v59 = vpack.c.bf16 %v292_v54, %v291_v53  ;;  %v15846_v53 = vld [vmem:[#allocation2 + $0x36c] ss:$16 sps:$4 sm:$0xff]   ;;  %v15841_v54 = vld [vmem:[#allocation2 + $0x360] ss:$16 sps:$4 sm:$0xff]  }
  0xdf   :  { %v18953_v58 = vsel %vm17554_vm7, 4294967295, %v18952_v58 }
  0xe0   :  { %18954 = vst [vmem:[#allocation35_spill] sm:$0xff] %v18953_v58 }
  0xe1   :  { %784 = vmatpush1.bf16.msra.mxu0 %v15703_v60  ;;  %827 = vmatpush1.bf16.msra.mxu1 %v15706_v62  ;;  %v15769_v60 = vld [vmem:[#allocation2 + $0x4e0] ss:$16 sps:$4 sm:$0xff]   ;;  %v15777_v62 = vld [vmem:[#allocation2 + $0x4c4] ss:$16 sps:$4 sm:$0xff]  }
  0xe2   :  { %785 = vmatprep.subr.bf16.mxu0 %v15711_v63  ;;  %828 = vmatprep.subr.bf16.mxu1 %v15714_v1  ;;  %v15780_v63 = vld [vmem:[#allocation2 + $0x4cc] ss:$16 sps:$4 sm:$0xff]   ;;  %v15775_v1 = vld [vmem:[#allocation2 + $0x4c0] ss:$16 sps:$4 sm:$0xff]  }
  0xe5   :  { %786 = vmatpush1.bf16.msra.mxu0 %v15709_v3  ;;  %829 = vmatpush1.bf16.msra.mxu1 %v15712_v7  ;;  %v15783_v3 = vld [vmem:[#allocation2 + $0x4a4] ss:$16 sps:$4 sm:$0xff]   ;;  %v15781_v7 = vld [vmem:[#allocation2 + $0x4a0] ss:$16 sps:$4 sm:$0xff]  }
  0xe6   :  { %787 = vmatprep.subr.bf16.mxu0 %v15717_v8  ;;  %830 = vmatprep.subr.bf16.mxu1 %v15720_v9  ;;  %v15784_v8 = vld [vmem:[#allocation2 + $0x4a8] ss:$16 sps:$4 sm:$0xff]   ;;  %v15789_v9 = vld [vmem:[#allocation2 + $0x484] ss:$16 sps:$4 sm:$0xff]  }
  0xe9   :  { %788 = vmatpush1.bf16.msra.mxu0 %v15715_v10  ;;  %831 = vmatpush1.bf16.msra.mxu1 %v15718_v11  ;;  %v15792_v10 = vld [vmem:[#allocation2 + $0x48c] ss:$16 sps:$4 sm:$0xff]   ;;  %v15787_v11 = vld [vmem:[#allocation2 + $0x480] ss:$16 sps:$4 sm:$0xff]  }
  0xea   :  { %1052 = vmatprep.subr.bf16.mxu0 %v15723_v14  ;;  %1095 = vmatprep.subr.bf16.mxu1 %v15726_v15  ;;  %v15798_v14 = vld [vmem:[#allocation2 + $0x46c] ss:$16 sps:$4 sm:$0xff]   ;;  %v15793_v15 = vld [vmem:[#allocation2 + $0x460] ss:$16 sps:$4 sm:$0xff]  }
  0xec   :  { %13539 = vmatmul.mubr.msk.bf16.vlgmr.msra.gmra.mxu0 %vm17535_vm3, %v13538_v17  ;;  %13542 = vmatmul.mubr.msk.bf16.vlgmr.msra.gmra.mxu1 %vm17535_vm3, %v13538_v17  ;;  %v15796_v17 = vld [vmem:[#allocation2 + $0x468] ss:$16 sps:$4 sm:$0xff]  }
  0xed   :  { %1053 = vmatpush1.bf16.msra.mxu0 %v15721_v18  ;;  %1096 = vmatpush1.bf16.msra.mxu1 %v15724_v19  ;;  %v15801_v18 = vld [vmem:[#allocation2 + $0x444] ss:$16 sps:$4 sm:$0xff]   ;;  %v15804_v19 = vld [vmem:[#allocation2 + $0x44c] ss:$16 sps:$4 sm:$0xff]  }
  0xee   :  { %1054 = vmatprep.subr.bf16.mxu0 %v15729_v20  ;;  %1097 = vmatprep.subr.bf16.mxu1 %v15732_v21  ;;  %v15799_v20 = vld [vmem:[#allocation2 + $0x440] ss:$16 sps:$4 sm:$0xff]   ;;  %v15802_v21 = vld [vmem:[#allocation2 + $0x448] ss:$16 sps:$4 sm:$0xff]  }
  0xef   :  { %1084 = vmatprep.mubr.bf16.mxu0 %v18894_v0  ;;  %1127 = vmatprep.mubr.bf16.mxu1 %v18894_v0 }
  0xf1   :  { %1055 = vmatpush1.bf16.msra.mxu0 %v15727_v22  ;;  %1098 = vmatpush1.bf16.msra.mxu1 %v15730_v23  ;;  %v15807_v22 = vld [vmem:[#allocation2 + $0x424] ss:$16 sps:$4 sm:$0xff]   ;;  %v15810_v23 = vld [vmem:[#allocation2 + $0x42c] ss:$16 sps:$4 sm:$0xff]  }
  0xf2   :  { %1056 = vmatprep.subr.bf16.mxu0 %v15735_v24  ;;  %1099 = vmatprep.subr.bf16.mxu1 %v15738_v25  ;;  %v15805_v24 = vld [vmem:[#allocation2 + $0x420] ss:$16 sps:$4 sm:$0xff]   ;;  %v15808_v25 = vld [vmem:[#allocation2 + $0x428] ss:$16 sps:$4 sm:$0xff]  }
  0xf5   :  { %1057 = vmatpush1.bf16.msra.mxu0 %v15733_v26  ;;  %1100 = vmatpush1.bf16.msra.mxu1 %v15736_v27  ;;  %v15813_v26 = vld [vmem:[#allocation2 + $0x404] ss:$16 sps:$4 sm:$0xff]   ;;  %v15816_v27 = vld [vmem:[#allocation2 + $0x40c] ss:$16 sps:$4 sm:$0xff]  }
  0xf6   :  { %1058 = vmatprep.subr.bf16.mxu0 %v15741_v28  ;;  %1101 = vmatprep.subr.bf16.mxu1 %v15744_v29  ;;  %v15811_v28 = vld [vmem:[#allocation2 + $0x400] ss:$16 sps:$4 sm:$0xff]   ;;  %v15814_v29 = vld [vmem:[#allocation2 + $0x408] ss:$16 sps:$4 sm:$0xff]  }
  0xf9   :  { %1059 = vmatpush1.bf16.msra.mxu0 %v15739_v30  ;;  %1102 = vmatpush1.bf16.msra.mxu1 %v15742_v31  ;;  %v17567_v30 = vld [vmem:[%s18878_s0 + $0x10] sm:$0xff]  ;;  %v17572_v31 = vld [vmem:[%s18878_s0 + $0x18] sm:$0xff] }
  0xfa   :  { %1060 = vmatprep.subr.bf16.mxu0 %v15747_v32  ;;  %1103 = vmatprep.subr.bf16.mxu1 %v15750_v35  ;;  %v15819_v32 = vld [vmem:[#allocation2 + $0x3e4] ss:$16 sps:$4 sm:$0xff]   ;;  %v15822_v35 = vld [vmem:[#allocation2 + $0x3ec] ss:$16 sps:$4 sm:$0xff]  }
  0xfd   :  { %1061 = vmatpush1.bf16.msra.mxu0 %v15745_v36  ;;  %1104 = vmatpush1.bf16.msra.mxu1 %v15748_v38  ;;  %v17576_v36 = vpack.c.bf16 %v17572_v31, %v17567_v30  ;;  %v15817_v38 = vld [vmem:[#allocation2 + $0x3e0] ss:$16 sps:$4 sm:$0xff]  }
  0xfe   :  { %1062 = vmatprep.subr.bf16.mxu0 %v15753_v39  ;;  %1105 = vmatprep.subr.bf16.mxu1 %v15756_v40  ;;  %v15820_v39 = vld [vmem:[#allocation2 + $0x3e8] ss:$16 sps:$4 sm:$0xff]   ;;  %v15825_v40 = vld [vmem:[#allocation2 + $0x3c4] ss:$16 sps:$4 sm:$0xff]  }
 0x101   :  { %1063 = vmatpush1.bf16.msra.mxu0 %v15751_v41  ;;  %1106 = vmatpush1.bf16.msra.mxu1 %v15754_v42  ;;  %v15828_v41 = vld [vmem:[#allocation2 + $0x3cc] ss:$16 sps:$4 sm:$0xff]   ;;  %v15823_v42 = vld [vmem:[#allocation2 + $0x3c0] ss:$16 sps:$4 sm:$0xff]  }
 0x102   :  { %1064 = vmatprep.subr.bf16.mxu0 %v15759_v43  ;;  %1107 = vmatprep.subr.bf16.mxu1 %v15762_v44  ;;  %v15826_v43 = vld [vmem:[#allocation2 + $0x3c8] ss:$16 sps:$4 sm:$0xff]   ;;  %v15831_v44 = vld [vmem:[#allocation2 + $0x3a4] ss:$16 sps:$4 sm:$0xff]  }
 0x105   :  { %1065 = vmatpush1.bf16.msra.mxu0 %v15757_v47  ;;  %1108 = vmatpush1.bf16.msra.mxu1 %v15760_v48  ;;  %v15832_v47 = vld [vmem:[#allocation2 + $0x3a8] ss:$16 sps:$4 sm:$0xff]   ;;  %v15837_v48 = vld [vmem:[#allocation2 + $0x384] ss:$16 sps:$4 sm:$0xff]  }
 0x106   :  { %1066 = vmatprep.subr.bf16.mxu0 %v15765_v49  ;;  %1109 = vmatprep.subr.bf16.mxu1 %v15768_v50  ;;  %v15840_v49 = vld [vmem:[#allocation2 + $0x38c] ss:$16 sps:$4 sm:$0xff]   ;;  %v15835_v50 = vld [vmem:[#allocation2 + $0x380] ss:$16 sps:$4 sm:$0xff]  }
 0x109   :  { %1067 = vmatpush1.bf16.msra.mxu0 %v15763_v51  ;;  %1110 = vmatpush1.bf16.msra.mxu1 %v15766_v52  ;;  %v15838_v51 = vld [vmem:[#allocation2 + $0x388] ss:$16 sps:$4 sm:$0xff]   ;;  %v15843_v52 = vld [vmem:[#allocation2 + $0x364] ss:$16 sps:$4 sm:$0xff]  }
 0x10a   :  { %1515 = vmatprep.subr.bf16.mxu0 %v15771_v55  ;;  %1558 = vmatprep.subr.bf16.mxu1 %v15774_v57  ;;  %v15844_v55 = vld [vmem:[#allocation2 + $0x368] ss:$16 sps:$4 sm:$0xff]   ;;  %v15849_v57 = vld [vmem:[#allocation2 + $0x344] ss:$16 sps:$4 sm:$0xff]  }
 0x10c   :  { %13577 = vmatmul.mubr.msk.bf16.vlgmr.msra.gmra.mxu0 %vm17554_vm7, %v13576_v59  ;;  %13580 = vmatmul.mubr.msk.bf16.vlgmr.msra.gmra.mxu1 %vm17554_vm7, %v13576_v59  ;;  %v15852_v59 = vld [vmem:[#allocation2 + $0x34c] ss:$16 sps:$4 sm:$0xff]  }
 0x10d   :  { %1516 = vmatpush1.bf16.msra.mxu0 %v15769_v60  ;;  %1559 = vmatpush1.bf16.msra.mxu1 %v15772_v61  ;;  %v15847_v60 = vld [vmem:[#allocation2 + $0x340] ss:$16 sps:$4 sm:$0xff]   ;;  %v15850_v61 = vld [vmem:[#allocation2 + $0x348] ss:$16 sps:$4 sm:$0xff]  }
 0x10e   :  { %1517 = vmatprep.subr.bf16.mxu0 %v15777_v62  ;;  %1560 = vmatprep.subr.bf16.mxu1 %v15780_v63  ;;  %v15855_v62 = vld [vmem:[#allocation2 + $0x324] ss:$16 sps:$4 sm:$0xff]   ;;  %v15858_v63 = vld [vmem:[#allocation2 + $0x32c] ss:$16 sps:$4 sm:$0xff]  }
 0x10f   :  { %1547 = vmatprep.mubr.bf16.mxu0 %v18894_v0  ;;  %1590 = vmatprep.mubr.bf16.mxu1 %v18894_v0 }
 0x111   :  { %1518 = vmatpush1.bf16.msra.mxu0 %v15775_v1  ;;  %1561 = vmatpush1.bf16.msra.mxu1 %v15778_v2  ;;  %v267_v1 = vadd.f32 %v17567_v30, %v17503_v33  ;;  %v268_v2 = vadd.f32 %v17572_v31, %v17508_v34  ;;  %v17596_v33 = vld [vmem:[%s18878_s0 + $0x28] sm:$0xff]  ;;  %v15861_v34 = vld [vmem:[#allocation2 + $0x304] ss:$16 sps:$4 sm:$0xff]  }
 0x112   :  { %1519 = vmatprep.subr.bf16.mxu0 %v15783_v3  ;;  %1562 = vmatprep.subr.bf16.mxu1 %v15786_v6  ;;  %v15853_v3 = vld [vmem:[#allocation2 + $0x320] ss:$16 sps:$4 sm:$0xff]   ;;  %v15856_v6 = vld [vmem:[#allocation2 + $0x328] ss:$16 sps:$4 sm:$0xff]  }
 0x115   :  { %1520 = vmatpush1.bf16.msra.mxu0 %v15781_v7  ;;  %1563 = vmatpush1.bf16.msra.mxu1 %v15784_v8  ;;  %v1261_v7 = vrot.slane %v17567_v30, 6  ;;  %v1262_v8 = vrot.slane %v17572_v31, 6 }
 0x116   :  { %1521 = vmatprep.subr.bf16.mxu0 %v15789_v9  ;;  %1564 = vmatprep.subr.bf16.mxu1 %v15792_v10  ;;  %v17591_v9 = vld [vmem:[%s18878_s0 + $0x20] sm:$0xff]  ;;  %v15864_v10 = vld [vmem:[#allocation2 + $0x30c] ss:$16 sps:$4 sm:$0xff]   ;;  %s17349_s0 = smov [#allocation25]  }
 0x117   :  { %s13450_s5 = sshll.u32 %s17349_s0, 4  ;;  %s13451_s5 = int_to_ptr.vmem [resolvable:$true] %s13450_s5 }
 0x118   :  { %s17288_s19 = scalar_lea.vmem %s13451_s5, 256  ;;  %p17293_p1 = scmp.lt.s32.totalorder %s13451_s5, %s13451_s5 }
 0x119   :  { %1522 = vmatpush1.bf16.msra.mxu0 %v15787_v11  ;;  %1565 = vmatpush1.bf16.msra.mxu1 %v15790_v12  ;;  %v17600_v11 = vadd.f32 %v17591_v9, %v267_v1  ;;  %v17603_v12 = vadd.f32 %v17596_v33, %v268_v2  ;;  %v15913_v1 = vld [vmem:[#allocation2 + $0x7e0] ss:$16 sps:$4 sm:$0xff]   ;;  %v15916_v2 = vld [vmem:[#allocation2 + $0x7e8] ss:$16 sps:$4 sm:$0xff]   ;;  %p17289_p0 = scmp.ne.s32.totalorder %s13451_s5, %s17288_s19  ;;  %p17294_p2 = scmp.lt.s32.totalorder %s17288_s19, %s17288_s19 }
 0x11a   :  { %1523 = vmatprep.subr.bf16.mxu0 %v15795_v13  ;;  %1566 = vmatprep.subr.bf16.mxu1 %v15798_v14  ;;  %v15859_v13 = vld [vmem:[#allocation2 + $0x300] ss:$16 sps:$4 sm:$0xff]   ;;  %v15862_v14 = vld [vmem:[#allocation2 + $0x308] ss:$16 sps:$4 sm:$0xff]  }
 0x11b   :  { %18955 = vst [vmem:[#allocation36_spill] sm:$0xff] %v17600_v11  ;;  %18956 = vst [vmem:[#allocation37_spill] sm:$0xff] %v17603_v12  ;;  %p17295_p3 = por %p17294_p2, %p17293_p1 }
 0x11d   :  { %1524 = vmatpush1.bf16.msra.mxu0 %v15793_v15  ;;  %1567 = vmatpush1.bf16.msra.mxu1 %v15796_v17  ;;  %v1264_v15 = vsel %vm1263_vm8, %v1261_v7, %v1262_v8  ;;  %v1265_v17 = vsel %vm1263_vm8, %v1262_v8, %v1261_v7  ;;  %v15919_v7 = vld [vmem:[#allocation2 + $0x7c0] ss:$16 sps:$4 sm:$0xff]   ;;  %v15922_v8 = vld [vmem:[#allocation2 + $0x7c8] ss:$16 sps:$4 sm:$0xff]   ;;  %vm2266_vm8 = vcmp.lt.s32.totalorder %v17523_v4, 4  ;;  %p17296_p4 = pnand %p17295_p3, %p17289_p0 }
 0x11e   :  { %1525 = vmatprep.subr.bf16.mxu0 %v15801_v18  ;;  %1568 = vmatprep.subr.bf16.mxu1 %v15804_v19  ;;  %v15867_v18 = vld [vmem:[#allocation2 + $0x5e4] ss:$16 sps:$4 sm:$0xff]   ;;  %v15870_v19 = vld [vmem:[#allocation2 + $0x5ec] ss:$16 sps:$4 sm:$0xff]   ;;  %vm17655_vm10 = vmpackc.low %vm2267_vm9, %vm2266_vm8 }
 0x11f   :  { %v1146_v4 = vld [vmem:[#allocation5] sm:$0xf] }
 0x121   :  { %1526 = vmatpush1.bf16.msra.mxu0 %v15799_v20  ;;  %1569 = vmatpush1.bf16.msra.mxu1 %v15802_v21  ;;  %v13646_v20 = vpack.c.bf16 %v1264_v15, %v1265_v17  ;;  %v15865_v21 = vld [vmem:[#allocation2 + $0x5e0] ss:$16 sps:$4 sm:$0xff]   ;;  %v15933_v15 = vld [vmem:[#allocation2 + $0x784] ss:$16 sps:$4 sm:$0xff]   ;;  %v15936_v17 = vld [vmem:[#allocation2 + $0x78c] ss:$16 sps:$4 sm:$0xff]  }
 0x122   :  { %1527 = vmatprep.subr.bf16.mxu0 %v15807_v22  ;;  %1570 = vmatprep.subr.bf16.mxu1 %v15810_v23  ;;  %v15868_v22 = vld [vmem:[#allocation2 + $0x5e8] ss:$16 sps:$4 sm:$0xff]   ;;  %v15873_v23 = vld [vmem:[#allocation2 + $0x5c4] ss:$16 sps:$4 sm:$0xff]  }
 0x125   :  { %1528 = vmatpush1.bf16.msra.mxu0 %v15805_v24  ;;  %1571 = vmatpush1.bf16.msra.mxu1 %v15808_v25  ;;  %v15876_v24 = vld [vmem:[#allocation2 + $0x5cc] ss:$16 sps:$4 sm:$0xff]   ;;  %v15871_v25 = vld [vmem:[#allocation2 + $0x5c0] ss:$16 sps:$4 sm:$0xff]  }
 0x126   :  { %1529 = vmatprep.subr.bf16.mxu0 %v15813_v26  ;;  %1572 = vmatprep.subr.bf16.mxu1 %v15816_v27  ;;  %v15874_v26 = vld [vmem:[#allocation2 + $0x5c8] ss:$16 sps:$4 sm:$0xff]   ;;  %v15879_v27 = vld [vmem:[#allocation2 + $0x5a4] ss:$16 sps:$4 sm:$0xff]  }
 0x129   :  { %1530 = vmatpush1.bf16.msra.mxu0 %v15811_v28  ;;  %1573 = vmatpush1.bf16.msra.mxu1 %v15814_v29  ;;  %v15882_v28 = vld [vmem:[#allocation2 + $0x5ac] ss:$16 sps:$4 sm:$0xff]   ;;  %v15877_v29 = vld [vmem:[#allocation2 + $0x5a0] ss:$16 sps:$4 sm:$0xff]  }
 0x12a   :  { %1761 = vmatprep.subr.bf16.mxu0 %v15819_v32  ;;  %1804 = vmatprep.subr.bf16.mxu1 %v15822_v35  ;;  %v15880_v32 = vld [vmem:[#allocation2 + $0x5a8] ss:$16 sps:$4 sm:$0xff]   ;;  %v15885_v35 = vld [vmem:[#allocation2 + $0x584] ss:$16 sps:$4 sm:$0xff]  }
 0x12c   :  { %1548 = vmatmul.mubr.bf16.vlgmr.msra.gmra.mxu0 %v17576_v36  ;;  %1591 = vmatmul.mubr.bf16.vlgmr.msra.gmra.mxu1 %v17576_v36 }
 0x12d   :  { %1762 = vmatpush1.bf16.msra.mxu0 %v15817_v38  ;;  %1805 = vmatpush1.bf16.msra.mxu1 %v15820_v39  ;;  %v15888_v38 = vld [vmem:[#allocation2 + $0x58c] ss:$16 sps:$4 sm:$0xff]   ;;  %v15883_v39 = vld [vmem:[#allocation2 + $0x580] ss:$16 sps:$4 sm:$0xff]  }
 0x12e   :  { %1763 = vmatprep.subr.bf16.mxu0 %v15825_v40  ;;  %1806 = vmatprep.subr.bf16.mxu1 %v15828_v41  ;;  %v15886_v40 = vld [vmem:[#allocation2 + $0x588] ss:$16 sps:$4 sm:$0xff]   ;;  %v15891_v41 = vld [vmem:[#allocation2 + $0x564] ss:$16 sps:$4 sm:$0xff]  }
 0x12f   :  { %1793 = vmatprep.mubr.bf16.mxu0 %v18894_v0  ;;  %1836 = vmatprep.mubr.bf16.mxu1 %v18894_v0 }
 0x131   :  { %1764 = vmatpush1.bf16.msra.mxu0 %v15823_v42  ;;  %1807 = vmatpush1.bf16.msra.mxu1 %v15826_v43  ;;  %v15894_v42 = vld [vmem:[#allocation2 + $0x56c] ss:$16 sps:$4 sm:$0xff]   ;;  %v15889_v43 = vld [vmem:[#allocation2 + $0x560] ss:$16 sps:$4 sm:$0xff]  }
 0x132   :  { %1765 = vmatprep.subr.bf16.mxu0 %v15831_v44  ;;  %1808 = vmatprep.subr.bf16.mxu1 %v15834_v45  ;;  %v15892_v44 = vld [vmem:[#allocation2 + $0x568] ss:$16 sps:$4 sm:$0xff]   ;;  %v15897_v45 = vld [vmem:[#allocation2 + $0x544] ss:$16 sps:$4 sm:$0xff]  }
 0x135   :  { %1766 = vmatpush1.bf16.msra.mxu0 %v15829_v46  ;;  %1809 = vmatpush1.bf16.msra.mxu1 %v15832_v47  ;;  %v15900_v46 = vld [vmem:[#allocation2 + $0x54c] ss:$16 sps:$4 sm:$0xff]   ;;  %v15895_v47 = vld [vmem:[#allocation2 + $0x540] ss:$16 sps:$4 sm:$0xff]  }
 0x136   :  { %1767 = vmatprep.subr.bf16.mxu0 %v15837_v48  ;;  %1810 = vmatprep.subr.bf16.mxu1 %v15840_v49  ;;  %v15898_v48 = vld [vmem:[#allocation2 + $0x548] ss:$16 sps:$4 sm:$0xff]   ;;  %v15903_v49 = vld [vmem:[#allocation2 + $0x524] ss:$16 sps:$4 sm:$0xff]  }
 0x139   :  { %1768 = vmatpush1.bf16.msra.mxu0 %v15835_v50  ;;  %1811 = vmatpush1.bf16.msra.mxu1 %v15838_v51  ;;  %v15906_v50 = vld [vmem:[#allocation2 + $0x52c] ss:$16 sps:$4 sm:$0xff]   ;;  %v1275_v51 = vrot.slane %v17567_v30, 2 }
 0x13a   :  { %1769 = vmatprep.subr.bf16.mxu0 %v15843_v52  ;;  %1812 = vmatprep.subr.bf16.mxu1 %v15846_v53  ;;  %v15901_v52 = vld [vmem:[#allocation2 + $0x520] ss:$16 sps:$4 sm:$0xff]   ;;  %v1276_v53 = vrot.slane %v17572_v31, 2  ;;  %v15915_v31 = vld [vmem:[#allocation2 + $0x7e4] ss:$16 sps:$4 sm:$0xff]  }
 0x13c   :  { %v1279_v30 = vsel %vm1277_vm12, %v1276_v53, %v1275_v51 }
 0x13d   :  { %1770 = vmatpush1.bf16.msra.mxu0 %v15841_v54  ;;  %1813 = vmatpush1.bf16.msra.mxu1 %v15844_v55  ;;  %v15904_v54 = vld [vmem:[#allocation2 + $0x528] ss:$16 sps:$4 sm:$0xff]   ;;  %v15909_v55 = vld [vmem:[#allocation2 + $0x504] ss:$16 sps:$4 sm:$0xff]  }
 0x13e   :  { %1771 = vmatprep.subr.bf16.mxu0 %v15849_v57  ;;  %1814 = vmatprep.subr.bf16.mxu1 %v15852_v59  ;;  %v15912_v57 = vld [vmem:[#allocation2 + $0x50c] ss:$16 sps:$4 sm:$0xff]   ;;  %v15907_v59 = vld [vmem:[#allocation2 + $0x500] ss:$16 sps:$4 sm:$0xff]  }
 0x141   :  { %1772 = vmatpush1.bf16.msra.mxu0 %v15847_v60  ;;  %1815 = vmatpush1.bf16.msra.mxu1 %v15850_v61  ;;  %v15910_v60 = vld [vmem:[#allocation2 + $0x508] ss:$16 sps:$4 sm:$0xff]   ;;  %v1278_v61 = vsel %vm1277_vm12, %v1275_v51, %v1276_v53  ;;  %v15975_v51 = vld [vmem:[#allocation2 + $0x6a4] ss:$16 sps:$4 sm:$0xff]   ;;  %v15973_v53 = vld [vmem:[#allocation2 + $0x6a0] ss:$16 sps:$4 sm:$0xff]  }
 0x142   :  { %1773 = vmatprep.subr.bf16.mxu0 %v15855_v62  ;;  %1816 = vmatprep.subr.bf16.mxu1 %v15858_v63  ;;  %v15918_v62 = vld [vmem:[#allocation2 + $0x7ec] ss:$16 sps:$4 sm:$0xff]   ;;  %v13684_v63 = vpack.c.bf16 %v1279_v30, %v1278_v61  ;;  %v15987_v61 = vld [vmem:[#allocation2 + $0x664] ss:$16 sps:$4 sm:$0xff]  }
 0x143   :  { %v15990_v30 = vld [vmem:[#allocation2 + $0x66c] ss:$16 sps:$4 sm:$0xff]  }
 0x145   :  { %1774 = vmatpush1.bf16.msra.mxu0 %v15853_v3  ;;  %1817 = vmatpush1.bf16.msra.mxu1 %v15856_v6  ;;  %v15921_v3 = vld [vmem:[#allocation2 + $0x7c4] ss:$16 sps:$4 sm:$0xff]   ;;  %v15924_v6 = vld [vmem:[#allocation2 + $0x7cc] ss:$16 sps:$4 sm:$0xff]  }
 0x146   :  { %1775 = vmatprep.subr.bf16.mxu0 %v15861_v34  ;;  %1818 = vmatprep.subr.bf16.mxu1 %v15864_v10  ;;  %v15927_v34 = vld [vmem:[#allocation2 + $0x7a4] ss:$16 sps:$4 sm:$0xff]   ;;  %v15930_v10 = vld [vmem:[#allocation2 + $0x7ac] ss:$16 sps:$4 sm:$0xff]  }
 0x149   :  { %1776 = vmatpush1.bf16.msra.mxu0 %v15859_v13  ;;  %1819 = vmatpush1.bf16.msra.mxu1 %v15862_v14  ;;  %v15925_v13 = vld [vmem:[#allocation2 + $0x7a0] ss:$16 sps:$4 sm:$0xff]   ;;  %v15928_v14 = vld [vmem:[#allocation2 + $0x7a8] ss:$16 sps:$4 sm:$0xff]  }
 0x14a   :  { %2040 = vmatprep.subr.bf16.mxu0 %v15867_v18  ;;  %2083 = vmatprep.subr.bf16.mxu1 %v15870_v19  ;;  %v15931_v18 = vld [vmem:[#allocation2 + $0x780] ss:$16 sps:$4 sm:$0xff]   ;;  %v15934_v19 = vld [vmem:[#allocation2 + $0x788] ss:$16 sps:$4 sm:$0xff]  }
 0x14c   :  { %13647 = vmatmul.mubr.msk.bf16.vlgmr.msra.gmra.mxu0 %vm13645_vm11, %v13646_v20  ;;  %13650 = vmatmul.mubr.msk.bf16.vlgmr.msra.gmra.mxu1 %vm13645_vm11, %v13646_v20  ;;  %v15939_v20 = vld [vmem:[#allocation2 + $0x764] ss:$16 sps:$4 sm:$0xff]  }
 0x14d   :  { %2041 = vmatpush1.bf16.msra.mxu0 %v15865_v21  ;;  %2084 = vmatpush1.bf16.msra.mxu1 %v15868_v22  ;;  %v15942_v21 = vld [vmem:[#allocation2 + $0x76c] ss:$16 sps:$4 sm:$0xff]   ;;  %v15937_v22 = vld [vmem:[#allocation2 + $0x760] ss:$16 sps:$4 sm:$0xff]  }
 0x14e   :  { %2042 = vmatprep.subr.bf16.mxu0 %v15873_v23  ;;  %2085 = vmatprep.subr.bf16.mxu1 %v15876_v24  ;;  %v15940_v23 = vld [vmem:[#allocation2 + $0x768] ss:$16 sps:$4 sm:$0xff]   ;;  %v15945_v24 = vld [vmem:[#allocation2 + $0x744] ss:$16 sps:$4 sm:$0xff]  }
 0x14f   :  { %2072 = vmatprep.mubr.bf16.mxu0 %v18894_v0  ;;  %2115 = vmatprep.mubr.bf16.mxu1 %v18894_v0 }
 0x151   :  { %2043 = vmatpush1.bf16.msra.mxu0 %v15871_v25  ;;  %2086 = vmatpush1.bf16.msra.mxu1 %v15874_v26  ;;  %v15948_v25 = vld [vmem:[#allocation2 + $0x74c] ss:$16 sps:$4 sm:$0xff]   ;;  %v15943_v26 = vld [vmem:[#allocation2 + $0x740] ss:$16 sps:$4 sm:$0xff]  }
 0x152   :  { %2044 = vmatprep.subr.bf16.mxu0 %v15879_v27  ;;  %2087 = vmatprep.subr.bf16.mxu1 %v15882_v28  ;;  %v15946_v27 = vld [vmem:[#allocation2 + $0x748] ss:$16 sps:$4 sm:$0xff]   ;;  %v15951_v28 = vld [vmem:[#allocation2 + $0x724] ss:$16 sps:$4 sm:$0xff]  }
 0x155   :  { %2045 = vmatpush1.bf16.msra.mxu0 %v15877_v29  ;;  %2088 = vmatpush1.bf16.msra.mxu1 %v15880_v32  ;;  %v15954_v29 = vld [vmem:[#allocation2 + $0x72c] ss:$16 sps:$4 sm:$0xff]   ;;  %v15949_v32 = vld [vmem:[#allocation2 + $0x720] ss:$16 sps:$4 sm:$0xff]  }
 0x156   :  { %2046 = vmatprep.subr.bf16.mxu0 %v15885_v35  ;;  %2089 = vmatprep.subr.bf16.mxu1 %v15888_v38  ;;  %v15952_v35 = vld [vmem:[#allocation2 + $0x728] ss:$16 sps:$4 sm:$0xff]   ;;  %v15957_v38 = vld [vmem:[#allocation2 + $0x704] ss:$16 sps:$4 sm:$0xff]  }
 0x159   :  { %2047 = vmatpush1.bf16.msra.mxu0 %v15883_v39  ;;  %2090 = vmatpush1.bf16.msra.mxu1 %v15886_v40  ;;  %v15960_v39 = vld [vmem:[#allocation2 + $0x70c] ss:$16 sps:$4 sm:$0xff]   ;;  %v15955_v40 = vld [vmem:[#allocation2 + $0x700] ss:$16 sps:$4 sm:$0xff]  }
 0x15a   :  { %2048 = vmatprep.subr.bf16.mxu0 %v15891_v41  ;;  %2091 = vmatprep.subr.bf16.mxu1 %v15894_v42  ;;  %v15958_v41 = vld [vmem:[#allocation2 + $0x708] ss:$16 sps:$4 sm:$0xff]   ;;  %v15963_v42 = vld [vmem:[#allocation2 + $0x6e4] ss:$16 sps:$4 sm:$0xff]  }
 0x15d   :  { %2049 = vmatpush1.bf16.msra.mxu0 %v15889_v43  ;;  %2092 = vmatpush1.bf16.msra.mxu1 %v15892_v44  ;;  %v15966_v43 = vld [vmem:[#allocation2 + $0x6ec] ss:$16 sps:$4 sm:$0xff]   ;;  %v17618_v44 = vpack.c.bf16 %v17596_v33, %v17591_v9 }
 0x15e   :  { %2050 = vmatprep.subr.bf16.mxu0 %v15897_v45  ;;  %2093 = vmatprep.subr.bf16.mxu1 %v15900_v46  ;;  %v15961_v45 = vld [vmem:[#allocation2 + $0x6e0] ss:$16 sps:$4 sm:$0xff]   ;;  %v15964_v46 = vld [vmem:[#allocation2 + $0x6e8] ss:$16 sps:$4 sm:$0xff]  }
 0x161   :  { %2051 = vmatpush1.bf16.msra.mxu0 %v15895_v47  ;;  %2094 = vmatpush1.bf16.msra.mxu1 %v15898_v48  ;;  %v15969_v47 = vld [vmem:[#allocation2 + $0x6c4] ss:$16 sps:$4 sm:$0xff]   ;;  %v15972_v48 = vld [vmem:[#allocation2 + $0x6cc] ss:$16 sps:$4 sm:$0xff]  }
 0x162   :  { %2052 = vmatprep.subr.bf16.mxu0 %v15903_v49  ;;  %2095 = vmatprep.subr.bf16.mxu1 %v15906_v50  ;;  %v15967_v49 = vld [vmem:[#allocation2 + $0x6c0] ss:$16 sps:$4 sm:$0xff]   ;;  %v15970_v50 = vld [vmem:[#allocation2 + $0x6c8] ss:$16 sps:$4 sm:$0xff]  }
 0x165   :  { %2053 = vmatpush1.bf16.msra.mxu0 %v15901_v52  ;;  %2096 = vmatpush1.bf16.msra.mxu1 %v15904_v54  ;;  %v15978_v52 = vld [vmem:[#allocation2 + $0x6ac] ss:$16 sps:$4 sm:$0xff]   ;;  %v15976_v54 = vld [vmem:[#allocation2 + $0x6a8] ss:$16 sps:$4 sm:$0xff]  }
 0x166   :  { %2054 = vmatprep.subr.bf16.mxu0 %v15909_v55  ;;  %2097 = vmatprep.subr.bf16.mxu1 %v15912_v57  ;;  %v15981_v55 = vld [vmem:[#allocation2 + $0x684] ss:$16 sps:$4 sm:$0xff]   ;;  %v15984_v57 = vld [vmem:[#allocation2 + $0x68c] ss:$16 sps:$4 sm:$0xff]  }
 0x169   :  { %2055 = vmatpush1.bf16.msra.mxu0 %v15907_v59  ;;  %2098 = vmatpush1.bf16.msra.mxu1 %v15910_v60  ;;  %v15979_v59 = vld [vmem:[#allocation2 + $0x680] ss:$16 sps:$4 sm:$0xff]   ;;  %v15982_v60 = vld [vmem:[#allocation2 + $0x688] ss:$16 sps:$4 sm:$0xff]  }
 0x16a   :  { %2501 = vmatprep.subr.bf16.mxu0 %v15915_v31  ;;  %2544 = vmatprep.subr.bf16.mxu1 %v15918_v62  ;;  %v15985_v31 = vld [vmem:[#allocation2 + $0x660] ss:$16 sps:$4 sm:$0xff]   ;;  %v15988_v62 = vld [vmem:[#allocation2 + $0x668] ss:$16 sps:$4 sm:$0xff]  }
 0x16c   :  { %13685 = vmatmul.mubr.msk.bf16.vlgmr.msra.gmra.mxu0 %vm13683_vm15, %v13684_v63  ;;  %13688 = vmatmul.mubr.msk.bf16.vlgmr.msra.gmra.mxu1 %vm13683_vm15, %v13684_v63  ;;  %v15993_v63 = vld [vmem:[#allocation2 + $0x644] ss:$16 sps:$4 sm:$0xff]  }
 0x16d   :  { %2502 = vmatpush1.bf16.msra.mxu0 %v15913_v1  ;;  %2545 = vmatpush1.bf16.msra.mxu1 %v15916_v2  ;;  %v15996_v1 = vld [vmem:[#allocation2 + $0x64c] ss:$16 sps:$4 sm:$0xff]   ;;  %v15991_v2 = vld [vmem:[#allocation2 + $0x640] ss:$16 sps:$4 sm:$0xff]  }
 0x16e   :  { %2503 = vmatprep.subr.bf16.mxu0 %v15921_v3  ;;  %2546 = vmatprep.subr.bf16.mxu1 %v15924_v6  ;;  %v15994_v3 = vld [vmem:[#allocation2 + $0x648] ss:$16 sps:$4 sm:$0xff]   ;;  %v15999_v6 = vld [vmem:[#allocation2 + $0x624] ss:$16 sps:$4 sm:$0xff]  }
 0x16f   :  { %2533 = vmatprep.mubr.bf16.mxu0 %v18894_v0  ;;  %2576 = vmatprep.mubr.bf16.mxu1 %v18894_v0 }
 0x171   :  { %2504 = vmatpush1.bf16.msra.mxu0 %v15919_v7  ;;  %2547 = vmatpush1.bf16.msra.mxu1 %v15922_v8 }
 0x172   :  { %2505 = vmatprep.subr.bf16.mxu0 %v15927_v34  ;;  %2548 = vmatprep.subr.bf16.mxu1 %v15930_v10  ;;  %v16002_v34 = vld [vmem:[#allocation2 + $0x62c] ss:$16 sps:$4 sm:$0xff]   ;;  %v2252_v10 = vrot.slane %v17591_v9, 4  ;;  %v16006_v9 = vld [vmem:[#allocation2 + $0x608] ss:$16 sps:$4 sm:$0xff]  }
 0x175   :  { %2506 = vmatpush1.bf16.msra.mxu0 %v15925_v13  ;;  %2549 = vmatpush1.bf16.msra.mxu1 %v15928_v14  ;;  %v15997_v13 = vld [vmem:[#allocation2 + $0x620] ss:$16 sps:$4 sm:$0xff]   ;;  %v2253_v14 = vrot.slane %v17596_v33, 4 }
 0x176   :  { %2507 = vmatprep.subr.bf16.mxu0 %v15933_v15  ;;  %2550 = vmatprep.subr.bf16.mxu1 %v15936_v17  ;;  %v16000_v15 = vld [vmem:[#allocation2 + $0x628] ss:$16 sps:$4 sm:$0xff]   ;;  %v16005_v17 = vld [vmem:[#allocation2 + $0x604] ss:$16 sps:$4 sm:$0xff]  }
 0x177   :  { %v17630_v33 = vsel %vm2254_vm1, %v2253_v14, %v2252_v10 }
 0x179   :  { %2508 = vmatpush1.bf16.msra.mxu0 %v15931_v18  ;;  %2551 = vmatpush1.bf16.msra.mxu1 %v15934_v19 }
 0x17a   :  { %2509 = vmatprep.subr.bf16.mxu0 %v15939_v20  ;;  %2552 = vmatprep.subr.bf16.mxu1 %v15942_v21  ;;  %v16008_v20 = vld [vmem:[#allocation2 + $0x60c] ss:$16 sps:$4 sm:$0xff]   ;;  %v16003_v21 = vld [vmem:[#allocation2 + $0x600] ss:$16 sps:$4 sm:$0xff]  }
 0x17d   :  { %2510 = vmatpush1.bf16.msra.mxu0 %v15937_v22  ;;  %2553 = vmatpush1.bf16.msra.mxu1 %v15940_v23  ;;  %v17628_v22 = vsel %vm2254_vm1, %v2252_v10, %v2253_v14  ;;  %v16011_v23 = vld [vmem:[#allocation2 + $0x8e4] ss:$16 sps:$4 sm:$0xff]   ;;  %v16045_v14 = vld [vmem:[#allocation2 + $0x820] ss:$16 sps:$4 sm:$0xff]  }
 0x17e   :  { %2511 = vmatprep.subr.bf16.mxu0 %v15945_v24  ;;  %2554 = vmatprep.subr.bf16.mxu1 %v15948_v25  ;;  %v16047_v10 = vld [vmem:[#allocation2 + $0x824] ss:$16 sps:$4 sm:$0xff]  }
 0x181   :  { %2512 = vmatpush1.bf16.msra.mxu0 %v15943_v26  ;;  %2555 = vmatpush1.bf16.msra.mxu1 %v15946_v27  ;;  %v16014_v26 = vld [vmem:[#allocation2 + $0x8ec] ss:$16 sps:$4 sm:$0xff]   ;;  %v13754_v27 = vpack.c.bf16 %v17628_v22, %v17630_v33 }
 0x182   :  { %2513 = vmatprep.subr.bf16.mxu0 %v15951_v28  ;;  %2556 = vmatprep.subr.bf16.mxu1 %v15954_v29  ;;  %v16009_v28 = vld [vmem:[#allocation2 + $0x8e0] ss:$16 sps:$4 sm:$0xff]   ;;  %v16012_v29 = vld [vmem:[#allocation2 + $0x8e8] ss:$16 sps:$4 sm:$0xff]  }
 0x185   :  { %2514 = vmatpush1.bf16.msra.mxu0 %v15949_v32  ;;  %2557 = vmatpush1.bf16.msra.mxu1 %v15952_v35  ;;  %v16017_v32 = vld [vmem:[#allocation2 + $0x8c4] ss:$16 sps:$4 sm:$0xff]  }
 0x186   :  { %2515 = vmatprep.subr.bf16.mxu0 %v15957_v38  ;;  %2558 = vmatprep.subr.bf16.mxu1 %v15960_v39  ;;  %v16020_v39 = vld [vmem:[#allocation2 + $0x8cc] ss:$16 sps:$4 sm:$0xff]  }
 0x189   :  { %2516 = vmatpush1.bf16.msra.mxu0 %v15955_v40  ;;  %2559 = vmatpush1.bf16.msra.mxu1 %v15958_v41 }
 0x18a   :  { %2747 = vmatprep.subr.bf16.mxu0 %v15963_v42  ;;  %2790 = vmatprep.subr.bf16.mxu1 %v15966_v43  ;;  %v16015_v42 = vld [vmem:[#allocation2 + $0x8c0] ss:$16 sps:$4 sm:$0xff]  }
 0x18c   :  { %2534 = vmatmul.mubr.bf16.vlgmr.msra.gmra.mxu0 %v17618_v44  ;;  %2577 = vmatmul.mubr.bf16.vlgmr.msra.gmra.mxu1 %v17618_v44  ;;  %v561_v7 = vpop.f32.mrf.mxu0  ;;  %v604_v8 = vpop.f32.mrf.mxu1 }
 0x18d   :  { %2748 = vmatpush1.bf16.msra.mxu0 %v15961_v45  ;;  %2791 = vmatpush1.bf16.msra.mxu1 %v15964_v46  ;;  %v16018_v46 = vld [vmem:[#allocation2 + $0x8c8] ss:$16 sps:$4 sm:$0xff]  }
 0x18e   :  { %2749 = vmatprep.subr.bf16.mxu0 %v15969_v47  ;;  %2792 = vmatprep.subr.bf16.mxu1 %v15972_v48  ;;  %v563_v18 = vpop.f32.mrf.mxu0  ;;  %v606_v19 = vpop.f32.mrf.mxu1  ;;  %v16023_v47 = vld [vmem:[#allocation2 + $0x8a4] ss:$16 sps:$4 sm:$0xff]  }
 0x18f   :  { %2779 = vmatprep.mubr.bf16.mxu0 %v18894_v0  ;;  %2822 = vmatprep.mubr.bf16.mxu1 %v18894_v0 }
 0x190   :  { %v565_v24 = vpop.f32.mrf.mxu0  ;;  %v608_v25 = vpop.f32.mrf.mxu1 }
 0x191   :  { %2750 = vmatpush1.bf16.msra.mxu0 %v15967_v49  ;;  %2793 = vmatpush1.bf16.msra.mxu1 %v15970_v50  ;;  %v16026_v50 = vld [vmem:[#allocation2 + $0x8ac] ss:$16 sps:$4 sm:$0xff]  }
 0x192   :  { %2751 = vmatprep.subr.bf16.mxu0 %v15975_v51  ;;  %2794 = vmatprep.subr.bf16.mxu1 %v15978_v52  ;;  %v17635_v35 = vpop.f32.mrf.mxu0  ;;  %v17637_v38 = vpop.f32.mrf.mxu1 }
 0x195   :  { %2752 = vmatpush1.bf16.msra.mxu0 %v15973_v53  ;;  %2795 = vmatpush1.bf16.msra.mxu1 %v15976_v54  ;;  %v16021_v53 = vld [vmem:[#allocation2 + $0x8a0] ss:$16 sps:$4 sm:$0xff]   ;;  %v16024_v54 = vld [vmem:[#allocation2 + $0x8a8] ss:$16 sps:$4 sm:$0xff]  }
 0x196   :  { %2753 = vmatprep.subr.bf16.mxu0 %v15981_v55  ;;  %2796 = vmatprep.subr.bf16.mxu1 %v15984_v57 }
 0x199   :  { %2754 = vmatpush1.bf16.msra.mxu0 %v15979_v59  ;;  %2797 = vmatpush1.bf16.msra.mxu1 %v15982_v60  ;;  %v16029_v59 = vld [vmem:[#allocation2 + $0x884] ss:$16 sps:$4 sm:$0xff]   ;;  %v16032_v60 = vld [vmem:[#allocation2 + $0x88c] ss:$16 sps:$4 sm:$0xff]  }
 0x19a   :  { %2755 = vmatprep.subr.bf16.mxu0 %v15987_v61  ;;  %2798 = vmatprep.subr.bf16.mxu1 %v15990_v30 }
 0x19d   :  { %2756 = vmatpush1.bf16.msra.mxu0 %v15985_v31  ;;  %2799 = vmatpush1.bf16.msra.mxu1 %v15988_v62  ;;  %v16027_v31 = vld [vmem:[#allocation2 + $0x880] ss:$16 sps:$4 sm:$0xff]   ;;  %v16030_v62 = vld [vmem:[#allocation2 + $0x888] ss:$16 sps:$4 sm:$0xff]  }
 0x19e   :  { %2757 = vmatprep.subr.bf16.mxu0 %v15993_v63  ;;  %2800 = vmatprep.subr.bf16.mxu1 %v15996_v1  ;;  %v16035_v63 = vld [vmem:[#allocation2 + $0x864] ss:$16 sps:$4 sm:$0xff]   ;;  %v16038_v1 = vld [vmem:[#allocation2 + $0x86c] ss:$16 sps:$4 sm:$0xff]  }
 0x1a1   :  { %2758 = vmatpush1.bf16.msra.mxu0 %v15991_v2  ;;  %2801 = vmatpush1.bf16.msra.mxu1 %v15994_v3  ;;  %v16033_v2 = vld [vmem:[#allocation2 + $0x860] ss:$16 sps:$4 sm:$0xff]   ;;  %v16036_v3 = vld [vmem:[#allocation2 + $0x868] ss:$16 sps:$4 sm:$0xff]  }
 0x1a2   :  { %2759 = vmatprep.subr.bf16.mxu0 %v15999_v6  ;;  %2802 = vmatprep.subr.bf16.mxu1 %v16002_v34  ;;  %v16041_v6 = vld [vmem:[#allocation2 + $0x844] ss:$16 sps:$4 sm:$0xff]   ;;  %v16042_v34 = vld [vmem:[#allocation2 + $0x848] ss:$16 sps:$4 sm:$0xff]  }
 0x1a5   :  { %2760 = vmatpush1.bf16.msra.mxu0 %v15997_v13  ;;  %2803 = vmatpush1.bf16.msra.mxu1 %v16000_v15  ;;  %v16050_v13 = vld [vmem:[#allocation2 + $0x82c] ss:$16 sps:$4 sm:$0xff]   ;;  %v16048_v15 = vld [vmem:[#allocation2 + $0x828] ss:$16 sps:$4 sm:$0xff]  }
 0x1a6   :  { %2761 = vmatprep.subr.bf16.mxu0 %v16005_v17  ;;  %2804 = vmatprep.subr.bf16.mxu1 %v16008_v20  ;;  %v16053_v17 = vld [vmem:[#allocation2 + $0x804] ss:$16 sps:$4 sm:$0xff]   ;;  %v16051_v20 = vld [vmem:[#allocation2 + $0x800] ss:$16 sps:$4 sm:$0xff]  }
 0x1a9   :  { %2762 = vmatpush1.bf16.msra.mxu0 %v16003_v21  ;;  %2805 = vmatpush1.bf16.msra.mxu1 %v16006_v9  ;;  %v16054_v21 = vld [vmem:[#allocation2 + $0x808] ss:$16 sps:$4 sm:$0xff]  }
 0x1aa   :  { %3026 = vmatprep.subr.bf16.mxu0 %v16011_v23  ;;  %3069 = vmatprep.subr.bf16.mxu1 %v16014_v26  ;;  %v16059_v9 = vld [vmem:[#allocation10 + $0x1e4] ss:$16 sps:$4 sm:$0xff]   ;;  %v16062_v23 = vld [vmem:[#allocation10 + $0x1ec] ss:$16 sps:$4 sm:$0xff]   ;;  %v16060_v26 = vld [vmem:[#allocation10 + $0x1e8] ss:$16 sps:$4 sm:$0xff]  }
 0x1ac   :  { %v807_v40 = vpop.f32.mrf.mxu0  ;;  %v850_v41 = vpop.f32.mrf.mxu1  ;;  %13755 = vmatmul.mubr.msk.bf16.vlgmr.msra.gmra.mxu0 %vm13753_vm6, %v13754_v27  ;;  %13758 = vmatmul.mubr.msk.bf16.vlgmr.msra.gmra.mxu1 %vm13753_vm6, %v13754_v27  ;;  %v13792_v27 = vpack.c.bf16 %v17630_v33, %v17628_v22  ;;  %v16071_v22 = vld [vmem:[#allocation10 + $0x1a4] ss:$16 sps:$4 sm:$0xff]  }
 0x1ad   :  { %v17639_v43 = vadd.f32 %v807_v40, %v561_v7  ;;  %v17641_v45 = vadd.f32 %v850_v41, %v604_v8  ;;  %3027 = vmatpush1.bf16.msra.mxu0 %v16009_v28  ;;  %3070 = vmatpush1.bf16.msra.mxu1 %v16012_v29  ;;  %v16044_v7 = vld [vmem:[#allocation2 + $0x84c] ss:$16 sps:$4 sm:$0xff]   ;;  %v16039_v8 = vld [vmem:[#allocation2 + $0x840] ss:$16 sps:$4 sm:$0xff]   ;;  %v16065_v28 = vld [vmem:[#allocation10 + $0x1c4] ss:$16 sps:$4 sm:$0xff]   ;;  %v1151_v40 = vrot.slane %v1146_v4, %v17660_v5 }
 0x1ae   :  { %v809_v48 = vpop.f32.mrf.mxu0  ;;  %v852_v49 = vpop.f32.mrf.mxu1  ;;  %3028 = vmatprep.subr.bf16.mxu0 %v16017_v32  ;;  %3071 = vmatprep.subr.bf16.mxu1 %v16020_v39  ;;  %v16068_v29 = vld [vmem:[#allocation10 + $0x1cc] ss:$16 sps:$4 sm:$0xff]  }
 0x1af   :  { %v17643_v51 = vadd.f32 %v809_v48, %v563_v18  ;;  %v17645_v52 = vadd.f32 %v852_v49, %v606_v19  ;;  %3058 = vmatprep.mubr.bf16.mxu0 %v18894_v0  ;;  %3101 = vmatprep.mubr.bf16.mxu1 %v18894_v0  ;;  %v16056_v18 = vld [vmem:[#allocation2 + $0x80c] ss:$16 sps:$4 sm:$0xff]  }
 0x1b0   :  { %v811_v55 = vpop.f32.mrf.mxu0  ;;  %v854_v57 = vpop.f32.mrf.mxu1 }
 0x1b1   :  { %v17649_v61 = vadd.f32 %v811_v55, %v565_v24  ;;  %v17651_v30 = vadd.f32 %v854_v57, %v608_v25  ;;  %3029 = vmatpush1.bf16.msra.mxu0 %v16015_v42  ;;  %3072 = vmatpush1.bf16.msra.mxu1 %v16018_v46  ;;  %v17663_v24 = vsub.s32 2, %v17518_v56  ;;  %v16057_v25 = vld [vmem:[#allocation10 + $0x1e0] ss:$16 sps:$4 sm:$0xff]   ;;  %v16066_v46 = vld [vmem:[#allocation10 + $0x1c8] ss:$16 sps:$4 sm:$0xff]  }
 0x1b2   :  { %3030 = vmatprep.subr.bf16.mxu0 %v16023_v47  ;;  %3073 = vmatprep.subr.bf16.mxu1 %v16026_v50  ;;  %v17667_v32 = vpop.f32.mrf.mxu0  ;;  %v17669_v39 = vpop.f32.mrf.mxu1  ;;  %v16063_v42 = vld [vmem:[#allocation10 + $0x1c0] ss:$16 sps:$4 sm:$0xff]   ;;  %v16074_v50 = vld [vmem:[#allocation10 + $0x1ac] ss:$16 sps:$4 sm:$0xff]  }
 0x1b3   :  { %v1159_v41 = vrot.slane %v1146_v4, %v17663_v24 }
 0x1b5   :  { %3031 = vmatpush1.bf16.msra.mxu0 %v16021_v53  ;;  %3074 = vmatpush1.bf16.msra.mxu1 %v16024_v54  ;;  %v1200_v53 = vld [vmem:[#allocation7] sm:$0xf] }
 0x1b6   :  { %3032 = vmatprep.subr.bf16.mxu0 %v16029_v59  ;;  %3075 = vmatprep.subr.bf16.mxu1 %v16032_v60 }
 0x1b9   :  { %3033 = vmatpush1.bf16.msra.mxu0 %v16027_v31  ;;  %3076 = vmatpush1.bf16.msra.mxu1 %v16030_v62  ;;  %v16069_v62 = vld [vmem:[#allocation10 + $0x1a0] ss:$16 sps:$4 sm:$0xff]  }
 0x1ba   :  { %3034 = vmatprep.subr.bf16.mxu0 %v16035_v63  ;;  %3077 = vmatprep.subr.bf16.mxu1 %v16038_v1  ;;  %v16077_v1 = vld [vmem:[#allocation10 + $0x184] ss:$16 sps:$4 sm:$0xff]  }
 0x1bd   :  { %3035 = vmatpush1.bf16.msra.mxu0 %v16033_v2  ;;  %3078 = vmatpush1.bf16.msra.mxu1 %v16036_v3 }
 0x1be   :  { %3036 = vmatprep.subr.bf16.mxu0 %v16041_v6  ;;  %3079 = vmatprep.subr.bf16.mxu1 %v16044_v7  ;;  %v16080_v6 = vld [vmem:[#allocation10 + $0x18c] ss:$16 sps:$4 sm:$0xff]  }
 0x1c1   :  { %3037 = vmatpush1.bf16.msra.mxu0 %v16039_v8  ;;  %3080 = vmatpush1.bf16.msra.mxu1 %v16042_v34  ;;  %v1205_v8 = vrot.slane %v1200_v53, %v17660_v5  ;;  %v16075_v34 = vld [vmem:[#allocation10 + $0x180] ss:$16 sps:$4 sm:$0xff]  }
 0x1c2   :  { %3038 = vmatprep.subr.bf16.mxu0 %v16047_v10  ;;  %3081 = vmatprep.subr.bf16.mxu1 %v16050_v13  ;;  %v16078_v10 = vld [vmem:[#allocation10 + $0x188] ss:$16 sps:$4 sm:$0xff]  }
 0x1c5   :  { %3039 = vmatpush1.bf16.msra.mxu0 %v16045_v14  ;;  %3082 = vmatpush1.bf16.msra.mxu1 %v16048_v15  ;;  %v1213_v14 = vrot.slane %v1200_v53, %v17663_v24  ;;  %v16083_v15 = vld [vmem:[#allocation10 + $0x164] ss:$16 sps:$4 sm:$0xff]  }
 0x1c6   :  { %3040 = vmatprep.subr.bf16.mxu0 %v16053_v17  ;;  %3083 = vmatprep.subr.bf16.mxu1 %v16056_v18  ;;  %v16086_v17 = vld [vmem:[#allocation10 + $0x16c] ss:$16 sps:$4 sm:$0xff]  }
 0x1c9   :  { %3041 = vmatpush1.bf16.msra.mxu0 %v16051_v20  ;;  %3084 = vmatpush1.bf16.msra.mxu1 %v16054_v21 }
 0x1ca   :  { %3462 = vmatprep.subr.bf16.mxu0 %v16059_v9  ;;  %3505 = vmatprep.subr.bf16.mxu1 %v16062_v23  ;;  %v16081_v9 = vld [vmem:[#allocation10 + $0x160] ss:$16 sps:$4 sm:$0xff]   ;;  %v16084_v23 = vld [vmem:[#allocation10 + $0x168] ss:$16 sps:$4 sm:$0xff]  }
 0x1cc   :  { %v1086_v47 = vpop.f32.mrf.mxu0  ;;  %v1129_v48 = vpop.f32.mrf.mxu1  ;;  %13793 = vmatmul.mubr.msk.bf16.vlgmr.msra.gmra.mxu0 %vm17655_vm10, %v13792_v27  ;;  %13796 = vmatmul.mubr.msk.bf16.vlgmr.msra.gmra.mxu1 %vm17655_vm10, %v13792_v27  ;;  %v16092_v27 = vld [vmem:[#allocation10 + $0x14c] ss:$16 sps:$4 sm:$0xff]  }
 0x1cd   :  { %v1138_v33 = vadd.f32 %v1086_v47, %v17639_v43  ;;  %v1140_v49 = vadd.f32 %v1129_v48, %v17641_v45  ;;  %3463 = vmatpush1.bf16.msra.mxu0 %v16057_v25  ;;  %3506 = vmatpush1.bf16.msra.mxu1 %v16060_v26  ;;  %v16072_v43 = vld [vmem:[#allocation10 + $0x1a8] ss:$16 sps:$4 sm:$0xff]   ;;  %v16089_v26 = vld [vmem:[#allocation10 + $0x144] ss:$16 sps:$4 sm:$0xff]  }
 0x1ce   :  { %v1088_v54 = vpop.f32.mrf.mxu0  ;;  %v1131_v55 = vpop.f32.mrf.mxu1  ;;  %3464 = vmatprep.subr.bf16.mxu0 %v16065_v28  ;;  %3507 = vmatprep.subr.bf16.mxu1 %v16068_v29  ;;  %v16090_v47 = vld [vmem:[#allocation10 + $0x148] ss:$16 sps:$4 sm:$0xff]  }
 0x1cf   :  { %v1168_v57 = vadd.f32 %v1151_v40, %v1138_v33  ;;  %v1170_v59 = vadd.f32 %v1159_v41, %v1140_v49  ;;  %v17680_v60 = vadd.f32 %v1088_v54, %v17643_v51  ;;  %v17683_v31 = vadd.f32 %v1131_v55, %v17645_v52  ;;  %3494 = vmatprep.mubr.bf16.mxu0 %v18894_v0  ;;  %v1230_v51 = vld [vmem:[#allocation8] sm:$0xf] }
 0x1d0   :  { %v1090_v45 = vpop.f32.mrf.mxu0  ;;  %v1133_v63 = vpop.f32.mrf.mxu1  ;;  %3537 = vmatprep.mubr.bf16.mxu1 %v18894_v0  ;;  %v1243_v25 = vrot.slane %v1230_v51, %v17663_v24  ;;  %v16095_v49 = vld [vmem:[#allocation10 + $0x124] ss:$16 sps:$4 sm:$0xff]  }
 0x1d1   :  { %vm1176_vm11 = vcmp.ge.f32.partialorder %v1168_v57, 0.0  ;;  %v1184_v2 = vmul.f32 0.05, %v1168_v57  ;;  %v1186_v3 = vmul.f32 0.05, %v1170_v59  ;;  %3465 = vmatpush1.bf16.msra.mxu0 %v16063_v42  ;;  %3508 = vmatpush1.bf16.msra.mxu1 %v16066_v46  ;;  %vm1178_vm12 = vcmp.ge.f32.partialorder %v1170_v59, 0.0 }
 0x1d2   :  { %v1142_v52 = vadd.f32 %v1090_v45, %v17649_v61  ;;  %v1144_v7 = vadd.f32 %v1133_v63, %v17651_v30  ;;  %3466 = vmatprep.subr.bf16.mxu0 %v16071_v22  ;;  %3509 = vmatprep.subr.bf16.mxu1 %v16074_v50  ;;  %v1235_v30 = vrot.slane %v1230_v51, %v17660_v5  ;;  %v16087_v46 = vld [vmem:[#allocation10 + $0x140] ss:$16 sps:$4 sm:$0xff]   ;;  %v16098_v50 = vld [vmem:[#allocation10 + $0x12c] ss:$16 sps:$4 sm:$0xff]   ;;  %v16101_v63 = vld [vmem:[#allocation10 + $0x104] ss:$16 sps:$4 sm:$0xff]  }
 0x1d3   :  { %v1192_v13 = vsel %vm1176_vm11, %v1168_v57, %v1184_v2  ;;  %v1194_v18 = vsel %vm1178_vm12, %v1170_v59, %v1186_v3  ;;  %v16093_v59 = vld [vmem:[#allocation10 + $0x120] ss:$16 sps:$4 sm:$0xff]  }
 0x1d4   :  { %v1172_v19 = vadd.f32 %v1151_v40, %v1142_v52  ;;  %v1174_v20 = vadd.f32 %v1159_v41, %v1144_v7  ;;  %v1222_v61 = vmul.f32 %v1205_v8, %v1192_v13  ;;  %v1224_v4 = vmul.f32 %v1213_v14, %v1194_v18 }
 0x1d5   :  { %3467 = vmatpush1.bf16.msra.mxu0 %v16069_v62  ;;  %3510 = vmatpush1.bf16.msra.mxu1 %v16072_v43  ;;  %v16096_v62 = vld [vmem:[#allocation10 + $0x128] ss:$16 sps:$4 sm:$0xff]  }
 0x1d6   :  { %3468 = vmatprep.subr.bf16.mxu0 %v16077_v1  ;;  %vm1180_vm13 = vcmp.ge.f32.partialorder %v1172_v19, 0.0  ;;  %v1188_v21 = vmul.f32 0.05, %v1172_v19  ;;  %3511 = vmatprep.subr.bf16.mxu1 %v16080_v6  ;;  %vm1182_vm14 = vcmp.ge.f32.partialorder %v1174_v20, 0.0  ;;  %v1190_v29 = vmul.f32 0.05, %v1174_v20 }
 0x1d7   :  { %v17693_v41 = vadd.f32 %v1235_v30, %v1222_v61  ;;  %v17695_v48 = vadd.f32 %v1243_v25, %v1224_v4  ;;  %v16104_v1 = vld [vmem:[#allocation10 + $0x10c] ss:$16 sps:$4 sm:$0xff]   ;;  %v16105_v61 = vld [vmem:[#allocation10 + $0xe0] ss:$16 sps:$4 sm:$0xff]  }
 0x1d8   :  { %v1196_v28 = vsel %vm1180_vm13, %v1172_v19, %v1188_v21  ;;  %v1198_v42 = vsel %vm1182_vm14, %v1174_v20, %v1190_v29  ;;  %v16114_v29 = vld [vmem:[#allocation10 + $0xc8] ss:$16 sps:$4 sm:$0xff]  }
 0x1d9   :  { %3469 = vmatpush1.bf16.msra.mxu0 %v16075_v34  ;;  %3512 = vmatpush1.bf16.msra.mxu1 %v16078_v10  ;;  %v1226_v40 = vmul.f32 %v1205_v8, %v1196_v28  ;;  %v1228_v33 = vmul.f32 %v1213_v14, %v1198_v42  ;;  %v9094_v57 = vrot.slane %v17693_v41, 7  ;;  %v9096_v43 = vrot.slane %v17695_v48, 7  ;;  %v16099_v34 = vld [vmem:[#allocation10 + $0x100] ss:$16 sps:$4 sm:$0xff]   ;;  %v16102_v10 = vld [vmem:[#allocation10 + $0x108] ss:$16 sps:$4 sm:$0xff]  }
 0x1da   :  { %3470 = vmatprep.subr.bf16.mxu0 %v16083_v15  ;;  %3513 = vmatprep.subr.bf16.mxu1 %v16086_v17  ;;  %v9122_v8 = vrot.slane %v17693_v41, 1  ;;  %v16107_v15 = vld [vmem:[#allocation10 + $0xe4] ss:$16 sps:$4 sm:$0xff]   ;;  %v16110_v17 = vld [vmem:[#allocation10 + $0xec] ss:$16 sps:$4 sm:$0xff]   ;;  %v9124_v20 = vrot.slane %v17695_v48, 1 }
 0x1db   :  { %v17697_v22 = vadd.f32 %v1235_v30, %v1226_v40  ;;  %v17700_v54 = vadd.f32 %v1243_v25, %v1228_v33  ;;  %v16108_v30 = vld [vmem:[#allocation10 + $0xe8] ss:$16 sps:$4 sm:$0xff]   ;;  %v16111_v28 = vld [vmem:[#allocation10 + $0xc0] ss:$16 sps:$4 sm:$0xff]   ;;  %v16119_v40 = vld [vmem:[#allocation10 + $0xa4] ss:$16 sps:$4 sm:$0xff]  }
 0x1dc   :  { %v16122_v42 = vld [vmem:[#allocation10 + $0xac] ss:$16 sps:$4 sm:$0xff]   ;;  %v16125_v33 = vld [vmem:[#allocation10 + $0x84] ss:$16 sps:$4 sm:$0xff]  }
 0x1dd   :  { %3471 = vmatpush1.bf16.msra.mxu0 %v16081_v9  ;;  %3514 = vmatpush1.bf16.msra.mxu1 %v16084_v23  ;;  %v9098_v53 = vrot.slane %v17697_v22, 7  ;;  %v9100_v45 = vrot.slane %v17700_v54, 7  ;;  %v9126_v3 = vrot.slane %v17697_v22, 1  ;;  %v9128_v14 = vrot.slane %v17700_v54, 1  ;;  %v16113_v9 = vld [vmem:[#allocation10 + $0xc4] ss:$16 sps:$4 sm:$0xff]  }
 0x1de   :  { %3472 = vmatprep.subr.bf16.mxu0 %v16089_v26  ;;  %3515 = vmatprep.subr.bf16.mxu1 %v16092_v27  ;;  %v16116_v23 = vld [vmem:[#allocation10 + $0xcc] ss:$16 sps:$4 sm:$0xff]  }
 0x1df   :  { %v17712_v6 = vsel %vm276_vm0, %v9094_v57, %v9098_v53  ;;  %v17716_v51 = vsel %vm276_vm0, %v9098_v53, %v9094_v57  ;;  %v17722_v7 = vsel %vm276_vm0, %v9096_v43, %v9100_v45  ;;  %v17727_v13 = vsel %vm276_vm0, %v9100_v45, %v9096_v43  ;;  %v16131_v53 = vld [vmem:[#allocation10 + $0x64] ss:$16 sps:$4 sm:$0xff]   ;;  %v16134_v57 = vld [vmem:[#allocation10 + $0x6c] ss:$16 sps:$4 sm:$0xff]  }
 0x1e0   :  { %v17734_v19 = vsel %vm290_vm4, %v9122_v8, %v9126_v3  ;;  %v17739_v21 = vsel %vm290_vm4, %v9126_v3, %v9122_v8  ;;  %v17745_v25 = vsel %vm290_vm4, %v9124_v20, %v9128_v14  ;;  %v17749_v26 = vsel %vm290_vm4, %v9128_v14, %v9124_v20  ;;  %v16137_v43 = vld [vmem:[#allocation10 + $0x44] ss:$16 sps:$4 sm:$0xff]   ;;  %v16140_v45 = vld [vmem:[#allocation10 + $0x4c] ss:$16 sps:$4 sm:$0xff]   ;;  %v17757_v3 = vpop.f32.mrf.mxu0  ;;  %v17759_v8 = vpop.f32.mrf.mxu1  ;;  %v16144_v20 = vld [vmem:[#allocation10 + $0x28] ss:$16 sps:$4 sm:$0xff]  }
 0x1e1   :  { %3473 = vmatpush1.bf16.msra.mxu0 %v16087_v46  ;;  %3516 = vmatpush1.bf16.msra.mxu1 %v16090_v47  ;;  %18959 = vst [vmem:[#allocation38_spill] sm:$0xff] %v17734_v19  ;;  %18960 = vst [vmem:[#allocation39_spill] sm:$0xff] %v17739_v21  ;;  %v16117_v46 = vld [vmem:[#allocation10 + $0xa0] ss:$16 sps:$4 sm:$0xff]   ;;  %v16120_v47 = vld [vmem:[#allocation10 + $0xa8] ss:$16 sps:$4 sm:$0xff]  }
 0x1e2   :  { %3474 = vmatprep.subr.bf16.mxu0 %v16095_v49  ;;  %3517 = vmatprep.subr.bf16.mxu1 %v16098_v50  ;;  %18961 = vst [vmem:[#allocation40_spill] sm:$0xff] %v17745_v25  ;;  %18962 = vst [vmem:[#allocation41_spill] sm:$0xff] %v17749_v26  ;;  %v16128_v49 = vld [vmem:[#allocation10 + $0x8c] ss:$16 sps:$4 sm:$0xff]   ;;  %v16123_v50 = vld [vmem:[#allocation10 + $0x80] ss:$16 sps:$4 sm:$0xff]  }
 0x1e3   :  { %v16188_v27 = vld [vmem:[#allocation10 + $0x24c] ss:$16 sps:$4 sm:$0xff]  }
 0x1e5   :  { %3475 = vmatpush1.bf16.msra.mxu0 %v16093_v59  ;;  %3518 = vmatpush1.bf16.msra.mxu1 %v16096_v62  ;;  %v16129_v59 = vld [vmem:[#allocation10 + $0x60] ss:$16 sps:$4 sm:$0xff]   ;;  %v16132_v62 = vld [vmem:[#allocation10 + $0x68] ss:$16 sps:$4 sm:$0xff]  }
 0x1e6   :  { %3476 = vmatprep.subr.bf16.mxu0 %v16101_v63  ;;  %3519 = vmatprep.subr.bf16.mxu1 %v16104_v1  ;;  %v16135_v63 = vld [vmem:[#allocation10 + $0x40] ss:$16 sps:$4 sm:$0xff]   ;;  %v16138_v1 = vld [vmem:[#allocation10 + $0x48] ss:$16 sps:$4 sm:$0xff]  }
 0x1e9   :  { %3477 = vmatpush1.bf16.msra.mxu0 %v16099_v34  ;;  %3520 = vmatpush1.bf16.msra.mxu1 %v16102_v10  ;;  %v16143_v34 = vld [vmem:[#allocation10 + $0x24] ss:$16 sps:$4 sm:$0xff]   ;;  %v16146_v10 = vld [vmem:[#allocation10 + $0x2c] ss:$16 sps:$4 sm:$0xff]  }
 0x1ea   :  { %3708 = vmatprep.subr.bf16.mxu0 %v16107_v15  ;;  %3751 = vmatprep.subr.bf16.mxu1 %v16110_v17  ;;  %v16141_v17 = vld [vmem:[#allocation10 + $0x20] ss:$16 sps:$4 sm:$0xff]  }
 0x1ec   :  { %3495 = vmatmul.mubr.bf16.vlgmr.msra.gmra.mxu0 %v17576_v36  ;;  %3538 = vmatmul.mubr.bf16.vlgmr.msra.gmra.mxu1 %v17576_v36  ;;  %v16126_v36 = vld [vmem:[#allocation10 + $0x88] ss:$16 sps:$4 sm:$0xff]   ;;  %v1549_v14 = vpop.f32.mrf.mxu0  ;;  %v1592_v15 = vpop.f32.mrf.mxu1 }
 0x1ed   :  { %3709 = vmatpush1.bf16.msra.mxu0 %v16105_v61  ;;  %3752 = vmatpush1.bf16.msra.mxu1 %v16108_v30  ;;  %v16149_v61 = vld [vmem:[#allocation10 + $0x4] ss:$16 sps:$4 sm:$0xff]   ;;  %v16152_v30 = vld [vmem:[#allocation10 + $0xc] ss:$16 sps:$4 sm:$0xff]  }
 0x1ee   :  { %3710 = vmatprep.subr.bf16.mxu0 %v16113_v9  ;;  %3753 = vmatprep.subr.bf16.mxu1 %v16116_v23  ;;  %v1551_v9 = vpop.f32.mrf.mxu0  ;;  %v1594_v23 = vpop.f32.mrf.mxu1 }
 0x1ef   :  { %3740 = vmatprep.mubr.bf16.mxu0 %v18894_v0  ;;  %3783 = vmatprep.mubr.bf16.mxu1 %v18894_v0 }
 0x1f1   :  { %3711 = vmatpush1.bf16.msra.mxu0 %v16111_v28  ;;  %3754 = vmatpush1.bf16.msra.mxu1 %v16114_v29  ;;  %v16147_v28 = vld [vmem:[#allocation10] ss:$16 sps:$4 sm:$0xff]   ;;  %v16150_v29 = vld [vmem:[#allocation10 + $0x8] ss:$16 sps:$4 sm:$0xff]  }
 0x1f2   :  { %3712 = vmatprep.subr.bf16.mxu0 %v16119_v40  ;;  %3755 = vmatprep.subr.bf16.mxu1 %v16122_v42  ;;  %v16155_v40 = vld [vmem:[#allocation10 + $0x2e4] ss:$16 sps:$4 sm:$0xff]   ;;  %v16158_v42 = vld [vmem:[#allocation10 + $0x2ec] ss:$16 sps:$4 sm:$0xff]  }
 0x1f5   :  { %3713 = vmatpush1.bf16.msra.mxu0 %v16117_v46  ;;  %3756 = vmatpush1.bf16.msra.mxu1 %v16120_v47  ;;  %v17762_v46 = vsub.s32 1, %v17518_v56  ;;  %v17765_v47 = vsub.s32 3, %v17518_v56 }
 0x1f6   :  { %3714 = vmatprep.subr.bf16.mxu0 %v16125_v33  ;;  %3757 = vmatprep.subr.bf16.mxu1 %v16128_v49  ;;  %v1553_v33 = vpop.f32.mrf.mxu0  ;;  %v1596_v49 = vpop.f32.mrf.mxu1 }
 0x1f9   :  { %3715 = vmatpush1.bf16.msra.mxu0 %v16123_v50  ;;  %3758 = vmatpush1.bf16.msra.mxu1 %v16126_v36  ;;  %v16153_v50 = vld [vmem:[#allocation10 + $0x2e0] ss:$16 sps:$4 sm:$0xff]   ;;  %v16156_v36 = vld [vmem:[#allocation10 + $0x2e8] ss:$16 sps:$4 sm:$0xff]  }
 0x1fa   :  { %3716 = vmatprep.subr.bf16.mxu0 %v16131_v53  ;;  %3759 = vmatprep.subr.bf16.mxu1 %v16134_v57  ;;  %v16161_v53 = vld [vmem:[#allocation10 + $0x2c4] ss:$16 sps:$4 sm:$0xff]   ;;  %v16164_v57 = vld [vmem:[#allocation10 + $0x2cc] ss:$16 sps:$4 sm:$0xff]  }
 0x1fd   :  { %3717 = vmatpush1.bf16.msra.mxu0 %v16129_v59  ;;  %3760 = vmatpush1.bf16.msra.mxu1 %v16132_v62  ;;  %v17767_v59 = vpop.f32.mrf.mxu0  ;;  %v17769_v62 = vpop.f32.mrf.mxu1 }
 0x1fe   :  { %3718 = vmatprep.subr.bf16.mxu0 %v16137_v43  ;;  %3761 = vmatprep.subr.bf16.mxu1 %v16140_v45  ;;  %v16159_v43 = vld [vmem:[#allocation10 + $0x2c0] ss:$16 sps:$4 sm:$0xff]   ;;  %v16162_v45 = vld [vmem:[#allocation10 + $0x2c8] ss:$16 sps:$4 sm:$0xff]  }
 0x201   :  { %3719 = vmatpush1.bf16.msra.mxu0 %v16135_v63  ;;  %3762 = vmatpush1.bf16.msra.mxu1 %v16138_v1 }
 0x202   :  { %3720 = vmatprep.subr.bf16.mxu0 %v16143_v34  ;;  %3763 = vmatprep.subr.bf16.mxu1 %v16146_v10  ;;  %v16167_v34 = vld [vmem:[#allocation10 + $0x2a4] ss:$16 sps:$4 sm:$0xff]  }
 0x205   :  { %3721 = vmatpush1.bf16.msra.mxu0 %v16141_v17  ;;  %3764 = vmatpush1.bf16.msra.mxu1 %v16144_v20  ;;  %v16170_v20 = vld [vmem:[#allocation10 + $0x2ac] ss:$16 sps:$4 sm:$0xff]  }
 0x206   :  { %3722 = vmatprep.subr.bf16.mxu0 %v16149_v61  ;;  %3765 = vmatprep.subr.bf16.mxu1 %v16152_v30 }
 0x209   :  { %3723 = vmatpush1.bf16.msra.mxu0 %v16147_v28  ;;  %3766 = vmatpush1.bf16.msra.mxu1 %v16150_v29 }
 0x20a   :  { %3987 = vmatprep.subr.bf16.mxu0 %v16155_v40  ;;  %4030 = vmatprep.subr.bf16.mxu1 %v16158_v42  ;;  %v16165_v40 = vld [vmem:[#allocation10 + $0x2a0] ss:$16 sps:$4 sm:$0xff]   ;;  %v16168_v42 = vld [vmem:[#allocation10 + $0x2a8] ss:$16 sps:$4 sm:$0xff]  }
 0x20c   :  { %v1795_v63 = vpop.f32.mrf.mxu0  ;;  %v1838_v1 = vpop.f32.mrf.mxu1  ;;  %3741 = vmatmul.mubr.bf16.vlgmr.msra.gmra.mxu0 %v17512_v37  ;;  %3784 = vmatmul.mubr.bf16.vlgmr.msra.gmra.mxu1 %v17512_v37 }
 0x20d   :  { %v17773_v10 = vadd.f32 %v1795_v63, %v1549_v14  ;;  %v17775_v17 = vadd.f32 %v1838_v1, %v1592_v15  ;;  %3988 = vmatpush1.bf16.msra.mxu0 %v16153_v50  ;;  %4031 = vmatpush1.bf16.msra.mxu1 %v16156_v36  ;;  %v16173_v15 = vld [vmem:[#allocation10 + $0x284] ss:$16 sps:$4 sm:$0xff]   ;;  %v16176_v50 = vld [vmem:[#allocation10 + $0x28c] ss:$16 sps:$4 sm:$0xff]   ;;  %v16177_v1 = vld [vmem:[#allocation10 + $0x260] ss:$16 sps:$4 sm:$0xff]  }
 0x20e   :  { %v1797_v61 = vpop.f32.mrf.mxu0  ;;  %v1840_v30 = vpop.f32.mrf.mxu1  ;;  %3989 = vmatprep.subr.bf16.mxu0 %v16161_v53  ;;  %4032 = vmatprep.subr.bf16.mxu1 %v16164_v57  ;;  %v16179_v53 = vld [vmem:[#allocation10 + $0x264] ss:$16 sps:$4 sm:$0xff]   ;;  %v16182_v57 = vld [vmem:[#allocation10 + $0x26c] ss:$16 sps:$4 sm:$0xff]  }
 0x20f   :  { %v17777_v28 = vadd.f32 %v1797_v61, %v1551_v9  ;;  %v17779_v29 = vadd.f32 %v1840_v30, %v1594_v23  ;;  %4019 = vmatprep.mubr.bf16.mxu0 %v18894_v0  ;;  %4062 = vmatprep.mubr.bf16.mxu1 %v18894_v0  ;;  %v16171_v9 = vld [vmem:[#allocation10 + $0x280] ss:$16 sps:$4 sm:$0xff]   ;;  %v16174_v23 = vld [vmem:[#allocation10 + $0x288] ss:$16 sps:$4 sm:$0xff]   ;;  %v16185_v30 = vld [vmem:[#allocation10 + $0x244] ss:$16 sps:$4 sm:$0xff]  }
 0x210   :  { %v1799_v37 = vpop.f32.mrf.mxu0  ;;  %v1842_v14 = vpop.f32.mrf.mxu1  ;;  %v16180_v61 = vld [vmem:[#allocation10 + $0x268] ss:$16 sps:$4 sm:$0xff]  }
 0x211   :  { %v17783_v36 = vadd.f32 %v1799_v37, %v1553_v33  ;;  %v17785_v63 = vadd.f32 %v1842_v14, %v1596_v49  ;;  %3990 = vmatpush1.bf16.msra.mxu0 %v16159_v43  ;;  %4033 = vmatpush1.bf16.msra.mxu1 %v16162_v45  ;;  %v16183_v33 = vld [vmem:[#allocation10 + $0x240] ss:$16 sps:$4 sm:$0xff]   ;;  %v16186_v49 = vld [vmem:[#allocation10 + $0x248] ss:$16 sps:$4 sm:$0xff]   ;;  %v16191_v43 = vld [vmem:[#allocation10 + $0x224] ss:$16 sps:$4 sm:$0xff]  }
 0x212   :  { %3991 = vmatprep.subr.bf16.mxu0 %v16167_v34  ;;  %4034 = vmatprep.subr.bf16.mxu1 %v16170_v20  ;;  %v16194_v45 = vld [vmem:[#allocation10 + $0x22c] ss:$16 sps:$4 sm:$0xff]   ;;  %v16189_v34 = vld [vmem:[#allocation10 + $0x220] ss:$16 sps:$4 sm:$0xff]   ;;  %v16192_v20 = vld [vmem:[#allocation10 + $0x228] ss:$16 sps:$4 sm:$0xff]  }
 0x213   :  { %v16195_v37 = vld [vmem:[#allocation10 + $0x200] ss:$16 sps:$4 sm:$0xff]   ;;  %v16198_v14 = vld [vmem:[#allocation10 + $0x208] ss:$16 sps:$4 sm:$0xff]  }
 0x215   :  { %3992 = vmatpush1.bf16.msra.mxu0 %v16165_v40  ;;  %4035 = vmatpush1.bf16.msra.mxu1 %v16168_v42  ;;  %v16197_v40 = vld [vmem:[#allocation10 + $0x204] ss:$16 sps:$4 sm:$0xff]   ;;  %v16200_v42 = vld [vmem:[#allocation10 + $0x20c] ss:$16 sps:$4 sm:$0xff]  }
 0x216   :  { %3993 = vmatprep.subr.bf16.mxu0 %v16173_v15  ;;  %4036 = vmatprep.subr.bf16.mxu1 %v16176_v50  ;;  %v2135_v15 = vld [vmem:[#allocation5 + $0x4] sm:$0xf]  ;;  %v17787_v50 = vpop.f32.mrf.mxu0 }
 0x219   :  { %3994 = vmatpush1.bf16.msra.mxu0 %v16171_v9  ;;  %4037 = vmatpush1.bf16.msra.mxu1 %v16174_v23  ;;  %v2140_v9 = vrot.slane %v2135_v15, %v17660_v5  ;;  %v17792_v23 = vld [vmem:[#allocation7 + $0x4] sm:$0xf] }
 0x21a   :  { %3995 = vmatprep.subr.bf16.mxu0 %v16179_v53  ;;  %4038 = vmatprep.subr.bf16.mxu1 %v16182_v57  ;;  %v2148_v53 = vrot.slane %v2135_v15, %v17663_v24 }
 0x21d   :  { %3996 = vmatpush1.bf16.msra.mxu0 %v16177_v1  ;;  %4039 = vmatpush1.bf16.msra.mxu1 %v16180_v61 }
 0x21e   :  { %3997 = vmatprep.subr.bf16.mxu0 %v16185_v30  ;;  %4040 = vmatprep.subr.bf16.mxu1 %v16188_v27  ;;  %v17789_v27 = vpop.f32.mrf.mxu1  ;;  %v17798_v30 = vld [vmem:[#allocation8 + $0x4] sm:$0xf] }
 0x21f   :  { %v2234_v52 = vrot.slane %v17798_v30, %v17663_v24 }
 0x221   :  { %3998 = vmatpush1.bf16.msra.mxu0 %v16183_v33  ;;  %4041 = vmatpush1.bf16.msra.mxu1 %v16186_v49 }
 0x222   :  { %3999 = vmatprep.subr.bf16.mxu0 %v16191_v43  ;;  %4042 = vmatprep.subr.bf16.mxu1 %v16194_v45 }
 0x225   :  { %4000 = vmatpush1.bf16.msra.mxu0 %v16189_v34  ;;  %4043 = vmatpush1.bf16.msra.mxu1 %v16192_v20 }
 0x226   :  { %4001 = vmatprep.subr.bf16.mxu0 %v16197_v40  ;;  %4044 = vmatprep.subr.bf16.mxu1 %v16200_v42  ;;  %v2195_v42 = vrot.slane %v17792_v23, %v17660_v5 }
 0x229   :  { %4002 = vmatpush1.bf16.msra.mxu0 %v16195_v37  ;;  %4045 = vmatpush1.bf16.msra.mxu1 %v16198_v14 }
 0x22c   :  { %v2074_v57 = vpop.f32.mrf.mxu0  ;;  %v2117_v1 = vpop.f32.mrf.mxu1  ;;  %4020 = vmatmul.mubr.bf16.vlgmr.msra.gmra.mxu0 %v17618_v44  ;;  %4063 = vmatmul.mubr.bf16.vlgmr.msra.gmra.mxu1 %v17618_v44  ;;  %v2203_v44 = vrot.slane %v17792_v23, %v17663_v24 }
 0x22d   :  { %v2126_v61 = vadd.f32 %v2074_v57, %v17773_v10  ;;  %v2128_v33 = vadd.f32 %v2117_v1, %v17775_v17  ;;  %v2144_v10 = vrot.slane %v2135_v15, %v17762_v46  ;;  %v2226_v1 = vrot.slane %v17798_v30, %v17660_v5 }
 0x22e   :  { %v2076_v49 = vpop.f32.mrf.mxu0  ;;  %v2119_v43 = vpop.f32.mrf.mxu1 }
 0x22f   :  { %v2157_v45 = vadd.f32 %v2140_v9, %v2126_v61  ;;  %v2159_v34 = vadd.f32 %v2148_v53, %v2128_v33  ;;  %v2127_v20 = vadd.f32 %v2076_v49, %v17777_v28  ;;  %v2129_v40 = vadd.f32 %v2119_v43, %v17779_v29 }
 0x230   :  { %v2078_v37 = vpop.f32.mrf.mxu0  ;;  %v2121_v14 = vpop.f32.mrf.mxu1  ;;  %v2152_v28 = vrot.slane %v2135_v15, %v17765_v47 }
 0x231   :  { %vm2165_vm15 = vcmp.ge.f32.partialorder %v2157_v45, 0.0  ;;  %v2173_v17 = vmul.f32 0.05, %v2157_v45  ;;  %vm2167_vm1 = vcmp.ge.f32.partialorder %v2159_v34, 0.0  ;;  %v2175_v57 = vmul.f32 0.05, %v2159_v34 }
 0x232   :  { %v2130_v29 = vadd.f32 %v2078_v37, %v17783_v36  ;;  %v2132_v61 = vadd.f32 %v2121_v14, %v17785_v63  ;;  %v17813_v4 = vadd.f32 %v2144_v10, %v2127_v20  ;;  %v17819_v12 = vadd.f32 %v2152_v28, %v2129_v40 }
 0x233   :  { %v2181_v33 = vsel %vm2165_vm15, %v2157_v45, %v2173_v17  ;;  %v2183_v49 = vsel %vm2167_vm1, %v2159_v34, %v2175_v57 }
 0x234   :  { %v2212_v43 = vmul.f32 %v2195_v42, %v2181_v33  ;;  %v2214_v18 = vmul.f32 %v2203_v44, %v2183_v49  ;;  %v2161_v2 = vadd.f32 %v2140_v9, %v2130_v29  ;;  %v2163_v55 = vadd.f32 %v2148_v53, %v2132_v61 }
 0x235   :  { %v17822_v36 = vmul.f32 0.05, %v17813_v4  ;;  %v17828_v20 = vmul.f32 0.05, %v17819_v12  ;;  %vm2166_vm6 = vcmp.ge.f32.partialorder %v17813_v4, 0.0  ;;  %vm2168_vm9 = vcmp.ge.f32.partialorder %v17819_v12, 0.0 }
 0x236   :  { %v17817_v0 = vadd.f32 %v2226_v1, %v2212_v43  ;;  %vm2169_vm2 = vcmp.ge.f32.partialorder %v2161_v2, 0.0  ;;  %v2177_v15 = vmul.f32 0.05, %v2161_v2  ;;  %v17824_v63 = vadd.f32 %v2234_v52, %v2214_v18 }
 0x237   :  { %vm2171_vm5 = vcmp.ge.f32.partialorder %v2163_v55, 0.0  ;;  %v2179_v53 = vmul.f32 0.05, %v2163_v55 }
 0x238   :  { %18963 = vst [vmem:[#allocation42_spill] sm:$0xff] %v17817_v0  ;;  %18964 = vst [vmem:[#allocation43_spill] sm:$0xff] %v17824_v63  ;;  %v2185_v45 = vsel %vm2169_vm2, %v2161_v2, %v2177_v15  ;;  %v10172_v34 = vrot.slane %v17817_v0, 7  ;;  %v10200_v14 = vrot.slane %v17817_v0, 1  ;;  %v10174_v17 = vrot.slane %v17824_v63, 7 }
 0x239   :  { %v2216_v9 = vmul.f32 %v2195_v42, %v2185_v45  ;;  %v2187_v40 = vsel %vm2171_vm5, %v2163_v55, %v2179_v53  ;;  %v10202_v57 = vrot.slane %v17824_v63, 1 }
 0x23a   :  { %v2218_v18 = vmul.f32 %v2203_v44, %v2187_v40  ;;  %v2080_v40 = vpop.f32.mrf.mxu0 }
 0x23b   :  { %v17830_v37 = vadd.f32 %v2226_v1, %v2216_v9 }
 0x23c   :  { %v17839_v33 = vadd.f32 %v2234_v52, %v2218_v18 }
 0x23d   :  { %18965 = vst [vmem:[#allocation44_spill] sm:$0xff] %v17830_v37  ;;  %v10176_v2 = vrot.slane %v17830_v37, 7  ;;  %v10204_v29 = vrot.slane %v17830_v37, 1  ;;  %v2230_v37 = vrot.slane %v17798_v30, %v17762_v46 }
 0x23e   :  { %18966 = vst [vmem:[#allocation45_spill] sm:$0xff] %v17839_v33  ;;  %v10178_v1 = vrot.slane %v17839_v33, 7  ;;  %v10206_v49 = vrot.slane %v17839_v33, 1 }
 0x23f   :  { %v17843_v42 = vsel %vm276_vm0, %v10172_v34, %v10176_v2  ;;  %v17847_v55 = vsel %vm276_vm0, %v10176_v2, %v10172_v34  ;;  %v17851_v44 = vsel %vm290_vm4, %v10200_v14, %v10204_v29  ;;  %v17861_v15 = vsel %vm290_vm4, %v10204_v29, %v10200_v14 }
 0x240   :  { %18967 = vst [vmem:[#allocation46_spill] sm:$0xff] %v17843_v42  ;;  %18968 = vst [vmem:[#allocation47_spill] sm:$0xff] %v17847_v55  ;;  %v17865_v45 = vsel %vm276_vm0, %v10174_v17, %v10178_v1  ;;  %v17869_v34 = vsel %vm276_vm0, %v10178_v1, %v10174_v17  ;;  %v17875_v53 = vsel %vm290_vm4, %v10202_v57, %v10206_v49  ;;  %v2123_v17 = vpop.f32.mrf.mxu1 }
 0x241   :  { %18969 = vst [vmem:[#allocation48_spill] sm:$0xff] %v17851_v44  ;;  %18970 = vst [vmem:[#allocation49_spill] sm:$0xff] %v17861_v15  ;;  %v17881_v18 = vsel %vm290_vm4, %v10206_v49, %v10202_v57  ;;  %v1802_v2 = vadd.f32 %v17787_v50, %v17767_v59  ;;  %v1845_v1 = vadd.f32 %v17789_v27, %v17769_v62 }
 0x242   :  { %18971 = vst [vmem:[#allocation50_spill] sm:$0xff] %v17865_v45  ;;  %18972 = vst [vmem:[#allocation51_spill] sm:$0xff] %v17869_v34 }
 0x243   :  { %18973 = vst [vmem:[#allocation52_spill] sm:$0xff] %v17875_v53  ;;  %18974 = vst [vmem:[#allocation53_spill] sm:$0xff] %v17881_v18  ;;  %v2131_v9 = vadd.f32 %v2080_v40, %v1802_v2  ;;  %v2133_v43 = vadd.f32 %v2123_v17, %v1845_v1  ;;  %v2207_v40 = vrot.slane %v17792_v23, %v17765_v47 }
 0x244   :  { %v2182_v1 = vsel %vm2166_vm6, %v17813_v4, %v17822_v36 }
 0x245   :  { %v2162_v61 = vadd.f32 %v2144_v10, %v2131_v9  ;;  %v2164_v52 = vadd.f32 %v2152_v28, %v2133_v43  ;;  %v2199_v9 = vrot.slane %v17792_v23, %v17762_v46 }
 0x247   :  { %v2178_v11 = vmul.f32 0.05, %v2162_v61  ;;  %v2180_v14 = vmul.f32 0.05, %v2164_v52  ;;  %vm2170_vm8 = vcmp.ge.f32.partialorder %v2162_v61, 0.0  ;;  %vm2172_vm10 = vcmp.ge.f32.partialorder %v2164_v52, 0.0 }
 0x248   :  { %v2213_v0 = vmul.f32 %v2199_v9, %v2182_v1 }
 0x249   :  { %v2186_v53 = vsel %vm2170_vm8, %v2162_v61, %v2178_v11  ;;  %v2238_v11 = vrot.slane %v17798_v30, %v17765_v47 }
 0x24a   :  { %v2217_v4 = vmul.f32 %v2199_v9, %v2186_v53 }
 0x24c   :  { %v2535_v44 = vpop.f32.mrf.mxu0  ;;  %v2578_v15 = vpop.f32.mrf.mxu1 }
 0x24e   :  { %v2537_v57 = vpop.f32.mrf.mxu0  ;;  %v2580_v49 = vpop.f32.mrf.mxu1 }
 0x250   :  { %v2539_v59 = vpop.f32.mrf.mxu0  ;;  %v2582_v50 = vpop.f32.mrf.mxu1 }
 0x252   :  { %v17891_v29 = vpop.f32.mrf.mxu0  ;;  %v17893_v62 = vpop.f32.mrf.mxu1 }
 0x26c   :  { %v2781_v27 = vpop.f32.mrf.mxu0  ;;  %v2824_v10 = vpop.f32.mrf.mxu1 }
 0x26d   :  { %v2782_v28 = vadd.f32 %v2781_v27, %v2535_v44  ;;  %v2825_v43 = vadd.f32 %v2824_v10, %v2578_v15  ;;  %v2184_v44 = vsel %vm2168_vm9, %v17819_v12, %v17828_v20  ;;  %v2188_v15 = vsel %vm2172_vm10, %v2164_v52, %v2180_v14 }
 0x26e   :  { %v2783_v2 = vpop.f32.mrf.mxu0  ;;  %v2826_v17 = vpop.f32.mrf.mxu1  ;;  %v2215_v36 = vmul.f32 %v2207_v40, %v2184_v44  ;;  %v2219_v61 = vmul.f32 %v2207_v40, %v2188_v15  ;;  %v17946_v15 = vld [vmem:[#allocation7 + $0x8] sm:$0xf] }
 0x26f   :  { %v2784_v18 = vadd.f32 %v2783_v2, %v2537_v57  ;;  %v2827_v63 = vadd.f32 %v2826_v17, %v2580_v49  ;;  %v17913_v57 = vadd.f32 %v2230_v37, %v2213_v0  ;;  %v17915_v49 = vadd.f32 %v2230_v37, %v2217_v4  ;;  %v3121_v2 = vld [vmem:[#allocation5 + $0x8] sm:$0xf] }
 0x270   :  { %v2785_v27 = vpop.f32.mrf.mxu0  ;;  %v2828_v23 = vpop.f32.mrf.mxu1  ;;  %v17917_v12 = vadd.f32 %v2238_v11, %v2215_v36  ;;  %v17919_v20 = vadd.f32 %v2238_v11, %v2219_v61  ;;  %v3126_v44 = vrot.slane %v3121_v2, %v17660_v5 }
 0x271   :  { %v2786_v10 = vadd.f32 %v2785_v27, %v2539_v59  ;;  %v2829_v33 = vadd.f32 %v2828_v23, %v2582_v50  ;;  %18975 = vst [vmem:[#allocation54_spill] sm:$0xff] %v17913_v57  ;;  %18976 = vst [vmem:[#allocation55_spill] sm:$0xff] %v17915_v49  ;;  %v10201_v52 = vrot.slane %v17913_v57, 1  ;;  %v10205_v14 = vrot.slane %v17915_v49, 1  ;;  %v4326_v57 = vld [vmem:[#allocation14 + $0x138] sm:$0xff] }
 0x272   :  { %18977 = vst [vmem:[#allocation56_spill] sm:$0xff] %v17917_v12  ;;  %18978 = vst [vmem:[#allocation57_spill] sm:$0xff] %v17919_v20  ;;  %v10203_v59 = vrot.slane %v17917_v12, 1  ;;  %v10207_v53 = vrot.slane %v17919_v20, 1  ;;  %v2787_v17 = vpop.f32.mrf.mxu0  ;;  %v2830_v1 = vpop.f32.mrf.mxu1  ;;  %v3134_v27 = vrot.slane %v3121_v2, %v17663_v24  ;;  %v4442_v49 = vld [vmem:[#allocation14 + $0x4d8] sm:$0xff] }
 0x273   :  { %v17927_v30 = vsel %vm290_vm4, %v10201_v52, %v10205_v14  ;;  %v17931_v0 = vsel %vm290_vm4, %v10205_v14, %v10201_v52  ;;  %v2788_v26 = vadd.f32 %v2787_v17, %v17891_v29 }
 0x274   :  { %18979 = vst [vmem:[#allocation58_spill] sm:$0xff] %v17927_v30  ;;  %18980 = vst [vmem:[#allocation59_spill] sm:$0xff] %v17931_v0  ;;  %v17937_v50 = vsel %vm290_vm4, %v10203_v59, %v10207_v53  ;;  %v17941_v9 = vsel %vm290_vm4, %v10207_v53, %v10203_v59  ;;  %v17949_v59 = vld [vmem:[#allocation8 + $0x8] sm:$0xf] }
 0x275   :  { %18981 = vst [vmem:[#allocation60_spill] sm:$0xff] %v17937_v50  ;;  %18982 = vst [vmem:[#allocation61_spill] sm:$0xff] %v17941_v9  ;;  %v3181_v50 = vrot.slane %v17946_v15, %v17660_v5  ;;  %v3189_v9 = vrot.slane %v17946_v15, %v17663_v24 }
 0x28c   :  { %v3060_v23 = vpop.f32.mrf.mxu0  ;;  %v3103_v4 = vpop.f32.mrf.mxu1 }
 0x28d   :  { %v3112_v36 = vadd.f32 %v3060_v23, %v2782_v28  ;;  %v3114_v11 = vadd.f32 %v3103_v4, %v2825_v43  ;;  %v3130_v43 = vrot.slane %v3121_v2, %v17762_v46 }
 0x28e   :  { %v3062_v61 = vpop.f32.mrf.mxu0  ;;  %v3105_v52 = vpop.f32.mrf.mxu1 }
 0x28f   :  { %v3143_v14 = vadd.f32 %v3126_v44, %v3112_v36  ;;  %v3145_v53 = vadd.f32 %v3134_v27, %v3114_v11  ;;  %v3113_v40 = vadd.f32 %v3062_v61, %v2784_v18  ;;  %v3115_v37 = vadd.f32 %v3105_v52, %v2827_v63 }
 0x290   :  { %v3064_v30 = vpop.f32.mrf.mxu0  ;;  %v3107_v0 = vpop.f32.mrf.mxu1  ;;  %v3138_v63 = vrot.slane %v3121_v2, %v17765_v47  ;;  %v3212_v18 = vrot.slane %v17949_v59, %v17660_v5  ;;  %v3220_v61 = vrot.slane %v17949_v59, %v17663_v24 }
 0x291   :  { %vm3151_vm11 = vcmp.ge.f32.partialorder %v3143_v14, 0.0  ;;  %v3159_v34 = vmul.f32 0.05, %v3143_v14  ;;  %vm3153_vm12 = vcmp.ge.f32.partialorder %v3145_v53, 0.0  ;;  %v3161_v28 = vmul.f32 0.05, %v3145_v53 }
 0x292   :  { %v3116_v23 = vadd.f32 %v3064_v30, %v2786_v10  ;;  %v3118_v4 = vadd.f32 %v3107_v0, %v2829_v33  ;;  %v3066_v25 = vpop.f32.mrf.mxu0  ;;  %v3144_v19 = vadd.f32 %v3130_v43, %v3113_v40  ;;  %v3146_v10 = vadd.f32 %v3138_v63, %v3115_v37 }
 0x293   :  { %v3167_v36 = vsel %vm3151_vm11, %v3143_v14, %v3159_v34  ;;  %v3169_v11 = vsel %vm3153_vm12, %v3145_v53, %v3161_v28  ;;  %v3117_v34 = vadd.f32 %v3066_v25, %v2788_v26  ;;  %v3109_v14 = vpop.f32.mrf.mxu1  ;;  %v2831_v53 = vadd.f32 %v2830_v1, %v17893_v62 }
 0x294   :  { %v3198_v52 = vmul.f32 %v3181_v50, %v3167_v36  ;;  %v3200_v45 = vmul.f32 %v3189_v9, %v3169_v11  ;;  %v3147_v55 = vadd.f32 %v3126_v44, %v3116_v23  ;;  %v3149_v42 = vadd.f32 %v3134_v27, %v3118_v4 }
 0x295   :  { %v3160_v28 = vmul.f32 0.05, %v3144_v19  ;;  %v3162_v23 = vmul.f32 0.05, %v3146_v10  ;;  %v3148_v37 = vadd.f32 %v3130_v43, %v3117_v34  ;;  %v3119_v40 = vadd.f32 %v3109_v14, %v2831_v53 }
 0x296   :  { %vm3155_vm13 = vcmp.ge.f32.partialorder %v3147_v55, 0.0  ;;  %v3163_v33 = vmul.f32 0.05, %v3147_v55  ;;  %v17962_v30 = vadd.f32 %v3212_v18, %v3198_v52  ;;  %v17964_v0 = vadd.f32 %v3220_v61, %v3200_v45 }
 0x297   :  { %vm3157_vm14 = vcmp.ge.f32.partialorder %v3149_v42, 0.0  ;;  %v3165_v27 = vmul.f32 0.05, %v3149_v42  ;;  %vm3152_vm15 = vcmp.ge.f32.partialorder %v3144_v19, 0.0  ;;  %vm3156_vm1 = vcmp.ge.f32.partialorder %v3148_v37, 0.0 }
 0x298   :  { %18983 = vst [vmem:[#allocation62_spill] sm:$0xff] %v17962_v30  ;;  %18984 = vst [vmem:[#allocation63_spill] sm:$0xff] %v17964_v0  ;;  %v3171_v2 = vsel %vm3155_vm13, %v3147_v55, %v3163_v33  ;;  %v11255_v25 = vrot.slane %v17962_v30, 7  ;;  %v11283_v26 = vrot.slane %v17962_v30, 1  ;;  %v11257_v45 = vrot.slane %v17964_v0, 7 }
 0x299   :  { %v3202_v44 = vmul.f32 %v3181_v50, %v3171_v2  ;;  %v3173_v29 = vsel %vm3157_vm14, %v3149_v42, %v3165_v27  ;;  %v11285_v17 = vrot.slane %v17964_v0, 1  ;;  %v3150_v42 = vadd.f32 %v3138_v63, %v3119_v40 }
 0x29a   :  { %v3204_v55 = vmul.f32 %v3189_v9, %v3173_v29  ;;  %v3164_v33 = vmul.f32 0.05, %v3148_v37  ;;  %vm3154_vm2 = vcmp.ge.f32.partialorder %v3146_v10, 0.0 }
 0x29b   :  { %v17967_v4 = vadd.f32 %v3212_v18, %v3202_v44  ;;  %v3166_v53 = vmul.f32 0.05, %v3150_v42  ;;  %vm3158_vm5 = vcmp.ge.f32.partialorder %v3150_v42, 0.0 }
 0x29c   :  { %v17977_v36 = vadd.f32 %v3220_v61, %v3204_v55  ;;  %v3193_v55 = vrot.slane %v17946_v15, %v17765_v47  ;;  %v3224_v61 = vrot.slane %v17949_v59, %v17765_v47 }
 0x29d   :  { %18985 = vst [vmem:[#allocation64_spill] sm:$0xff] %v17967_v4  ;;  %v11259_v62 = vrot.slane %v17967_v4, 7  ;;  %v11287_v50 = vrot.slane %v17967_v4, 1 }
 0x29e   :  { %18986 = vst [vmem:[#allocation65_spill] sm:$0xff] %v17977_v36  ;;  %v11261_v18 = vrot.slane %v17977_v36, 7  ;;  %v11289_v52 = vrot.slane %v17977_v36, 1 }
 0x29f   :  { %v17981_v43 = vsel %vm276_vm0, %v11255_v25, %v11259_v62  ;;  %v17985_v11 = vsel %vm276_vm0, %v11259_v62, %v11255_v25  ;;  %v17989_v9 = vsel %vm290_vm4, %v11283_v26, %v11287_v50  ;;  %v17999_v34 = vsel %vm290_vm4, %v11287_v50, %v11283_v26 }
 0x2a0   :  { %18987 = vst [vmem:[#allocation66_spill] sm:$0xff] %v17981_v43  ;;  %18988 = vst [vmem:[#allocation67_spill] sm:$0xff] %v17985_v11  ;;  %v18003_v2 = vsel %vm276_vm0, %v11257_v45, %v11261_v18  ;;  %v18007_v14 = vsel %vm276_vm0, %v11261_v18, %v11257_v45  ;;  %v18015_v29 = vsel %vm290_vm4, %v11285_v17, %v11289_v52 }
 0x2a1   :  { %18989 = vst [vmem:[#allocation68_spill] sm:$0xff] %v17989_v9  ;;  %18990 = vst [vmem:[#allocation69_spill] sm:$0xff] %v17999_v34  ;;  %v18019_v40 = vsel %vm290_vm4, %v11289_v52, %v11285_v17  ;;  %v3185_v26 = vrot.slane %v17946_v15, %v17762_v46  ;;  %v3168_v45 = vsel %vm3152_vm15, %v3144_v19, %v3160_v28  ;;  %vm17348_vm15 = vmmov 0  }
 0x2a2   :  { %18991 = vst [vmem:[#allocation70_spill] sm:$0xff] %v18003_v2  ;;  %18992 = vst [vmem:[#allocation71_spill] sm:$0xff] %v18007_v14  ;;  %v3172_v62 = vsel %vm3156_vm1, %v3148_v37, %v3164_v33  ;;  %v3170_v50 = vsel %vm3154_vm2, %v3146_v10, %v3162_v23  ;;  %v3174_v18 = vsel %vm3158_vm5, %v3150_v42, %v3166_v53  ;;  %vm7316_vm1 = vcmask 1043456  }
 0x2a3   :  { %18993 = vst [vmem:[#allocation72_spill] sm:$0xff] %v18015_v29  ;;  %18994 = vst [vmem:[#allocation73_spill] sm:$0xff] %v18019_v40  ;;  %v3199_v27 = vmul.f32 %v3185_v26, %v3168_v45  ;;  %v3216_v17 = vrot.slane %v17949_v59, %v17762_v46  ;;  %v3203_v52 = vmul.f32 %v3185_v26, %v3172_v62  ;;  %vm7288_vm2 = vcmask 64512  }
 0x2a4   :  { %v3201_v25 = vmul.f32 %v3193_v55, %v3170_v50  ;;  %v3205_v1 = vmul.f32 %v3193_v55, %v3174_v18 }
 0x2a5   :  { %v18031_v44 = vadd.f32 %v3216_v17, %v3199_v27  ;;  %v18033_v63 = vadd.f32 %v3216_v17, %v3203_v52 }
 0x2a6   :  { %v18035_v19 = vadd.f32 %v3224_v61, %v3201_v25  ;;  %v18037_v15 = vadd.f32 %v3224_v61, %v3205_v1 }
 0x2a7   :  { %18995 = vst [vmem:[#allocation74_spill] sm:$0xff] %v18031_v44  ;;  %18996 = vst [vmem:[#allocation75_spill] sm:$0xff] %v18033_v63  ;;  %v11284_v10 = vrot.slane %v18031_v44, 1  ;;  %v11288_v28 = vrot.slane %v18033_v63, 1 }
 0x2a8   :  { %18997 = vst [vmem:[#allocation76_spill] sm:$0xff] %v18035_v19  ;;  %18998 = vst [vmem:[#allocation77_spill] sm:$0xff] %v18037_v15  ;;  %v11286_v23 = vrot.slane %v18035_v19, 1  ;;  %v11290_v37 = vrot.slane %v18037_v15, 1 }
 0x2a9   :  { %v18045_v59 = vsel %vm290_vm4, %v11284_v10, %v11288_v28  ;;  %v18049_v42 = vsel %vm290_vm4, %v11288_v28, %v11284_v10 }
 0x2aa   :  { %18999 = vst [vmem:[#allocation78_spill] sm:$0xff] %v18045_v59  ;;  %19000 = vst [vmem:[#allocation79_spill] sm:$0xff] %v18049_v42  ;;  %v18055_v33 = vsel %vm290_vm4, %v11286_v23, %v11290_v37  ;;  %v18059_v61 = vsel %vm290_vm4, %v11290_v37, %v11286_v23 }
 0x2ab   :  { %19001 = vst [vmem:[#allocation80_spill] sm:$0xff] %v18055_v33  ;;  %19002 = vst [vmem:[#allocation81_spill] sm:$0xff] %v18059_v61 }
 0x2ac   :  { %v3496_v27 = vpop.f32.mrf.mxu0  ;;  %v3539_v25 = vpop.f32.mrf.mxu1 }
 0x2ae   :  { %v3498_v26 = vpop.f32.mrf.mxu0  ;;  %v3541_v45 = vpop.f32.mrf.mxu1 }
 0x2b0   :  { %v3500_v55 = vpop.f32.mrf.mxu0  ;;  %v3543_v62 = vpop.f32.mrf.mxu1 }
 0x2b2   :  { %v3502_v50 = vpop.f32.mrf.mxu0  ;;  %v3545_v18 = vpop.f32.mrf.mxu1 }
 0x2cc   :  { %v3742_v17 = vpop.f32.mrf.mxu0  ;;  %v3785_v52 = vpop.f32.mrf.mxu1 }
 0x2cd   :  { %v3743_v37 = vadd.f32 %v3742_v17, %v3496_v27  ;;  %v3786_v9 = vadd.f32 %v3785_v52, %v3539_v25 }
 0x2ce   :  { %v3744_v10 = vpop.f32.mrf.mxu0  ;;  %v3787_v28 = vpop.f32.mrf.mxu1 }
 0x2cf   :  { %v3745_v59 = vadd.f32 %v3744_v10, %v3498_v26  ;;  %v3788_v42 = vadd.f32 %v3787_v28, %v3541_v45  ;;  %v16203_v10 = vld [vmem:[#allocation11 + $0xe4] ss:$16 sps:$4 sm:$0xff]  }
 0x2d0   :  { %v3746_v1 = vpop.f32.mrf.mxu0  ;;  %v3789_v29 = vpop.f32.mrf.mxu1  ;;  %v16206_v28 = vld [vmem:[#allocation11 + $0x2e4] ss:$16 sps:$4 sm:$0xff]   ;;  %5338 = vmatprep.subr.bf16.mxu0 %v16203_v10  ;;  %v16240_v10 = vld [vmem:[#allocation11 + $0x220] ss:$16 sps:$4 sm:$0xff]  }
 0x2d1   :  { %v3747_v0 = vadd.f32 %v3746_v1, %v3500_v55  ;;  %v3790_v36 = vadd.f32 %v3789_v29, %v3543_v62  ;;  %5381 = vmatprep.subr.bf16.mxu1 %v16206_v28  ;;  %v16248_v28 = vld [vmem:[#allocation11 + $0x204] ss:$16 sps:$4 sm:$0xff]  }
 0x2d2   :  { %v3748_v40 = vpop.f32.mrf.mxu0  ;;  %v3791_v23 = vpop.f32.mrf.mxu1 }
 0x2d3   :  { %v3749_v27 = vadd.f32 %v3748_v40, %v3502_v50  ;;  %v3792_v25 = vadd.f32 %v3791_v23, %v3545_v18  ;;  %v16201_v18 = vld [vmem:[#allocation11 + $0xe0] ss:$16 sps:$4 sm:$0xff]   ;;  %v16209_v23 = vld [vmem:[#allocation11 + $0xc4] ss:$16 sps:$4 sm:$0xff]  }
 0x2d4   :  { %5339 = vmatpush1.bf16.msra.mxu0 %v16201_v18  ;;  %v16237_v18 = vld [vmem:[#allocation11 + $0x20] ss:$16 sps:$4 sm:$0xff]  }
 0x2d5   :  { %5340 = vmatprep.subr.bf16.mxu0 %v16209_v23  ;;  %v16243_v23 = vld [vmem:[#allocation11] ss:$16 sps:$4 sm:$0xff]  }
 0x2ec   :  { %v4021_v34 = vpop.f32.mrf.mxu0  ;;  %v4064_v53 = vpop.f32.mrf.mxu1 }
 0x2ed   :  { %v4073_v33 = vadd.f32 %v4021_v34, %v3743_v37  ;;  %v4075_v61 = vadd.f32 %v4064_v53, %v3786_v9  ;;  %v16212_v37 = vld [vmem:[#allocation11 + $0x2c4] ss:$16 sps:$4 sm:$0xff]  }
 0x2ee   :  { %v4023_v30 = vpop.f32.mrf.mxu0  ;;  %v4066_v4 = vpop.f32.mrf.mxu1 }
 0x2ef   :  { %vm4081_vm6 = vcmp.ge.f32.partialorder %v4073_v33, 0.0  ;;  %v4089_v14 = vmul.f32 0.05, %v4073_v33  ;;  %vm4083_vm8 = vcmp.ge.f32.partialorder %v4075_v61, 0.0  ;;  %v4091_v2 = vmul.f32 0.05, %v4075_v61 }
 0x2f0   :  { %v4074_v11 = vadd.f32 %v4023_v30, %v3745_v59  ;;  %v4076_v43 = vadd.f32 %v4066_v4, %v3788_v42  ;;  %v4025_v19 = vpop.f32.mrf.mxu0  ;;  %v4068_v44 = vpop.f32.mrf.mxu1 }
 0x2f1   :  { %v4077_v17 = vadd.f32 %v4025_v19, %v3747_v0  ;;  %v4079_v52 = vadd.f32 %v4068_v44, %v3790_v36  ;;  %v18064_v30 = vsel %vm4081_vm6, %v4073_v33, %v4089_v14  ;;  %v18069_v0 = vsel %vm4083_vm8, %v4075_v61, %v4091_v2 }
 0x2f2   :  { %vm4082_vm9 = vcmp.ge.f32.partialorder %v4074_v11, 0.0  ;;  %v4090_v9 = vmul.f32 0.05, %v4074_v11  ;;  %v4092_v34 = vmul.f32 0.05, %v4076_v43  ;;  %v4027_v53 = vpop.f32.mrf.mxu0  ;;  %v4070_v1 = vpop.f32.mrf.mxu1  ;;  %vm4084_vm10 = vcmp.ge.f32.partialorder %v4076_v43, 0.0 }
 0x2f3   :  { %vm4085_vm11 = vcmp.ge.f32.partialorder %v4077_v17, 0.0  ;;  %v4093_v29 = vmul.f32 0.05, %v4077_v17  ;;  %vm4087_vm12 = vcmp.ge.f32.partialorder %v4079_v52, 0.0  ;;  %v4095_v26 = vmul.f32 0.05, %v4079_v52 }
 0x2f4   :  { %v4078_v45 = vadd.f32 %v4027_v53, %v3749_v27  ;;  %v4080_v55 = vadd.f32 %v4070_v1, %v3792_v25  ;;  %v18066_v4 = vsel %vm4082_vm9, %v4074_v11, %v4090_v9  ;;  %v18079_v14 = vsel %vm4084_vm10, %v4076_v43, %v4092_v34  ;;  %v16204_v43 = vld [vmem:[#allocation11 + $0x2e0] ss:$16 sps:$4 sm:$0xff]   ;;  %v16221_v53 = vld [vmem:[#allocation11 + $0x84] ss:$16 sps:$4 sm:$0xff]  }
 0x2f5   :  { %v4105_v36 = vadd.f32 %v18066_v4, %v18064_v30  ;;  %v18074_v59 = vsel %vm4085_vm11, %v4077_v17, %v4093_v29  ;;  %v18085_v33 = vsel %vm4087_vm12, %v4079_v52, %v4095_v26  ;;  %v16207_v27 = vld [vmem:[#allocation11 + $0xc0] ss:$16 sps:$4 sm:$0xff]   ;;  %5382 = vmatpush1.bf16.msra.mxu1 %v16204_v43  ;;  %v16215_v17 = vld [vmem:[#allocation11 + $0xa4] ss:$16 sps:$4 sm:$0xff]  }
 0x2f6   :  { %vm4086_vm13 = vcmp.ge.f32.partialorder %v4078_v45, 0.0  ;;  %v4094_v44 = vmul.f32 0.05, %v4078_v45  ;;  %v4096_v40 = vmul.f32 0.05, %v4080_v55  ;;  %vm4088_vm14 = vcmp.ge.f32.partialorder %v4080_v55, 0.0  ;;  %5383 = vmatprep.subr.bf16.mxu1 %v16212_v37  ;;  %5341 = vmatpush1.bf16.msra.mxu0 %v16207_v27 }
 0x2f7   :  { %v4106_v19 = vadd.f32 %v4105_v36, %v18069_v0  ;;  %v16210_v25 = vld [vmem:[#allocation11 + $0x2c0] ss:$16 sps:$4 sm:$0xff]   ;;  %v16218_v52 = vld [vmem:[#allocation11 + $0x2a4] ss:$16 sps:$4 sm:$0xff]   ;;  %5342 = vmatprep.subr.bf16.mxu0 %v16215_v17 }
 0x2f8   :  { %v18076_v42 = vsel %vm4086_vm13, %v4078_v45, %v4094_v44  ;;  %v18088_v62 = vsel %vm4088_vm14, %v4080_v55, %v4096_v40  ;;  %v16213_v9 = vld [vmem:[#allocation11 + $0xa0] ss:$16 sps:$4 sm:$0xff]   ;;  %v16224_v1 = vld [vmem:[#allocation11 + $0x284] ss:$16 sps:$4 sm:$0xff]  }
 0x2f9   :  { %v4107_v11 = vadd.f32 %v4106_v19, %v18079_v14  ;;  %v4110_v2 = vadd.f32 %v18076_v42, %v18074_v59  ;;  %5384 = vmatpush1.bf16.msra.mxu1 %v16210_v25  ;;  %v16216_v34 = vld [vmem:[#allocation11 + $0x2a0] ss:$16 sps:$4 sm:$0xff]   ;;  %v16227_v45 = vld [vmem:[#allocation11 + $0x64] ss:$16 sps:$4 sm:$0xff]  }
 0x2fa   :  { %5385 = vmatprep.subr.bf16.mxu1 %v16218_v52  ;;  %5343 = vmatpush1.bf16.msra.mxu0 %v16213_v9  ;;  %v16219_v29 = vld [vmem:[#allocation11 + $0x80] ss:$16 sps:$4 sm:$0xff]   ;;  %v16230_v36 = vld [vmem:[#allocation11 + $0x264] ss:$16 sps:$4 sm:$0xff]  }
 0x2fb   :  { %4108 = vadd.xlane.f32.xlu0 %v4107_v11  ;;  %v4111_v61 = vadd.f32 %v4110_v2, %v18085_v33  ;;  %5344 = vmatprep.subr.bf16.mxu0 %v16221_v53  ;;  %v16222_v26 = vld [vmem:[#allocation11 + $0x280] ss:$16 sps:$4 sm:$0xff]   ;;  %v16233_v40 = vld [vmem:[#allocation11 + $0x44] ss:$16 sps:$4 sm:$0xff]  }
 0x2fc   :  { %v16225_v55 = vld [vmem:[#allocation11 + $0x60] ss:$16 sps:$4 sm:$0xff]   ;;  %v16236_v19 = vld [vmem:[#allocation11 + $0x244] ss:$16 sps:$4 sm:$0xff]  }
 0x2fd   :  { %v4112_v50 = vadd.f32 %v4111_v61, %v18088_v62  ;;  %5386 = vmatpush1.bf16.msra.mxu1 %v16216_v34  ;;  %v16228_v44 = vld [vmem:[#allocation11 + $0x260] ss:$16 sps:$4 sm:$0xff]   ;;  %v16239_v61 = vld [vmem:[#allocation11 + $0x24] ss:$16 sps:$4 sm:$0xff]  }
 0x2fe   :  { %5387 = vmatprep.subr.bf16.mxu1 %v16224_v1  ;;  %5345 = vmatpush1.bf16.msra.mxu0 %v16219_v29  ;;  %v16231_v11 = vld [vmem:[#allocation11 + $0x40] ss:$16 sps:$4 sm:$0xff]   ;;  %v16245_v43 = vld [vmem:[#allocation11 + $0x4] ss:$16 sps:$4 sm:$0xff]  }
 0x2ff   :  { %4113 = vadd.xlane.f32.xlu0 %v4112_v50  ;;  %5346 = vmatprep.subr.bf16.mxu0 %v16227_v45  ;;  %v16234_v2 = vld [vmem:[#allocation11 + $0x240] ss:$16 sps:$4 sm:$0xff]   ;;  %v16242_v50 = vld [vmem:[#allocation11 + $0x224] ss:$16 sps:$4 sm:$0xff]  }
 0x300   :  { %v16246_v37 = vld [vmem:[#allocation11 + $0x200] ss:$16 sps:$4 sm:$0xff]   ;;  %v16251_v27 = vld [vmem:[#allocation11 + $0x1e4] ss:$16 sps:$4 sm:$0xff]  }
 0x301   :  { %5388 = vmatpush1.bf16.msra.mxu1 %v16222_v26  ;;  %v16254_v25 = vld [vmem:[#allocation11 + $0x3e4] ss:$16 sps:$4 sm:$0xff]   ;;  %v16249_v17 = vld [vmem:[#allocation11 + $0x1e0] ss:$16 sps:$4 sm:$0xff]  }
 0x302   :  { %5389 = vmatprep.subr.bf16.mxu1 %v16230_v36  ;;  %5347 = vmatpush1.bf16.msra.mxu0 %v16225_v55  ;;  %v16252_v52 = vld [vmem:[#allocation11 + $0x3e0] ss:$16 sps:$4 sm:$0xff]   ;;  %v16257_v9 = vld [vmem:[#allocation11 + $0x1c4] ss:$16 sps:$4 sm:$0xff]  }
 0x303   :  { %5348 = vmatprep.subr.bf16.mxu0 %v16233_v40  ;;  %v16260_v34 = vld [vmem:[#allocation11 + $0x3c4] ss:$16 sps:$4 sm:$0xff]   ;;  %v16255_v53 = vld [vmem:[#allocation11 + $0x1c0] ss:$16 sps:$4 sm:$0xff]  }
 0x304   :  { %v16258_v1 = vld [vmem:[#allocation11 + $0x3c0] ss:$16 sps:$4 sm:$0xff]  }
 0x305   :  { %5390 = vmatpush1.bf16.msra.mxu1 %v16228_v44 }
 0x306   :  { %5391 = vmatprep.subr.bf16.mxu1 %v16236_v19  ;;  %5349 = vmatpush1.bf16.msra.mxu0 %v16231_v11 }
 0x307   :  { %5350 = vmatprep.subr.bf16.mxu0 %v16239_v61 }
 0x309   :  { %5392 = vmatpush1.bf16.msra.mxu1 %v16234_v2 }
 0x30a   :  { %5393 = vmatprep.subr.bf16.mxu1 %v16242_v50  ;;  %5351 = vmatpush1.bf16.msra.mxu0 %v16237_v18 }
 0x30b   :  { %5352 = vmatprep.subr.bf16.mxu0 %v16245_v43 }
 0x30d   :  { %5394 = vmatpush1.bf16.msra.mxu1 %v16240_v10 }
 0x30e   :  { %5395 = vmatprep.subr.bf16.mxu1 %v16248_v28  ;;  %5353 = vmatpush1.bf16.msra.mxu0 %v16243_v23 }
 0x30f   :  { %5354 = vmatprep.subr.bf16.mxu0 %v16251_v27 }
 0x311   :  { %5396 = vmatpush1.bf16.msra.mxu1 %v16246_v37 }
 0x312   :  { %5397 = vmatprep.subr.bf16.mxu1 %v16254_v25  ;;  %5355 = vmatpush2.bf16.msra.mxu0 %v16249_v17  ;;  %v16263_v25 = vld [vmem:[#allocation11 + $0x1a4] ss:$16 sps:$4 sm:$0xff]   ;;  %v16264_v17 = vld [vmem:[#allocation11 + $0x3a0] ss:$16 sps:$4 sm:$0xff]  }
 0x313   :  { %5356 = vmatprep.subr.bf16.mxu0 %v16257_v9  ;;  %v16267_v9 = vld [vmem:[#allocation11 + $0x180] ss:$16 sps:$4 sm:$0xff]  }
 0x315   :  { %5398 = vmatpush2.bf16.msra.mxu1 %v16252_v52  ;;  %v16266_v52 = vld [vmem:[#allocation11 + $0x3a4] ss:$16 sps:$4 sm:$0xff]  }
 0x316   :  { %5399 = vmatprep.subr.bf16.mxu1 %v16260_v34  ;;  %5357 = vmatpush2.bf16.msra.mxu0 %v16255_v53  ;;  %v16269_v34 = vld [vmem:[#allocation11 + $0x184] ss:$16 sps:$4 sm:$0xff]   ;;  %v16270_v53 = vld [vmem:[#allocation11 + $0x380] ss:$16 sps:$4 sm:$0xff]  }
 0x317   :  { %5358 = vmatprep.subr.bf16.mxu0 %v16263_v25 }
 0x319   :  { %5400 = vmatpush2.bf16.msra.mxu1 %v16258_v1  ;;  %v16272_v1 = vld [vmem:[#allocation11 + $0x384] ss:$16 sps:$4 sm:$0xff]  }
 0x31a   :  { %5401 = vmatprep.subr.bf16.mxu1 %v16266_v52 }
 0x31d   :  { %5402 = vmatpush2.bf16.msra.mxu1 %v16264_v17 }
 0x31e   :  { %5403 = vmatprep.subr.bf16.mxu1 %v16272_v1 }
 0x321   :  { %5404 = vmatpush2.bf16.msra.mxu1 %v16270_v53 }
 0x384   :  { %v4109_v29 = vpop.xlane.xlu0 %4108 }
 0x385   :  { %v4116_v26 = vmul.f32 0.001953125, %v4109_v29  ;;  %v16275_v29 = vld [vmem:[#allocation11 + $0x164] ss:$16 sps:$4 sm:$0xff]  }
 0x387   :  { %v18092_v45 = vsub.f32 %v18064_v30, %v4116_v26  ;;  %v18095_v55 = vsub.f32 %v18066_v4, %v4116_v26  ;;  %v18098_v36 = vsub.f32 %v18069_v0, %v4116_v26  ;;  %v18101_v40 = vsub.f32 %v18079_v14, %v4116_v26  ;;  %v16278_v26 = vld [vmem:[#allocation11 + $0x364] ss:$16 sps:$4 sm:$0xff]  }
 0x388   :  { %v4114_v44 = vpop.xlane.xlu0 %4113  ;;  %5405 = vmatprep.subr.bf16.mxu1 %v16278_v26 }
 0x389   :  { %v4117_v19 = vmul.f32 0.001953125, %v4114_v44  ;;  %v4126_v11 = vmul.f32 %v18092_v45, %v18092_v45  ;;  %v4127_v2 = vmul.f32 %v18095_v55, %v18095_v55  ;;  %v4128_v30 = vmul.f32 %v18098_v36, %v18098_v36  ;;  %v16273_v44 = vld [vmem:[#allocation11 + $0x160] ss:$16 sps:$4 sm:$0xff]  }
 0x38a   :  { %v4129_v50 = vmul.f32 %v18101_v40, %v18101_v40 }
 0x38b   :  { %v18110_v4 = vsub.f32 %v18074_v59, %v4117_v19  ;;  %v18113_v0 = vsub.f32 %v18076_v42, %v4117_v19  ;;  %v4134_v61 = vadd.f32 %v4127_v2, %v4126_v11  ;;  %v18116_v14 = vsub.f32 %v18085_v33, %v4117_v19  ;;  %v16281_v11 = vld [vmem:[#allocation11 + $0x144] ss:$16 sps:$4 sm:$0xff]  }
 0x38c   :  { %v18121_v10 = vsub.f32 %v18088_v62, %v4117_v19  ;;  %v16261_v62 = vld [vmem:[#allocation11 + $0x1a0] ss:$16 sps:$4 sm:$0xff]   ;;  %v16284_v2 = vld [vmem:[#allocation11 + $0x344] ss:$16 sps:$4 sm:$0xff]  }
 0x38d   :  { %v4135_v18 = vadd.f32 %v4134_v61, %v4128_v30  ;;  %v4130_v43 = vmul.f32 %v18110_v4, %v18110_v4  ;;  %v4131_v59 = vmul.f32 %v18113_v0, %v18113_v0  ;;  %v4132_v42 = vmul.f32 %v18116_v14, %v18116_v14  ;;  %5359 = vmatpush2.bf16.msra.mxu0 %v16261_v62  ;;  %v16276_v19 = vld [vmem:[#allocation11 + $0x360] ss:$16 sps:$4 sm:$0xff]  }
 0x38e   :  { %v4133_v33 = vmul.f32 %v18121_v10, %v18121_v10  ;;  %5360 = vmatprep.subr.bf16.mxu0 %v16269_v34  ;;  %v16279_v30 = vld [vmem:[#allocation11 + $0x140] ss:$16 sps:$4 sm:$0xff]   ;;  %5406 = vmatpush2.bf16.msra.mxu1 %v16276_v19 }
 0x38f   :  { %v4136_v28 = vadd.f32 %v4135_v18, %v4129_v50  ;;  %v4139_v23 = vadd.f32 %v4131_v59, %v4130_v43  ;;  %v16282_v61 = vld [vmem:[#allocation11 + $0x340] ss:$16 sps:$4 sm:$0xff]   ;;  %v16287_v50 = vld [vmem:[#allocation11 + $0x124] ss:$16 sps:$4 sm:$0xff]   ;;  %5407 = vmatprep.subr.bf16.mxu1 %v16284_v2 }
 0x390   :  { %v16290_v18 = vld [vmem:[#allocation11 + $0x324] ss:$16 sps:$4 sm:$0xff]   ;;  %v16285_v43 = vld [vmem:[#allocation11 + $0x120] ss:$16 sps:$4 sm:$0xff]  }
 0x391   :  { %4137 = vadd.xlane.f32.xlu1 %v4136_v28  ;;  %v4140_v37 = vadd.f32 %v4139_v23, %v4132_v42  ;;  %5361 = vmatpush2.bf16.msra.mxu0 %v16267_v9  ;;  %v16288_v59 = vld [vmem:[#allocation11 + $0x320] ss:$16 sps:$4 sm:$0xff]   ;;  %v16293_v28 = vld [vmem:[#allocation11 + $0x104] ss:$16 sps:$4 sm:$0xff]  }
 0x392   :  { %5362 = vmatprep.subr.bf16.mxu0 %v16275_v29  ;;  %5408 = vmatpush2.bf16.msra.mxu1 %v16282_v61  ;;  %v16296_v42 = vld [vmem:[#allocation11 + $0x304] ss:$16 sps:$4 sm:$0xff]   ;;  %v16291_v23 = vld [vmem:[#allocation11 + $0x100] ss:$16 sps:$4 sm:$0xff]  }
 0x393   :  { %v4141_v27 = vadd.f32 %v4140_v37, %v4133_v33  ;;  %5409 = vmatprep.subr.bf16.mxu1 %v16290_v18  ;;  %v16294_v33 = vld [vmem:[#allocation11 + $0x300] ss:$16 sps:$4 sm:$0xff]   ;;  %v16299_v37 = vld [vmem:[#allocation11 + $0xec] ss:$16 sps:$4 sm:$0xff]  }
 0x395   :  { %4142 = vadd.xlane.f32.xlu1 %v4141_v27  ;;  %5363 = vmatpush2.bf16.msra.mxu0 %v16273_v44  ;;  %v16302_v27 = vld [vmem:[#allocation11 + $0x2ec] ss:$16 sps:$4 sm:$0xff]  }
 0x396   :  { %5364 = vmatprep.subr.bf16.mxu0 %v16281_v11  ;;  %5410 = vmatpush2.bf16.msra.mxu1 %v16288_v59 }
 0x397   :  { %5411 = vmatprep.subr.bf16.mxu1 %v16296_v42  ;;  %v16312_v42 = vld [vmem:[#allocation11 + $0x2a8] ss:$16 sps:$4 sm:$0xff]  }
 0x399   :  { %5365 = vmatpush2.bf16.msra.mxu0 %v16279_v30 }
 0x39a   :  { %5366 = vmatprep.subr.bf16.mxu0 %v16287_v50  ;;  %5412 = vmatpush2.bf16.msra.mxu1 %v16294_v33  ;;  %v16320_v33 = vld [vmem:[#allocation11 + $0x28c] ss:$16 sps:$4 sm:$0xff]  }
 0x39b   :  { %5467 = vmatprep.subr.bf16.mxu1 %v16302_v27  ;;  %v16318_v27 = vld [vmem:[#allocation11 + $0x288] ss:$16 sps:$4 sm:$0xff]  }
 0x39d   :  { %5367 = vmatpush2.bf16.msra.mxu0 %v16285_v43  ;;  %v16297_v43 = vld [vmem:[#allocation11 + $0xe8] ss:$16 sps:$4 sm:$0xff]  }
 0x39e   :  { %5368 = vmatprep.subr.bf16.mxu0 %v16293_v28  ;;  %v16309_v28 = vld [vmem:[#allocation11 + $0xa8] ss:$16 sps:$4 sm:$0xff]  }
 0x3a1   :  { %5369 = vmatpush2.bf16.msra.mxu0 %v16291_v23  ;;  %v16317_v23 = vld [vmem:[#allocation11 + $0x8c] ss:$16 sps:$4 sm:$0xff]  }
 0x3a2   :  { %5424 = vmatprep.subr.bf16.mxu0 %v16299_v37  ;;  %v16315_v37 = vld [vmem:[#allocation11 + $0x88] ss:$16 sps:$4 sm:$0xff]  }
 0x41a   :  { %v4138_v62 = vpop.xlane.xlu1 %4137 }
 0x41b   :  { %v4144_v25 = vmul.f32 0.001953125, %v4138_v62  ;;  %v16323_v62 = vld [vmem:[#allocation11 + $0x6c] ss:$16 sps:$4 sm:$0xff]  }
 0x41d   :  { %v4146_v17 = vadd.f32 1e-05, %v4144_v25  ;;  %v16326_v25 = vld [vmem:[#allocation11 + $0x26c] ss:$16 sps:$4 sm:$0xff]  }
 0x41e   :  { %v4143_v52 = vpop.xlane.xlu1 %4142 }
 0x41f   :  { %v4145_v9 = vmul.f32 0.001953125, %v4143_v52  ;;  %16969 = vrsqrt.f32 %v4146_v17  ;;  %v16321_v17 = vld [vmem:[#allocation11 + $0x68] ss:$16 sps:$4 sm:$0xff]  }
 0x420   :  { %v16324_v52 = vld [vmem:[#allocation11 + $0x268] ss:$16 sps:$4 sm:$0xff]  }
 0x421   :  { %v4147_v34 = vadd.f32 1e-05, %v4145_v9  ;;  %v16329_v9 = vld [vmem:[#allocation11 + $0x4c] ss:$16 sps:$4 sm:$0xff]  }
 0x423   :  { %16971 = vrsqrt.f32 %v4147_v34  ;;  %v16332_v34 = vld [vmem:[#allocation11 + $0x24c] ss:$16 sps:$4 sm:$0xff]  }
 0x42c   :  { %v16970_v53 = vpop.eup %16969 }
 0x42d   :  { %v4151_v29 = vmul.f32 %v16970_v53, %v18095_v55  ;;  %v4153_v26 = vmul.f32 %v16970_v53, %v18101_v40  ;;  %v4150_v44 = vmul.f32 %v16970_v53, %v18092_v45  ;;  %v4152_v19 = vmul.f32 %v16970_v53, %v18098_v36  ;;  %v16300_v55 = vld [vmem:[#allocation11 + $0x2e8] ss:$16 sps:$4 sm:$0xff]   ;;  %v16305_v45 = vld [vmem:[#allocation11 + $0xcc] ss:$16 sps:$4 sm:$0xff]  }
 0x42e   :  { %v16308_v36 = vld [vmem:[#allocation11 + $0x2cc] ss:$16 sps:$4 sm:$0xff]   ;;  %v16327_v53 = vld [vmem:[#allocation11 + $0x48] ss:$16 sps:$4 sm:$0xff]  }
 0x430   :  { %v16972_v1 = vpop.eup %16971 }
 0x431   :  { %v4155_v11 = vmul.f32 %v16972_v1, %v18113_v0  ;;  %v4157_v2 = vmul.f32 %v16972_v1, %v18121_v10  ;;  %v4154_v30 = vmul.f32 %v16972_v1, %v18110_v4  ;;  %v4156_v61 = vmul.f32 %v16972_v1, %v18116_v14  ;;  %v16303_v4 = vld [vmem:[#allocation11 + $0xc8] ss:$16 sps:$4 sm:$0xff]   ;;  %v16311_v14 = vld [vmem:[#allocation11 + $0xac] ss:$16 sps:$4 sm:$0xff]  }
 0x432   :  { %v16306_v0 = vld [vmem:[#allocation11 + $0x2c8] ss:$16 sps:$4 sm:$0xff]   ;;  %v16314_v10 = vld [vmem:[#allocation11 + $0x2ac] ss:$16 sps:$4 sm:$0xff]  }
 0x433   :  { %v18139_v50 = vpack.c.bf16 %v4155_v11, %v4151_v29  ;;  %v18141_v18 = vpack.c.bf16 %v4157_v2, %v4153_v26  ;;  %v18143_v59 = vpack.c.bf16 %v4154_v30, %v4150_v44  ;;  %v18145_v40 = vpack.c.bf16 %v4156_v61, %v4152_v19  ;;  %v16330_v1 = vld [vmem:[#allocation11 + $0x248] ss:$16 sps:$4 sm:$0xff]   ;;  %v16335_v29 = vld [vmem:[#allocation11 + $0x2c] ss:$16 sps:$4 sm:$0xff]  }
 0x434   :  { %v16338_v26 = vld [vmem:[#allocation11 + $0x22c] ss:$16 sps:$4 sm:$0xff]   ;;  %v16333_v44 = vld [vmem:[#allocation11 + $0x28] ss:$16 sps:$4 sm:$0xff]  }
 0x435   :  { %5370 = vmatprep.mubr.bf16.mxu0 %v18139_v50  ;;  %5413 = vmatprep.mubr.bf16.mxu1 %v18141_v18  ;;  %v16336_v19 = vld [vmem:[#allocation11 + $0x228] ss:$16 sps:$4 sm:$0xff]   ;;  %v16341_v11 = vld [vmem:[#allocation11 + $0xc] ss:$16 sps:$4 sm:$0xff]  }
 0x436   :  { %5371 = vmatmul.mubr.bf16.vlgmr.msra.gmra.mxu0 %v18143_v59  ;;  %5414 = vmatmul.mubr.bf16.vlgmr.msra.gmra.mxu1 %v18145_v40  ;;  %v16344_v2 = vld [vmem:[#allocation11 + $0x20c] ss:$16 sps:$4 sm:$0xff]   ;;  %v16339_v30 = vld [vmem:[#allocation11 + $0x8] ss:$16 sps:$4 sm:$0xff]  }
 0x437   :  { %5425 = vmatpush1.bf16.msra.mxu0 %v16297_v43  ;;  %5468 = vmatpush1.bf16.msra.mxu1 %v16300_v55  ;;  %v16342_v61 = vld [vmem:[#allocation11 + $0x208] ss:$16 sps:$4 sm:$0xff]   ;;  %v16347_v43 = vld [vmem:[#allocation11 + $0x1ec] ss:$16 sps:$4 sm:$0xff]  }
 0x438   :  { %5456 = vmatprep.mubr.bf16.mxu0 %v18139_v50  ;;  %5499 = vmatprep.mubr.bf16.mxu1 %v18141_v18  ;;  %v16350_v55 = vld [vmem:[#allocation11 + $0x3ec] ss:$16 sps:$4 sm:$0xff]  }
 0x439   :  { %5426 = vmatprep.subr.bf16.mxu0 %v16305_v45  ;;  %5469 = vmatprep.subr.bf16.mxu1 %v16308_v36  ;;  %v16345_v45 = vld [vmem:[#allocation11 + $0x1e8] ss:$16 sps:$4 sm:$0xff]  }
 0x43a   :  { %v16348_v36 = vld [vmem:[#allocation11 + $0x3e8] ss:$16 sps:$4 sm:$0xff]  }
 0x43b   :  { %5427 = vmatpush1.bf16.msra.mxu0 %v16303_v4  ;;  %5470 = vmatpush1.bf16.msra.mxu1 %v16306_v0  ;;  %v16353_v4 = vld [vmem:[#allocation11 + $0x1cc] ss:$16 sps:$4 sm:$0xff]  }
 0x43c   :  { %5428 = vmatprep.subr.bf16.mxu0 %v16311_v14  ;;  %5471 = vmatprep.subr.bf16.mxu1 %v16314_v10  ;;  %v16356_v0 = vld [vmem:[#allocation11 + $0x3cc] ss:$16 sps:$4 sm:$0xff]   ;;  %v16351_v14 = vld [vmem:[#allocation11 + $0x1c8] ss:$16 sps:$4 sm:$0xff]  }
 0x43d   :  { %v16354_v10 = vld [vmem:[#allocation11 + $0x3c8] ss:$16 sps:$4 sm:$0xff]  }
 0x43f   :  { %5429 = vmatpush1.bf16.msra.mxu0 %v16309_v28  ;;  %5472 = vmatpush1.bf16.msra.mxu1 %v16312_v42  ;;  %v16359_v28 = vld [vmem:[#allocation11 + $0x1ac] ss:$16 sps:$4 sm:$0xff]  }
 0x440   :  { %5430 = vmatprep.subr.bf16.mxu0 %v16317_v23  ;;  %5473 = vmatprep.subr.bf16.mxu1 %v16320_v33  ;;  %v16362_v42 = vld [vmem:[#allocation11 + $0x3ac] ss:$16 sps:$4 sm:$0xff]   ;;  %v16357_v23 = vld [vmem:[#allocation11 + $0x1a8] ss:$16 sps:$4 sm:$0xff]  }
 0x441   :  { %v16360_v33 = vld [vmem:[#allocation11 + $0x3a8] ss:$16 sps:$4 sm:$0xff]  }
 0x443   :  { %5431 = vmatpush1.bf16.msra.mxu0 %v16315_v37  ;;  %5474 = vmatpush1.bf16.msra.mxu1 %v16318_v27  ;;  %v16365_v37 = vld [vmem:[#allocation11 + $0x18c] ss:$16 sps:$4 sm:$0xff]  }
 0x444   :  { %5432 = vmatprep.subr.bf16.mxu0 %v16323_v62  ;;  %5475 = vmatprep.subr.bf16.mxu1 %v16326_v25  ;;  %v16368_v27 = vld [vmem:[#allocation11 + $0x38c] ss:$16 sps:$4 sm:$0xff]   ;;  %v16363_v62 = vld [vmem:[#allocation11 + $0x188] ss:$16 sps:$4 sm:$0xff]  }
 0x445   :  { %v16366_v25 = vld [vmem:[#allocation11 + $0x388] ss:$16 sps:$4 sm:$0xff]  }
 0x447   :  { %5433 = vmatpush1.bf16.msra.mxu0 %v16321_v17  ;;  %5476 = vmatpush1.bf16.msra.mxu1 %v16324_v52  ;;  %v16371_v17 = vld [vmem:[#allocation11 + $0x16c] ss:$16 sps:$4 sm:$0xff]  }
 0x448   :  { %5434 = vmatprep.subr.bf16.mxu0 %v16329_v9  ;;  %5477 = vmatprep.subr.bf16.mxu1 %v16332_v34  ;;  %v16374_v52 = vld [vmem:[#allocation11 + $0x36c] ss:$16 sps:$4 sm:$0xff]   ;;  %v16369_v9 = vld [vmem:[#allocation11 + $0x168] ss:$16 sps:$4 sm:$0xff]  }
 0x449   :  { %v16372_v34 = vld [vmem:[#allocation11 + $0x368] ss:$16 sps:$4 sm:$0xff]  }
 0x44b   :  { %5435 = vmatpush1.bf16.msra.mxu0 %v16327_v53  ;;  %5478 = vmatpush1.bf16.msra.mxu1 %v16330_v1  ;;  %v16377_v53 = vld [vmem:[#allocation11 + $0x14c] ss:$16 sps:$4 sm:$0xff]  }
 0x44c   :  { %5436 = vmatprep.subr.bf16.mxu0 %v16335_v29  ;;  %5479 = vmatprep.subr.bf16.mxu1 %v16338_v26  ;;  %v16380_v1 = vld [vmem:[#allocation11 + $0x34c] ss:$16 sps:$4 sm:$0xff]   ;;  %v16375_v29 = vld [vmem:[#allocation11 + $0x148] ss:$16 sps:$4 sm:$0xff]  }
 0x44d   :  { %v16378_v26 = vld [vmem:[#allocation11 + $0x348] ss:$16 sps:$4 sm:$0xff]  }
 0x44f   :  { %5437 = vmatpush1.bf16.msra.mxu0 %v16333_v44  ;;  %5480 = vmatpush1.bf16.msra.mxu1 %v16336_v19  ;;  %v16383_v44 = vld [vmem:[#allocation11 + $0x12c] ss:$16 sps:$4 sm:$0xff]  }
 0x450   :  { %5438 = vmatprep.subr.bf16.mxu0 %v16341_v11  ;;  %5481 = vmatprep.subr.bf16.mxu1 %v16344_v2  ;;  %v16386_v19 = vld [vmem:[#allocation11 + $0x32c] ss:$16 sps:$4 sm:$0xff]   ;;  %v16381_v11 = vld [vmem:[#allocation11 + $0x128] ss:$16 sps:$4 sm:$0xff]  }
 0x451   :  { %v16384_v2 = vld [vmem:[#allocation11 + $0x328] ss:$16 sps:$4 sm:$0xff]  }
 0x453   :  { %5439 = vmatpush1.bf16.msra.mxu0 %v16339_v30  ;;  %5482 = vmatpush1.bf16.msra.mxu1 %v16342_v61  ;;  %v16389_v30 = vld [vmem:[#allocation11 + $0x10c] ss:$16 sps:$4 sm:$0xff]  }
 0x454   :  { %5440 = vmatprep.subr.bf16.mxu0 %v16347_v43  ;;  %5483 = vmatprep.subr.bf16.mxu1 %v16350_v55  ;;  %v16392_v61 = vld [vmem:[#allocation11 + $0x30c] ss:$16 sps:$4 sm:$0xff]   ;;  %v4343_v43 = vld [vmem:[#allocation14 + $0x1c0] sm:$0xff] }
 0x455   :  { %v4347_v55 = vld [vmem:[#allocation14 + $0x1e0] sm:$0xff] }
 0x457   :  { %5441 = vmatpush2.bf16.msra.mxu0 %v16345_v45  ;;  %5484 = vmatpush2.bf16.msra.mxu1 %v16348_v36  ;;  %v4471_v45 = vld [vmem:[#allocation14 + $0x5c0] sm:$0xff] }
 0x458   :  { %5442 = vmatprep.subr.bf16.mxu0 %v16353_v4  ;;  %5485 = vmatprep.subr.bf16.mxu1 %v16356_v0  ;;  %v4475_v36 = vld [vmem:[#allocation14 + $0x5e0] sm:$0xff] }
 0x459   :  { %v16387_v4 = vld [vmem:[#allocation11 + $0x108] ss:$16 sps:$4 sm:$0xff]  }
 0x45a   :  { %v16390_v0 = vld [vmem:[#allocation11 + $0x308] ss:$16 sps:$4 sm:$0xff]  }
 0x45b   :  { %5443 = vmatpush2.bf16.msra.mxu0 %v16351_v14  ;;  %5486 = vmatpush2.bf16.msra.mxu1 %v16354_v10  ;;  %v14078_v14 = vcombine.high %v4343_v43, %v4347_v55  ;;  %v14206_v10 = vcombine.high %v4471_v45, %v4475_v36 }
 0x45c   :  { %5444 = vmatprep.subr.bf16.mxu0 %v16359_v28  ;;  %5487 = vmatprep.subr.bf16.mxu1 %v16362_v42  ;;  %v4335_v28 = vld [vmem:[#allocation14 + $0x180] sm:$0xff] }
 0x45d   :  { %v4339_v42 = vld [vmem:[#allocation14 + $0x1a0] sm:$0xff] }
 0x45f   :  { %5445 = vmatpush2.bf16.msra.mxu0 %v16357_v23  ;;  %5488 = vmatpush2.bf16.msra.mxu1 %v16360_v33  ;;  %v4463_v23 = vld [vmem:[#allocation14 + $0x580] sm:$0xff] }
 0x460   :  { %5446 = vmatprep.subr.bf16.mxu0 %v16365_v37  ;;  %5489 = vmatprep.subr.bf16.mxu1 %v16368_v27  ;;  %v4467_v33 = vld [vmem:[#allocation14 + $0x5a0] sm:$0xff]  ;;  %v14077_v37 = vcombine.low %v4343_v43, %v4347_v55  ;;  %v14205_v27 = vcombine.low %v4471_v45, %v4475_v36 }
 0x461   :  { %v4311_v45 = vld [vmem:[#allocation14 + $0xc0] sm:$0xff] }
 0x462   :  { %v4315_v36 = vld [vmem:[#allocation14 + $0xe0] sm:$0xff] }
 0x463   :  { %5447 = vmatpush2.bf16.msra.mxu0 %v16363_v62  ;;  %5490 = vmatpush2.bf16.msra.mxu1 %v16366_v25  ;;  %v14070_v62 = vcombine.high %v4335_v28, %v4339_v42  ;;  %v14198_v25 = vcombine.high %v4463_v23, %v4467_v33 }
 0x464   :  { %5448 = vmatprep.subr.bf16.mxu0 %v16371_v17  ;;  %5491 = vmatprep.subr.bf16.mxu1 %v16374_v52  ;;  %v4327_v17 = vld [vmem:[#allocation14 + $0x140] sm:$0xff] }
 0x465   :  { %v4331_v52 = vld [vmem:[#allocation14 + $0x160] sm:$0xff] }
 0x467   :  { %5449 = vmatpush2.bf16.msra.mxu0 %v16369_v9  ;;  %5492 = vmatpush2.bf16.msra.mxu1 %v16372_v34  ;;  %v4455_v9 = vld [vmem:[#allocation14 + $0x540] sm:$0xff] }
 0x468   :  { %5450 = vmatprep.subr.bf16.mxu0 %v16377_v53  ;;  %5493 = vmatprep.subr.bf16.mxu1 %v16380_v1  ;;  %v4459_v34 = vld [vmem:[#allocation14 + $0x560] sm:$0xff]  ;;  %v14069_v53 = vcombine.low %v4335_v28, %v4339_v42  ;;  %v14197_v1 = vcombine.low %v4463_v23, %v4467_v33  ;;  %v14046_v28 = vcombine.high %v4311_v45, %v4315_v36 }
 0x469   :  { %v4303_v23 = vld [vmem:[#allocation14 + $0x80] sm:$0xff] }
 0x46a   :  { %v4307_v33 = vld [vmem:[#allocation14 + $0xa0] sm:$0xff] }
 0x46b   :  { %5451 = vmatpush2.bf16.msra.mxu0 %v16375_v29  ;;  %5494 = vmatpush2.bf16.msra.mxu1 %v16378_v26  ;;  %v14062_v29 = vcombine.high %v4327_v17, %v4331_v52  ;;  %v14190_v26 = vcombine.high %v4455_v9, %v4459_v34 }
 0x46c   :  { %5452 = vmatprep.subr.bf16.mxu0 %v16383_v44  ;;  %5495 = vmatprep.subr.bf16.mxu1 %v16386_v19  ;;  %v4319_v44 = vld [vmem:[#allocation14 + $0x100] sm:$0xff] }
 0x46d   :  { %v4323_v19 = vld [vmem:[#allocation14 + $0x120] sm:$0xff] }
 0x46e   :  { %v14054_v43 = vcombine.high %v4319_v44, %v4323_v19 }
 0x46f   :  { %5453 = vmatpush2.bf16.msra.mxu0 %v16381_v11  ;;  %5496 = vmatpush2.bf16.msra.mxu1 %v16384_v2  ;;  %v4447_v11 = vld [vmem:[#allocation14 + $0x500] sm:$0xff] }
 0x470   :  { %5454 = vmatprep.subr.bf16.mxu0 %v16389_v30  ;;  %5497 = vmatprep.subr.bf16.mxu1 %v16392_v61  ;;  %v4451_v2 = vld [vmem:[#allocation14 + $0x520] sm:$0xff]  ;;  %v14061_v30 = vcombine.low %v4327_v17, %v4331_v52  ;;  %v14189_v61 = vcombine.low %v4455_v9, %v4459_v34  ;;  %v14038_v17 = vcombine.high %v4303_v23, %v4307_v33 }
 0x471   :  { %v14182_v55 = vcombine.high %v4447_v11, %v4451_v2  ;;  %v4295_v9 = vld [vmem:[#allocation14 + $0x40] sm:$0xff] }
 0x472   :  { %v4299_v34 = vld [vmem:[#allocation14 + $0x60] sm:$0xff] }
 0x473   :  { %5455 = vmatpush2.bf16.msra.mxu0 %v16387_v4  ;;  %5498 = vmatpush2.bf16.msra.mxu1 %v16390_v0  ;;  %v4439_v4 = vld [vmem:[#allocation14 + $0x4c0] sm:$0xff] }
 0x474   :  { %6831 = vmatprep.subr.bf16.mxu0 %v14078_v14  ;;  %6874 = vmatprep.subr.bf16.mxu1 %v14206_v10  ;;  %v4443_v0 = vld [vmem:[#allocation14 + $0x4e0] sm:$0xff]  ;;  %v14053_v14 = vcombine.low %v4319_v44, %v4323_v19  ;;  %v14181_v10 = vcombine.low %v4447_v11, %v4451_v2  ;;  %v14030_v44 = vcombine.high %v4295_v9, %v4299_v34 }
 0x475   :  { %v14174_v42 = vcombine.high %v4439_v4, %v4443_v0  ;;  %v4287_v11 = vld [vmem:[#allocation14] sm:$0xff] }
 0x476   :  { %5457 = vmatmul.mubr.bf16.vlgmr.msra.gmra.mxu0 %v18143_v59  ;;  %5500 = vmatmul.mubr.bf16.vlgmr.msra.gmra.mxu1 %v18145_v40  ;;  %v4291_v2 = vld [vmem:[#allocation14 + $0x20] sm:$0xff] }
 0x477   :  { %6832 = vmatpush1.bf16.msra.mxu0 %v14077_v37  ;;  %6863 = vmatprep.mubr.bf16.mxu0 %v18139_v50  ;;  %v4431_v37 = vld [vmem:[#allocation14 + $0x480] sm:$0xff] }
 0x478   :  { %6875 = vmatpush1.bf16.msra.mxu1 %v14205_v27  ;;  %6906 = vmatprep.mubr.bf16.mxu1 %v18141_v18  ;;  %v4435_v27 = vld [vmem:[#allocation14 + $0x4a0] sm:$0xff] }
 0x479   :  { %6833 = vmatprep.subr.bf16.mxu0 %v14070_v62  ;;  %6876 = vmatprep.subr.bf16.mxu1 %v14198_v25  ;;  %v14045_v62 = vcombine.low %v4311_v45, %v4315_v36  ;;  %v14173_v25 = vcombine.low %v4439_v4, %v4443_v0  ;;  %v14166_v52 = vcombine.high %v4431_v37, %v4435_v27  ;;  %v4407_v4 = vld [vmem:[#allocation14 + $0x3c0] sm:$0xff] }
 0x47a   :  { %v14022_v45 = vcombine.high %v4287_v11, %v4291_v2  ;;  %v4411_v0 = vld [vmem:[#allocation14 + $0x3e0] sm:$0xff] }
 0x47b   :  { %6834 = vmatpush1.bf16.msra.mxu0 %v14069_v53  ;;  %v4423_v53 = vld [vmem:[#allocation14 + $0x440] sm:$0xff] }
 0x47c   :  { %6877 = vmatpush1.bf16.msra.mxu1 %v14197_v1  ;;  %6835 = vmatprep.subr.bf16.mxu0 %v14062_v29  ;;  %v4427_v1 = vld [vmem:[#allocation14 + $0x460] sm:$0xff]  ;;  %v14037_v29 = vcombine.low %v4303_v23, %v4307_v33  ;;  %v14142_v23 = vcombine.high %v4407_v4, %v4411_v0 }
 0x47d   :  { %6878 = vmatprep.subr.bf16.mxu1 %v14190_v26  ;;  %v14165_v26 = vcombine.low %v4431_v37, %v4435_v27  ;;  %v14158_v19 = vcombine.high %v4423_v53, %v4427_v1  ;;  %v4399_v37 = vld [vmem:[#allocation14 + $0x380] sm:$0xff] }
 0x47e   :  { %v4403_v27 = vld [vmem:[#allocation14 + $0x3a0] sm:$0xff] }
 0x47f   :  { %6836 = vmatpush1.bf16.msra.mxu0 %v14061_v30  ;;  %v4415_v30 = vld [vmem:[#allocation14 + $0x400] sm:$0xff] }
 0x480   :  { %6879 = vmatpush1.bf16.msra.mxu1 %v14189_v61  ;;  %6837 = vmatprep.subr.bf16.mxu0 %v14054_v43  ;;  %v4419_v61 = vld [vmem:[#allocation14 + $0x420] sm:$0xff]  ;;  %v14029_v43 = vcombine.low %v4295_v9, %v4299_v34  ;;  %v14134_v9 = vcombine.high %v4399_v37, %v4403_v27 }
 0x481   :  { %6880 = vmatprep.subr.bf16.mxu1 %v14182_v55  ;;  %v14157_v55 = vcombine.low %v4423_v53, %v4427_v1  ;;  %v14150_v36 = vcombine.high %v4415_v30, %v4419_v61  ;;  %v4391_v53 = vld [vmem:[#allocation14 + $0x340] sm:$0xff] }
 0x482   :  { %v4395_v1 = vld [vmem:[#allocation14 + $0x360] sm:$0xff] }
 0x483   :  { %6838 = vmatpush1.bf16.msra.mxu0 %v14053_v14  ;;  %v4535_v14 = vld [vmem:[#allocation14 + $0x7c0] sm:$0xff] }
 0x484   :  { %6881 = vmatpush1.bf16.msra.mxu1 %v14181_v10  ;;  %6839 = vmatprep.subr.bf16.mxu0 %v14046_v28  ;;  %v4539_v10 = vld [vmem:[#allocation14 + $0x7e0] sm:$0xff]  ;;  %v14021_v28 = vcombine.low %v4287_v11, %v4291_v2  ;;  %v14126_v11 = vcombine.high %v4391_v53, %v4395_v1 }
 0x485   :  { %6882 = vmatprep.subr.bf16.mxu1 %v14174_v42  ;;  %v14149_v42 = vcombine.low %v4415_v30, %v4419_v61  ;;  %v14270_v33 = vcombine.high %v4535_v14, %v4539_v10  ;;  %v4383_v30 = vld [vmem:[#allocation14 + $0x300] sm:$0xff] }
 0x486   :  { %v4387_v61 = vld [vmem:[#allocation14 + $0x320] sm:$0xff] }
 0x487   :  { %6840 = vmatpush1.bf16.msra.mxu0 %v14045_v62  ;;  %v4527_v62 = vld [vmem:[#allocation14 + $0x780] sm:$0xff] }
 0x488   :  { %6883 = vmatpush1.bf16.msra.mxu1 %v14173_v25  ;;  %6841 = vmatprep.subr.bf16.mxu0 %v14038_v17  ;;  %v4531_v25 = vld [vmem:[#allocation14 + $0x7a0] sm:$0xff]  ;;  %v14141_v17 = vcombine.low %v4407_v4, %v4411_v0  ;;  %v14118_v4 = vcombine.high %v4383_v30, %v4387_v61 }
 0x489   :  { %6884 = vmatprep.subr.bf16.mxu1 %v14166_v52  ;;  %v14269_v52 = vcombine.low %v4535_v14, %v4539_v10  ;;  %v14262_v34 = vcombine.high %v4527_v62, %v4531_v25  ;;  %v4375_v14 = vld [vmem:[#allocation14 + $0x2c0] sm:$0xff] }
 0x48a   :  { %v4379_v10 = vld [vmem:[#allocation14 + $0x2e0] sm:$0xff] }
 0x48b   :  { %6842 = vmatpush1.bf16.msra.mxu0 %v14037_v29  ;;  %v4519_v29 = vld [vmem:[#allocation14 + $0x740] sm:$0xff] }
 0x48c   :  { %6885 = vmatpush1.bf16.msra.mxu1 %v14165_v26  ;;  %6843 = vmatprep.subr.bf16.mxu0 %v14030_v44  ;;  %v4523_v26 = vld [vmem:[#allocation14 + $0x760] sm:$0xff]  ;;  %v14133_v44 = vcombine.low %v4399_v37, %v4403_v27  ;;  %v14110_v37 = vcombine.high %v4375_v14, %v4379_v10 }
 0x48d   :  { %6886 = vmatprep.subr.bf16.mxu1 %v14158_v19  ;;  %v14261_v19 = vcombine.low %v4527_v62, %v4531_v25  ;;  %v14254_v2 = vcombine.high %v4519_v29, %v4523_v26  ;;  %v4367_v62 = vld [vmem:[#allocation14 + $0x280] sm:$0xff] }
 0x48e   :  { %v4371_v25 = vld [vmem:[#allocation14 + $0x2a0] sm:$0xff] }
 0x48f   :  { %6844 = vmatpush1.bf16.msra.mxu0 %v14029_v43  ;;  %v4511_v43 = vld [vmem:[#allocation14 + $0x700] sm:$0xff] }
 0x490   :  { %6887 = vmatpush1.bf16.msra.mxu1 %v14157_v55  ;;  %6845 = vmatprep.subr.bf16.mxu0 %v14022_v45  ;;  %v4515_v55 = vld [vmem:[#allocation14 + $0x720] sm:$0xff]  ;;  %v14125_v45 = vcombine.low %v4391_v53, %v4395_v1  ;;  %v14102_v53 = vcombine.high %v4367_v62, %v4371_v25 }
 0x491   :  { %6888 = vmatprep.subr.bf16.mxu1 %v14150_v36  ;;  %v14253_v36 = vcombine.low %v4519_v29, %v4523_v26  ;;  %v14246_v0 = vcombine.high %v4511_v43, %v4515_v55  ;;  %v4359_v29 = vld [vmem:[#allocation14 + $0x240] sm:$0xff] }
 0x492   :  { %v4363_v26 = vld [vmem:[#allocation14 + $0x260] sm:$0xff] }
 0x493   :  { %6846 = vmatpush1.bf16.msra.mxu0 %v14021_v28  ;;  %v4503_v28 = vld [vmem:[#allocation14 + $0x6c0] sm:$0xff] }
 0x494   :  { %6889 = vmatpush1.bf16.msra.mxu1 %v14149_v42  ;;  %6847 = vmatprep.subr.bf16.mxu0 %v14142_v23  ;;  %v4507_v42 = vld [vmem:[#allocation14 + $0x6e0] sm:$0xff]  ;;  %v14117_v23 = vcombine.low %v4383_v30, %v4387_v61  ;;  %v14094_v30 = vcombine.high %v4359_v29, %v4363_v26 }
 0x495   :  { %6890 = vmatprep.subr.bf16.mxu1 %v14270_v33  ;;  %v14245_v33 = vcombine.low %v4511_v43, %v4515_v55  ;;  %v14238_v27 = vcombine.high %v4503_v28, %v4507_v42  ;;  %v4351_v43 = vld [vmem:[#allocation14 + $0x200] sm:$0xff] }
 0x496   :  { %v4355_v55 = vld [vmem:[#allocation14 + $0x220] sm:$0xff] }
 0x497   :  { %6848 = vmatpush2.bf16.msra.mxu0 %v14141_v17  ;;  %v4495_v17 = vld [vmem:[#allocation14 + $0x680] sm:$0xff] }
 0x498   :  { %6891 = vmatpush2.bf16.msra.mxu1 %v14269_v52  ;;  %6849 = vmatprep.subr.bf16.mxu0 %v14134_v9  ;;  %v4499_v52 = vld [vmem:[#allocation14 + $0x6a0] sm:$0xff]  ;;  %v14109_v9 = vcombine.low %v4375_v14, %v4379_v10  ;;  %v14086_v14 = vcombine.high %v4351_v43, %v4355_v55 }
 0x499   :  { %6892 = vmatprep.subr.bf16.mxu1 %v14262_v34  ;;  %v14237_v34 = vcombine.low %v4503_v28, %v4507_v42  ;;  %v14230_v1 = vcombine.high %v4495_v17, %v4499_v52  ;;  %v4344_v28 = vld [vmem:[#allocation14 + $0x1c8] sm:$0xff] }
 0x49a   :  { %v4348_v42 = vld [vmem:[#allocation14 + $0x1e8] sm:$0xff] }
 0x49b   :  { %6850 = vmatpush2.bf16.msra.mxu0 %v14133_v44  ;;  %v4487_v44 = vld [vmem:[#allocation14 + $0x640] sm:$0xff] }
 0x49c   :  { %6893 = vmatpush2.bf16.msra.mxu1 %v14261_v19  ;;  %6851 = vmatprep.subr.bf16.mxu0 %v14126_v11  ;;  %v4491_v19 = vld [vmem:[#allocation14 + $0x660] sm:$0xff]  ;;  %v14101_v11 = vcombine.low %v4367_v62, %v4371_v25  ;;  %v14080_v62 = vcombine.high %v4344_v28, %v4348_v42 }
 0x49d   :  { %6894 = vmatprep.subr.bf16.mxu1 %v14254_v2  ;;  %v14229_v2 = vcombine.low %v4495_v17, %v4499_v52  ;;  %v14222_v61 = vcombine.high %v4487_v44, %v4491_v19  ;;  %v4336_v17 = vld [vmem:[#allocation14 + $0x188] sm:$0xff] }
 0x49e   :  { %v4340_v52 = vld [vmem:[#allocation14 + $0x1a8] sm:$0xff] }
 0x49f   :  { %6852 = vmatpush2.bf16.msra.mxu0 %v14125_v45  ;;  %v4479_v45 = vld [vmem:[#allocation14 + $0x600] sm:$0xff] }
 0x4a0   :  { %6895 = vmatpush2.bf16.msra.mxu1 %v14253_v36  ;;  %6853 = vmatprep.subr.bf16.mxu0 %v14118_v4  ;;  %v4483_v36 = vld [vmem:[#allocation14 + $0x620] sm:$0xff]  ;;  %v14093_v4 = vcombine.low %v4359_v29, %v4363_v26  ;;  %v14072_v29 = vcombine.high %v4336_v17, %v4340_v52  ;;  %v4328_v26 = vld [vmem:[#allocation14 + $0x148] sm:$0xff] }
 0x4a1   :  { %6896 = vmatprep.subr.bf16.mxu1 %v14246_v0  ;;  %v14221_v0 = vcombine.low %v4487_v44, %v4491_v19  ;;  %v14214_v10 = vcombine.high %v4479_v45, %v4483_v36  ;;  %v4332_v44 = vld [vmem:[#allocation14 + $0x168] sm:$0xff] }
 0x4a3   :  { %6854 = vmatpush2.bf16.msra.mxu0 %v14117_v23  ;;  %v4472_v23 = vld [vmem:[#allocation14 + $0x5c8] sm:$0xff] }
 0x4a4   :  { %6897 = vmatpush2.bf16.msra.mxu1 %v14245_v33  ;;  %6855 = vmatprep.subr.bf16.mxu0 %v14110_v37  ;;  %v4476_v33 = vld [vmem:[#allocation14 + $0x5e8] sm:$0xff]  ;;  %v14085_v37 = vcombine.low %v4351_v43, %v4355_v55  ;;  %v14064_v43 = vcombine.high %v4328_v26, %v4332_v44 }
 0x4a5   :  { %6898 = vmatprep.subr.bf16.mxu1 %v14238_v27  ;;  %v14213_v27 = vcombine.low %v4479_v45, %v4483_v36  ;;  %v14208_v25 = vcombine.high %v4472_v23, %v4476_v33  ;;  %v4320_v45 = vld [vmem:[#allocation14 + $0x108] sm:$0xff] }
 0x4a6   :  { %v4324_v36 = vld [vmem:[#allocation14 + $0x128] sm:$0xff] }
 0x4a7   :  { %6856 = vmatpush2.bf16.msra.mxu0 %v14109_v9  ;;  %v14079_v9 = vcombine.low %v4344_v28, %v4348_v42  ;;  %v14056_v28 = vcombine.high %v4320_v45, %v4324_v36 }
 0x4a8   :  { %6899 = vmatpush2.bf16.msra.mxu1 %v14237_v34  ;;  %6857 = vmatprep.subr.bf16.mxu0 %v14102_v53  ;;  %v4464_v34 = vld [vmem:[#allocation14 + $0x588] sm:$0xff] }
 0x4a9   :  { %6900 = vmatprep.subr.bf16.mxu1 %v14230_v1  ;;  %v4468_v53 = vld [vmem:[#allocation14 + $0x5a8] sm:$0xff]  ;;  %v14207_v1 = vcombine.low %v4472_v23, %v4476_v33 }
 0x4aa   :  { %v14200_v19 = vcombine.high %v4464_v34, %v4468_v53  ;;  %v4312_v23 = vld [vmem:[#allocation14 + $0xc8] sm:$0xff] }
 0x4ab   :  { %6858 = vmatpush2.bf16.msra.mxu0 %v14101_v11  ;;  %v4456_v11 = vld [vmem:[#allocation14 + $0x548] sm:$0xff] }
 0x4ac   :  { %6901 = vmatpush2.bf16.msra.mxu1 %v14229_v2  ;;  %6859 = vmatprep.subr.bf16.mxu0 %v14094_v30  ;;  %v4460_v2 = vld [vmem:[#allocation14 + $0x568] sm:$0xff]  ;;  %v14071_v30 = vcombine.low %v4336_v17, %v4340_v52 }
 0x4ad   :  { %6902 = vmatprep.subr.bf16.mxu1 %v14222_v61  ;;  %v14199_v61 = vcombine.low %v4464_v34, %v4468_v53  ;;  %v14192_v55 = vcombine.high %v4456_v11, %v4460_v2  ;;  %v4316_v33 = vld [vmem:[#allocation14 + $0xe8] sm:$0xff] }
 0x4ae   :  { %v14048_v17 = vcombine.high %v4312_v23, %v4316_v33  ;;  %v4308_v34 = vld [vmem:[#allocation14 + $0xa8] sm:$0xff] }
 0x4af   :  { %6860 = vmatpush2.bf16.msra.mxu0 %v14093_v4  ;;  %v4448_v4 = vld [vmem:[#allocation14 + $0x508] sm:$0xff] }
 0x4b0   :  { %6903 = vmatpush2.bf16.msra.mxu1 %v14221_v0  ;;  %6861 = vmatprep.subr.bf16.mxu0 %v14086_v14  ;;  %v4452_v0 = vld [vmem:[#allocation14 + $0x528] sm:$0xff]  ;;  %v14063_v14 = vcombine.low %v4328_v26, %v4332_v44 }
 0x4b1   :  { %6904 = vmatprep.subr.bf16.mxu1 %v14214_v10  ;;  %v14191_v10 = vcombine.low %v4456_v11, %v4460_v2  ;;  %v14184_v42 = vcombine.high %v4448_v4, %v4452_v0  ;;  %v4432_v53 = vld [vmem:[#allocation14 + $0x488] sm:$0xff] }
 0x4b2   :  { %v4296_v11 = vld [vmem:[#allocation14 + $0x48] sm:$0xff] }
 0x4b3   :  { %6862 = vmatpush2.bf16.msra.mxu0 %v14085_v37  ;;  %v4440_v37 = vld [vmem:[#allocation14 + $0x4c8] sm:$0xff] }
 0x4b4   :  { %6905 = vmatpush2.bf16.msra.mxu1 %v14213_v27  ;;  %6917 = vmatprep.subr.bf16.mxu0 %v14080_v62  ;;  %v4444_v27 = vld [vmem:[#allocation14 + $0x4e8] sm:$0xff]  ;;  %v14055_v62 = vcombine.low %v4320_v45, %v4324_v36 }
 0x4b5   :  { %6960 = vmatprep.subr.bf16.mxu1 %v14208_v25  ;;  %v14183_v25 = vcombine.low %v4448_v4, %v4452_v0  ;;  %v14176_v52 = vcombine.high %v4440_v37, %v4444_v27  ;;  %v14175_v26 = vcombine.low %v4440_v37, %v4444_v27  ;;  %v4300_v2 = vld [vmem:[#allocation14 + $0x68] sm:$0xff] }
 0x4b6   :  { %6864 = vmatmul.mubr.bf16.vlgmr.msra.gmra.mxu0 %v18143_v59  ;;  %v14032_v45 = vcombine.high %v4296_v11, %v4300_v2  ;;  %v4288_v4 = vld [vmem:[#allocation14 + $0x8] sm:$0xff] }
 0x4b7   :  { %6907 = vmatmul.mubr.bf16.vlgmr.msra.gmra.mxu1 %v18145_v40  ;;  %6918 = vmatpush1.bf16.msra.mxu0 %v14079_v9  ;;  %v4304_v9 = vld [vmem:[#allocation14 + $0x88] sm:$0xff] }
 0x4b8   :  { %6949 = vmatprep.mubr.bf16.mxu0 %v18139_v50  ;;  %6961 = vmatpush1.bf16.msra.mxu1 %v14207_v1  ;;  %v4436_v1 = vld [vmem:[#allocation14 + $0x4a8] sm:$0xff]  ;;  %v14040_v44 = vcombine.high %v4304_v9, %v4308_v34 }
 0x4b9   :  { %6992 = vmatprep.mubr.bf16.mxu1 %v18141_v18  ;;  %6919 = vmatprep.subr.bf16.mxu0 %v14072_v29  ;;  %v14047_v29 = vcombine.low %v4312_v23, %v4316_v33  ;;  %v4292_v0 = vld [vmem:[#allocation14 + $0x28] sm:$0xff] }
 0x4ba   :  { %6962 = vmatprep.subr.bf16.mxu1 %v14200_v19  ;;  %v14168_v19 = vcombine.high %v4432_v53, %v4436_v1  ;;  %v14024_v23 = vcombine.high %v4288_v4, %v4292_v0  ;;  %v4408_v37 = vld [vmem:[#allocation14 + $0x3c8] sm:$0xff] }
 0x4bb   :  { %6920 = vmatpush1.bf16.msra.mxu0 %v14071_v30  ;;  %v4424_v30 = vld [vmem:[#allocation14 + $0x448] sm:$0xff] }
 0x4bc   :  { %6963 = vmatpush1.bf16.msra.mxu1 %v14199_v61  ;;  %6921 = vmatprep.subr.bf16.mxu0 %v14064_v43  ;;  %v4428_v61 = vld [vmem:[#allocation14 + $0x468] sm:$0xff]  ;;  %v14039_v43 = vcombine.low %v4304_v9, %v4308_v34 }
 0x4bd   :  { %6964 = vmatprep.subr.bf16.mxu1 %v14192_v55  ;;  %v14167_v55 = vcombine.low %v4432_v53, %v4436_v1  ;;  %v14160_v36 = vcombine.high %v4424_v30, %v4428_v61  ;;  %v4412_v27 = vld [vmem:[#allocation14 + $0x3e8] sm:$0xff] }
 0x4be   :  { %v14144_v9 = vcombine.high %v4408_v37, %v4412_v27  ;;  %v4400_v53 = vld [vmem:[#allocation14 + $0x388] sm:$0xff] }
 0x4bf   :  { %6922 = vmatpush1.bf16.msra.mxu0 %v14063_v14  ;;  %v4416_v14 = vld [vmem:[#allocation14 + $0x408] sm:$0xff] }
 0x4c0   :  { %6965 = vmatpush1.bf16.msra.mxu1 %v14191_v10  ;;  %6923 = vmatprep.subr.bf16.mxu0 %v14056_v28  ;;  %v4420_v10 = vld [vmem:[#allocation14 + $0x428] sm:$0xff]  ;;  %v14031_v28 = vcombine.low %v4296_v11, %v4300_v2 }
 0x4c1   :  { %6966 = vmatprep.subr.bf16.mxu1 %v14184_v42  ;;  %v14159_v42 = vcombine.low %v4424_v30, %v4428_v61  ;;  %v14152_v33 = vcombine.high %v4416_v14, %v4420_v10  ;;  %v4404_v1 = vld [vmem:[#allocation14 + $0x3a8] sm:$0xff] }
 0x4c2   :  { %v14136_v11 = vcombine.high %v4400_v53, %v4404_v1  ;;  %v4392_v30 = vld [vmem:[#allocation14 + $0x348] sm:$0xff] }
 0x4c3   :  { %6924 = vmatpush1.bf16.msra.mxu0 %v14055_v62  ;;  %v4536_v62 = vld [vmem:[#allocation14 + $0x7c8] sm:$0xff] }
 0x4c4   :  { %6967 = vmatpush1.bf16.msra.mxu1 %v14183_v25  ;;  %6925 = vmatprep.subr.bf16.mxu0 %v14048_v17  ;;  %v4540_v25 = vld [vmem:[#allocation14 + $0x7e8] sm:$0xff]  ;;  %v14023_v17 = vcombine.low %v4288_v4, %v4292_v0 }
 0x4c5   :  { %6968 = vmatprep.subr.bf16.mxu1 %v14176_v52  ;;  %v14151_v52 = vcombine.low %v4416_v14, %v4420_v10  ;;  %v14272_v34 = vcombine.high %v4536_v62, %v4540_v25  ;;  %v4396_v61 = vld [vmem:[#allocation14 + $0x368] sm:$0xff] }
 0x4c6   :  { %v14128_v4 = vcombine.high %v4392_v30, %v4396_v61  ;;  %v4384_v14 = vld [vmem:[#allocation14 + $0x308] sm:$0xff] }
 0x4c7   :  { %6926 = vmatpush1.bf16.msra.mxu0 %v14047_v29  ;;  %v4528_v29 = vld [vmem:[#allocation14 + $0x788] sm:$0xff] }
 0x4c8   :  { %6969 = vmatpush1.bf16.msra.mxu1 %v14175_v26  ;;  %6927 = vmatprep.subr.bf16.mxu0 %v14040_v44  ;;  %v4532_v26 = vld [vmem:[#allocation14 + $0x7a8] sm:$0xff]  ;;  %v14143_v44 = vcombine.low %v4408_v37, %v4412_v27 }
 0x4c9   :  { %6970 = vmatprep.subr.bf16.mxu1 %v14168_v19  ;;  %v14271_v19 = vcombine.low %v4536_v62, %v4540_v25  ;;  %v14264_v2 = vcombine.high %v4528_v29, %v4532_v26  ;;  %v4388_v10 = vld [vmem:[#allocation14 + $0x328] sm:$0xff] }
 0x4ca   :  { %v14120_v37 = vcombine.high %v4384_v14, %v4388_v10  ;;  %v4376_v62 = vld [vmem:[#allocation14 + $0x2c8] sm:$0xff] }
 0x4cb   :  { %6928 = vmatpush1.bf16.msra.mxu0 %v14039_v43  ;;  %v4520_v43 = vld [vmem:[#allocation14 + $0x748] sm:$0xff] }
 0x4cc   :  { %6971 = vmatpush1.bf16.msra.mxu1 %v14167_v55  ;;  %6929 = vmatprep.subr.bf16.mxu0 %v14032_v45  ;;  %v4524_v55 = vld [vmem:[#allocation14 + $0x768] sm:$0xff]  ;;  %v14135_v45 = vcombine.low %v4400_v53, %v4404_v1 }
 0x4cd   :  { %6972 = vmatprep.subr.bf16.mxu1 %v14160_v36  ;;  %v14263_v36 = vcombine.low %v4528_v29, %v4532_v26  ;;  %v14256_v0 = vcombine.high %v4520_v43, %v4524_v55  ;;  %v4380_v25 = vld [vmem:[#allocation14 + $0x2e8] sm:$0xff] }
 0x4ce   :  { %v14112_v53 = vcombine.high %v4376_v62, %v4380_v25  ;;  %v4368_v29 = vld [vmem:[#allocation14 + $0x288] sm:$0xff] }
 0x4cf   :  { %6930 = vmatpush1.bf16.msra.mxu0 %v14031_v28  ;;  %v4512_v28 = vld [vmem:[#allocation14 + $0x708] sm:$0xff] }
 0x4d0   :  { %6973 = vmatpush1.bf16.msra.mxu1 %v14159_v42  ;;  %6931 = vmatprep.subr.bf16.mxu0 %v14024_v23  ;;  %v4516_v42 = vld [vmem:[#allocation14 + $0x728] sm:$0xff]  ;;  %v14127_v23 = vcombine.low %v4392_v30, %v4396_v61 }
 0x4d1   :  { %6974 = vmatprep.subr.bf16.mxu1 %v14152_v33  ;;  %v14255_v33 = vcombine.low %v4520_v43, %v4524_v55  ;;  %v14248_v27 = vcombine.high %v4512_v28, %v4516_v42  ;;  %v4372_v26 = vld [vmem:[#allocation14 + $0x2a8] sm:$0xff] }
 0x4d2   :  { %v14104_v30 = vcombine.high %v4368_v29, %v4372_v26  ;;  %v4360_v43 = vld [vmem:[#allocation14 + $0x248] sm:$0xff] }
 0x4d3   :  { %6932 = vmatpush1.bf16.msra.mxu0 %v14023_v17  ;;  %v4504_v17 = vld [vmem:[#allocation14 + $0x6c8] sm:$0xff] }
 0x4d4   :  { %6975 = vmatpush1.bf16.msra.mxu1 %v14151_v52  ;;  %6933 = vmatprep.subr.bf16.mxu0 %v14144_v9  ;;  %v4508_v52 = vld [vmem:[#allocation14 + $0x6e8] sm:$0xff]  ;;  %v14119_v9 = vcombine.low %v4384_v14, %v4388_v10 }
 0x4d5   :  { %6976 = vmatprep.subr.bf16.mxu1 %v14272_v34  ;;  %v14247_v34 = vcombine.low %v4512_v28, %v4516_v42  ;;  %v14240_v1 = vcombine.high %v4504_v17, %v4508_v52  ;;  %v4364_v55 = vld [vmem:[#allocation14 + $0x268] sm:$0xff] }
 0x4d6   :  { %v14096_v14 = vcombine.high %v4360_v43, %v4364_v55  ;;  %v4352_v28 = vld [vmem:[#allocation14 + $0x208] sm:$0xff] }
 0x4d7   :  { %6934 = vmatpush2.bf16.msra.mxu0 %v14143_v44  ;;  %v4496_v44 = vld [vmem:[#allocation14 + $0x688] sm:$0xff] }
 0x4d8   :  { %6977 = vmatpush2.bf16.msra.mxu1 %v14271_v19  ;;  %6935 = vmatprep.subr.bf16.mxu0 %v14136_v11  ;;  %v4500_v19 = vld [vmem:[#allocation14 + $0x6a8] sm:$0xff]  ;;  %v14111_v11 = vcombine.low %v4376_v62, %v4380_v25 }
 0x4d9   :  { %6978 = vmatprep.subr.bf16.mxu1 %v14264_v2  ;;  %v14239_v2 = vcombine.low %v4504_v17, %v4508_v52  ;;  %v14232_v61 = vcombine.high %v4496_v44, %v4500_v19  ;;  %v4356_v42 = vld [vmem:[#allocation14 + $0x228] sm:$0xff]  ;;  %v4345_v17 = vld [vmem:[#allocation14 + $0x1d0] sm:$0xff] }
 0x4da   :  { %v14088_v62 = vcombine.high %v4352_v28, %v4356_v42  ;;  %v4349_v52 = vld [vmem:[#allocation14 + $0x1f0] sm:$0xff] }
 0x4db   :  { %6936 = vmatpush2.bf16.msra.mxu0 %v14135_v45  ;;  %v4488_v45 = vld [vmem:[#allocation14 + $0x648] sm:$0xff] }
 0x4dc   :  { %6979 = vmatpush2.bf16.msra.mxu1 %v14263_v36  ;;  %6937 = vmatprep.subr.bf16.mxu0 %v14128_v4  ;;  %v4492_v36 = vld [vmem:[#allocation14 + $0x668] sm:$0xff]  ;;  %v14103_v4 = vcombine.low %v4368_v29, %v4372_v26  ;;  %v14082_v29 = vcombine.high %v4345_v17, %v4349_v52 }
 0x4dd   :  { %6980 = vmatprep.subr.bf16.mxu1 %v14256_v0  ;;  %v14231_v0 = vcombine.low %v4496_v44, %v4500_v19  ;;  %v14224_v10 = vcombine.high %v4488_v45, %v4492_v36  ;;  %v4337_v44 = vld [vmem:[#allocation14 + $0x190] sm:$0xff] }
 0x4de   :  { %v4341_v19 = vld [vmem:[#allocation14 + $0x1b0] sm:$0xff] }
 0x4df   :  { %6938 = vmatpush2.bf16.msra.mxu0 %v14127_v23  ;;  %v4480_v23 = vld [vmem:[#allocation14 + $0x608] sm:$0xff] }
 0x4e0   :  { %6981 = vmatpush2.bf16.msra.mxu1 %v14255_v33  ;;  %6939 = vmatprep.subr.bf16.mxu0 %v14120_v37  ;;  %v4484_v33 = vld [vmem:[#allocation14 + $0x628] sm:$0xff]  ;;  %v14095_v37 = vcombine.low %v4360_v43, %v4364_v55  ;;  %v18161_v43 = vld [vmem:[#allocation13] sm:$0xf] }
 0x4e1   :  { %6982 = vmatprep.subr.bf16.mxu1 %v14248_v27  ;;  %v14223_v27 = vcombine.low %v4488_v45, %v4492_v36  ;;  %v14216_v25 = vcombine.high %v4480_v23, %v4484_v33  ;;  %v18165_v55 = vrot.slane %v18161_v43, %v17762_v46  ;;  %v14074_v45 = vcombine.high %v4337_v44, %v4341_v19  ;;  %v4329_v36 = vld [vmem:[#allocation14 + $0x150] sm:$0xff] }
 0x4e3   :  { %6940 = vmatpush2.bf16.msra.mxu0 %v14119_v9  ;;  %v4473_v9 = vld [vmem:[#allocation14 + $0x5d0] sm:$0xff] }
 0x4e4   :  { %6983 = vmatpush2.bf16.msra.mxu1 %v14247_v34  ;;  %6941 = vmatprep.subr.bf16.mxu0 %v14112_v53  ;;  %v4477_v34 = vld [vmem:[#allocation14 + $0x5f0] sm:$0xff]  ;;  %v14087_v53 = vcombine.low %v4352_v28, %v4356_v42 }
 0x4e5   :  { %6984 = vmatprep.subr.bf16.mxu1 %v14240_v1  ;;  %v14215_v1 = vcombine.low %v4480_v23, %v4484_v33  ;;  %v14210_v26 = vcombine.high %v4473_v9, %v4477_v34  ;;  %v4457_v28 = vld [vmem:[#allocation14 + $0x550] sm:$0xff]  ;;  %v14073_v23 = vcombine.low %v4337_v44, %v4341_v19 }
 0x4e6   :  { %v4461_v42 = vld [vmem:[#allocation14 + $0x570] sm:$0xff] }
 0x4e7   :  { %6942 = vmatpush2.bf16.msra.mxu0 %v14111_v11  ;;  %v14081_v11 = vcombine.low %v4345_v17, %v4349_v52  ;;  %v4321_v17 = vld [vmem:[#allocation14 + $0x110] sm:$0xff] }
 0x4e8   :  { %6985 = vmatpush2.bf16.msra.mxu1 %v14239_v2  ;;  %6943 = vmatprep.subr.bf16.mxu0 %v14104_v30  ;;  %v4465_v2 = vld [vmem:[#allocation14 + $0x590] sm:$0xff] }
 0x4e9   :  { %6986 = vmatprep.subr.bf16.mxu1 %v14232_v61  ;;  %v4469_v30 = vld [vmem:[#allocation14 + $0x5b0] sm:$0xff]  ;;  %v14209_v61 = vcombine.low %v4473_v9, %v4477_v34 }
 0x4ea   :  { %v4325_v52 = vld [vmem:[#allocation14 + $0x130] sm:$0xff] }
 0x4eb   :  { %6944 = vmatpush2.bf16.msra.mxu0 %v14103_v4  ;;  %v4333_v4 = vld [vmem:[#allocation14 + $0x170] sm:$0xff]  ;;  %v14058_v44 = vcombine.high %v4321_v17, %v4325_v52 }
 0x4ec   :  { %6987 = vmatpush2.bf16.msra.mxu1 %v14231_v0  ;;  %6945 = vmatprep.subr.bf16.mxu0 %v14096_v14  ;;  %v4449_v34 = vld [vmem:[#allocation14 + $0x510] sm:$0xff] }
 0x4ed   :  { %6988 = vmatprep.subr.bf16.mxu1 %v14224_v10  ;;  %v14202_v10 = vcombine.high %v4465_v2, %v4469_v30 }
 0x4ef   :  { %6946 = vmatpush2.bf16.msra.mxu0 %v14095_v37  ;;  %v14201_v37 = vcombine.low %v4465_v2, %v4469_v30  ;;  %v4317_v2 = vld [vmem:[#allocation14 + $0xf0] sm:$0xff] }
 0x4f0   :  { %6989 = vmatpush2.bf16.msra.mxu1 %v14223_v27  ;;  %6947 = vmatprep.subr.bf16.mxu0 %v14088_v62  ;;  %v14066_v27 = vcombine.high %v4329_v36, %v4333_v4  ;;  %v4441_v30 = vld [vmem:[#allocation14 + $0x4d0] sm:$0xff] }
 0x4f1   :  { %6990 = vmatprep.subr.bf16.mxu1 %v14216_v25  ;;  %v14194_v25 = vcombine.high %v4457_v28, %v4461_v42 }
 0x4f3   :  { %6948 = vmatpush2.bf16.msra.mxu0 %v14087_v53  ;;  %v4453_v53 = vld [vmem:[#allocation14 + $0x530] sm:$0xff] }
 0x4f4   :  { %6991 = vmatpush2.bf16.msra.mxu1 %v14215_v1  ;;  %7003 = vmatprep.subr.bf16.mxu0 %v14082_v29  ;;  %v14065_v29 = vcombine.low %v4329_v36, %v4333_v4  ;;  %v14186_v19 = vcombine.high %v4449_v34, %v4453_v53  ;;  %v4309_v36 = vld [vmem:[#allocation14 + $0xb0] sm:$0xff] }
 0x4f5   :  { %7046 = vmatprep.subr.bf16.mxu1 %v14210_v26  ;;  %v14193_v26 = vcombine.low %v4457_v28, %v4461_v42  ;;  %v4433_v4 = vld [vmem:[#allocation14 + $0x490] sm:$0xff] }
 0x4f6   :  { %6950 = vmatmul.mubr.bf16.vlgmr.msra.gmra.mxu0 %v18143_v59  ;;  %v18168_v0 = vpop.f32.mrf.mxu0  ;;  %v18170_v14 = vpop.f32.mrf.mxu1 }
 0x4f7   :  { %6993 = vmatmul.mubr.bf16.vlgmr.msra.gmra.mxu1 %v18145_v40  ;;  %7004 = vmatpush1.bf16.msra.mxu0 %v14081_v11  ;;  %v4313_v11 = vld [vmem:[#allocation14 + $0xd0] sm:$0xff] }
 0x4f8   :  { %7035 = vmatprep.mubr.bf16.mxu0 %v18139_v50  ;;  %7047 = vmatpush1.bf16.msra.mxu1 %v14209_v61  ;;  %v5374_v33 = vpop.f32.mrf.mxu0  ;;  %v5417_v9 = vpop.f32.mrf.mxu1  ;;  %v4445_v61 = vld [vmem:[#allocation14 + $0x4f0] sm:$0xff]  ;;  %v14049_v28 = vcombine.low %v4313_v11, %v4317_v2 }
 0x4f9   :  { %7078 = vmatprep.mubr.bf16.mxu1 %v18141_v18  ;;  %v5375_v62 = vadd.f32 %v5374_v33, %v18165_v55  ;;  %7005 = vmatprep.subr.bf16.mxu0 %v14074_v45  ;;  %v14057_v45 = vcombine.low %v4321_v17, %v4325_v52  ;;  %v14050_v33 = vcombine.high %v4313_v11, %v4317_v2  ;;  %v4301_v17 = vld [vmem:[#allocation14 + $0x70] sm:$0xff] }
 0x4fa   :  { %7048 = vmatprep.subr.bf16.mxu1 %v14202_v10  ;;  %v14185_v10 = vcombine.low %v4449_v34, %v4453_v53  ;;  %v14177_v42 = vcombine.low %v4441_v30, %v4445_v61  ;;  %v4425_v52 = vld [vmem:[#allocation14 + $0x450] sm:$0xff] }
 0x4fb   :  { %v18176_v1 = vadd.f32 %v5417_v9, %v5375_v62  ;;  %7006 = vmatpush1.bf16.msra.mxu0 %v14073_v23  ;;  %v14178_v62 = vcombine.high %v4441_v30, %v4445_v61  ;;  %v4305_v23 = vld [vmem:[#allocation14 + $0x90] sm:$0xff] }
 0x4fc   :  { %7049 = vmatpush1.bf16.msra.mxu1 %v14201_v37  ;;  %7007 = vmatprep.subr.bf16.mxu0 %v14066_v27  ;;  %v4437_v37 = vld [vmem:[#allocation14 + $0x4b0] sm:$0xff]  ;;  %v14042_v27 = vcombine.high %v4305_v23, %v4309_v36  ;;  %v14041_v34 = vcombine.low %v4305_v23, %v4309_v36 }
 0x4fd   :  { %7050 = vmatprep.subr.bf16.mxu1 %v14194_v25  ;;  %v14170_v25 = vcombine.high %v4433_v4, %v4437_v37  ;;  %v4297_v9 = vld [vmem:[#allocation14 + $0x50] sm:$0xff]  ;;  %v14169_v53 = vcombine.low %v4433_v4, %v4437_v37 }
 0x4fe   :  { %v4293_v11 = vld [vmem:[#allocation14 + $0x30] sm:$0xff]  ;;  %v14033_v30 = vcombine.low %v4297_v9, %v4301_v17 }
 0x4ff   :  { %7008 = vmatpush1.bf16.msra.mxu0 %v14065_v29  ;;  %v4429_v29 = vld [vmem:[#allocation14 + $0x470] sm:$0xff] }
 0x500   :  { %7051 = vmatpush1.bf16.msra.mxu1 %v14193_v26  ;;  %7009 = vmatprep.subr.bf16.mxu0 %v14058_v44  ;;  %v14034_v26 = vcombine.high %v4297_v9, %v4301_v17  ;;  %v14162_v44 = vcombine.high %v4425_v52, %v4429_v29  ;;  %v4417_v2 = vld [vmem:[#allocation14 + $0x410] sm:$0xff]  ;;  %v14161_v61 = vcombine.low %v4425_v52, %v4429_v29 }
 0x501   :  { %7052 = vmatprep.subr.bf16.mxu1 %v14186_v19  ;;  %v4289_v19 = vld [vmem:[#allocation14 + $0x10] sm:$0xff] }
 0x502   :  { %v4413_v23 = vld [vmem:[#allocation14 + $0x3f0] sm:$0xff]  ;;  %v14025_v4 = vcombine.low %v4289_v19, %v4293_v11 }
 0x503   :  { %7010 = vmatpush1.bf16.msra.mxu0 %v14057_v45  ;;  %v4421_v45 = vld [vmem:[#allocation14 + $0x430] sm:$0xff] }
 0x504   :  { %7053 = vmatpush1.bf16.msra.mxu1 %v14185_v10  ;;  %7011 = vmatprep.subr.bf16.mxu0 %v14050_v33  ;;  %v14026_v10 = vcombine.high %v4289_v19, %v4293_v11  ;;  %v14154_v33 = vcombine.high %v4417_v2, %v4421_v45  ;;  %v4537_v36 = vld [vmem:[#allocation14 + $0x7d0] sm:$0xff]  ;;  %v14153_v37 = vcombine.low %v4417_v2, %v4421_v45 }
 0x505   :  { %7054 = vmatprep.subr.bf16.mxu1 %v14178_v62  ;;  %v4409_v62 = vld [vmem:[#allocation14 + $0x3d0] sm:$0xff] }
 0x506   :  { %v4405_v9 = vld [vmem:[#allocation14 + $0x3b0] sm:$0xff]  ;;  %v14145_v52 = vcombine.low %v4409_v62, %v4413_v23 }
 0x507   :  { %7012 = vmatpush1.bf16.msra.mxu0 %v14049_v28  ;;  %v4541_v28 = vld [vmem:[#allocation14 + $0x7f0] sm:$0xff] }
 0x508   :  { %7055 = vmatpush1.bf16.msra.mxu1 %v14177_v42  ;;  %7013 = vmatprep.subr.bf16.mxu0 %v14042_v27  ;;  %v14146_v42 = vcombine.high %v4409_v62, %v4413_v23  ;;  %v14274_v27 = vcombine.high %v4537_v36, %v4541_v28  ;;  %v4529_v17 = vld [vmem:[#allocation14 + $0x790] sm:$0xff]  ;;  %v14273_v29 = vcombine.low %v4537_v36, %v4541_v28 }
 0x509   :  { %7056 = vmatprep.subr.bf16.mxu1 %v14170_v25  ;;  %v4401_v25 = vld [vmem:[#allocation14 + $0x390] sm:$0xff] }
 0x50a   :  { %v4397_v19 = vld [vmem:[#allocation14 + $0x370] sm:$0xff]  ;;  %v14137_v2 = vcombine.low %v4401_v25, %v4405_v9 }
 0x50b   :  { %7014 = vmatpush1.bf16.msra.mxu0 %v14041_v34  ;;  %v4533_v34 = vld [vmem:[#allocation14 + $0x7b0] sm:$0xff] }
 0x50c   :  { %7057 = vmatpush1.bf16.msra.mxu1 %v14169_v53  ;;  %7015 = vmatprep.subr.bf16.mxu0 %v14034_v26  ;;  %v14138_v53 = vcombine.high %v4401_v25, %v4405_v9  ;;  %v14266_v26 = vcombine.high %v4529_v17, %v4533_v34  ;;  %v4521_v11 = vld [vmem:[#allocation14 + $0x750] sm:$0xff]  ;;  %v14265_v45 = vcombine.low %v4529_v17, %v4533_v34 }
 0x50d   :  { %7058 = vmatprep.subr.bf16.mxu1 %v14162_v44  ;;  %v4393_v44 = vld [vmem:[#allocation14 + $0x350] sm:$0xff] }
 0x50e   :  { %v4389_v62 = vld [vmem:[#allocation14 + $0x330] sm:$0xff]  ;;  %v14129_v36 = vcombine.low %v4393_v44, %v4397_v19 }
 0x50f   :  { %7016 = vmatpush1.bf16.msra.mxu0 %v14033_v30  ;;  %v4525_v30 = vld [vmem:[#allocation14 + $0x770] sm:$0xff] }
 0x510   :  { %7059 = vmatpush1.bf16.msra.mxu1 %v14161_v61  ;;  %7017 = vmatprep.subr.bf16.mxu0 %v14026_v10  ;;  %v14130_v61 = vcombine.high %v4393_v44, %v4397_v19  ;;  %v14258_v10 = vcombine.high %v4521_v11, %v4525_v30  ;;  %v4513_v23 = vld [vmem:[#allocation14 + $0x710] sm:$0xff]  ;;  %v14257_v28 = vcombine.low %v4521_v11, %v4525_v30 }
 0x511   :  { %7060 = vmatprep.subr.bf16.mxu1 %v14154_v33  ;;  %v4385_v33 = vld [vmem:[#allocation14 + $0x310] sm:$0xff] }
 0x512   :  { %v4381_v25 = vld [vmem:[#allocation14 + $0x2f0] sm:$0xff]  ;;  %v14121_v17 = vcombine.low %v4385_v33, %v4389_v62 }
 0x513   :  { %7018 = vmatpush1.bf16.msra.mxu0 %v14025_v4  ;;  %v4517_v4 = vld [vmem:[#allocation14 + $0x730] sm:$0xff] }
 0x514   :  { %7061 = vmatpush1.bf16.msra.mxu1 %v14153_v37  ;;  %7019 = vmatprep.subr.bf16.mxu0 %v14146_v42  ;;  %v14122_v37 = vcombine.high %v4385_v33, %v4389_v62  ;;  %v14250_v42 = vcombine.high %v4513_v23, %v4517_v4  ;;  %v4505_v9 = vld [vmem:[#allocation14 + $0x6d0] sm:$0xff]  ;;  %v14249_v34 = vcombine.low %v4513_v23, %v4517_v4 }
 0x515   :  { %7062 = vmatprep.subr.bf16.mxu1 %v14274_v27  ;;  %v4377_v27 = vld [vmem:[#allocation14 + $0x2d0] sm:$0xff] }
 0x516   :  { %v4373_v44 = vld [vmem:[#allocation14 + $0x2b0] sm:$0xff]  ;;  %v14113_v11 = vcombine.low %v4377_v27, %v4381_v25 }
 0x517   :  { %7020 = vmatpush2.bf16.msra.mxu0 %v14145_v52  ;;  %v4509_v52 = vld [vmem:[#allocation14 + $0x6f0] sm:$0xff] }
 0x518   :  { %7063 = vmatpush2.bf16.msra.mxu1 %v14273_v29  ;;  %7021 = vmatprep.subr.bf16.mxu0 %v14138_v53  ;;  %v14114_v29 = vcombine.high %v4377_v27, %v4381_v25  ;;  %v14242_v53 = vcombine.high %v4505_v9, %v4509_v52  ;;  %v4497_v19 = vld [vmem:[#allocation14 + $0x690] sm:$0xff]  ;;  %v14241_v30 = vcombine.low %v4505_v9, %v4509_v52 }
 0x519   :  { %7064 = vmatprep.subr.bf16.mxu1 %v14266_v26  ;;  %v4369_v26 = vld [vmem:[#allocation14 + $0x290] sm:$0xff] }
 0x51a   :  { %v4365_v33 = vld [vmem:[#allocation14 + $0x270] sm:$0xff]  ;;  %v14105_v23 = vcombine.low %v4369_v26, %v4373_v44 }
 0x51b   :  { %7022 = vmatpush2.bf16.msra.mxu0 %v14137_v2  ;;  %v4501_v2 = vld [vmem:[#allocation14 + $0x6b0] sm:$0xff] }
 0x51c   :  { %7065 = vmatpush2.bf16.msra.mxu1 %v14265_v45  ;;  %7023 = vmatprep.subr.bf16.mxu0 %v14130_v61  ;;  %v14106_v45 = vcombine.high %v4369_v26, %v4373_v44  ;;  %v14234_v61 = vcombine.high %v4497_v19, %v4501_v2  ;;  %v4489_v62 = vld [vmem:[#allocation14 + $0x650] sm:$0xff]  ;;  %v14233_v4 = vcombine.low %v4497_v19, %v4501_v2  ;;  %v4350_v26 = vld [vmem:[#allocation14 + $0x1f8] sm:$0xff]  ;;  %v18178_v2 = vpop.f32.mrf.mxu0 }
 0x51d   :  { %7066 = vmatprep.subr.bf16.mxu1 %v14258_v10  ;;  %v4361_v10 = vld [vmem:[#allocation14 + $0x250] sm:$0xff]  ;;  %v4474_v44 = vld [vmem:[#allocation14 + $0x5d8] sm:$0xff] }
 0x51e   :  { %v4357_v27 = vld [vmem:[#allocation14 + $0x230] sm:$0xff]  ;;  %v14097_v9 = vcombine.low %v4361_v10, %v4365_v33 }
 0x51f   :  { %7024 = vmatpush2.bf16.msra.mxu0 %v14129_v36  ;;  %v4493_v36 = vld [vmem:[#allocation14 + $0x670] sm:$0xff] }
 0x520   :  { %7067 = vmatpush2.bf16.msra.mxu1 %v14257_v28  ;;  %7025 = vmatprep.subr.bf16.mxu0 %v14122_v37  ;;  %v14098_v28 = vcombine.high %v4361_v10, %v4365_v33  ;;  %v14226_v37 = vcombine.high %v4489_v62, %v4493_v36  ;;  %v4481_v25 = vld [vmem:[#allocation14 + $0x610] sm:$0xff]  ;;  %v14225_v52 = vcombine.low %v4489_v62, %v4493_v36  ;;  %v4338_v33 = vld [vmem:[#allocation14 + $0x198] sm:$0xff] }
 0x521   :  { %7068 = vmatprep.subr.bf16.mxu1 %v14250_v42  ;;  %v4353_v42 = vld [vmem:[#allocation14 + $0x210] sm:$0xff]  ;;  %v4342_v62 = vld [vmem:[#allocation14 + $0x1b8] sm:$0xff]  ;;  %v4689_v36 = vrot.slane %v18161_v43, %v17663_v24 }
 0x522   :  { %v14089_v19 = vcombine.low %v4353_v42, %v4357_v27 }
 0x523   :  { %7026 = vmatpush2.bf16.msra.mxu0 %v14121_v17  ;;  %v4485_v17 = vld [vmem:[#allocation14 + $0x630] sm:$0xff] }
 0x524   :  { %7069 = vmatpush2.bf16.msra.mxu1 %v14249_v34  ;;  %7027 = vmatprep.subr.bf16.mxu0 %v14114_v29  ;;  %v14090_v34 = vcombine.high %v4353_v42, %v4357_v27  ;;  %v14218_v29 = vcombine.high %v4481_v25, %v4485_v17 }
 0x525   :  { %7070 = vmatprep.subr.bf16.mxu1 %v14242_v53  ;;  %v4346_v53 = vld [vmem:[#allocation14 + $0x1d8] sm:$0xff] }
 0x527   :  { %7028 = vmatpush2.bf16.msra.mxu0 %v14113_v11  ;;  %v4478_v11 = vld [vmem:[#allocation14 + $0x5f8] sm:$0xff] }
 0x528   :  { %7071 = vmatpush2.bf16.msra.mxu1 %v14241_v30  ;;  %7029 = vmatprep.subr.bf16.mxu0 %v14106_v45  ;;  %v18180_v30 = vpop.f32.mrf.mxu1  ;;  %v14217_v45 = vcombine.low %v4481_v25, %v4485_v17  ;;  %v14212_v10 = vcombine.high %v4474_v44, %v4478_v11  ;;  %v14211_v27 = vcombine.low %v4474_v44, %v4478_v11 }
 0x529   :  { %7072 = vmatprep.subr.bf16.mxu1 %v14234_v61  ;;  %v14084_v61 = vcombine.high %v4346_v53, %v4350_v26  ;;  %v18190_v25 = vrot.slane %v18161_v43, %v17765_v47  ;;  %v14076_v17 = vcombine.high %v4338_v33, %v4342_v62  ;;  %v14075_v44 = vcombine.low %v4338_v33, %v4342_v62  ;;  %v4450_v33 = vld [vmem:[#allocation14 + $0x518] sm:$0xff] }
 0x52a   :  { %v18186_v42 = vpop.f32.mrf.mxu1  ;;  %v4454_v62 = vld [vmem:[#allocation14 + $0x538] sm:$0xff] }
 0x52b   :  { %7030 = vmatpush2.bf16.msra.mxu0 %v14105_v23  ;;  %v14083_v23 = vcombine.low %v4346_v53, %v4350_v26  ;;  %v4458_v26 = vld [vmem:[#allocation14 + $0x558] sm:$0xff] }
 0x52c   :  { %7073 = vmatpush2.bf16.msra.mxu1 %v14233_v4  ;;  %7031 = vmatprep.subr.bf16.mxu0 %v14098_v28  ;;  %v4466_v4 = vld [vmem:[#allocation14 + $0x598] sm:$0xff] }
 0x52d   :  { %7074 = vmatprep.subr.bf16.mxu1 %v14226_v37  ;;  %v4470_v28 = vld [vmem:[#allocation14 + $0x5b8] sm:$0xff]  ;;  %v18184_v37 = vpop.f32.mrf.mxu0 }
 0x52e   :  { %v14204_v53 = vcombine.high %v4466_v4, %v4470_v28 }
 0x52f   :  { %7032 = vmatpush2.bf16.msra.mxu0 %v14097_v9  ;;  %v4330_v9 = vld [vmem:[#allocation14 + $0x158] sm:$0xff] }
 0x530   :  { %7075 = vmatpush2.bf16.msra.mxu1 %v14225_v52  ;;  %7033 = vmatprep.subr.bf16.mxu0 %v14090_v34  ;;  %v4334_v52 = vld [vmem:[#allocation14 + $0x178] sm:$0xff] }
 0x531   :  { %7076 = vmatprep.subr.bf16.mxu1 %v14218_v29 }
 0x533   :  { %7034 = vmatpush2.bf16.msra.mxu0 %v14089_v19  ;;  %v4462_v19 = vld [vmem:[#allocation14 + $0x578] sm:$0xff] }
 0x534   :  { %7077 = vmatpush2.bf16.msra.mxu1 %v14217_v45  ;;  %7089 = vmatprep.subr.bf16.mxu0 %v14084_v61  ;;  %v14203_v61 = vcombine.low %v4466_v4, %v4470_v28  ;;  %v14196_v12 = vcombine.high %v4458_v26, %v4462_v19  ;;  %v14067_v4 = vcombine.low %v4330_v9, %v4334_v52 }
 0x535   :  { %7132 = vmatprep.subr.bf16.mxu1 %v14212_v10  ;;  %v14068_v10 = vcombine.high %v4330_v9, %v4334_v52  ;;  %v4306_v9 = vld [vmem:[#allocation14 + $0x98] sm:$0xff] }
 0x536   :  { %v5458_v34 = vpop.f32.mrf.mxu0  ;;  %v5501_v29 = vpop.f32.mrf.mxu1  ;;  %7036 = vmatmul.mubr.bf16.vlgmr.msra.gmra.mxu0 %v18143_v59  ;;  %v4310_v52 = vld [vmem:[#allocation14 + $0xb8] sm:$0xff] }
 0x537   :  { %v5459_v15 = vadd.f32 %v5458_v34, %v4689_v36  ;;  %7079 = vmatmul.mubr.bf16.vlgmr.msra.gmra.mxu1 %v18145_v40  ;;  %7090 = vmatpush1.bf16.msra.mxu0 %v14083_v23  ;;  %v4322_v34 = vld [vmem:[#allocation14 + $0x118] sm:$0xff] }
 0x538   :  { %7121 = vmatprep.mubr.bf16.mxu0 %v18139_v50  ;;  %7133 = vmatpush1.bf16.msra.mxu1 %v14211_v27  ;;  %v5460_v11 = vpop.f32.mrf.mxu0  ;;  %v5503_v45 = vpop.f32.mrf.mxu1  ;;  %v14059_v58 = vcombine.low %v4322_v34, %v4326_v57 }
 0x539   :  { %v18195_v63 = vadd.f32 %v5501_v29, %v5459_v15  ;;  %7164 = vmatprep.mubr.bf16.mxu1 %v18141_v18  ;;  %v5461_v21 = vadd.f32 %v5460_v11, %v18190_v25  ;;  %7091 = vmatprep.subr.bf16.mxu0 %v14076_v17  ;;  %v14195_v15 = vcombine.low %v4458_v26, %v4462_v19  ;;  %v4314_v29 = vld [vmem:[#allocation14 + $0xd8] sm:$0xff] }
 0x53a   :  { %v5462_v20 = vpop.f32.mrf.mxu0  ;;  %7134 = vmatprep.subr.bf16.mxu1 %v14204_v53  ;;  %v5505_v28 = vpop.f32.mrf.mxu1  ;;  %v14060_v18 = vcombine.high %v4322_v34, %v4326_v57  ;;  %v14188_v17 = vcombine.high %v4450_v33, %v4454_v62  ;;  %v4318_v11 = vld [vmem:[#allocation14 + $0xf8] sm:$0xff] }
 0x53b   :  { %v18199_v50 = vadd.f32 %v5503_v45, %v5461_v21  ;;  %v5463_v23 = vadd.f32 %v5462_v20, %v4689_v36  ;;  %7092 = vmatpush1.bf16.msra.mxu0 %v14075_v44  ;;  %v4446_v53 = vld [vmem:[#allocation14 + $0x4f8] sm:$0xff]  ;;  %v14187_v21 = vcombine.low %v4450_v33, %v4454_v62  ;;  %v14052_v20 = vcombine.high %v4314_v29, %v4318_v11 }
 0x53c   :  { %7135 = vmatpush1.bf16.msra.mxu1 %v14203_v61  ;;  %7093 = vmatprep.subr.bf16.mxu0 %v14068_v10  ;;  %v14180_v36 = vcombine.high %v4442_v49, %v4446_v53  ;;  %v4434_v26 = vld [vmem:[#allocation14 + $0x498] sm:$0xff]  ;;  %v14051_v44 = vcombine.low %v4314_v29, %v4318_v11  ;;  %v14044_v45 = vcombine.high %v4306_v9, %v4310_v52 }
 0x53d   :  { %v18201_v27 = vadd.f32 %v5505_v28, %v5463_v23  ;;  %7136 = vmatprep.subr.bf16.mxu1 %v14196_v12  ;;  %v4438_v19 = vld [vmem:[#allocation14 + $0x4b8] sm:$0xff]  ;;  %v14179_v12 = vcombine.low %v4442_v49, %v4446_v53  ;;  %v14043_v33 = vcombine.low %v4306_v9, %v4310_v52 }
 0x53e   :  { %v14172_v61 = vcombine.high %v4434_v26, %v4438_v19  ;;  %v4298_v10 = vld [vmem:[#allocation14 + $0x58] sm:$0xff]  ;;  %v14171_v62 = vcombine.low %v4434_v26, %v4438_v19 }
 0x53f   :  { %7094 = vmatpush1.bf16.msra.mxu0 %v14067_v4  ;;  %v4302_v57 = vld [vmem:[#allocation14 + $0x78] sm:$0xff] }
 0x540   :  { %7137 = vmatpush1.bf16.msra.mxu1 %v14195_v15  ;;  %7095 = vmatprep.subr.bf16.mxu0 %v14060_v18  ;;  %v4426_v34 = vld [vmem:[#allocation14 + $0x458] sm:$0xff]  ;;  %v14036_v4 = vcombine.high %v4298_v10, %v4302_v57  ;;  %v14035_v49 = vcombine.low %v4298_v10, %v4302_v57 }
 0x541   :  { %7138 = vmatprep.subr.bf16.mxu1 %v14188_v17  ;;  %v4430_v23 = vld [vmem:[#allocation14 + $0x478] sm:$0xff] }
 0x542   :  { %v14164_v28 = vcombine.high %v4426_v34, %v4430_v23  ;;  %v4294_v15 = vld [vmem:[#allocation14 + $0x38] sm:$0xff]  ;;  %v14163_v29 = vcombine.low %v4426_v34, %v4430_v23 }
 0x543   :  { %7096 = vmatpush1.bf16.msra.mxu0 %v14059_v58  ;;  %v4290_v58 = vld [vmem:[#allocation14 + $0x18] sm:$0xff] }
 0x544   :  { %7139 = vmatpush1.bf16.msra.mxu1 %v14187_v21  ;;  %7097 = vmatprep.subr.bf16.mxu0 %v14052_v20  ;;  %v4418_v18 = vld [vmem:[#allocation14 + $0x418] sm:$0xff]  ;;  %v14028_v11 = vcombine.high %v4290_v58, %v4294_v15  ;;  %v14027_v52 = vcombine.low %v4290_v58, %v4294_v15 }
 0x545   :  { %7140 = vmatprep.subr.bf16.mxu1 %v14180_v36  ;;  %v4422_v17 = vld [vmem:[#allocation14 + $0x438] sm:$0xff] }
 0x546   :  { %v14156_v53 = vcombine.high %v4418_v18, %v4422_v17  ;;  %v4410_v21 = vld [vmem:[#allocation14 + $0x3d8] sm:$0xff]  ;;  %v14155_v26 = vcombine.low %v4418_v18, %v4422_v17 }
 0x547   :  { %7098 = vmatpush1.bf16.msra.mxu0 %v14051_v44  ;;  %v4414_v20 = vld [vmem:[#allocation14 + $0x3f8] sm:$0xff] }
 0x548   :  { %7141 = vmatpush1.bf16.msra.mxu1 %v14179_v12  ;;  %7099 = vmatprep.subr.bf16.mxu0 %v14044_v45  ;;  %v4538_v36 = vld [vmem:[#allocation14 + $0x7d8] sm:$0xff]  ;;  %v14148_v19 = vcombine.high %v4410_v21, %v4414_v20  ;;  %v14147_v57 = vcombine.low %v4410_v21, %v4414_v20 }
 0x549   :  { %7142 = vmatprep.subr.bf16.mxu1 %v14172_v61  ;;  %v4542_v9 = vld [vmem:[#allocation14 + $0x7f8] sm:$0xff] }
 0x54a   :  { %v14276_v44 = vcombine.high %v4538_v36, %v4542_v9  ;;  %v4402_v12 = vld [vmem:[#allocation14 + $0x398] sm:$0xff]  ;;  %v14275_v34 = vcombine.low %v4538_v36, %v4542_v9 }
 0x54b   :  { %7100 = vmatpush1.bf16.msra.mxu0 %v14043_v33  ;;  %v4406_v45 = vld [vmem:[#allocation14 + $0x3b8] sm:$0xff] }
 0x54c   :  { %7143 = vmatpush1.bf16.msra.mxu1 %v14171_v62  ;;  %7101 = vmatprep.subr.bf16.mxu0 %v14036_v4  ;;  %v4530_v61 = vld [vmem:[#allocation14 + $0x798] sm:$0xff]  ;;  %v14140_v23 = vcombine.high %v4402_v12, %v4406_v45  ;;  %v14139_v15 = vcombine.low %v4402_v12, %v4406_v45 }
 0x54d   :  { %7144 = vmatprep.subr.bf16.mxu1 %v14164_v28  ;;  %v4534_v10 = vld [vmem:[#allocation14 + $0x7b8] sm:$0xff] }
 0x54e   :  { %v14268_v33 = vcombine.high %v4530_v61, %v4534_v10  ;;  %v4394_v62 = vld [vmem:[#allocation14 + $0x358] sm:$0xff]  ;;  %v14267_v18 = vcombine.low %v4530_v61, %v4534_v10 }
 0x54f   :  { %7102 = vmatpush1.bf16.msra.mxu0 %v14035_v49  ;;  %v4398_v4 = vld [vmem:[#allocation14 + $0x378] sm:$0xff] }
 0x550   :  { %7145 = vmatpush1.bf16.msra.mxu1 %v14163_v29  ;;  %7103 = vmatprep.subr.bf16.mxu0 %v14028_v11  ;;  %v4522_v28 = vld [vmem:[#allocation14 + $0x758] sm:$0xff]  ;;  %v14132_v17 = vcombine.high %v4394_v62, %v4398_v4  ;;  %v14131_v20 = vcombine.low %v4394_v62, %v4398_v4 }
 0x551   :  { %7146 = vmatprep.subr.bf16.mxu1 %v14156_v53  ;;  %v4526_v58 = vld [vmem:[#allocation14 + $0x778] sm:$0xff] }
 0x552   :  { %v14260_v49 = vcombine.high %v4522_v28, %v4526_v58  ;;  %v4386_v29 = vld [vmem:[#allocation14 + $0x318] sm:$0xff]  ;;  %v14259_v36 = vcombine.low %v4522_v28, %v4526_v58 }
 0x553   :  { %7104 = vmatpush1.bf16.msra.mxu0 %v14027_v52  ;;  %v4390_v11 = vld [vmem:[#allocation14 + $0x338] sm:$0xff] }
 0x554   :  { %7147 = vmatpush1.bf16.msra.mxu1 %v14155_v26  ;;  %7105 = vmatprep.subr.bf16.mxu0 %v14148_v19  ;;  %v4514_v53 = vld [vmem:[#allocation14 + $0x718] sm:$0xff]  ;;  %v14124_v9 = vcombine.high %v4386_v29, %v4390_v11  ;;  %v14123_v45 = vcombine.low %v4386_v29, %v4390_v11 }
 0x555   :  { %7148 = vmatprep.subr.bf16.mxu1 %v14276_v44  ;;  %v4518_v21 = vld [vmem:[#allocation14 + $0x738] sm:$0xff] }
 0x556   :  { %v14252_v52 = vcombine.high %v4514_v53, %v4518_v21  ;;  %v4378_v26 = vld [vmem:[#allocation14 + $0x2d8] sm:$0xff]  ;;  %v14251_v61 = vcombine.low %v4514_v53, %v4518_v21 }
 0x557   :  { %7106 = vmatpush2.bf16.msra.mxu0 %v14147_v57  ;;  %v4382_v19 = vld [vmem:[#allocation14 + $0x2f8] sm:$0xff] }
 0x558   :  { %7149 = vmatpush2.bf16.msra.mxu1 %v14275_v34  ;;  %7107 = vmatprep.subr.bf16.mxu0 %v14140_v23  ;;  %v4506_v44 = vld [vmem:[#allocation14 + $0x6d8] sm:$0xff]  ;;  %v14116_v10 = vcombine.high %v4378_v26, %v4382_v19  ;;  %v14115_v4 = vcombine.low %v4378_v26, %v4382_v19 }
 0x559   :  { %7150 = vmatprep.subr.bf16.mxu1 %v14268_v33  ;;  %v4510_v12 = vld [vmem:[#allocation14 + $0x6f8] sm:$0xff] }
 0x55a   :  { %v14244_v57 = vcombine.high %v4506_v44, %v4510_v12  ;;  %v4370_v34 = vld [vmem:[#allocation14 + $0x298] sm:$0xff]  ;;  %v14243_v28 = vcombine.low %v4506_v44, %v4510_v12 }
 0x55b   :  { %7108 = vmatpush2.bf16.msra.mxu0 %v14139_v15  ;;  %v4374_v23 = vld [vmem:[#allocation14 + $0x2b8] sm:$0xff] }
 0x55c   :  { %7151 = vmatpush2.bf16.msra.mxu1 %v14267_v18  ;;  %7109 = vmatprep.subr.bf16.mxu0 %v14132_v17  ;;  %v4498_v33 = vld [vmem:[#allocation14 + $0x698] sm:$0xff]  ;;  %v14108_v58 = vcombine.high %v4370_v34, %v4374_v23  ;;  %v14107_v11 = vcombine.low %v4370_v34, %v4374_v23  ;;  %v18207_v23 = vpop.f32.mrf.mxu0 }
 0x55d   :  { %7152 = vmatprep.subr.bf16.mxu1 %v14260_v49  ;;  %v4502_v62 = vld [vmem:[#allocation14 + $0x6b8] sm:$0xff] }
 0x55e   :  { %v14236_v15 = vcombine.high %v4498_v33, %v4502_v62  ;;  %v4362_v18 = vld [vmem:[#allocation14 + $0x258] sm:$0xff]  ;;  %v14235_v53 = vcombine.low %v4498_v33, %v4502_v62  ;;  %v17347_v33 = vmov 0.0   ;;  %v18210_v62 = vpop.f32.mrf.mxu1 }
 0x55f   :  { %7110 = vmatpush2.bf16.msra.mxu0 %v14131_v20  ;;  %v4366_v17 = vld [vmem:[#allocation14 + $0x278] sm:$0xff] }
 0x560   :  { %7153 = vmatpush2.bf16.msra.mxu1 %v14259_v36  ;;  %7111 = vmatprep.subr.bf16.mxu0 %v14124_v9  ;;  %v4490_v49 = vld [vmem:[#allocation14 + $0x658] sm:$0xff]  ;;  %v14100_v21 = vcombine.high %v4362_v18, %v4366_v17  ;;  %v14099_v19 = vcombine.low %v4362_v18, %v4366_v17 }
 0x561   :  { %7154 = vmatprep.subr.bf16.mxu1 %v14252_v52  ;;  %v4494_v29 = vld [vmem:[#allocation14 + $0x678] sm:$0xff] }
 0x562   :  { %v14228_v20 = vcombine.high %v4490_v49, %v4494_v29  ;;  %v4354_v36 = vld [vmem:[#allocation14 + $0x218] sm:$0xff]  ;;  %v14227_v44 = vcombine.low %v4490_v49, %v4494_v29 }
 0x563   :  { %7112 = vmatpush2.bf16.msra.mxu0 %v14123_v45  ;;  %v4358_v9 = vld [vmem:[#allocation14 + $0x238] sm:$0xff] }
 0x564   :  { %7155 = vmatpush2.bf16.msra.mxu1 %v14251_v61  ;;  %7113 = vmatprep.subr.bf16.mxu0 %v14116_v10  ;;  %v4482_v52 = vld [vmem:[#allocation14 + $0x618] sm:$0xff]  ;;  %v14092_v12 = vcombine.high %v4354_v36, %v4358_v9  ;;  %v14091_v61 = vcombine.low %v4354_v36, %v4358_v9 }
 0x565   :  { %7156 = vmatprep.subr.bf16.mxu1 %v14244_v57  ;;  %v4486_v26 = vld [vmem:[#allocation14 + $0x638] sm:$0xff]  ;;  %v18203_v57 = vld [vmem:[#allocation16] sm:$0xff] }
 0x566   :  { %v14220_v45 = vcombine.high %v4482_v52, %v4486_v26  ;;  %v14219_v10 = vcombine.low %v4482_v52, %v4486_v26  ;;  %v5514_v34 = vrot.slane %v18203_v57, %v17660_v5 }
 0x567   :  { %7114 = vmatpush2.bf16.msra.mxu0 %v14115_v4  ;;  %v5518_v4 = vrot.slane %v18203_v57, %v17762_v46 }
 0x568   :  { %7157 = vmatpush2.bf16.msra.mxu1 %v14243_v28  ;;  %7115 = vmatprep.subr.bf16.mxu0 %v14108_v58  ;;  %v4681_v28 = vrot.slane %v18161_v43, %v17660_v5 }
 0x569   :  { %7158 = vmatprep.subr.bf16.mxu1 %v14236_v15 }
 0x56a   :  { %v5373_v43 = vadd.f32 %v18168_v0, %v4681_v28 }
 0x56b   :  { %7116 = vmatpush2.bf16.msra.mxu0 %v14107_v11 }
 0x56c   :  { %7159 = vmatpush2.bf16.msra.mxu1 %v14235_v53  ;;  %7117 = vmatprep.subr.bf16.mxu0 %v14100_v21  ;;  %v5416_v26 = vadd.f32 %v18170_v14, %v5373_v43  ;;  %v5522_v14 = vrot.slane %v18203_v57, %v17663_v24 }
 0x56d   :  { %7160 = vmatprep.subr.bf16.mxu1 %v14228_v20 }
 0x56e   :  { %v14919_v0 = vpack.c.bf16 %v5416_v26, %v5416_v26 }
 0x56f   :  { %7118 = vmatpush2.bf16.msra.mxu0 %v14099_v19  ;;  %v5377_v19 = vadd.f32 %v18178_v2, %v4681_v28  ;;  %v5526_v2 = vrot.slane %v18203_v57, %v17765_v47 }
 0x570   :  { %7161 = vmatpush2.bf16.msra.mxu1 %v14227_v44  ;;  %7119 = vmatprep.subr.bf16.mxu0 %v14092_v12 }
 0x571   :  { %7162 = vmatprep.subr.bf16.mxu1 %v14220_v45 }
 0x573   :  { %7120 = vmatpush2.bf16.msra.mxu0 %v14091_v61  ;;  %v5420_v61 = vadd.f32 %v18180_v30, %v5377_v19 }
 0x574   :  { %7163 = vmatpush2.bf16.msra.mxu1 %v14219_v10  ;;  %15503 = vmatprep.subr.bf16.mxu0 %v17347_v33 }
 0x575   :  { %15509 = vmatprep.subr.bf16.mxu1 %v17347_v33  ;;  %v14920_v10 = vpack.c.bf16 %v5420_v61, %v5420_v61 }
 0x576   :  { %v6865_v58 = vpop.f32.mrf.mxu0  ;;  %7122 = vmatmul.mubr.bf16.vlgmr.msra.gmra.mxu0 %v18143_v59 }
 0x577   :  { %v6866_v15 = vadd.f32 %v6865_v58, %v5514_v34  ;;  %v6908_v18 = vpop.f32.mrf.mxu1  ;;  %7165 = vmatmul.mubr.bf16.vlgmr.msra.gmra.mxu1 %v18145_v40  ;;  %15505 = vmatprep.mubr.msk.bf16.mxu0 %vm17348_vm15, %v17347_v33 }
 0x578   :  { %v6867_v17 = vpop.f32.mrf.mxu0  ;;  %15511 = vmatprep.mubr.msk.bf16.mxu1 %vm17348_vm15, %v17347_v33 }
 0x579   :  { %v6909_v49 = vadd.f32 %v6908_v18, %v6866_v15  ;;  %v6868_v29 = vadd.f32 %v6867_v17, %v5518_v4  ;;  %v6910_v11 = vpop.f32.mrf.mxu1 }
 0x57a   :  { %v6869_v53 = vpop.f32.mrf.mxu0 }
 0x57b   :  { %v14921_v21 = vpack.c.bf16 %v6909_v49, %v6909_v49  ;;  %v18224_v59 = vadd.f32 %v6910_v11, %v6868_v29  ;;  %v6870_v20 = vadd.f32 %v6869_v53, %v5514_v34  ;;  %v6912_v36 = vpop.f32.mrf.mxu1 }
 0x57c   :  { %v6871_v40 = vpop.f32.mrf.mxu0 }
 0x57d   :  { %v6913_v9 = vadd.f32 %v6912_v36, %v6870_v20  ;;  %v6872_v52 = vadd.f32 %v6871_v40, %v5518_v4  ;;  %15504 = vmatpush3.bf16.xpose.msra.mxu0 %v14921_v21  ;;  %v6914_v44 = vpop.f32.mrf.mxu1  ;;  %v5529_v40 = vsub.s32 4, %v17518_v56 }
 0x57e   :  { %15515 = vmatprep.subr.bf16.mxu0 %v17347_v33 }
 0x57f   :  { %v14922_v12 = vpack.c.bf16 %v6913_v9, %v6913_v9  ;;  %v18229_v45 = vadd.f32 %v6914_v44, %v6872_v52  ;;  %v5533_v9 = vsub.s32 5, %v17518_v56  ;;  %v5530_v52 = vrot.slane %v18203_v57, %v5529_v40 }
 0x580   :  { %v5537_v40 = vsub.s32 6, %v17518_v56 }
 0x581   :  { %15510 = vmatpush3.bf16.xpose.msra.mxu1 %v14922_v12  ;;  %v5534_v26 = vrot.slane %v18203_v57, %v5533_v9  ;;  %v5541_v9 = vsub.s32 7, %v17518_v56  ;;  %v16808_v56 = vld [vmem:[#allocation20 + $0x280] sm:$0xff]  }
 0x582   :  { %15521 = vmatprep.subr.bf16.mxu1 %v17347_v33 }
 0x584   :  { %15506 = vmatmul.mubr.bf16.vlgmr.msra.gmra.mxu0 %v14919_v0 }
 0x585   :  { %15517 = vmatprep.mubr.msk.bf16.mxu0 %vm17348_vm15, %v17347_v33 }
 0x588   :  { %15512 = vmatmul.mubr.bf16.vlgmr.msra.gmra.mxu1 %v14920_v10 }
 0x589   :  { %15523 = vmatprep.mubr.msk.bf16.mxu1 %vm17348_vm15, %v17347_v33 }
 0x5b6   :  { %v6951_v34 = vpop.f32.mrf.mxu0 }
 0x5b7   :  { %v6952_v4 = vadd.f32 %v6951_v34, %v5522_v14  ;;  %v6994_v30 = vpop.f32.mrf.mxu1 }
 0x5b8   :  { %v6953_v28 = vpop.f32.mrf.mxu0 }
 0x5b9   :  { %v18241_v58 = vadd.f32 %v6994_v30, %v6952_v4  ;;  %v6954_v15 = vadd.f32 %v6953_v28, %v5526_v2  ;;  %v6996_v18 = vpop.f32.mrf.mxu1 }
 0x5ba   :  { %v6955_v17 = vpop.f32.mrf.mxu0 }
 0x5bb   :  { %v18243_v49 = vadd.f32 %v6996_v18, %v6954_v15  ;;  %v6956_v29 = vadd.f32 %v6955_v17, %v5522_v14  ;;  %v6998_v11 = vpop.f32.mrf.mxu1 }
 0x5bc   :  { %v6957_v43 = vpop.f32.mrf.mxu0 }
 0x5bd   :  { %v18245_v53 = vadd.f32 %v6998_v11, %v6956_v29  ;;  %v6958_v21 = vadd.f32 %v6957_v43, %v5526_v2  ;;  %v7000_v20 = vpop.f32.mrf.mxu1 }
 0x5bf   :  { %v18247_v36 = vadd.f32 %v7000_v20, %v6958_v21 }
 0x5f6   :  { %v7037_v19 = vpop.f32.mrf.mxu0 }
 0x5f7   :  { %v7038_v44 = vadd.f32 %v7037_v19, %v5530_v52  ;;  %v7080_v12 = vpop.f32.mrf.mxu1 }
 0x5f8   :  { %v7039_v0 = vpop.f32.mrf.mxu0 }
 0x5f9   :  { %v7081_v61 = vadd.f32 %v7080_v12, %v7038_v44  ;;  %v7040_v10 = vadd.f32 %v7039_v0, %v5534_v26  ;;  %v7082_v14 = vpop.f32.mrf.mxu1 }
 0x5fa   :  { %v7041_v2 = vpop.f32.mrf.mxu0 }
 0x5fb   :  { %v14923_v34 = vpack.c.bf16 %v7081_v61, %v7081_v61  ;;  %v18253_v4 = vadd.f32 %v7082_v14, %v7040_v10  ;;  %v7042_v30 = vadd.f32 %v7041_v2, %v5530_v52  ;;  %v7084_v28 = vpop.f32.mrf.mxu1  ;;  %v5538_v52 = vrot.slane %v18203_v57, %v5537_v40 }
 0x5fc   :  { %v7043_v15 = vpop.f32.mrf.mxu0 }
 0x5fd   :  { %v7318_v18 = vsel %vm7316_vm1, %v14923_v34, 0  ;;  %v7085_v17 = vadd.f32 %v7084_v28, %v7042_v30  ;;  %v7044_v29 = vadd.f32 %v7043_v15, %v5534_v26  ;;  %v7086_v11 = vpop.f32.mrf.mxu1  ;;  %v5542_v26 = vrot.slane %v18203_v57, %v5541_v9 }
 0x5fe   :  { %15516 = vmatpush3.bf16.msra.mxu0 %v7318_v18 }
 0x5ff   :  { %v14924_v43 = vpack.c.bf16 %v7085_v17, %v7085_v17  ;;  %v18256_v21 = vadd.f32 %v7086_v11, %v7044_v29  ;;  %15527 = vmatprep.subr.bf16.mxu0 %v17347_v33 }
 0x601   :  { %v7364_v20 = vsel %vm7316_vm1, %v14924_v43, 0 }
 0x602   :  { %15522 = vmatpush3.bf16.msra.mxu1 %v7364_v20 }
 0x603   :  { %15533 = vmatprep.subr.bf16.mxu1 %v17347_v33 }
 0x636   :  { %v7123_v19 = vpop.f32.mrf.mxu0 }
 0x637   :  { %v7124_v44 = vadd.f32 %v7123_v19, %v5538_v52  ;;  %v7166_v12 = vpop.f32.mrf.mxu1 }
 0x638   :  { %v7125_v0 = vpop.f32.mrf.mxu0 }
 0x639   :  { %v18265_v61 = vadd.f32 %v7166_v12, %v7124_v44  ;;  %v7126_v10 = vadd.f32 %v7125_v0, %v5542_v26  ;;  %v7168_v14 = vpop.f32.mrf.mxu1 }
 0x63a   :  { %v7127_v2 = vpop.f32.mrf.mxu0 }
 0x63b   :  { %v18267_v34 = vadd.f32 %v7168_v14, %v7126_v10  ;;  %v7128_v30 = vadd.f32 %v7127_v2, %v5538_v52  ;;  %v7170_v28 = vpop.f32.mrf.mxu1 }
 0x63c   :  { %v7129_v15 = vpop.f32.mrf.mxu0 }
 0x63d   :  { %v18269_v18 = vadd.f32 %v7170_v28, %v7128_v30  ;;  %v7130_v17 = vadd.f32 %v7129_v15, %v5542_v26  ;;  %v7172_v29 = vpop.f32.mrf.mxu1 }
 0x63f   :  { %v18271_v11 = vadd.f32 %v7172_v29, %v7130_v17 }
 0x644   :  { %v7240_v57 = vpop.f32.mrf.mxu0 }
 0x645   :  { %v7286_v43 = vmul.f32 0.088388346, %v7240_v57 }
 0x646   :  { %v15507_v20 = vpop.f32.mrf.mxu0 }
 0x647   :  { %v7289_v40 = vsel %vm7288_vm2, %v7286_v43, -inf }
 0x648   :  { %v7280_v9 = vpop.f32.mrf.mxu1  ;;  %7290 = vmax.xlane.f32.xlu0 %v7289_v40  ;;  %v7243_v19 = vpop.f32.mrf.mxu0 }
 0x649   :  { %v7287_v44 = vmul.f32 0.088388346, %v7280_v9 }
 0x64a   :  { %v15508_v12 = vpop.f32.mrf.mxu0  ;;  %v15513_v52 = vpop.f32.mrf.mxu1 }
 0x64b   :  { %v7292_v0 = vsel %vm7288_vm2, %v7287_v44, -inf }
 0x64c   :  { %7293 = vmax.xlane.f32.xlu1 %v7292_v0  ;;  %v7283_v10 = vpop.f32.mrf.mxu1 }
 0x64e   :  { %v15514_v26 = vpop.f32.mrf.mxu1 }
 0x64f   :  { %v5379_v26 = vadd.f32 %v18184_v37, %v18165_v55 }
 0x651   :  { %v5422_v55 = vadd.f32 %v18186_v42, %v5379_v26 }
 0x6d1   :  { %v7291_v14 = vpop.xlane.xlu0 %7290 }
 0x6d2   :  { %v7295_v2 = vsub.f32 %v7286_v43, %v7291_v14 }
 0x6d4   :  { %v7297_v30 = vmul.f32 1.442695, %v7295_v2  ;;  %v14928_v2 = vpack.c.bf16 %v18229_v45, %v18229_v45  ;;  %v14930_v45 = vpack.c.bf16 %v18256_v21, %v18256_v21 }
 0x6d5   :  { %v7294_v28 = vpop.xlane.xlu1 %7293 }
 0x6d6   :  { %16973 = vpow2.f32 %v7297_v30  ;;  %v7296_v15 = vsub.f32 %v7287_v44, %v7294_v28  ;;  %v14927_v44 = vpack.c.bf16 %v18224_v59, %v18224_v59  ;;  %v14929_v30 = vpack.c.bf16 %v18253_v4, %v18253_v4 }
 0x6d7   :  { %v14925_v59 = vpack.c.bf16 %v18176_v1, %v18176_v1  ;;  %v14926_v4 = vpack.c.bf16 %v5422_v55, %v5422_v55  ;;  %v7582_v28 = vsel %vm7316_vm1, %v14930_v45, 0 }
 0x6d8   :  { %v7299_v17 = vmul.f32 1.442695, %v7296_v15  ;;  %v7536_v37 = vsel %vm7316_vm1, %v14929_v30, 0 }
 0x6da   :  { %16975 = vpow2.f32 %v7299_v17 }
 0x6e3   :  { %v16974_v29 = vpop.eup %16973 }
 0x6e4   :  { %v7301_v57 = vsel %vm7288_vm2, %v16974_v29, 0.0 }
 0x6e5   :  { %7302 = vadd.xlane.f32.xlu0 %v7301_v57 }
 0x6e7   :  { %v16976_v20 = vpop.eup %16975 }
 0x6e8   :  { %v7304_v40 = vsel %vm7288_vm2, %v16976_v20, 0.0 }
 0x6e9   :  { %7305 = vadd.xlane.f32.xlu1 %v7304_v40 }
 0x76e   :  { %v7303_v9 = vpop.xlane.xlu0 %7302 }
 0x76f   :  { %16977 = vrcp.f32 %v7303_v9 }
 0x772   :  { %v7306_v19 = vpop.xlane.xlu1 %7305 }
 0x773   :  { %16979 = vrcp.f32 %v7306_v19 }
 0x77c   :  { %v16978_v12 = vpop.eup %16977 }
 0x77d   :  { %v7308_v43 = vmul.f32 %v16978_v12, %v16974_v29 }
 0x77f   :  { %v7311_v52 = vpack.c.bf16 %v7308_v43, %v7308_v43 }
 0x780   :  { %v16980_v0 = vpop.eup %16979 }
 0x781   :  { %15518 = vmatmul.mubr.msk.bf16.vlgmr.msra.gmra.mxu0 %vm7288_vm2, %v7311_v52  ;;  %v7310_v10 = vmul.f32 %v16980_v0, %v16976_v20 }
 0x782   :  { %15528 = vmatpush3.bf16.xpose.msra.mxu0 %v14927_v44  ;;  %15529 = vmatprep.mubr.msk.bf16.mxu0 %vm17348_vm15, %v17347_v33 }
 0x783   :  { %v7312_v14 = vpack.c.bf16 %v7310_v10, %v7310_v10  ;;  %15539 = vmatprep.subr.bf16.mxu0 %v17347_v33 }
 0x785   :  { %15524 = vmatmul.mubr.msk.bf16.vlgmr.msra.gmra.mxu1 %vm7288_vm2, %v7312_v14 }
 0x786   :  { %15534 = vmatpush3.bf16.xpose.msra.mxu1 %v14928_v2  ;;  %15535 = vmatprep.mubr.msk.bf16.mxu1 %vm17348_vm15, %v17347_v33 }
 0x787   :  { %15545 = vmatprep.subr.bf16.mxu1 %v17347_v33 }
 0x789   :  { %15530 = vmatmul.mubr.bf16.vlgmr.msra.gmra.mxu0 %v14925_v59 }
 0x78a   :  { %15540 = vmatpush3.bf16.msra.mxu0 %v7536_v37  ;;  %15541 = vmatprep.mubr.msk.bf16.mxu0 %vm17348_vm15, %v17347_v33 }
 0x78d   :  { %15536 = vmatmul.mubr.bf16.vlgmr.msra.gmra.mxu1 %v14926_v4 }
 0x78e   :  { %15546 = vmatpush3.bf16.msra.mxu1 %v7582_v28  ;;  %15547 = vmatprep.mubr.msk.bf16.mxu1 %vm17348_vm15, %v17347_v33 }
 0x841   :  { %v7354_v1 = vpop.f32.mrf.mxu0 }
 0x843   :  { %v15519_v42 = vpop.f32.mrf.mxu0 }
 0x845   :  { %v7357_v15 = vpop.f32.mrf.mxu0  ;;  %v7400_v17 = vpop.f32.mrf.mxu1 }
 0x846   :  { %v18304_v29 = vpack.c.bf16 %v7400_v17, %v7354_v1 }
 0x847   :  { %v15520_v21 = vpop.f32.mrf.mxu0  ;;  %v15525_v57 = vpop.f32.mrf.mxu1 }
 0x848   :  { %v16395_v21 = vld [vmem:[#allocation17 + $0x1e4] ss:$16 sps:$4 sm:$0xff]   ;;  %v16398_v57 = vld [vmem:[#allocation17 + $0x1ec] ss:$16 sps:$4 sm:$0xff]  }
 0x849   :  { %v7403_v20 = vpop.f32.mrf.mxu1  ;;  %v7460_v40 = vpop.f32.mrf.mxu0  ;;  %7785 = vmatprep.subr.bf16.mxu0 %v16395_v21  ;;  %7828 = vmatprep.subr.bf16.mxu1 %v16398_v57  ;;  %v16417_v21 = vld [vmem:[#allocation17 + $0x160] ss:$16 sps:$4 sm:$0xff]   ;;  %v16422_v57 = vld [vmem:[#allocation17 + $0x16c] ss:$16 sps:$4 sm:$0xff]  }
 0x84a   :  { %v7506_v9 = vmul.f32 0.088388346, %v7460_v40 }
 0x84b   :  { %v15526_v19 = vpop.f32.mrf.mxu1  ;;  %v15531_v12 = vpop.f32.mrf.mxu0 }
 0x84c   :  { %v7508_v43 = vsel %vm7288_vm2, %v7506_v9, -inf  ;;  %v16393_v12 = vld [vmem:[#allocation17 + $0x1e0] ss:$16 sps:$4 sm:$0xff]  }
 0x84d   :  { %v7500_v52 = vpop.f32.mrf.mxu1  ;;  %7509 = vmax.xlane.f32.xlu0 %v7508_v43  ;;  %v7463_v0 = vpop.f32.mrf.mxu0 }
 0x84e   :  { %v7507_v44 = vmul.f32 0.088388346, %v7500_v52  ;;  %v16401_v52 = vld [vmem:[#allocation17 + $0x1c4] ss:$16 sps:$4 sm:$0xff]  }
 0x84f   :  { %v15532_v10 = vpop.f32.mrf.mxu0  ;;  %v15537_v26 = vpop.f32.mrf.mxu1 }
 0x850   :  { %v7511_v14 = vsel %vm7288_vm2, %v7507_v44, -inf  ;;  %v16396_v10 = vld [vmem:[#allocation17 + $0x1e8] ss:$16 sps:$4 sm:$0xff]   ;;  %v16399_v26 = vld [vmem:[#allocation17 + $0x1c0] ss:$16 sps:$4 sm:$0xff]  }
 0x851   :  { %7512 = vmax.xlane.f32.xlu1 %v7511_v14  ;;  %v7503_v2 = vpop.f32.mrf.mxu1  ;;  %v19003_v14 = vmov 0  }
 0x853   :  { %v15538_v30 = vpop.f32.mrf.mxu1 }
 0x854   :  { %v16404_v30 = vld [vmem:[#allocation17 + $0x1cc] ss:$16 sps:$4 sm:$0xff]  }
 0x8d6   :  { %v7510_v59 = vpop.xlane.xlu0 %7509 }
 0x8d7   :  { %v7514_v55 = vsub.f32 %v7506_v9, %v7510_v59  ;;  %v16407_v59 = vld [vmem:[#allocation17 + $0x1a4] ss:$16 sps:$4 sm:$0xff]  }
 0x8d9   :  { %v7516_v37 = vmul.f32 1.442695, %v7514_v55  ;;  %v16402_v55 = vld [vmem:[#allocation17 + $0x1c8] ss:$16 sps:$4 sm:$0xff]  }
 0x8da   :  { %v7513_v45 = vpop.xlane.xlu1 %7512 }
 0x8db   :  { %16981 = vpow2.f32 %v7516_v37  ;;  %v7515_v4 = vsub.f32 %v7507_v44, %v7513_v45  ;;  %v16405_v37 = vld [vmem:[#allocation17 + $0x1a0] ss:$16 sps:$4 sm:$0xff]   ;;  %v16410_v45 = vld [vmem:[#allocation17 + $0x1ac] ss:$16 sps:$4 sm:$0xff]  }
 0x8dd   :  { %v7518_v28 = vmul.f32 1.442695, %v7515_v4  ;;  %v16413_v4 = vld [vmem:[#allocation17 + $0x184] ss:$16 sps:$4 sm:$0xff]  }
 0x8df   :  { %16983 = vpow2.f32 %v7518_v28  ;;  %v16408_v28 = vld [vmem:[#allocation17 + $0x1a8] ss:$16 sps:$4 sm:$0xff]  }
 0x8e8   :  { %v16982_v1 = vpop.eup %16981 }
 0x8e9   :  { %v7520_v42 = vsel %vm7288_vm2, %v16982_v1, 0.0 }
 0x8ea   :  { %7521 = vadd.xlane.f32.xlu0 %v7520_v42  ;;  %v16416_v42 = vld [vmem:[#allocation17 + $0x18c] ss:$16 sps:$4 sm:$0xff]  }
 0x8ec   :  { %v16984_v15 = vpop.eup %16983 }
 0x8ed   :  { %v7523_v17 = vsel %vm7288_vm2, %v16984_v15, 0.0 }
 0x8ee   :  { %7524 = vadd.xlane.f32.xlu1 %v7523_v17  ;;  %v16414_v17 = vld [vmem:[#allocation17 + $0x188] ss:$16 sps:$4 sm:$0xff]  }
 0x973   :  { %v7522_v20 = vpop.xlane.xlu0 %7521 }
 0x974   :  { %16985 = vrcp.f32 %v7522_v20  ;;  %v16425_v20 = vld [vmem:[#allocation17 + $0x144] ss:$16 sps:$4 sm:$0xff]  }
 0x977   :  { %v7525_v40 = vpop.xlane.xlu1 %7524 }
 0x978   :  { %16987 = vrcp.f32 %v7525_v40  ;;  %v16420_v40 = vld [vmem:[#allocation17 + $0x168] ss:$16 sps:$4 sm:$0xff]  }
 0x981   :  { %v16986_v9 = vpop.eup %16985 }
 0x982   :  { %v7527_v19 = vmul.f32 %v16986_v9, %v16982_v1  ;;  %v16411_v1 = vld [vmem:[#allocation17 + $0x180] ss:$16 sps:$4 sm:$0xff]  }
 0x983   :  { %v16423_v9 = vld [vmem:[#allocation17 + $0x140] ss:$16 sps:$4 sm:$0xff]  }
 0x984   :  { %v7530_v43 = vpack.c.bf16 %v7527_v19, %v7527_v19  ;;  %v16428_v19 = vld [vmem:[#allocation17 + $0x14c] ss:$16 sps:$4 sm:$0xff]  }
 0x985   :  { %v16988_v0 = vpop.eup %16987 }
 0x986   :  { %15542 = vmatmul.mubr.msk.bf16.vlgmr.msra.gmra.mxu0 %vm7288_vm2, %v7530_v43  ;;  %v7529_v44 = vmul.f32 %v16988_v0, %v16984_v15  ;;  %v16419_v15 = vld [vmem:[#allocation17 + $0x164] ss:$16 sps:$4 sm:$0xff]   ;;  %v16426_v43 = vld [vmem:[#allocation17 + $0x148] ss:$16 sps:$4 sm:$0xff]   ;;  %v16434_v0 = vld [vmem:[#allocation17 + $0x12c] ss:$16 sps:$4 sm:$0xff]  }
 0x987   :  { %7786 = vmatpush1.bf16.msra.mxu0 %v16393_v12  ;;  %7817 = vmatprep.mubr.bf16.mxu0 %v19003_v14  ;;  %v16431_v12 = vld [vmem:[#allocation17 + $0x124] ss:$16 sps:$4 sm:$0xff]  }
 0x988   :  { %v7531_v2 = vpack.c.bf16 %v7529_v44, %v7529_v44  ;;  %7787 = vmatprep.subr.bf16.mxu0 %v16401_v52  ;;  %v16429_v52 = vld [vmem:[#allocation17 + $0x120] ss:$16 sps:$4 sm:$0xff]   ;;  %v16432_v44 = vld [vmem:[#allocation17 + $0x128] ss:$16 sps:$4 sm:$0xff]  }
 0x98a   :  { %15548 = vmatmul.mubr.msk.bf16.vlgmr.msra.gmra.mxu1 %vm7288_vm2, %v7531_v2  ;;  %v16438_v2 = vld [vmem:[#allocation17 + $0x108] ss:$16 sps:$4 sm:$0xff]  }
 0x98b   :  { %7829 = vmatpush1.bf16.msra.mxu1 %v16396_v10  ;;  %7788 = vmatpush1.bf16.msra.mxu0 %v16399_v26  ;;  %v16435_v10 = vld [vmem:[#allocation17 + $0x100] ss:$16 sps:$4 sm:$0xff]   ;;  %v16437_v26 = vld [vmem:[#allocation17 + $0x104] ss:$16 sps:$4 sm:$0xff]  }
 0x98c   :  { %7830 = vmatprep.subr.bf16.mxu1 %v16404_v30  ;;  %7789 = vmatprep.subr.bf16.mxu0 %v16407_v59  ;;  %v16440_v30 = vld [vmem:[#allocation17 + $0x10c] ss:$16 sps:$4 sm:$0xff]   ;;  %v16443_v59 = vld [vmem:[#allocation17 + $0xe4] ss:$16 sps:$4 sm:$0xff]  }
 0x98d   :  { %7860 = vmatprep.mubr.bf16.mxu1 %v19003_v14 }
 0x98f   :  { %7831 = vmatpush1.bf16.msra.mxu1 %v16402_v55  ;;  %7790 = vmatpush1.bf16.msra.mxu0 %v16405_v37  ;;  %v16446_v55 = vld [vmem:[#allocation17 + $0xec] ss:$16 sps:$4 sm:$0xff]  }
 0x990   :  { %7832 = vmatprep.subr.bf16.mxu1 %v16410_v45  ;;  %7791 = vmatprep.subr.bf16.mxu0 %v16413_v4 }
 0x993   :  { %7833 = vmatpush1.bf16.msra.mxu1 %v16408_v28  ;;  %7792 = vmatpush1.bf16.msra.mxu0 %v16411_v1  ;;  %v16441_v1 = vld [vmem:[#allocation17 + $0xe0] ss:$16 sps:$4 sm:$0xff]  }
 0x994   :  { %7834 = vmatprep.subr.bf16.mxu1 %v16416_v42  ;;  %7793 = vmatprep.subr.bf16.mxu0 %v16419_v15  ;;  %v16444_v42 = vld [vmem:[#allocation17 + $0xe8] ss:$16 sps:$4 sm:$0xff]  }
 0x997   :  { %7835 = vmatpush1.bf16.msra.mxu1 %v16414_v17  ;;  %7794 = vmatpush1.bf16.msra.mxu0 %v16417_v21  ;;  %v16449_v17 = vld [vmem:[#allocation17 + $0xc4] ss:$16 sps:$4 sm:$0xff]   ;;  %v16452_v21 = vld [vmem:[#allocation17 + $0xcc] ss:$16 sps:$4 sm:$0xff]  }
 0x998   :  { %7836 = vmatprep.subr.bf16.mxu1 %v16422_v57  ;;  %7795 = vmatprep.subr.bf16.mxu0 %v16425_v20 }
 0x99b   :  { %7837 = vmatpush1.bf16.msra.mxu1 %v16420_v40  ;;  %7796 = vmatpush1.bf16.msra.mxu0 %v16423_v9  ;;  %v16447_v9 = vld [vmem:[#allocation17 + $0xc0] ss:$16 sps:$4 sm:$0xff]  }
 0x99c   :  { %7838 = vmatprep.subr.bf16.mxu1 %v16428_v19  ;;  %7797 = vmatprep.subr.bf16.mxu0 %v16431_v12  ;;  %v16450_v19 = vld [vmem:[#allocation17 + $0xc8] ss:$16 sps:$4 sm:$0xff]   ;;  %v16455_v12 = vld [vmem:[#allocation17 + $0xa4] ss:$16 sps:$4 sm:$0xff]  }
 0x99f   :  { %7839 = vmatpush1.bf16.msra.mxu1 %v16426_v43  ;;  %7798 = vmatpush1.bf16.msra.mxu0 %v16429_v52  ;;  %v16458_v43 = vld [vmem:[#allocation17 + $0xac] ss:$16 sps:$4 sm:$0xff]  }
 0x9a0   :  { %7840 = vmatprep.subr.bf16.mxu1 %v16434_v0  ;;  %7799 = vmatprep.subr.bf16.mxu0 %v16437_v26  ;;  %v16453_v0 = vld [vmem:[#allocation17 + $0xa0] ss:$16 sps:$4 sm:$0xff]   ;;  %v16464_v26 = vld [vmem:[#allocation17 + $0x8c] ss:$16 sps:$4 sm:$0xff]  }
 0x9a3   :  { %7841 = vmatpush1.bf16.msra.mxu1 %v16432_v44  ;;  %7800 = vmatpush1.bf16.msra.mxu0 %v16435_v10  ;;  %v16456_v44 = vld [vmem:[#allocation17 + $0xa8] ss:$16 sps:$4 sm:$0xff]   ;;  %v16461_v10 = vld [vmem:[#allocation17 + $0x84] ss:$16 sps:$4 sm:$0xff]  }
 0x9a4   :  { %7842 = vmatprep.subr.bf16.mxu1 %v16440_v30  ;;  %8031 = vmatprep.subr.bf16.mxu0 %v16443_v59  ;;  %v16462_v30 = vld [vmem:[#allocation17 + $0x88] ss:$16 sps:$4 sm:$0xff]   ;;  %v16467_v59 = vld [vmem:[#allocation17 + $0x64] ss:$16 sps:$4 sm:$0xff]  }
 0x9a7   :  { %7843 = vmatpush1.bf16.msra.mxu1 %v16438_v2  ;;  %v16459_v2 = vld [vmem:[#allocation17 + $0x80] ss:$16 sps:$4 sm:$0xff]  }
 0x9a8   :  { %8074 = vmatprep.subr.bf16.mxu1 %v16446_v55  ;;  %v16470_v55 = vld [vmem:[#allocation17 + $0x6c] ss:$16 sps:$4 sm:$0xff]  }
 0xa46   :  { %v7572_v37 = vpop.f32.mrf.mxu0 }
 0xa48   :  { %v15543_v45 = vpop.f32.mrf.mxu0 }
 0xa49   :  { %v16468_v45 = vld [vmem:[#allocation17 + $0x68] ss:$16 sps:$4 sm:$0xff]  }
 0xa4a   :  { %v7575_v4 = vpop.f32.mrf.mxu0  ;;  %v7618_v28 = vpop.f32.mrf.mxu1 }
 0xa4b   :  { %v7624_v15 = vpack.c.bf16 %v7618_v28, %v7572_v37  ;;  %v16465_v37 = vld [vmem:[#allocation17 + $0x60] ss:$16 sps:$4 sm:$0xff]   ;;  %v16473_v4 = vld [vmem:[#allocation17 + $0x44] ss:$16 sps:$4 sm:$0xff]   ;;  %v16476_v28 = vld [vmem:[#allocation17 + $0x4c] ss:$16 sps:$4 sm:$0xff]  }
 0xa4c   :  { %v15544_v57 = vpop.f32.mrf.mxu0  ;;  %v15549_v20 = vpop.f32.mrf.mxu1 }
 0xa4d   :  { %7818 = vmatmul.mubr.bf16.vlgmr.msra.gmra.mxu0 %v7624_v15  ;;  %7861 = vmatmul.mubr.bf16.vlgmr.msra.gmra.mxu1 %v7624_v15  ;;  %v16479_v15 = vld [vmem:[#allocation17 + $0x24] ss:$16 sps:$4 sm:$0xff]   ;;  %v16480_v57 = vld [vmem:[#allocation17 + $0x28] ss:$16 sps:$4 sm:$0xff]  }
 0xa4e   :  { %8032 = vmatpush1.bf16.msra.mxu0 %v16441_v1  ;;  %8075 = vmatpush1.bf16.msra.mxu1 %v16444_v42  ;;  %v7621_v40 = vpop.f32.mrf.mxu1  ;;  %v16471_v1 = vld [vmem:[#allocation17 + $0x40] ss:$16 sps:$4 sm:$0xff]   ;;  %v16474_v42 = vld [vmem:[#allocation17 + $0x48] ss:$16 sps:$4 sm:$0xff]   ;;  %v16485_v20 = vld [vmem:[#allocation17 + $0x4] ss:$16 sps:$4 sm:$0xff]  }
 0xa4f   :  { %8033 = vmatprep.subr.bf16.mxu0 %v16449_v17  ;;  %8076 = vmatprep.subr.bf16.mxu1 %v16452_v21  ;;  %v16482_v17 = vld [vmem:[#allocation17 + $0x2c] ss:$16 sps:$4 sm:$0xff]   ;;  %v16477_v21 = vld [vmem:[#allocation17 + $0x20] ss:$16 sps:$4 sm:$0xff]  }
 0xa50   :  { %v15550_v52 = vpop.f32.mrf.mxu1  ;;  %8063 = vmatprep.mubr.bf16.mxu0 %v19003_v14  ;;  %8106 = vmatprep.mubr.bf16.mxu1 %v19003_v14  ;;  %v16488_v40 = vld [vmem:[#allocation17 + $0xc] ss:$16 sps:$4 sm:$0xff]  }
 0xa51   :  { %v14932_v52 = vpack.c.bf16 %v18201_v27, %v18201_v27 }
 0xa52   :  { %8034 = vmatpush1.bf16.msra.mxu0 %v16447_v9  ;;  %8077 = vmatpush1.bf16.msra.mxu1 %v16450_v19  ;;  %v16483_v9 = vld [vmem:[#allocation17] ss:$16 sps:$4 sm:$0xff]   ;;  %v16486_v19 = vld [vmem:[#allocation17 + $0x8] ss:$16 sps:$4 sm:$0xff]  }
 0xa53   :  { %8035 = vmatprep.subr.bf16.mxu0 %v16455_v12  ;;  %8078 = vmatprep.subr.bf16.mxu1 %v16458_v43  ;;  %v14933_v12 = vpack.c.bf16 %v18241_v58, %v18241_v58  ;;  %v14934_v43 = vpack.c.bf16 %v18245_v53, %v18245_v53  ;;  %v14935_v58 = vpack.c.bf16 %v18265_v61, %v18265_v61 }
 0xa54   :  { %v14936_v53 = vpack.c.bf16 %v18269_v18, %v18269_v18 }
 0xa56   :  { %8036 = vmatpush1.bf16.msra.mxu0 %v16453_v0  ;;  %8079 = vmatpush1.bf16.msra.mxu1 %v16456_v44  ;;  %v8246_v0 = vsel %vm7316_vm1, %v14935_v58, 0  ;;  %v8292_v44 = vsel %vm7316_vm1, %v14936_v53, 0 }
 0xa57   :  { %8037 = vmatprep.subr.bf16.mxu0 %v16461_v10  ;;  %8080 = vmatprep.subr.bf16.mxu1 %v16464_v26 }
 0xa5a   :  { %8038 = vmatpush1.bf16.msra.mxu0 %v16459_v2  ;;  %8081 = vmatpush1.bf16.msra.mxu1 %v16462_v30 }
 0xa5b   :  { %8039 = vmatprep.subr.bf16.mxu0 %v16467_v59  ;;  %8082 = vmatprep.subr.bf16.mxu1 %v16470_v55 }
 0xa5e   :  { %8040 = vmatpush1.bf16.msra.mxu0 %v16465_v37  ;;  %8083 = vmatpush1.bf16.msra.mxu1 %v16468_v45 }
 0xa5f   :  { %8041 = vmatprep.subr.bf16.mxu0 %v16473_v4  ;;  %8084 = vmatprep.subr.bf16.mxu1 %v16476_v28 }
 0xa62   :  { %8042 = vmatpush1.bf16.msra.mxu0 %v16471_v1  ;;  %8085 = vmatpush1.bf16.msra.mxu1 %v16474_v42 }
 0xa63   :  { %8043 = vmatprep.subr.bf16.mxu0 %v16479_v15  ;;  %8086 = vmatprep.subr.bf16.mxu1 %v16482_v17 }
 0xa66   :  { %8044 = vmatpush1.bf16.msra.mxu0 %v16477_v21  ;;  %8087 = vmatpush1.bf16.msra.mxu1 %v16480_v57 }
 0xa67   :  { %8045 = vmatprep.subr.bf16.mxu0 %v16485_v20  ;;  %8088 = vmatprep.subr.bf16.mxu1 %v16488_v40 }
 0xa6a   :  { %8046 = vmatpush1.bf16.msra.mxu0 %v16483_v9  ;;  %8089 = vmatpush1.bf16.msra.mxu1 %v16486_v19 }
 0xa6b   :  { %15551 = vmatprep.subr.bf16.mxu0 %v17347_v33  ;;  %15557 = vmatprep.subr.bf16.mxu1 %v17347_v33 }
 0xa6d   :  { %8064 = vmatmul.mubr.bf16.vlgmr.msra.gmra.mxu0 %v18304_v29  ;;  %8107 = vmatmul.mubr.bf16.vlgmr.msra.gmra.mxu1 %v18304_v29  ;;  %v14931_v29 = vpack.c.bf16 %v18195_v63, %v18195_v63 }
 0xa6e   :  { %15552 = vmatpush3.bf16.xpose.msra.mxu0 %v14933_v12  ;;  %15558 = vmatpush3.bf16.xpose.msra.mxu1 %v14934_v43 }
 0xa6f   :  { %15553 = vmatprep.mubr.msk.bf16.mxu0 %vm17348_vm15, %v17347_v33  ;;  %15559 = vmatprep.mubr.msk.bf16.mxu1 %vm17348_vm15, %v17347_v33 }
 0xa70   :  { %15563 = vmatprep.subr.bf16.mxu0 %v17347_v33  ;;  %15569 = vmatprep.subr.bf16.mxu1 %v17347_v33 }
 0xa75   :  { %15554 = vmatmul.mubr.bf16.vlgmr.msra.gmra.mxu0 %v14931_v29  ;;  %15560 = vmatmul.mubr.bf16.vlgmr.msra.gmra.mxu1 %v14932_v52 }
 0xa76   :  { %15564 = vmatpush3.bf16.msra.mxu0 %v8246_v0  ;;  %15570 = vmatpush3.bf16.msra.mxu1 %v8292_v44 }
 0xa77   :  { %15565 = vmatprep.mubr.msk.bf16.mxu0 %vm17348_vm15, %v17347_v33  ;;  %15571 = vmatprep.mubr.msk.bf16.mxu1 %vm17348_vm15, %v17347_v33 }
 0xb0d   :  { %v7819_v61 = vpop.f32.mrf.mxu0  ;;  %v7862_v18 = vpop.f32.mrf.mxu1 }
 0xb0f   :  { %v7821_v63 = vpop.f32.mrf.mxu0  ;;  %v7864_v10 = vpop.f32.mrf.mxu1 }
 0xb11   :  { %v7823_v26 = vpop.f32.mrf.mxu0  ;;  %v7866_v27 = vpop.f32.mrf.mxu1 }
 0xb13   :  { %v7825_v2 = vpop.f32.mrf.mxu0  ;;  %v7868_v30 = vpop.f32.mrf.mxu1 }
 0xb2d   :  { %v8065_v59 = vpop.f32.mrf.mxu0  ;;  %v8108_v55 = vpop.f32.mrf.mxu1 }
 0xb2e   :  { %v18344_v37 = vadd.f32 %v8065_v59, %v7819_v61  ;;  %v18346_v45 = vadd.f32 %v8108_v55, %v7862_v18 }
 0xb2f   :  { %v8067_v4 = vpop.f32.mrf.mxu0  ;;  %v8110_v28 = vpop.f32.mrf.mxu1 }
 0xb30   :  { %v18348_v1 = vadd.f32 %v8067_v4, %v7821_v63  ;;  %v18350_v42 = vadd.f32 %v8110_v28, %v7864_v10 }
 0xb31   :  { %v8069_v15 = vpop.f32.mrf.mxu0  ;;  %v8112_v17 = vpop.f32.mrf.mxu1 }
 0xb32   :  { %v18352_v21 = vadd.f32 %v8069_v15, %v7823_v26  ;;  %v18354_v57 = vadd.f32 %v8112_v17, %v7866_v27 }
 0xb33   :  { %v8071_v20 = vpop.f32.mrf.mxu0  ;;  %v8114_v40 = vpop.f32.mrf.mxu1 }
 0xb34   :  { %v18356_v9 = vadd.f32 %v8071_v20, %v7825_v2  ;;  %v18358_v19 = vadd.f32 %v8114_v40, %v7868_v30  ;;  %v16491_v20 = vld [vmem:[#allocation17 + $0x2e4] ss:$16 sps:$4 sm:$0xff]   ;;  %v16494_v40 = vld [vmem:[#allocation17 + $0x2ec] ss:$16 sps:$4 sm:$0xff]  }
 0xb35   :  { %v8170_v12 = vpop.f32.mrf.mxu0  ;;  %v8210_v43 = vpop.f32.mrf.mxu1  ;;  %8495 = vmatprep.subr.bf16.mxu0 %v16491_v20  ;;  %8538 = vmatprep.subr.bf16.mxu1 %v16494_v40  ;;  %v16518_v20 = vld [vmem:[#allocation17 + $0x26c] ss:$16 sps:$4 sm:$0xff]   ;;  %v16515_v40 = vld [vmem:[#allocation17 + $0x264] ss:$16 sps:$4 sm:$0xff]  }
 0xb36   :  { %v8216_v58 = vmul.f32 0.088388346, %v8170_v12  ;;  %v8217_v53 = vmul.f32 0.088388346, %v8210_v43 }
 0xb37   :  { %v15555_v29 = vpop.f32.mrf.mxu0  ;;  %v15561_v52 = vpop.f32.mrf.mxu1 }
 0xb38   :  { %v8221_v0 = vsel %vm7288_vm2, %v8217_v53, -inf  ;;  %v8218_v44 = vsel %vm7288_vm2, %v8216_v58, -inf }
 0xb39   :  { %8222 = vmax.xlane.f32.xlu1 %v8221_v0  ;;  %v8213_v61 = vpop.f32.mrf.mxu1  ;;  %8219 = vmax.xlane.f32.xlu0 %v8218_v44  ;;  %v8173_v18 = vpop.f32.mrf.mxu0  ;;  %v16492_v0 = vld [vmem:[#allocation17 + $0x2e8] ss:$16 sps:$4 sm:$0xff]  }
 0xb3a   :  { %v16489_v61 = vld [vmem:[#allocation17 + $0x2e0] ss:$16 sps:$4 sm:$0xff]   ;;  %v16500_v18 = vld [vmem:[#allocation17 + $0x2cc] ss:$16 sps:$4 sm:$0xff]  }
 0xb3b   :  { %v15556_v63 = vpop.f32.mrf.mxu0  ;;  %v15562_v10 = vpop.f32.mrf.mxu1 }
 0xb3c   :  { %v16497_v10 = vld [vmem:[#allocation17 + $0x2c4] ss:$16 sps:$4 sm:$0xff]  }
 0xbc2   :  { %v8223_v26 = vpop.xlane.xlu1 %8222  ;;  %v8220_v27 = vpop.xlane.xlu0 %8219 }
 0xbc3   :  { %v8225_v2 = vsub.f32 %v8217_v53, %v8223_v26  ;;  %v8224_v30 = vsub.f32 %v8216_v58, %v8220_v27  ;;  %v16498_v26 = vld [vmem:[#allocation17 + $0x2c8] ss:$16 sps:$4 sm:$0xff]   ;;  %v16495_v27 = vld [vmem:[#allocation17 + $0x2c0] ss:$16 sps:$4 sm:$0xff]  }
 0xbc5   :  { %v8228_v59 = vmul.f32 1.442695, %v8225_v2  ;;  %v8226_v55 = vmul.f32 1.442695, %v8224_v30  ;;  %v16506_v2 = vld [vmem:[#allocation17 + $0x2ac] ss:$16 sps:$4 sm:$0xff]  }
 0xbc6   :  { %v16503_v30 = vld [vmem:[#allocation17 + $0x2a4] ss:$16 sps:$4 sm:$0xff]  }
 0xbc7   :  { %16989 = vpow2.f32 %v8228_v59  ;;  %v16504_v59 = vld [vmem:[#allocation17 + $0x2a8] ss:$16 sps:$4 sm:$0xff]  }
 0xbc8   :  { %16991 = vpow2.f32 %v8226_v55  ;;  %v16501_v55 = vld [vmem:[#allocation17 + $0x2a0] ss:$16 sps:$4 sm:$0xff]  }
 0xbd4   :  { %v16990_v4 = vpop.eup %16989 }
 0xbd5   :  { %v16992_v28 = vpop.eup %16991  ;;  %v8233_v15 = vsel %vm7288_vm2, %v16990_v4, 0.0 }
 0xbd6   :  { %8234 = vadd.xlane.f32.xlu1 %v8233_v15  ;;  %v8230_v17 = vsel %vm7288_vm2, %v16992_v28, 0.0  ;;  %v16510_v15 = vld [vmem:[#allocation17 + $0x288] ss:$16 sps:$4 sm:$0xff]  }
 0xbd7   :  { %8231 = vadd.xlane.f32.xlu0 %v8230_v17  ;;  %v16507_v17 = vld [vmem:[#allocation17 + $0x280] ss:$16 sps:$4 sm:$0xff]  }
 0xc5f   :  { %v8235_v12 = vpop.xlane.xlu1 %8234 }
 0xc60   :  { %16993 = vrcp.f32 %v8235_v12  ;;  %v8232_v43 = vpop.xlane.xlu0 %8231  ;;  %v16516_v12 = vld [vmem:[#allocation17 + $0x268] ss:$16 sps:$4 sm:$0xff]  }
 0xc61   :  { %16995 = vrcp.f32 %v8232_v43  ;;  %v16513_v43 = vld [vmem:[#allocation17 + $0x260] ss:$16 sps:$4 sm:$0xff]  }
 0xc6d   :  { %v16994_v58 = vpop.eup %16993 }
 0xc6e   :  { %v16996_v53 = vpop.eup %16995  ;;  %v8239_v29 = vmul.f32 %v16994_v58, %v16990_v4  ;;  %v16512_v4 = vld [vmem:[#allocation17 + $0x28c] ss:$16 sps:$4 sm:$0xff]  }
 0xc6f   :  { %v8237_v52 = vmul.f32 %v16996_v53, %v16992_v28  ;;  %v16509_v28 = vld [vmem:[#allocation17 + $0x284] ss:$16 sps:$4 sm:$0xff]   ;;  %v16524_v58 = vld [vmem:[#allocation17 + $0x24c] ss:$16 sps:$4 sm:$0xff]  }
 0xc70   :  { %v8241_v44 = vpack.c.bf16 %v8239_v29, %v8239_v29  ;;  %v16521_v53 = vld [vmem:[#allocation17 + $0x244] ss:$16 sps:$4 sm:$0xff]   ;;  %v16522_v29 = vld [vmem:[#allocation17 + $0x248] ss:$16 sps:$4 sm:$0xff]  }
 0xc71   :  { %v8240_v63 = vpack.c.bf16 %v8237_v52, %v8237_v52  ;;  %v16519_v52 = vld [vmem:[#allocation17 + $0x240] ss:$16 sps:$4 sm:$0xff]  }
 0xc72   :  { %15572 = vmatmul.mubr.msk.bf16.vlgmr.msra.gmra.mxu1 %vm7288_vm2, %v8241_v44  ;;  %v16527_v44 = vld [vmem:[#allocation17 + $0x224] ss:$16 sps:$4 sm:$0xff]  }
 0xc73   :  { %15566 = vmatmul.mubr.msk.bf16.vlgmr.msra.gmra.mxu0 %vm7288_vm2, %v8240_v63  ;;  %8539 = vmatpush1.bf16.msra.mxu1 %v16492_v0  ;;  %v16530_v0 = vld [vmem:[#allocation17 + $0x22c] ss:$16 sps:$4 sm:$0xff]  }
 0xc74   :  { %8496 = vmatpush1.bf16.msra.mxu0 %v16489_v61  ;;  %8540 = vmatprep.subr.bf16.mxu1 %v16500_v18  ;;  %v16528_v61 = vld [vmem:[#allocation17 + $0x228] ss:$16 sps:$4 sm:$0xff]   ;;  %v16525_v18 = vld [vmem:[#allocation17 + $0x220] ss:$16 sps:$4 sm:$0xff]   ;;  %v16536_v63 = vld [vmem:[#allocation17 + $0x20c] ss:$16 sps:$4 sm:$0xff]  }
 0xc75   :  { %8497 = vmatprep.subr.bf16.mxu0 %v16497_v10  ;;  %8527 = vmatprep.mubr.bf16.mxu0 %v19003_v14  ;;  %v16533_v10 = vld [vmem:[#allocation17 + $0x204] ss:$16 sps:$4 sm:$0xff]  }
 0xc76   :  { %8570 = vmatprep.mubr.bf16.mxu1 %v19003_v14 }
 0xc77   :  { %8541 = vmatpush1.bf16.msra.mxu1 %v16498_v26  ;;  %v16534_v26 = vld [vmem:[#allocation17 + $0x208] ss:$16 sps:$4 sm:$0xff]  }
 0xc78   :  { %8498 = vmatpush1.bf16.msra.mxu0 %v16495_v27  ;;  %8542 = vmatprep.subr.bf16.mxu1 %v16506_v2  ;;  %v16531_v27 = vld [vmem:[#allocation17 + $0x200] ss:$16 sps:$4 sm:$0xff]  }
 0xc79   :  { %8499 = vmatprep.subr.bf16.mxu0 %v16503_v30 }
 0xc7b   :  { %8543 = vmatpush1.bf16.msra.mxu1 %v16504_v59  ;;  %v5465_v59 = vadd.f32 %v18207_v23, %v18190_v25  ;;  %v14941_v23 = vpack.c.bf16 %v18267_v34, %v18267_v34 }
 0xc7c   :  { %8500 = vmatpush1.bf16.msra.mxu0 %v16501_v55  ;;  %8544 = vmatprep.subr.bf16.mxu1 %v16512_v4 }
 0xc7d   :  { %8501 = vmatprep.subr.bf16.mxu0 %v16509_v28  ;;  %v14939_v28 = vpack.c.bf16 %v18243_v49, %v18243_v49  ;;  %v14942_v49 = vpack.c.bf16 %v18271_v11, %v18271_v11 }
 0xc7f   :  { %8545 = vmatpush1.bf16.msra.mxu1 %v16510_v15  ;;  %v14940_v15 = vpack.c.bf16 %v18247_v36, %v18247_v36 }
 0xc80   :  { %8502 = vmatpush1.bf16.msra.mxu0 %v16507_v17  ;;  %8546 = vmatprep.subr.bf16.mxu1 %v16518_v20 }
 0xc81   :  { %8503 = vmatprep.subr.bf16.mxu0 %v16515_v40 }
 0xc83   :  { %8547 = vmatpush1.bf16.msra.mxu1 %v16516_v12  ;;  %v5508_v12 = vadd.f32 %v18210_v62, %v5465_v59  ;;  %v14937_v62 = vpack.c.bf16 %v18199_v50, %v18199_v50 }
 0xc84   :  { %8504 = vmatpush1.bf16.msra.mxu0 %v16513_v43  ;;  %8548 = vmatprep.subr.bf16.mxu1 %v16524_v58  ;;  %v8718_v58 = vsel %vm7316_vm1, %v14941_v23, 0 }
 0xc85   :  { %8505 = vmatprep.subr.bf16.mxu0 %v16521_v53  ;;  %v14938_v36 = vpack.c.bf16 %v5508_v12, %v5508_v12  ;;  %v8764_v53 = vsel %vm7316_vm1, %v14942_v49, 0 }
 0xc87   :  { %8549 = vmatpush1.bf16.msra.mxu1 %v16522_v29 }
 0xc88   :  { %8506 = vmatpush1.bf16.msra.mxu0 %v16519_v52  ;;  %8550 = vmatprep.subr.bf16.mxu1 %v16530_v0 }
 0xc89   :  { %8507 = vmatprep.subr.bf16.mxu0 %v16527_v44 }
 0xc8b   :  { %8551 = vmatpush1.bf16.msra.mxu1 %v16528_v61 }
 0xc8c   :  { %8508 = vmatpush1.bf16.msra.mxu0 %v16525_v18  ;;  %8552 = vmatprep.subr.bf16.mxu1 %v16536_v63 }
 0xc8d   :  { %8509 = vmatprep.subr.bf16.mxu0 %v16533_v10 }
 0xc8f   :  { %8553 = vmatpush1.bf16.msra.mxu1 %v16534_v26 }
 0xc90   :  { %8510 = vmatpush1.bf16.msra.mxu0 %v16531_v27  ;;  %15581 = vmatprep.subr.bf16.mxu1 %v17347_v33 }
 0xc91   :  { %15575 = vmatprep.subr.bf16.mxu0 %v17347_v33 }
 0xd32   :  { %v8328_v2 = vpop.f32.mrf.mxu1 }
 0xd33   :  { %v8282_v30 = vpop.f32.mrf.mxu0 }
 0xd34   :  { %v8334_v55 = vpack.c.bf16 %v8328_v2, %v8282_v30  ;;  %v15573_v4 = vpop.f32.mrf.mxu1 }
 0xd35   :  { %v15567_v17 = vpop.f32.mrf.mxu0 }
 0xd36   :  { %8528 = vmatmul.mubr.bf16.vlgmr.msra.gmra.mxu0 %v8334_v55  ;;  %8571 = vmatmul.mubr.bf16.vlgmr.msra.gmra.mxu1 %v8334_v55  ;;  %v8331_v20 = vpop.f32.mrf.mxu1 }
 0xd37   :  { %15576 = vmatpush3.bf16.xpose.msra.mxu0 %v14939_v28  ;;  %15582 = vmatpush3.bf16.xpose.msra.mxu1 %v14940_v15  ;;  %v8285_v40 = vpop.f32.mrf.mxu0 }
 0xd38   :  { %v15574_v43 = vpop.f32.mrf.mxu1  ;;  %15577 = vmatprep.mubr.msk.bf16.mxu0 %vm17348_vm15, %v17347_v33  ;;  %15583 = vmatprep.mubr.msk.bf16.mxu1 %vm17348_vm15, %v17347_v33 }
 0xd39   :  { %v15568_v25 = vpop.f32.mrf.mxu0  ;;  %15587 = vmatprep.subr.bf16.mxu0 %v17347_v33  ;;  %15593 = vmatprep.subr.bf16.mxu1 %v17347_v33 }
 0xd3e   :  { %15578 = vmatmul.mubr.bf16.vlgmr.msra.gmra.mxu0 %v14937_v62  ;;  %15584 = vmatmul.mubr.bf16.vlgmr.msra.gmra.mxu1 %v14938_v36  ;;  %v16539_v36 = vld [vmem:[#allocation17 + $0x3e4] ss:$16 sps:$4 sm:$0xff]  }
 0xd3f   :  { %15588 = vmatpush3.bf16.msra.mxu0 %v8718_v58  ;;  %15594 = vmatpush3.bf16.msra.mxu1 %v8764_v53  ;;  %v16542_v58 = vld [vmem:[#allocation17 + $0x3ec] ss:$16 sps:$4 sm:$0xff]  }
 0xd40   :  { %15589 = vmatprep.mubr.msk.bf16.mxu0 %vm17348_vm15, %v17347_v33  ;;  %15595 = vmatprep.mubr.msk.bf16.mxu1 %vm17348_vm15, %v17347_v33 }
 0xd41   :  { %8967 = vmatprep.subr.bf16.mxu0 %v16539_v36  ;;  %9010 = vmatprep.subr.bf16.mxu1 %v16542_v58  ;;  %v16576_v36 = vld [vmem:[#allocation17 + $0x328] ss:$16 sps:$4 sm:$0xff]   ;;  %v16573_v58 = vld [vmem:[#allocation17 + $0x320] ss:$16 sps:$4 sm:$0xff]  }
 0xdf6   :  { %v8529_v34 = vpop.f32.mrf.mxu0  ;;  %v8572_v11 = vpop.f32.mrf.mxu1 }
 0xdf7   :  { %v18396_v29 = vadd.f32 %v8529_v34, %v18344_v37  ;;  %v18399_v50 = vadd.f32 %v8572_v11, %v18346_v45 }
 0xdf8   :  { %v8531_v52 = vpop.f32.mrf.mxu0  ;;  %v8574_v0 = vpop.f32.mrf.mxu1 }
 0xdf9   :  { %v18402_v44 = vadd.f32 %v8531_v52, %v18348_v1  ;;  %v18405_v61 = vadd.f32 %v8574_v0, %v18350_v42 }
 0xdfa   :  { %v8533_v18 = vpop.f32.mrf.mxu0  ;;  %v8576_v63 = vpop.f32.mrf.mxu1 }
 0xdfb   :  { %v18408_v33 = vadd.f32 %v8533_v18, %v18352_v21  ;;  %v18411_v10 = vadd.f32 %v8576_v63, %v18354_v57  ;;  %v16540_v63 = vld [vmem:[#allocation17 + $0x3e8] ss:$16 sps:$4 sm:$0xff]  }
 0xdfc   :  { %v8535_v37 = vpop.f32.mrf.mxu0  ;;  %v8578_v26 = vpop.f32.mrf.mxu1 }
 0xdfd   :  { %v18414_v45 = vadd.f32 %v8535_v37, %v18356_v9  ;;  %v18417_v27 = vadd.f32 %v8578_v26, %v18358_v19  ;;  %v16537_v26 = vld [vmem:[#allocation17 + $0x3e0] ss:$16 sps:$4 sm:$0xff]  }
 0xdfe   :  { %v8642_v1 = vpop.f32.mrf.mxu0  ;;  %v8682_v2 = vpop.f32.mrf.mxu1 }
 0xdff   :  { %v8688_v42 = vmul.f32 0.088388346, %v8642_v1  ;;  %v8689_v30 = vmul.f32 0.088388346, %v8682_v2  ;;  %v16548_v1 = vld [vmem:[#allocation17 + $0x3cc] ss:$16 sps:$4 sm:$0xff]  }
 0xe00   :  { %v15579_v59 = vpop.f32.mrf.mxu0  ;;  %v15585_v55 = vpop.f32.mrf.mxu1 }
 0xe01   :  { %v8693_v21 = vsel %vm7288_vm2, %v8689_v30, -inf  ;;  %v8690_v4 = vsel %vm7288_vm2, %v8688_v42, -inf  ;;  %v16543_v59 = vld [vmem:[#allocation17 + $0x3c0] ss:$16 sps:$4 sm:$0xff]   ;;  %v16554_v55 = vld [vmem:[#allocation17 + $0x3ac] ss:$16 sps:$4 sm:$0xff]  }
 0xe02   :  { %8694 = vmax.xlane.f32.xlu1 %v8693_v21  ;;  %v8685_v57 = vpop.f32.mrf.mxu1  ;;  %8691 = vmax.xlane.f32.xlu0 %v8690_v4  ;;  %v8645_v28 = vpop.f32.mrf.mxu0  ;;  %v16551_v21 = vld [vmem:[#allocation17 + $0x3a4] ss:$16 sps:$4 sm:$0xff]   ;;  %v16552_v4 = vld [vmem:[#allocation17 + $0x3a8] ss:$16 sps:$4 sm:$0xff]  }
 0xe03   :  { %v16549_v57 = vld [vmem:[#allocation17 + $0x3a0] ss:$16 sps:$4 sm:$0xff]   ;;  %v16560_v28 = vld [vmem:[#allocation17 + $0x38c] ss:$16 sps:$4 sm:$0xff]  }
 0xe04   :  { %v15580_v15 = vpop.f32.mrf.mxu0  ;;  %v15586_v9 = vpop.f32.mrf.mxu1 }
 0xe05   :  { %v16557_v15 = vld [vmem:[#allocation17 + $0x384] ss:$16 sps:$4 sm:$0xff]   ;;  %v16558_v9 = vld [vmem:[#allocation17 + $0x388] ss:$16 sps:$4 sm:$0xff]  }
 0xe8b   :  { %v8695_v17 = vpop.xlane.xlu1 %8694  ;;  %v8692_v20 = vpop.xlane.xlu0 %8691 }
 0xe8c   :  { %v8697_v19 = vsub.f32 %v8689_v30, %v8695_v17  ;;  %v8696_v40 = vsub.f32 %v8688_v42, %v8692_v20  ;;  %v16545_v42 = vld [vmem:[#allocation17 + $0x3c4] ss:$16 sps:$4 sm:$0xff]   ;;  %v16546_v30 = vld [vmem:[#allocation17 + $0x3c8] ss:$16 sps:$4 sm:$0xff]   ;;  %v16555_v17 = vld [vmem:[#allocation17 + $0x380] ss:$16 sps:$4 sm:$0xff]  }
 0xe8d   :  { %v16566_v20 = vld [vmem:[#allocation17 + $0x36c] ss:$16 sps:$4 sm:$0xff]  }
 0xe8e   :  { %v8700_v12 = vmul.f32 1.442695, %v8697_v19  ;;  %v8698_v43 = vmul.f32 1.442695, %v8696_v40  ;;  %v16563_v19 = vld [vmem:[#allocation17 + $0x364] ss:$16 sps:$4 sm:$0xff]  }
 0xe8f   :  { %v16564_v40 = vld [vmem:[#allocation17 + $0x368] ss:$16 sps:$4 sm:$0xff]  }
 0xe90   :  { %16997 = vpow2.f32 %v8700_v12  ;;  %v16572_v12 = vld [vmem:[#allocation17 + $0x34c] ss:$16 sps:$4 sm:$0xff]  }
 0xe91   :  { %16999 = vpow2.f32 %v8698_v43  ;;  %v16569_v43 = vld [vmem:[#allocation17 + $0x344] ss:$16 sps:$4 sm:$0xff]  }
 0xe9d   :  { %v16998_v25 = vpop.eup %16997 }
 0xe9e   :  { %v17000_v23 = vpop.eup %16999  ;;  %v8705_v49 = vsel %vm7288_vm2, %v16998_v25, 0.0 }
 0xe9f   :  { %8706 = vadd.xlane.f32.xlu1 %v8705_v49  ;;  %v8702_v62 = vsel %vm7288_vm2, %v17000_v23, 0.0  ;;  %v16578_v49 = vld [vmem:[#allocation17 + $0x32c] ss:$16 sps:$4 sm:$0xff]  }
 0xea0   :  { %8703 = vadd.xlane.f32.xlu0 %v8702_v62  ;;  %v16575_v62 = vld [vmem:[#allocation17 + $0x324] ss:$16 sps:$4 sm:$0xff]  }
 0xf28   :  { %v8707_v53 = vpop.xlane.xlu1 %8706 }
 0xf29   :  { %17001 = vrcp.f32 %v8707_v53  ;;  %v8704_v34 = vpop.xlane.xlu0 %8703  ;;  %v16584_v53 = vld [vmem:[#allocation17 + $0x30c] ss:$16 sps:$4 sm:$0xff]  }
 0xf2a   :  { %17003 = vrcp.f32 %v8704_v34  ;;  %v16581_v34 = vld [vmem:[#allocation17 + $0x304] ss:$16 sps:$4 sm:$0xff]  }
 0xf36   :  { %v17002_v11 = vpop.eup %17001 }
 0xf37   :  { %v17004_v52 = vpop.eup %17003  ;;  %v8711_v0 = vmul.f32 %v17002_v11, %v16998_v25  ;;  %v16570_v25 = vld [vmem:[#allocation17 + $0x348] ss:$16 sps:$4 sm:$0xff]  }
 0xf38   :  { %v8709_v18 = vmul.f32 %v17004_v52, %v17000_v23  ;;  %v16567_v23 = vld [vmem:[#allocation17 + $0x340] ss:$16 sps:$4 sm:$0xff]   ;;  %v16582_v11 = vld [vmem:[#allocation17 + $0x308] ss:$16 sps:$4 sm:$0xff]  }
 0xf39   :  { %v8713_v37 = vpack.c.bf16 %v8711_v0, %v8711_v0  ;;  %v16579_v52 = vld [vmem:[#allocation17 + $0x300] ss:$16 sps:$4 sm:$0xff]  }
 0xf3a   :  { %v8712_v2 = vpack.c.bf16 %v8709_v18, %v8709_v18  ;;  %v16585_v0 = vld [vmem:[#allocation20 + $0x478] sm:$0xff]  }
 0xf3b   :  { %15596 = vmatmul.mubr.msk.bf16.vlgmr.msra.gmra.mxu1 %vm7288_vm2, %v8713_v37  ;;  %v16586_v18 = vld [vmem:[#allocation20 + $0x4f8] sm:$0xff]   ;;  %v857_v37 = vadd.f32 %v17669_v39, %v17637_v38 }
 0xf3c   :  { %15590 = vmatmul.mubr.msk.bf16.vlgmr.msra.gmra.mxu0 %vm7288_vm2, %v8712_v2  ;;  %9011 = vmatpush1.bf16.msra.mxu1 %v16540_v63  ;;  %v814_v63 = vadd.f32 %v17667_v32, %v17635_v35  ;;  %v17005_v2 = vld [vmem:[#allocation5] sm:$0xf] }
 0xf3d   :  { %8968 = vmatpush1.bf16.msra.mxu0 %v16537_v26  ;;  %9012 = vmatprep.subr.bf16.mxu1 %v16548_v1  ;;  %v1145_v1 = vadd.f32 %v17759_v8, %v857_v37  ;;  %v17006_v8 = vld [vmem:[#allocation7] sm:$0xf] }
 0xf3e   :  { %8969 = vmatprep.subr.bf16.mxu0 %v16545_v42  ;;  %8999 = vmatprep.mubr.bf16.mxu0 %v19003_v14  ;;  %v1143_v26 = vadd.f32 %v17757_v3, %v814_v63  ;;  %v1155_v42 = vrot.slane %v17005_v2, %v17762_v46 }
 0xf3f   :  { %9042 = vmatprep.mubr.bf16.mxu1 %v19003_v14  ;;  %v16561_v14 = vld [vmem:[#allocation17 + $0x360] ss:$16 sps:$4 sm:$0xff]  }
 0xf40   :  { %9013 = vmatpush1.bf16.msra.mxu1 %v16546_v30  ;;  %v1163_v30 = vrot.slane %v17005_v2, %v17765_v47  ;;  %v16591_v2 = vld [vmem:[#allocation20 + $0x430] sm:$0xff]  }
 0xf41   :  { %8970 = vmatpush1.bf16.msra.mxu0 %v16543_v59  ;;  %9014 = vmatprep.subr.bf16.mxu1 %v16554_v55  ;;  %v1173_v59 = vadd.f32 %v1155_v42, %v1143_v26 }
 0xf42   :  { %8971 = vmatprep.subr.bf16.mxu0 %v16551_v21  ;;  %v1175_v55 = vadd.f32 %v1163_v30, %v1145_v1  ;;  %v1169_v21 = vadd.f32 %v1155_v42, %v17680_v60  ;;  %v16592_v42 = vld [vmem:[#allocation20 + $0x4b0] sm:$0xff]  }
 0xf43   :  { %vm1181_vm5 = vcmp.ge.f32.partialorder %v1173_v59, 0.0 }
 0xf44   :  { %9015 = vmatpush1.bf16.msra.mxu1 %v16552_v4  ;;  %v1171_v4 = vadd.f32 %v1163_v30, %v17683_v31  ;;  %v1191_v35 = vmul.f32 0.05, %v1175_v55  ;;  %vm1183_vm6 = vcmp.ge.f32.partialorder %v1175_v55, 0.0  ;;  %v1185_v38 = vmul.f32 0.05, %v1169_v21 }
 0xf45   :  { %8972 = vmatpush1.bf16.msra.mxu0 %v16549_v57  ;;  %9016 = vmatprep.subr.bf16.mxu1 %v16560_v28  ;;  %v1189_v57 = vmul.f32 0.05, %v1173_v59  ;;  %vm1177_vm8 = vcmp.ge.f32.partialorder %v1169_v21, 0.0  ;;  %v1209_v28 = vrot.slane %v17006_v8, %v17762_v46 }
 0xf46   :  { %8973 = vmatprep.subr.bf16.mxu0 %v16557_v15  ;;  %v1187_v32 = vmul.f32 0.05, %v1171_v4  ;;  %vm1179_vm9 = vcmp.ge.f32.partialorder %v1171_v4, 0.0  ;;  %v1199_v3 = vsel %vm1183_vm6, %v1175_v55, %v1191_v35  ;;  %v1217_v15 = vrot.slane %v17006_v8, %v17765_v47  ;;  %v16594_v55 = vld [vmem:[#allocation20 + $0x4e8] sm:$0xff]   ;;  %v16597_v35 = vld [vmem:[#allocation20 + $0x460] sm:$0xff]   ;;  %v16602_v8 = vld [vmem:[#allocation20 + $0x4d8] sm:$0xff]  }
 0xf47   :  { %v1197_v39 = vsel %vm1181_vm5, %v1173_v59, %v1189_v57  ;;  %v16593_v59 = vld [vmem:[#allocation20 + $0x468] sm:$0xff]  }
 0xf48   :  { %9017 = vmatpush1.bf16.msra.mxu1 %v16558_v9  ;;  %v1193_v9 = vsel %vm1177_vm8, %v1169_v21, %v1185_v38  ;;  %v1227_v60 = vmul.f32 %v1209_v28, %v1197_v39  ;;  %v16596_v57 = vld [vmem:[#allocation20 + $0x4a8] sm:$0xff]   ;;  %v16598_v38 = vld [vmem:[#allocation20 + $0x4e0] sm:$0xff]  }
 0xf49   :  { %8974 = vmatpush1.bf16.msra.mxu0 %v16555_v17  ;;  %9018 = vmatprep.subr.bf16.mxu1 %v16566_v20  ;;  %v1195_v17 = vsel %vm1179_vm9, %v1171_v4, %v1187_v32  ;;  %v1229_v20 = vmul.f32 %v1217_v15, %v1199_v3  ;;  %v1223_v31 = vmul.f32 %v1209_v28, %v1193_v9  ;;  %v16595_v4 = vld [vmem:[#allocation20 + $0x428] sm:$0xff]   ;;  %v16599_v32 = vld [vmem:[#allocation20 + $0x420] sm:$0xff]   ;;  %v16601_v3 = vld [vmem:[#allocation20 + $0x458] sm:$0xff]  }
 0xf4a   :  { %8975 = vmatprep.subr.bf16.mxu0 %v16563_v19  ;;  %v1225_v19 = vmul.f32 %v1217_v15, %v1195_v17  ;;  %v16600_v39 = vld [vmem:[#allocation20 + $0x4a0] sm:$0xff]   ;;  %v16603_v28 = vld [vmem:[#allocation20 + $0x418] sm:$0xff]   ;;  %v16605_v9 = vld [vmem:[#allocation20 + $0x450] sm:$0xff]  }
 0xf4b   :  { %v16604_v15 = vld [vmem:[#allocation20 + $0x498] sm:$0xff]   ;;  %v16606_v17 = vld [vmem:[#allocation20 + $0x4d0] sm:$0xff]  }
 0xf4c   :  { %9019 = vmatpush1.bf16.msra.mxu1 %v16564_v40  ;;  %v17007_v40 = vld [vmem:[#allocation8] sm:$0xf] }
 0xf4d   :  { %8976 = vmatpush1.bf16.msra.mxu0 %v16561_v14  ;;  %9020 = vmatprep.subr.bf16.mxu1 %v16572_v12  ;;  %v1239_v14 = vrot.slane %v17007_v40, %v17762_v46  ;;  %v1247_v12 = vrot.slane %v17007_v40, %v17765_v47  ;;  %v16611_v40 = vld [vmem:[#allocation20 + $0x408] sm:$0xff]  }
 0xf4e   :  { %8977 = vmatprep.subr.bf16.mxu0 %v16569_v43 }
 0xf50   :  { %9021 = vmatpush1.bf16.msra.mxu1 %v16570_v25  ;;  %v18441_v25 = vadd.f32 %v1239_v14, %v1227_v60  ;;  %v16607_v60 = vld [vmem:[#allocation20 + $0x410] sm:$0xff]  }
 0xf51   :  { %8978 = vmatpush1.bf16.msra.mxu0 %v16567_v23  ;;  %9022 = vmatprep.subr.bf16.mxu1 %v16578_v49  ;;  %v18443_v23 = vadd.f32 %v1247_v12, %v1229_v20  ;;  %v16608_v20 = vld [vmem:[#allocation20 + $0x490] sm:$0xff]  }
 0xf52   :  { %8979 = vmatprep.subr.bf16.mxu0 %v16575_v62  ;;  %v16587_v62 = vld [vmem:[#allocation20 + $0x438] sm:$0xff]  }
 0xf54   :  { %9023 = vmatpush1.bf16.msra.mxu1 %v16576_v36  ;;  %v16588_v36 = vld [vmem:[#allocation20 + $0x4b8] sm:$0xff]  }
 0xf55   :  { %8980 = vmatpush1.bf16.msra.mxu0 %v16573_v58  ;;  %9024 = vmatprep.subr.bf16.mxu1 %v16584_v53 }
 0xf56   :  { %8981 = vmatprep.subr.bf16.mxu0 %v16581_v34  ;;  %v18445_v34 = vadd.f32 %v1239_v14, %v1223_v31  ;;  %v16609_v31 = vld [vmem:[#allocation20 + $0x448] sm:$0xff]  }
 0xf57   :  { %v16612_v14 = vld [vmem:[#allocation20 + $0x488] sm:$0xff]  }
 0xf58   :  { %9025 = vmatpush1.bf16.msra.mxu1 %v16582_v11  ;;  %v18447_v11 = vadd.f32 %v1247_v12, %v1225_v19  ;;  %v9091_v37 = vpack.c.bf16 %v18441_v25, %v18445_v34  ;;  %v16610_v19 = vld [vmem:[#allocation20 + $0x4c8] sm:$0xff]   ;;  %v16613_v12 = vld [vmem:[#allocation20 + $0x440] sm:$0xff]  }
 0xf59   :  { %8982 = vmatpush1.bf16.msra.mxu0 %v16579_v52  ;;  %14997 = vmatprep.subr.bf16.mxu1 %v16586_v18  ;;  %v16590_v18 = vld [vmem:[#allocation20 + $0x4f0] sm:$0xff]  }
 0xf5a   :  { %14975 = vmatprep.subr.bf16.mxu0 %v16585_v0  ;;  %v16589_v0 = vld [vmem:[#allocation20 + $0x470] sm:$0xff]   ;;  %v9093_v26 = vpack.c.bf16 %v18443_v23, %v18447_v11 }
 0xffb   :  { %v8800_v43 = vpop.f32.mrf.mxu1 }
 0xffc   :  { %v8754_v49 = vpop.f32.mrf.mxu0 }
 0xffd   :  { %v8806_v58 = vpack.c.bf16 %v8800_v43, %v8754_v49  ;;  %v15597_v53 = vpop.f32.mrf.mxu1  ;;  %v16614_v43 = vld [vmem:[#allocation20 + $0x4c0] sm:$0xff]   ;;  %v9099_v49 = vrot.slane %v18441_v25, 7 }
 0xffe   :  { %v15591_v52 = vpop.f32.mrf.mxu0  ;;  %v16617_v53 = vld [vmem:[#allocation20 + $0x78] sm:$0xff]  }
 0xfff   :  { %9000 = vmatmul.mubr.bf16.vlgmr.msra.gmra.mxu0 %v8806_v58  ;;  %9043 = vmatmul.mubr.bf16.vlgmr.msra.gmra.mxu1 %v8806_v58  ;;  %v8803_v63 = vpop.f32.mrf.mxu1  ;;  %v9101_v58 = vrot.slane %v18443_v23, 7  ;;  %v16618_v52 = vld [vmem:[#allocation20 + $0xf8] sm:$0xff]  }
0x1000   :  { %14976 = vmatpush3.bf16.msra.mxu0 %v16587_v62  ;;  %14998 = vmatpush3.bf16.msra.mxu1 %v16588_v36  ;;  %v8757_v1 = vpop.f32.mrf.mxu0  ;;  %v16615_v62 = vld [vmem:[#allocation20 + $0x400] sm:$0xff]  }
0x1001   :  { %9503 = vmatprep.mubr.bf16.mxu0 %v9091_v37  ;;  %9544 = vmatprep.mubr.bf16.mxu1 %v9093_v26  ;;  %v15598_v30 = vpop.f32.mrf.mxu1  ;;  %v16616_v36 = vld [vmem:[#allocation20 + $0x480] sm:$0xff]   ;;  %v16619_v26 = vld [vmem:[#allocation20 + $0x38] sm:$0xff]  }
0x1002   :  { %v15592_v21 = vpop.f32.mrf.mxu0  ;;  %14977 = vmatprep.subr.bf16.mxu0 %v16589_v0  ;;  %14999 = vmatprep.subr.bf16.mxu1 %v16590_v18  ;;  %v9095_v0 = vrot.slane %v18445_v34, 7  ;;  %v9097_v18 = vrot.slane %v18447_v11, 7 }
0x1003   :  { %v19004_v21 = vpack.c.bf16 %v17697_v22, %v17693_v41  ;;  %v16626_v41 = vld [vmem:[#allocation20 + $0xe8] sm:$0xff]  }
0x1004   :  { %14978 = vmatpush3.bf16.msra.mxu0 %v16591_v2  ;;  %15000 = vmatpush3.bf16.msra.mxu1 %v16592_v42  ;;  %v9103_v63 = vsel %vm276_vm0, %v9095_v0, %v9099_v49  ;;  %v9107_v37 = vsel %vm276_vm0, %v9099_v49, %v9095_v0  ;;  %v9105_v1 = vsel %vm276_vm0, %v9097_v18, %v9101_v58  ;;  %v16620_v42 = vld [vmem:[#allocation20 + $0xb8] sm:$0xff]   ;;  %v16627_v22 = vld [vmem:[#allocation20 + $0x28] sm:$0xff]   ;;  %v16645_v49 = vld [vmem:[#allocation20 + $0x40] sm:$0xff]   ;;  %v9129_v0 = vrot.slane %v18443_v23, 1 }
0x1005   :  { %14979 = vmatprep.subr.bf16.mxu0 %v16593_v59  ;;  %15001 = vmatprep.subr.bf16.mxu1 %v16594_v55  ;;  %v9109_v2 = vsel %vm276_vm0, %v9101_v58, %v9097_v18  ;;  %v14502_v30 = vpack.c.bf16 %v9103_v63, %v9107_v37  ;;  %v16621_v59 = vld [vmem:[#allocation20 + $0x70] sm:$0xff]   ;;  %v9127_v58 = vrot.slane %v18441_v25, 1  ;;  %v16650_v18 = vld [vmem:[#allocation20 + $0x8f8] sm:$0xff]   ;;  %v9123_v63 = vrot.slane %v18445_v34, 1 }
0x1006   :  { %v16622_v55 = vld [vmem:[#allocation20 + $0xf0] sm:$0xff]   ;;  %v9125_v37 = vrot.slane %v18447_v11, 1  ;;  %v19006_v11 = vpack.c.bf16 %v17712_v6, %v17716_v51  ;;  %v16657_v6 = vld [vmem:[#allocation20 + $0x868] sm:$0xff]  }
0x1007   :  { %v9135_v25 = vsel %vm290_vm4, %v9127_v58, %v9123_v63  ;;  %v16653_v34 = vld [vmem:[#allocation20 + $0x870] sm:$0xff]   ;;  %v16658_v51 = vld [vmem:[#allocation20 + $0x8e8] sm:$0xff]  }
0x1008   :  { %14980 = vmatpush3.bf16.msra.mxu0 %v16595_v4  ;;  %15002 = vmatpush3.bf16.msra.mxu1 %v16596_v57  ;;  %v19005_v4 = vpack.c.bf16 %v17700_v54, %v17695_v48  ;;  %v14508_v57 = vpack.c.bf16 %v9105_v1, %v9109_v2  ;;  %v16628_v48 = vld [vmem:[#allocation20 + $0xa8] sm:$0xff]   ;;  %v16629_v54 = vld [vmem:[#allocation20 + $0x60] sm:$0xff]   ;;  %v9131_v1 = vsel %vm290_vm4, %v9123_v63, %v9127_v58  ;;  %v16652_v2 = vld [vmem:[#allocation20 + $0x8b8] sm:$0xff]  }
0x1009   :  { %14981 = vmatprep.subr.bf16.mxu0 %v16597_v35  ;;  %15003 = vmatprep.subr.bf16.mxu1 %v16598_v38  ;;  %v16623_v35 = vld [vmem:[#allocation20 + $0x30] sm:$0xff]   ;;  %v9133_v23 = vsel %vm290_vm4, %v9125_v37, %v9129_v0 }
0x100a   :  { %v16624_v38 = vld [vmem:[#allocation20 + $0xb0] sm:$0xff]  }
0x100c   :  { %14982 = vmatpush3.bf16.msra.mxu0 %v16599_v32  ;;  %15004 = vmatpush3.bf16.msra.mxu1 %v16600_v39  ;;  %v16625_v32 = vld [vmem:[#allocation20 + $0x68] sm:$0xff]   ;;  %v16630_v39 = vld [vmem:[#allocation20 + $0xe0] sm:$0xff]  }
0x100d   :  { %14983 = vmatprep.subr.bf16.mxu0 %v16601_v3  ;;  %15005 = vmatprep.subr.bf16.mxu1 %v16602_v8  ;;  %v16631_v3 = vld [vmem:[#allocation20 + $0x20] sm:$0xff]  }
0x100e   :  { %v16632_v8 = vld [vmem:[#allocation20 + $0xa0] sm:$0xff]  }
0x1010   :  { %14984 = vmatpush3.bf16.msra.mxu0 %v16603_v28  ;;  %15006 = vmatpush3.bf16.msra.mxu1 %v16604_v15  ;;  %v16633_v28 = vld [vmem:[#allocation20 + $0x58] sm:$0xff]  }
0x1011   :  { %14985 = vmatprep.subr.bf16.mxu0 %v16605_v9  ;;  %15007 = vmatprep.subr.bf16.mxu1 %v16606_v17  ;;  %v16634_v15 = vld [vmem:[#allocation20 + $0xd8] sm:$0xff]  }
0x1012   :  { %v16635_v9 = vld [vmem:[#allocation20 + $0x18] sm:$0xff]  }
0x1013   :  { %v16636_v17 = vld [vmem:[#allocation20 + $0x98] sm:$0xff]  }
0x1014   :  { %14986 = vmatpush3.bf16.msra.mxu0 %v16607_v60  ;;  %15008 = vmatpush3.bf16.msra.mxu1 %v16608_v20  ;;  %v16637_v60 = vld [vmem:[#allocation20 + $0x50] sm:$0xff]  }
0x1015   :  { %14987 = vmatprep.subr.bf16.mxu0 %v16609_v31  ;;  %15009 = vmatprep.subr.bf16.mxu1 %v16610_v19  ;;  %v16638_v20 = vld [vmem:[#allocation20 + $0xd0] sm:$0xff]  }
0x1016   :  { %v16639_v31 = vld [vmem:[#allocation20 + $0x10] sm:$0xff]  }
0x1017   :  { %v16640_v19 = vld [vmem:[#allocation20 + $0x90] sm:$0xff]  }
0x1018   :  { %14988 = vmatpush3.bf16.msra.mxu0 %v16611_v40  ;;  %15010 = vmatpush3.bf16.msra.mxu1 %v16612_v14  ;;  %v16641_v40 = vld [vmem:[#allocation20 + $0x48] sm:$0xff]  }
0x1019   :  { %14989 = vmatprep.subr.bf16.mxu0 %v16613_v12  ;;  %15011 = vmatprep.subr.bf16.mxu1 %v16614_v43  ;;  %v16642_v14 = vld [vmem:[#allocation20 + $0xc8] sm:$0xff]  }
0x101a   :  { %v16643_v12 = vld [vmem:[#allocation20 + $0x8] sm:$0xff]  }
0x101b   :  { %v16644_v43 = vld [vmem:[#allocation20 + $0x88] sm:$0xff]  }
0x101c   :  { %14990 = vmatpush3.bf16.msra.mxu0 %v16615_v62  ;;  %15012 = vmatpush3.bf16.msra.mxu1 %v16616_v36  ;;  %v16646_v62 = vld [vmem:[#allocation20 + $0xc0] sm:$0xff]  }
0x101d   :  { %15019 = vmatprep.subr.bf16.mxu0 %v16617_v53  ;;  %15041 = vmatprep.subr.bf16.mxu1 %v16618_v52  ;;  %v16647_v36 = vld [vmem:[#allocation20] sm:$0xff]   ;;  %v16649_v52 = vld [vmem:[#allocation20 + $0x878] sm:$0xff]  }
0x101e   :  { %v16648_v53 = vld [vmem:[#allocation20 + $0x80] sm:$0xff]  }
0x101f   :  { %9504 = vmatmul.mubr.bf16.vlgmr.msra.gmra.mxu0 %v19004_v21  ;;  %9545 = vmatmul.mubr.bf16.vlgmr.msra.gmra.mxu1 %v19005_v4  ;;  %v16655_v4 = vld [vmem:[#allocation20 + $0x830] sm:$0xff]  }
0x1020   :  { %15020 = vmatpush3.bf16.msra.mxu0 %v16619_v26  ;;  %14503 = vmatprep.mubr.msk.bf16.mxu0 %vm17535_vm3, %v14502_v30  ;;  %v16651_v26 = vld [vmem:[#allocation20 + $0x838] sm:$0xff]   ;;  %v14546_v30 = vpack.c.bf16 %v9135_v25, %v9131_v1 }
0x1021   :  { %15042 = vmatpush3.bf16.msra.mxu1 %v16620_v42  ;;  %14509 = vmatprep.mubr.msk.bf16.mxu1 %vm17535_vm3, %v14508_v57  ;;  %v9137_v42 = vsel %vm290_vm4, %v9129_v0, %v9125_v37  ;;  %v16683_v37 = vld [vmem:[#allocation20 + $0x138] sm:$0xff]  }
0x1022   :  { %15021 = vmatprep.subr.bf16.mxu0 %v16621_v59  ;;  %15043 = vmatprep.subr.bf16.mxu1 %v16622_v55  ;;  %v16654_v59 = vld [vmem:[#allocation20 + $0x8f0] sm:$0xff]   ;;  %v19007_v55 = vpack.c.bf16 %v17722_v7, %v17727_v13  ;;  %v14552_v21 = vpack.c.bf16 %v9137_v42, %v9133_v23  ;;  %v16659_v7 = vld [vmem:[#allocation20 + $0x828] sm:$0xff]   ;;  %v16684_v25 = vld [vmem:[#allocation20 + $0x1b8] sm:$0xff]  }
0x1023   :  { %v16660_v13 = vld [vmem:[#allocation20 + $0x8a8] sm:$0xff]   ;;  %v16685_v42 = vld [vmem:[#allocation20 + $0x170] sm:$0xff]  }
0x1024   :  { %15022 = vmatpush3.bf16.msra.mxu0 %v16623_v35  ;;  %v16656_v35 = vld [vmem:[#allocation20 + $0x8b0] sm:$0xff]  }
0x1025   :  { %15044 = vmatpush3.bf16.msra.mxu1 %v16624_v38  ;;  %15023 = vmatprep.subr.bf16.mxu0 %v16625_v32  ;;  %v16661_v38 = vld [vmem:[#allocation20 + $0x860] sm:$0xff]  }
0x1026   :  { %15045 = vmatprep.subr.bf16.mxu1 %v16626_v41  ;;  %v16662_v32 = vld [vmem:[#allocation20 + $0x8e0] sm:$0xff]  }
0x1027   :  { %v16663_v41 = vld [vmem:[#allocation20 + $0x820] sm:$0xff]  }
0x1028   :  { %15024 = vmatpush3.bf16.msra.mxu0 %v16627_v22  ;;  %v16664_v22 = vld [vmem:[#allocation20 + $0x8a0] sm:$0xff]  }
0x1029   :  { %15046 = vmatpush3.bf16.msra.mxu1 %v16628_v48  ;;  %15025 = vmatprep.subr.bf16.mxu0 %v16629_v54  ;;  %v16665_v48 = vld [vmem:[#allocation20 + $0x858] sm:$0xff]  }
0x102a   :  { %15047 = vmatprep.subr.bf16.mxu1 %v16630_v39  ;;  %v16666_v54 = vld [vmem:[#allocation20 + $0x8d8] sm:$0xff]  }
0x102b   :  { %v16667_v39 = vld [vmem:[#allocation20 + $0x818] sm:$0xff]  }
0x102c   :  { %15026 = vmatpush3.bf16.msra.mxu0 %v16631_v3  ;;  %v16668_v3 = vld [vmem:[#allocation20 + $0x898] sm:$0xff]  }
0x102d   :  { %15048 = vmatpush3.bf16.msra.mxu1 %v16632_v8  ;;  %15027 = vmatprep.subr.bf16.mxu0 %v16633_v28  ;;  %v16669_v8 = vld [vmem:[#allocation20 + $0x850] sm:$0xff]  }
0x102e   :  { %15049 = vmatprep.subr.bf16.mxu1 %v16634_v15  ;;  %v16670_v28 = vld [vmem:[#allocation20 + $0x8d0] sm:$0xff]  }
0x102f   :  { %v16671_v15 = vld [vmem:[#allocation20 + $0x810] sm:$0xff]  }
0x1030   :  { %15028 = vmatpush3.bf16.msra.mxu0 %v16635_v9  ;;  %v16672_v9 = vld [vmem:[#allocation20 + $0x890] sm:$0xff]  }
0x1031   :  { %15050 = vmatpush3.bf16.msra.mxu1 %v16636_v17  ;;  %15029 = vmatprep.subr.bf16.mxu0 %v16637_v60  ;;  %v16673_v17 = vld [vmem:[#allocation20 + $0x848] sm:$0xff]  }
0x1032   :  { %15051 = vmatprep.subr.bf16.mxu1 %v16638_v20  ;;  %v16674_v60 = vld [vmem:[#allocation20 + $0x8c8] sm:$0xff]  }
0x1033   :  { %v16675_v20 = vld [vmem:[#allocation20 + $0x808] sm:$0xff]  }
0x1034   :  { %15030 = vmatpush3.bf16.msra.mxu0 %v16639_v31  ;;  %v16676_v31 = vld [vmem:[#allocation20 + $0x888] sm:$0xff]  }
0x1035   :  { %15052 = vmatpush3.bf16.msra.mxu1 %v16640_v19  ;;  %15031 = vmatprep.subr.bf16.mxu0 %v16641_v40  ;;  %v16677_v19 = vld [vmem:[#allocation20 + $0x840] sm:$0xff]  }
0x1036   :  { %15053 = vmatprep.subr.bf16.mxu1 %v16642_v14  ;;  %v16678_v40 = vld [vmem:[#allocation20 + $0x8c0] sm:$0xff]  }
0x1037   :  { %v16679_v14 = vld [vmem:[#allocation20 + $0x800] sm:$0xff]  }
0x1038   :  { %15032 = vmatpush3.bf16.msra.mxu0 %v16643_v12  ;;  %v19009_v12 = vld [vmem:[#allocation55_spill] sm:$0xff] }
0x1039   :  { %15054 = vmatpush3.bf16.msra.mxu1 %v16644_v43  ;;  %15033 = vmatprep.subr.bf16.mxu0 %v16645_v49  ;;  %v10177_v43 = vrot.slane %v19009_v12, 7  ;;  %v16680_v49 = vld [vmem:[#allocation20 + $0x880] sm:$0xff]  }
0x103a   :  { %15055 = vmatprep.subr.bf16.mxu1 %v16646_v62  ;;  %v16681_v62 = vld [vmem:[#allocation20 + $0x178] sm:$0xff]  }
0x103c   :  { %15034 = vmatpush3.bf16.msra.mxu0 %v16647_v36  ;;  %v19010_v36 = vld [vmem:[#allocation57_spill] sm:$0xff] }
0x103d   :  { %15056 = vmatpush3.bf16.msra.mxu1 %v16648_v53  ;;  %15063 = vmatprep.subr.bf16.mxu0 %v16649_v52  ;;  %v10179_v58 = vrot.slane %v19010_v36, 7  ;;  %v16682_v53 = vld [vmem:[#allocation20 + $0x1f8] sm:$0xff]   ;;  %v19011_v52 = vld [vmem:[#allocation54_spill] sm:$0xff] }
0x103e   :  { %15085 = vmatprep.subr.bf16.mxu1 %v16650_v18  ;;  %v10173_v0 = vrot.slane %v19011_v52, 7  ;;  %v19012_v18 = vld [vmem:[#allocation56_spill] sm:$0xff] }
0x103f   :  { %14506 = vmatmul.mubr.msk.bf16.vlgmr.msra.gmra.mxu0 %vm17535_vm3, %v19006_v11  ;;  %v10175_v63 = vrot.slane %v19012_v18, 7  ;;  %v19014_v11 = vld [vmem:[#allocation38_spill] sm:$0xff] }
0x1040   :  { %14512 = vmatmul.mubr.msk.bf16.vlgmr.msra.gmra.mxu1 %vm17535_vm3, %v19007_v55  ;;  %15064 = vmatpush3.bf16.msra.mxu0 %v16651_v26  ;;  %v10181_v26 = vsel %vm276_vm0, %v10173_v0, %v10177_v43  ;;  %v10185_v1 = vsel %vm276_vm0, %v10177_v43, %v10173_v0  ;;  %v16686_v55 = vld [vmem:[#allocation20 + $0x1f0] sm:$0xff]   ;;  %v16709_v43 = vld [vmem:[#allocation20 + $0x140] sm:$0xff]   ;;  %v16714_v0 = vld [vmem:[#allocation20 + $0x5f8] sm:$0xff]  }
0x1041   :  { %14547 = vmatprep.mubr.msk.bf16.mxu0 %vm17554_vm7, %v14546_v30  ;;  %15086 = vmatpush3.bf16.msra.mxu1 %v16652_v2  ;;  %v10183_v2 = vsel %vm276_vm0, %v10175_v63, %v10179_v58  ;;  %v10187_v23 = vsel %vm276_vm0, %v10179_v58, %v10175_v63  ;;  %v16712_v58 = vld [vmem:[#allocation20 + $0x180] sm:$0xff]   ;;  %v16715_v63 = vld [vmem:[#allocation20 + $0x538] sm:$0xff]  }
0x1042   :  { %14553 = vmatprep.mubr.msk.bf16.mxu1 %vm17554_vm7, %v14552_v21  ;;  %15065 = vmatprep.subr.bf16.mxu0 %v16653_v34  ;;  %v19013_v34 = vld [vmem:[#allocation39_spill] sm:$0xff]  ;;  %v19016_v21 = vld [vmem:[#allocation41_spill] sm:$0xff] }
0x1043   :  { %15087 = vmatprep.subr.bf16.mxu1 %v16654_v59  ;;  %v19015_v30 = vpack.c.bf16 %v19013_v34, %v19014_v11  ;;  %v14590_v59 = vpack.c.bf16 %v10181_v26, %v10185_v1  ;;  %v16717_v26 = vld [vmem:[#allocation20 + $0x570] sm:$0xff]  }
0x1044   :  { %15066 = vmatpush3.bf16.msra.mxu0 %v16655_v4  ;;  %v19017_v4 = vld [vmem:[#allocation40_spill] sm:$0xff]  ;;  %v19019_v1 = vld [vmem:[#allocation46_spill] sm:$0xff]  ;;  %v19023_v11 = vld [vmem:[#allocation51_spill] sm:$0xff] }
0x1045   :  { %15088 = vmatpush3.bf16.msra.mxu1 %v16656_v35  ;;  %15067 = vmatprep.subr.bf16.mxu0 %v16657_v6  ;;  %v19018_v35 = vpack.c.bf16 %v19016_v21, %v19017_v4  ;;  %v14596_v6 = vpack.c.bf16 %v10183_v2, %v10187_v23  ;;  %v10169_v23 = vpack.c.bf16 %v19009_v12, %v19011_v52  ;;  %v19022_v34 = vld [vmem:[#allocation50_spill] sm:$0xff] }
0x1046   :  { %15089 = vmatprep.subr.bf16.mxu1 %v16658_v51  ;;  %v16687_v51 = vld [vmem:[#allocation20 + $0x130] sm:$0xff]   ;;  %v16721_v4 = vld [vmem:[#allocation20 + $0x568] sm:$0xff]  }
0x1047   :  { %v16720_v21 = vld [vmem:[#allocation20 + $0x5b0] sm:$0xff]   ;;  %v16723_v12 = vld [vmem:[#allocation20 + $0x528] sm:$0xff]  }
0x1048   :  { %15068 = vmatpush3.bf16.msra.mxu0 %v16659_v7  ;;  %v16688_v7 = vld [vmem:[#allocation20 + $0x1b0] sm:$0xff]   ;;  %v16724_v52 = vld [vmem:[#allocation20 + $0x5a8] sm:$0xff]  }
0x1049   :  { %15090 = vmatpush3.bf16.msra.mxu1 %v16660_v13  ;;  %15069 = vmatprep.subr.bf16.mxu0 %v16661_v38  ;;  %v16689_v13 = vld [vmem:[#allocation20 + $0x168] sm:$0xff]  }
0x104a   :  { %15091 = vmatprep.subr.bf16.mxu1 %v16662_v32  ;;  %v16690_v38 = vld [vmem:[#allocation20 + $0x1e8] sm:$0xff]  }
0x104b   :  { %v16691_v32 = vld [vmem:[#allocation20 + $0x128] sm:$0xff]  }
0x104c   :  { %15070 = vmatpush3.bf16.msra.mxu0 %v16663_v41  ;;  %v16692_v41 = vld [vmem:[#allocation20 + $0x1a8] sm:$0xff]  }
0x104d   :  { %15092 = vmatpush3.bf16.msra.mxu1 %v16664_v22  ;;  %15071 = vmatprep.subr.bf16.mxu0 %v16665_v48  ;;  %v16693_v22 = vld [vmem:[#allocation20 + $0x160] sm:$0xff]  }
0x104e   :  { %15093 = vmatprep.subr.bf16.mxu1 %v16666_v54  ;;  %v16694_v48 = vld [vmem:[#allocation20 + $0x1e0] sm:$0xff]  }
0x104f   :  { %v16695_v54 = vld [vmem:[#allocation20 + $0x120] sm:$0xff]  }
0x1050   :  { %15072 = vmatpush3.bf16.msra.mxu0 %v16667_v39  ;;  %v16696_v39 = vld [vmem:[#allocation20 + $0x1a0] sm:$0xff]  }
0x1051   :  { %15094 = vmatpush3.bf16.msra.mxu1 %v16668_v3  ;;  %15073 = vmatprep.subr.bf16.mxu0 %v16669_v8  ;;  %v16697_v3 = vld [vmem:[#allocation20 + $0x158] sm:$0xff]  }
0x1052   :  { %15095 = vmatprep.subr.bf16.mxu1 %v16670_v28  ;;  %v16698_v8 = vld [vmem:[#allocation20 + $0x1d8] sm:$0xff]  }
0x1053   :  { %v16699_v28 = vld [vmem:[#allocation20 + $0x118] sm:$0xff]  }
0x1054   :  { %15074 = vmatpush3.bf16.msra.mxu0 %v16671_v15  ;;  %v16700_v15 = vld [vmem:[#allocation20 + $0x198] sm:$0xff]  }
0x1055   :  { %15096 = vmatpush3.bf16.msra.mxu1 %v16672_v9  ;;  %15075 = vmatprep.subr.bf16.mxu0 %v16673_v17  ;;  %v16701_v9 = vld [vmem:[#allocation20 + $0x150] sm:$0xff]  }
0x1056   :  { %15097 = vmatprep.subr.bf16.mxu1 %v16674_v60  ;;  %v16702_v17 = vld [vmem:[#allocation20 + $0x1d0] sm:$0xff]  }
0x1057   :  { %v16703_v60 = vld [vmem:[#allocation20 + $0x110] sm:$0xff]  }
0x1058   :  { %15076 = vmatpush3.bf16.msra.mxu0 %v16675_v20  ;;  %v16704_v20 = vld [vmem:[#allocation20 + $0x190] sm:$0xff]  }
0x1059   :  { %15098 = vmatpush3.bf16.msra.mxu1 %v16676_v31  ;;  %15077 = vmatprep.subr.bf16.mxu0 %v16677_v19  ;;  %v16705_v31 = vld [vmem:[#allocation20 + $0x148] sm:$0xff]  }
0x105a   :  { %15099 = vmatprep.subr.bf16.mxu1 %v16678_v40  ;;  %v16706_v19 = vld [vmem:[#allocation20 + $0x1c8] sm:$0xff]  }
0x105b   :  { %v16707_v40 = vld [vmem:[#allocation20 + $0x108] sm:$0xff]  }
0x105c   :  { %15078 = vmatpush3.bf16.msra.mxu0 %v16679_v14  ;;  %v16708_v14 = vld [vmem:[#allocation20 + $0x188] sm:$0xff]  }
0x105d   :  { %15100 = vmatpush3.bf16.msra.mxu1 %v16680_v49  ;;  %15107 = vmatprep.subr.bf16.mxu0 %v16681_v62  ;;  %v16710_v49 = vld [vmem:[#allocation20 + $0x1c0] sm:$0xff]  }
0x105e   :  { %15129 = vmatprep.subr.bf16.mxu1 %v16682_v53  ;;  %v16711_v62 = vld [vmem:[#allocation20 + $0x100] sm:$0xff]   ;;  %v16713_v53 = vld [vmem:[#allocation20 + $0x578] sm:$0xff]  }
0x105f   :  { %14550 = vmatmul.mubr.msk.bf16.vlgmr.msra.gmra.mxu0 %vm17554_vm7, %v19015_v30  ;;  %v19024_v30 = vpack.c.bf16 %v19022_v34, %v19023_v11  ;;  %v19035_v34 = vld [vmem:[#allocation60_spill] sm:$0xff] }
0x1060   :  { %14556 = vmatmul.mubr.msk.bf16.vlgmr.msra.gmra.mxu1 %vm17554_vm7, %v19018_v35  ;;  %15108 = vmatpush3.bf16.msra.mxu0 %v16683_v37  ;;  %v16716_v37 = vld [vmem:[#allocation20 + $0x5b8] sm:$0xff]   ;;  %v16722_v35 = vld [vmem:[#allocation20 + $0x5e8] sm:$0xff]  }
0x1061   :  { %14591 = vmatprep.mubr.msk.bf16.mxu0 %vm17535_vm3, %v14590_v59  ;;  %15130 = vmatpush3.bf16.msra.mxu1 %v16684_v25  ;;  %v19020_v25 = vld [vmem:[#allocation47_spill] sm:$0xff]  ;;  %v10171_v59 = vpack.c.bf16 %v19010_v36, %v19012_v18  ;;  %v16728_v36 = vld [vmem:[#allocation20 + $0x5a0] sm:$0xff]  }
0x1062   :  { %14597 = vmatprep.mubr.msk.bf16.mxu1 %vm17535_vm3, %v14596_v6  ;;  %15109 = vmatprep.subr.bf16.mxu0 %v16685_v42  ;;  %v19021_v2 = vpack.c.bf16 %v19019_v1, %v19020_v25  ;;  %v16718_v42 = vld [vmem:[#allocation20 + $0x5f0] sm:$0xff]   ;;  %v16725_v6 = vld [vmem:[#allocation20 + $0x560] sm:$0xff]   ;;  %v16729_v18 = vld [vmem:[#allocation20 + $0x558] sm:$0xff]  }
0x1063   :  { %15131 = vmatprep.subr.bf16.mxu1 %v16686_v55  ;;  %v16719_v55 = vld [vmem:[#allocation20 + $0x530] sm:$0xff]  }
0x1064   :  { %15110 = vmatpush3.bf16.msra.mxu0 %v16687_v51  ;;  %v16726_v51 = vld [vmem:[#allocation20 + $0x5e0] sm:$0xff]   ;;  %v19032_v1 = vld [vmem:[#allocation58_spill] sm:$0xff] }
0x1065   :  { %15132 = vmatpush3.bf16.msra.mxu1 %v16688_v7  ;;  %15111 = vmatprep.subr.bf16.mxu0 %v16689_v13  ;;  %v16727_v7 = vld [vmem:[#allocation20 + $0x520] sm:$0xff]   ;;  %v16730_v13 = vld [vmem:[#allocation20 + $0x5d8] sm:$0xff]  }
0x1066   :  { %15133 = vmatprep.subr.bf16.mxu1 %v16690_v38  ;;  %v16731_v38 = vld [vmem:[#allocation20 + $0x518] sm:$0xff]  }
0x1068   :  { %15112 = vmatpush3.bf16.msra.mxu0 %v16691_v32  ;;  %v16732_v32 = vld [vmem:[#allocation20 + $0x598] sm:$0xff]  }
0x1069   :  { %15134 = vmatpush3.bf16.msra.mxu1 %v16692_v41  ;;  %15113 = vmatprep.subr.bf16.mxu0 %v16693_v22  ;;  %v16733_v41 = vld [vmem:[#allocation20 + $0x550] sm:$0xff]  }
0x106a   :  { %15135 = vmatprep.subr.bf16.mxu1 %v16694_v48  ;;  %v16734_v22 = vld [vmem:[#allocation20 + $0x5d0] sm:$0xff]  }
0x106b   :  { %v16735_v48 = vld [vmem:[#allocation20 + $0x510] sm:$0xff]  }
0x106c   :  { %15114 = vmatpush3.bf16.msra.mxu0 %v16695_v54  ;;  %v16736_v54 = vld [vmem:[#allocation20 + $0x590] sm:$0xff]  }
0x106d   :  { %15136 = vmatpush3.bf16.msra.mxu1 %v16696_v39  ;;  %15115 = vmatprep.subr.bf16.mxu0 %v16697_v3  ;;  %v16737_v39 = vld [vmem:[#allocation20 + $0x548] sm:$0xff]  }
0x106e   :  { %15137 = vmatprep.subr.bf16.mxu1 %v16698_v8  ;;  %v16738_v3 = vld [vmem:[#allocation20 + $0x5c8] sm:$0xff]  }
0x106f   :  { %v16739_v8 = vld [vmem:[#allocation20 + $0x508] sm:$0xff]  }
0x1070   :  { %15116 = vmatpush3.bf16.msra.mxu0 %v16699_v28  ;;  %v16740_v28 = vld [vmem:[#allocation20 + $0x588] sm:$0xff]  }
0x1071   :  { %15138 = vmatpush3.bf16.msra.mxu1 %v16700_v15  ;;  %15117 = vmatprep.subr.bf16.mxu0 %v16701_v9  ;;  %v16741_v15 = vld [vmem:[#allocation20 + $0x540] sm:$0xff]  }
0x1072   :  { %15139 = vmatprep.subr.bf16.mxu1 %v16702_v17  ;;  %v16742_v9 = vld [vmem:[#allocation20 + $0x5c0] sm:$0xff]  }
0x1073   :  { %v16743_v17 = vld [vmem:[#allocation20 + $0x500] sm:$0xff]  }
0x1074   :  { %15118 = vmatpush3.bf16.msra.mxu0 %v16703_v60  ;;  %v16744_v60 = vld [vmem:[#allocation20 + $0x580] sm:$0xff]  }
0x1075   :  { %15140 = vmatpush3.bf16.msra.mxu1 %v16704_v20  ;;  %15119 = vmatprep.subr.bf16.mxu0 %v16705_v31  ;;  %v16745_v20 = vld [vmem:[#allocation20 + $0x978] sm:$0xff]  }
0x1076   :  { %15141 = vmatprep.subr.bf16.mxu1 %v16706_v19  ;;  %v16746_v31 = vld [vmem:[#allocation20 + $0x9f8] sm:$0xff]  }
0x1077   :  { %v16747_v19 = vld [vmem:[#allocation20 + $0x938] sm:$0xff]  }
0x1078   :  { %15120 = vmatpush3.bf16.msra.mxu0 %v16707_v40  ;;  %v16748_v40 = vld [vmem:[#allocation20 + $0x9b8] sm:$0xff]  }
0x1079   :  { %15142 = vmatpush3.bf16.msra.mxu1 %v16708_v14  ;;  %15121 = vmatprep.subr.bf16.mxu0 %v16709_v43  ;;  %v16749_v14 = vld [vmem:[#allocation20 + $0x970] sm:$0xff]   ;;  %v19025_v43 = vld [vmem:[#allocation44_spill] sm:$0xff] }
0x107a   :  { %15143 = vmatprep.subr.bf16.mxu1 %v16710_v49  ;;  %v19026_v49 = vld [vmem:[#allocation42_spill] sm:$0xff] }
0x107c   :  { %15122 = vmatpush3.bf16.msra.mxu0 %v16711_v62  ;;  %v19027_v62 = vpack.c.bf16 %v19025_v43, %v19026_v49  ;;  %v4672_v43 = vld [vmem:[#allocation19] sm:$0xf] }
0x107d   :  { %15144 = vmatpush3.bf16.msra.mxu1 %v16712_v58  ;;  %15151 = vmatprep.subr.bf16.mxu0 %v16713_v53  ;;  %v16750_v58 = vld [vmem:[#allocation20 + $0x9f0] sm:$0xff]   ;;  %v19028_v53 = vld [vmem:[#allocation45_spill] sm:$0xff]  ;;  %v16779_v49 = vld [vmem:[#allocation20 + $0x238] sm:$0xff]  }
0x107e   :  { %15173 = vmatprep.subr.bf16.mxu1 %v16714_v0  ;;  %v19029_v0 = vld [vmem:[#allocation43_spill] sm:$0xff] }
0x107f   :  { %14594 = vmatmul.mubr.msk.bf16.vlgmr.msra.gmra.mxu0 %vm17535_vm3, %v19021_v2  ;;  %v16752_v2 = vld [vmem:[#allocation20 + $0x9b0] sm:$0xff]  }
0x1080   :  { %14600 = vmatmul.mubr.msk.bf16.vlgmr.msra.gmra.mxu1 %vm17535_vm3, %v19024_v30  ;;  %15152 = vmatpush3.bf16.msra.mxu0 %v16715_v63  ;;  %v19030_v63 = vpack.c.bf16 %v19028_v53, %v19029_v0  ;;  %v16754_v30 = vld [vmem:[#allocation20 + $0x9e8] sm:$0xff]   ;;  %v16780_v53 = vld [vmem:[#allocation20 + $0x2b8] sm:$0xff]  }
0x1081   :  { %10858 = vmatprep.mubr.bf16.mxu0 %v10169_v23  ;;  %15174 = vmatpush3.bf16.msra.mxu1 %v16716_v37  ;;  %v16751_v37 = vld [vmem:[#allocation20 + $0x930] sm:$0xff]   ;;  %v16753_v23 = vld [vmem:[#allocation20 + $0x968] sm:$0xff]  }
0x1082   :  { %10899 = vmatprep.mubr.bf16.mxu1 %v10171_v59  ;;  %15153 = vmatprep.subr.bf16.mxu0 %v16717_v26  ;;  %v19031_v26 = vld [vmem:[#allocation59_spill] sm:$0xff]  ;;  %v16755_v59 = vld [vmem:[#allocation20 + $0x928] sm:$0xff]  }
0x1083   :  { %15175 = vmatprep.subr.bf16.mxu1 %v16718_v42  ;;  %v19033_v25 = vpack.c.bf16 %v19031_v26, %v19032_v1  ;;  %v19034_v42 = vld [vmem:[#allocation61_spill] sm:$0xff]  ;;  %v19042_v26 = vld [vmem:[#allocation48_spill] sm:$0xff] }
0x1084   :  { %15154 = vmatpush3.bf16.msra.mxu0 %v16719_v55  ;;  %v19036_v11 = vpack.c.bf16 %v19034_v42, %v19035_v34  ;;  %v16756_v55 = vld [vmem:[#allocation20 + $0x9a8] sm:$0xff]   ;;  %v9073_v42 = vrot.slane %v4672_v43, %v17663_v24  ;;  %v9069_v24 = vrot.slane %v4672_v43, %v17762_v46 }
0x1085   :  { %15176 = vmatpush3.bf16.msra.mxu1 %v16720_v21  ;;  %15155 = vmatprep.subr.bf16.mxu0 %v16721_v4  ;;  %v16757_v21 = vld [vmem:[#allocation20 + $0x960] sm:$0xff]  }
0x1086   :  { %15177 = vmatprep.subr.bf16.mxu1 %v16722_v35  ;;  %v16758_v4 = vld [vmem:[#allocation20 + $0x9e0] sm:$0xff]  }
0x1087   :  { %v16759_v35 = vld [vmem:[#allocation20 + $0x920] sm:$0xff]  }
0x1088   :  { %15156 = vmatpush3.bf16.msra.mxu0 %v16723_v12  ;;  %v16760_v12 = vld [vmem:[#allocation20 + $0x9a0] sm:$0xff]  }
0x1089   :  { %15178 = vmatpush3.bf16.msra.mxu1 %v16724_v52  ;;  %15157 = vmatprep.subr.bf16.mxu0 %v16725_v6  ;;  %v16761_v52 = vld [vmem:[#allocation20 + $0x958] sm:$0xff]  }
0x108a   :  { %15179 = vmatprep.subr.bf16.mxu1 %v16726_v51  ;;  %v16762_v6 = vld [vmem:[#allocation20 + $0x9d8] sm:$0xff]  }
0x108b   :  { %v16763_v51 = vld [vmem:[#allocation20 + $0x918] sm:$0xff]  }
0x108c   :  { %15158 = vmatpush3.bf16.msra.mxu0 %v16727_v7  ;;  %v16764_v7 = vld [vmem:[#allocation20 + $0x998] sm:$0xff]  }
0x108d   :  { %15180 = vmatpush3.bf16.msra.mxu1 %v16728_v36  ;;  %15159 = vmatprep.subr.bf16.mxu0 %v16729_v18  ;;  %v16765_v36 = vld [vmem:[#allocation20 + $0x950] sm:$0xff]  }
0x108e   :  { %15181 = vmatprep.subr.bf16.mxu1 %v16730_v13  ;;  %v16766_v18 = vld [vmem:[#allocation20 + $0x9d0] sm:$0xff]  }
0x108f   :  { %v16767_v13 = vld [vmem:[#allocation20 + $0x910] sm:$0xff]  }
0x1090   :  { %15160 = vmatpush3.bf16.msra.mxu0 %v16731_v38  ;;  %v16768_v38 = vld [vmem:[#allocation20 + $0x990] sm:$0xff]  }
0x1091   :  { %15182 = vmatpush3.bf16.msra.mxu1 %v16732_v32  ;;  %15161 = vmatprep.subr.bf16.mxu0 %v16733_v41  ;;  %v16769_v32 = vld [vmem:[#allocation20 + $0x948] sm:$0xff]  }
0x1092   :  { %15183 = vmatprep.subr.bf16.mxu1 %v16734_v22  ;;  %v16770_v41 = vld [vmem:[#allocation20 + $0x9c8] sm:$0xff]  }
0x1093   :  { %v16771_v22 = vld [vmem:[#allocation20 + $0x908] sm:$0xff]  }
0x1094   :  { %15162 = vmatpush3.bf16.msra.mxu0 %v16735_v48  ;;  %v16772_v48 = vld [vmem:[#allocation20 + $0x988] sm:$0xff]  }
0x1095   :  { %15184 = vmatpush3.bf16.msra.mxu1 %v16736_v54  ;;  %15163 = vmatprep.subr.bf16.mxu0 %v16737_v39  ;;  %v16773_v54 = vld [vmem:[#allocation20 + $0x940] sm:$0xff]  }
0x1096   :  { %15185 = vmatprep.subr.bf16.mxu1 %v16738_v3  ;;  %v16774_v39 = vld [vmem:[#allocation20 + $0x9c0] sm:$0xff]  }
0x1097   :  { %v16775_v3 = vld [vmem:[#allocation20 + $0x900] sm:$0xff]  }
0x1098   :  { %15164 = vmatpush3.bf16.msra.mxu0 %v16739_v8  ;;  %v19037_v8 = vld [vmem:[#allocation75_spill] sm:$0xff] }
0x1099   :  { %15186 = vmatpush3.bf16.msra.mxu1 %v16740_v28  ;;  %15165 = vmatprep.subr.bf16.mxu0 %v16741_v15  ;;  %v11260_v28 = vrot.slane %v19037_v8, 7  ;;  %v16776_v15 = vld [vmem:[#allocation20 + $0x980] sm:$0xff]  }
0x109a   :  { %15187 = vmatprep.subr.bf16.mxu1 %v16742_v9  ;;  %v16777_v9 = vld [vmem:[#allocation20 + $0x278] sm:$0xff]  }
0x109c   :  { %15166 = vmatpush3.bf16.msra.mxu0 %v16743_v17  ;;  %v19038_v17 = vld [vmem:[#allocation77_spill] sm:$0xff] }
0x109d   :  { %15188 = vmatpush3.bf16.msra.mxu1 %v16744_v60  ;;  %15195 = vmatprep.subr.bf16.mxu0 %v16745_v20  ;;  %v11262_v60 = vrot.slane %v19038_v17, 7  ;;  %v16778_v20 = vld [vmem:[#allocation20 + $0x2f8] sm:$0xff]  }
0x109e   :  { %15217 = vmatprep.subr.bf16.mxu1 %v16746_v31  ;;  %v19039_v31 = vld [vmem:[#allocation74_spill] sm:$0xff] }
0x109f   :  { %10859 = vmatmul.mubr.bf16.vlgmr.msra.gmra.mxu0 %v19027_v62 }
0x10a0   :  { %10900 = vmatmul.mubr.bf16.vlgmr.msra.gmra.mxu1 %v19030_v63  ;;  %15196 = vmatpush3.bf16.msra.mxu0 %v16747_v19  ;;  %v11256_v19 = vrot.slane %v19039_v31, 7 }
0x10a1   :  { %14667 = vmatprep.mubr.msk.bf16.mxu0 %vm17554_vm7, %v19033_v25  ;;  %15218 = vmatpush3.bf16.msra.mxu1 %v16748_v40  ;;  %v19040_v40 = vld [vmem:[#allocation76_spill] sm:$0xff] }
0x10a2   :  { %14673 = vmatprep.mubr.msk.bf16.mxu1 %vm17554_vm7, %v19036_v11  ;;  %15197 = vmatprep.subr.bf16.mxu0 %v16749_v14  ;;  %v11258_v14 = vrot.slane %v19040_v40, 7  ;;  %v11264_v62 = vsel %vm276_vm0, %v11256_v19, %v11260_v28  ;;  %v16781_v11 = vld [vmem:[#allocation20 + $0x270] sm:$0xff]  }
0x10a3   :  { %15219 = vmatprep.subr.bf16.mxu1 %v16750_v58  ;;  %v11268_v58 = vsel %vm276_vm0, %v11260_v28, %v11256_v19 }
0x10a4   :  { %15198 = vmatpush3.bf16.msra.mxu0 %v16751_v37  ;;  %v11266_v0 = vsel %vm276_vm0, %v11258_v14, %v11262_v60  ;;  %v11270_v63 = vsel %vm276_vm0, %v11262_v60, %v11258_v14  ;;  %v19041_v37 = vld [vmem:[#allocation49_spill] sm:$0xff]  ;;  %v14710_v34 = vpack.c.bf16 %v11264_v62, %v11268_v58 }
0x10a5   :  { %15220 = vmatpush3.bf16.msra.mxu1 %v16752_v2  ;;  %15199 = vmatprep.subr.bf16.mxu0 %v16753_v23  ;;  %v19043_v1 = vpack.c.bf16 %v19041_v37, %v19042_v26  ;;  %v9065_v2 = vrot.slane %v4672_v43, %v17660_v5 }
0x10a6   :  { %15221 = vmatprep.subr.bf16.mxu1 %v16754_v30  ;;  %v16782_v30 = vld [vmem:[#allocation20 + $0x2f0] sm:$0xff]  }
0x10a8   :  { %15200 = vmatpush3.bf16.msra.mxu0 %v16755_v59  ;;  %v19044_v59 = vld [vmem:[#allocation53_spill] sm:$0xff] }
0x10a9   :  { %15222 = vmatpush3.bf16.msra.mxu1 %v16756_v55  ;;  %15201 = vmatprep.subr.bf16.mxu0 %v16757_v21  ;;  %v19045_v55 = vld [vmem:[#allocation52_spill] sm:$0xff] }
0x10aa   :  { %15223 = vmatprep.subr.bf16.mxu1 %v16758_v4  ;;  %v19046_v21 = vpack.c.bf16 %v19044_v59, %v19045_v55 }
0x10ac   :  { %15202 = vmatpush3.bf16.msra.mxu0 %v16759_v35 }
0x10ad   :  { %15224 = vmatpush3.bf16.msra.mxu1 %v16760_v12  ;;  %15203 = vmatprep.subr.bf16.mxu0 %v16761_v52  ;;  %v14716_v12 = vpack.c.bf16 %v11266_v0, %v11270_v63  ;;  %v16783_v52 = vld [vmem:[#allocation20 + $0x230] sm:$0xff]   ;;  %v16792_v0 = vld [vmem:[#allocation20 + $0x2a0] sm:$0xff]  }
0x10ae   :  { %15225 = vmatprep.subr.bf16.mxu1 %v16762_v6 }
0x10b0   :  { %15204 = vmatpush3.bf16.msra.mxu0 %v16763_v51  ;;  %v9077_v51 = vrot.slane %v4672_v43, %v17765_v47  ;;  %v16787_v47 = vld [vmem:[#allocation20 + $0x228] sm:$0xff]  }
0x10b1   :  { %15226 = vmatpush3.bf16.msra.mxu1 %v16764_v7  ;;  %15205 = vmatprep.subr.bf16.mxu0 %v16765_v36  ;;  %v16784_v7 = vld [vmem:[#allocation20 + $0x2b0] sm:$0xff]   ;;  %v16785_v36 = vld [vmem:[#allocation20 + $0x268] sm:$0xff]  }
0x10b2   :  { %15227 = vmatprep.subr.bf16.mxu1 %v16766_v18  ;;  %v16786_v18 = vld [vmem:[#allocation20 + $0x2e8] sm:$0xff]  }
0x10b4   :  { %15206 = vmatpush3.bf16.msra.mxu0 %v16767_v13 }
0x10b5   :  { %15228 = vmatpush3.bf16.msra.mxu1 %v16768_v38  ;;  %15207 = vmatprep.subr.bf16.mxu0 %v16769_v32 }
0x10b6   :  { %15229 = vmatprep.subr.bf16.mxu1 %v16770_v41 }
0x10b8   :  { %15208 = vmatpush3.bf16.msra.mxu0 %v16771_v22 }
0x10b9   :  { %15230 = vmatpush3.bf16.msra.mxu1 %v16772_v48  ;;  %15209 = vmatprep.subr.bf16.mxu0 %v16773_v54 }
0x10ba   :  { %15231 = vmatprep.subr.bf16.mxu1 %v16774_v39  ;;  %v16788_v39 = vld [vmem:[#allocation20 + $0x2a8] sm:$0xff]  }
0x10bc   :  { %15210 = vmatpush3.bf16.msra.mxu0 %v16775_v3  ;;  %v16789_v3 = vld [vmem:[#allocation20 + $0x260] sm:$0xff]  }
0x10bd   :  { %15232 = vmatpush3.bf16.msra.mxu1 %v16776_v15  ;;  %15239 = vmatprep.subr.bf16.mxu0 %v16777_v9  ;;  %v16790_v9 = vld [vmem:[#allocation20 + $0x2e0] sm:$0xff]  }
0x10be   :  { %15261 = vmatprep.subr.bf16.mxu1 %v16778_v20 }
0x10bf   :  { %14670 = vmatmul.mubr.msk.bf16.vlgmr.msra.gmra.mxu0 %vm17554_vm7, %v19043_v1  ;;  %v9001_v25 = vpop.f32.mrf.mxu0  ;;  %v9044_v23 = vpop.f32.mrf.mxu1 }
0x10c0   :  { %14676 = vmatmul.mubr.msk.bf16.vlgmr.msra.gmra.mxu1 %vm17554_vm7, %v19046_v21  ;;  %v9053_v4 = vadd.f32 %v9001_v25, %v18396_v29  ;;  %v9055_v35 = vadd.f32 %v9044_v23, %v18399_v50  ;;  %15240 = vmatpush3.bf16.msra.mxu0 %v16779_v49  ;;  %v16793_v25 = vld [vmem:[#allocation20 + $0x258] sm:$0xff]  }
0x10c1   :  { %14711 = vmatprep.mubr.msk.bf16.mxu0 %vm17535_vm3, %v14710_v34  ;;  %15262 = vmatpush3.bf16.msra.mxu1 %v16780_v53  ;;  %v9003_v5 = vpop.f32.mrf.mxu0  ;;  %v9046_v6 = vpop.f32.mrf.mxu1 }
0x10c2   :  { %14717 = vmatprep.mubr.msk.bf16.mxu1 %vm17535_vm3, %v14716_v12  ;;  %v9054_v29 = vadd.f32 %v9003_v5, %v18402_v44  ;;  %v9056_v50 = vadd.f32 %v9046_v6, %v18405_v61  ;;  %v18591_v13 = vadd.f32 %v9065_v2, %v9053_v4  ;;  %v18593_v38 = vadd.f32 %v9073_v42, %v9055_v35  ;;  %v16795_v4 = vld [vmem:[#allocation20 + $0x218] sm:$0xff]   ;;  %v16797_v6 = vld [vmem:[#allocation20 + $0x250] sm:$0xff]  }
0x10c3   :  { %15241 = vmatprep.subr.bf16.mxu0 %v16781_v11  ;;  %15263 = vmatprep.subr.bf16.mxu1 %v16782_v30  ;;  %v9005_v46 = vpop.f32.mrf.mxu0  ;;  %v9048_v32 = vpop.f32.mrf.mxu1 }
0x10c4   :  { %15242 = vmatpush3.bf16.msra.mxu0 %v16783_v52  ;;  %v18595_v41 = vadd.f32 %v9069_v24, %v9054_v29  ;;  %v18597_v22 = vadd.f32 %v9077_v51, %v9056_v50  ;;  %v9057_v44 = vadd.f32 %v9005_v46, %v18408_v33  ;;  %v9059_v61 = vadd.f32 %v9048_v32, %v18411_v10 }
0x10c5   :  { %15264 = vmatpush3.bf16.msra.mxu1 %v16784_v7  ;;  %v9007_v48 = vpop.f32.mrf.mxu0  ;;  %v9050_v54 = vpop.f32.mrf.mxu1  ;;  %15243 = vmatprep.subr.bf16.mxu0 %v16785_v36  ;;  %v12338_v60 = vrot.slane %v18591_v13, 7  ;;  %v12366_v20 = vrot.slane %v18591_v13, 1  ;;  %v12340_v33 = vrot.slane %v18593_v38, 7  ;;  %v12368_v10 = vrot.slane %v18593_v38, 1  ;;  %v16798_v36 = vld [vmem:[#allocation20 + $0x2d0] sm:$0xff]  }
0x10c6   :  { %v9058_v28 = vadd.f32 %v9007_v48, %v18414_v45  ;;  %v9060_v15 = vadd.f32 %v9050_v54, %v18417_v27  ;;  %15265 = vmatprep.subr.bf16.mxu1 %v16786_v18  ;;  %v12339_v19 = vrot.slane %v18595_v41, 7  ;;  %v18608_v14 = vadd.f32 %v9065_v2, %v9057_v44  ;;  %v16791_v27 = vld [vmem:[#allocation20 + $0x220] sm:$0xff]   ;;  %v16794_v2 = vld [vmem:[#allocation20 + $0x2d8] sm:$0xff]   ;;  %v16799_v44 = vld [vmem:[#allocation20 + $0x210] sm:$0xff]  }
0x10c7   :  { %v18610_v43 = vadd.f32 %v9073_v42, %v9059_v61  ;;  %v12367_v49 = vrot.slane %v18595_v41, 1  ;;  %v12341_v62 = vrot.slane %v18597_v22, 7  ;;  %v12369_v58 = vrot.slane %v18597_v22, 1 }
0x10c8   :  { %v18612_v45 = vadd.f32 %v9069_v24, %v9058_v28  ;;  %15244 = vmatpush3.bf16.msra.mxu0 %v16787_v47  ;;  %v18617_v53 = vadd.f32 %v9077_v51, %v9060_v15  ;;  %v12334_v63 = vpack.c.bf16 %v18608_v14, %v18591_v13  ;;  %v12342_v37 = vrot.slane %v18608_v14, 7  ;;  %v16796_v24 = vld [vmem:[#allocation20 + $0x298] sm:$0xff]   ;;  %v16801_v28 = vld [vmem:[#allocation20 + $0x248] sm:$0xff]  }
0x10c9   :  { %15266 = vmatpush3.bf16.msra.mxu1 %v16788_v39  ;;  %15245 = vmatprep.subr.bf16.mxu0 %v16789_v3  ;;  %v12370_v26 = vrot.slane %v18608_v14, 1  ;;  %v12336_v1 = vpack.c.bf16 %v18610_v43, %v18593_v38  ;;  %v12344_v23 = vrot.slane %v18610_v43, 7  ;;  %v12372_v42 = vrot.slane %v18610_v43, 1  ;;  %v16800_v3 = vld [vmem:[#allocation20 + $0x290] sm:$0xff]   ;;  %v16946_v13 = vld [vmem:[#allocation20 + $0xbe8] sm:$0xff]   ;;  %v16949_v43 = vld [vmem:[#allocation20 + $0xb60] sm:$0xff]  }
0x10ca   :  { %15267 = vmatprep.subr.bf16.mxu1 %v16790_v9  ;;  %v12343_v34 = vrot.slane %v18612_v45, 7  ;;  %v12371_v11 = vrot.slane %v18612_v45, 1  ;;  %v18631_v30 = vsel %vm276_vm0, %v12338_v60, %v12342_v37  ;;  %v18635_v59 = vsel %vm276_vm0, %v12342_v37, %v12338_v60  ;;  %v16805_v37 = vld [vmem:[#allocation20 + $0x240] sm:$0xff]   ;;  %v16947_v38 = vld [vmem:[#allocation20 + $0xb28] sm:$0xff]  }
0x10cb   :  { %v18639_v55 = vsel %vm290_vm4, %v12366_v20, %v12370_v26  ;;  %v18643_v21 = vsel %vm290_vm4, %v12370_v26, %v12366_v20  ;;  %v14833_v35 = vpack.c.bf16 %v18631_v30, %v18635_v59  ;;  %v18651_v52 = vsel %vm276_vm0, %v12340_v33, %v12344_v23  ;;  %v16802_v20 = vld [vmem:[#allocation20 + $0x2c8] sm:$0xff]   ;;  %v16806_v26 = vld [vmem:[#allocation20 + $0x2c0] sm:$0xff]  }
0x10cc   :  { %15246 = vmatpush3.bf16.msra.mxu0 %v16791_v27  ;;  %v14909_v12 = vpack.c.bf16 %v18643_v21, %v18639_v55  ;;  %v18655_v5 = vsel %vm276_vm0, %v12344_v23, %v12340_v33  ;;  %v18659_v51 = vsel %vm290_vm4, %v12368_v10, %v12372_v42  ;;  %v18663_v7 = vsel %vm290_vm4, %v12372_v42, %v12368_v10  ;;  %v16811_v23 = vld [vmem:[#allocation20 + $0x638] sm:$0xff]   ;;  %v16914_v30 = vld [vmem:[#allocation20 + $0x7e8] sm:$0xff]  }
0x10cd   :  { %15268 = vmatpush3.bf16.msra.mxu1 %v16792_v0  ;;  %v14839_v29 = vpack.c.bf16 %v18651_v52, %v18655_v5  ;;  %v12345_v50 = vrot.slane %v18617_v53, 7  ;;  %15247 = vmatprep.subr.bf16.mxu0 %v16793_v25  ;;  %v14915_v18 = vpack.c.bf16 %v18663_v7, %v18659_v51  ;;  %v12373_v46 = vrot.slane %v18617_v53, 1  ;;  %v16803_v0 = vld [vmem:[#allocation20 + $0x208] sm:$0xff]   ;;  %v16807_v25 = vld [vmem:[#allocation20 + $0x200] sm:$0xff]   ;;  %v16812_v42 = vld [vmem:[#allocation20 + $0x6b8] sm:$0xff]  }
0x10ce   :  { %15269 = vmatprep.subr.bf16.mxu1 %v16794_v2  ;;  %v18673_v32 = vsel %vm276_vm0, %v12339_v19, %v12343_v34  ;;  %v18677_v47 = vsel %vm276_vm0, %v12343_v34, %v12339_v19  ;;  %v12335_v39 = vpack.c.bf16 %v18612_v45, %v18595_v41  ;;  %v12337_v9 = vpack.c.bf16 %v18617_v53, %v18597_v22  ;;  %v16810_v2 = vld [vmem:[#allocation20 + $0x6f8] sm:$0xff]   ;;  %v16813_v34 = vld [vmem:[#allocation20 + $0x670] sm:$0xff]   ;;  %v16915_v59 = vld [vmem:[#allocation20 + $0x728] sm:$0xff]  }
0x10cf   :  { %v14830_v61 = vpack.c.bf16 %v18673_v32, %v18677_v47  ;;  %v18683_v48 = vsel %vm276_vm0, %v12341_v62, %v12345_v50  ;;  %v18687_v54 = vsel %vm276_vm0, %v12345_v50, %v12341_v62  ;;  %v18697_v60 = vsel %vm290_vm4, %v12367_v49, %v12371_v11  ;;  %v16884_v32 = vld [vmem:[#allocation20 + $0x3a8] sm:$0xff]   ;;  %v16885_v47 = vld [vmem:[#allocation20 + $0x360] sm:$0xff]   ;;  %v16921_v5 = vld [vmem:[#allocation20 + $0x758] sm:$0xff]  }
0x10d0   :  { %15248 = vmatpush3.bf16.msra.mxu0 %v16795_v4  ;;  %v14836_v15 = vpack.c.bf16 %v18683_v48, %v18687_v54  ;;  %v18701_v33 = vsel %vm290_vm4, %v12371_v11, %v12367_v49  ;;  %v18705_v10 = vsel %vm290_vm4, %v12369_v58, %v12373_v46  ;;  %v18709_v19 = vsel %vm290_vm4, %v12373_v46, %v12369_v58  ;;  %v16804_v49 = vld [vmem:[#allocation20 + $0x288] sm:$0xff]   ;;  %v16809_v58 = vld [vmem:[#allocation20 + $0x678] sm:$0xff]   ;;  %v16814_v46 = vld [vmem:[#allocation20 + $0x6f0] sm:$0xff]  }
0x10d1   :  { %15270 = vmatpush3.bf16.msra.mxu1 %v16796_v24  ;;  %15249 = vmatprep.subr.bf16.mxu0 %v16797_v6  ;;  %v14906_v27 = vpack.c.bf16 %v18701_v33, %v18697_v60  ;;  %v14912_v62 = vpack.c.bf16 %v18709_v19, %v18705_v10  ;;  %v19047_v24 = vld [vmem:[#allocation66_spill] sm:$0xff]  ;;  %v19048_v6 = vld [vmem:[#allocation67_spill] sm:$0xff]  ;;  %v16918_v52 = vld [vmem:[#allocation20 + $0x7e0] sm:$0xff]  }
0x10d2   :  { %15271 = vmatprep.subr.bf16.mxu1 %v16798_v36  ;;  %v19049_v50 = vpack.c.bf16 %v19047_v24, %v19048_v6  ;;  %v11252_v36 = vpack.c.bf16 %v19037_v8, %v19039_v31  ;;  %v16821_v6 = vld [vmem:[#allocation20 + $0x660] sm:$0xff]   ;;  %v16889_v48 = vld [vmem:[#allocation20 + $0x358] sm:$0xff]   ;;  %v16948_v14 = vld [vmem:[#allocation20 + $0xba8] sm:$0xff]  }
0x10d3   :  { %v16890_v54 = vld [vmem:[#allocation20 + $0x3d8] sm:$0xff]   ;;  %v16919_v41 = vld [vmem:[#allocation20 + $0x720] sm:$0xff]  }
0x10d4   :  { %15250 = vmatpush3.bf16.msra.mxu0 %v16799_v44  ;;  %v19050_v44 = vld [vmem:[#allocation70_spill] sm:$0xff]  ;;  %v16920_v45 = vld [vmem:[#allocation20 + $0x7a0] sm:$0xff]   ;;  %v16922_v22 = vld [vmem:[#allocation20 + $0x7d8] sm:$0xff]  }
0x10d5   :  { %15272 = vmatpush3.bf16.msra.mxu1 %v16800_v3  ;;  %15251 = vmatprep.subr.bf16.mxu0 %v16801_v28  ;;  %v19051_v3 = vld [vmem:[#allocation71_spill] sm:$0xff]  ;;  %v16952_v60 = vld [vmem:[#allocation20 + $0xba0] sm:$0xff]  }
0x10d6   :  { %15273 = vmatprep.subr.bf16.mxu1 %v16802_v20  ;;  %v19052_v28 = vpack.c.bf16 %v19050_v44, %v19051_v3  ;;  %v11254_v20 = vpack.c.bf16 %v19038_v17, %v19040_v40  ;;  %v16825_v44 = vld [vmem:[#allocation20 + $0x658] sm:$0xff]  }
0x10d7   :  { %v16826_v3 = vld [vmem:[#allocation20 + $0x6d8] sm:$0xff]  }
0x10d8   :  { %15252 = vmatpush3.bf16.msra.mxu0 %v16803_v0  ;;  %v16815_v0 = vld [vmem:[#allocation20 + $0x630] sm:$0xff]   ;;  %v16923_v53 = vld [vmem:[#allocation20 + $0x718] sm:$0xff]  }
0x10d9   :  { %15274 = vmatpush3.bf16.msra.mxu1 %v16804_v49  ;;  %15253 = vmatprep.subr.bf16.mxu0 %v16805_v37  ;;  %v16953_v33 = vld [vmem:[#allocation20 + $0xb58] sm:$0xff]  }
0x10da   :  { %15275 = vmatprep.subr.bf16.mxu1 %v16806_v26  ;;  %v16816_v26 = vld [vmem:[#allocation20 + $0x6b0] sm:$0xff]   ;;  %v16954_v10 = vld [vmem:[#allocation20 + $0xbd8] sm:$0xff]  }
0x10db   :  { %v16955_v19 = vld [vmem:[#allocation20 + $0xb18] sm:$0xff]  }
0x10dc   :  { %15254 = vmatpush3.bf16.msra.mxu0 %v16807_v25  ;;  %v16817_v25 = vld [vmem:[#allocation20 + $0x668] sm:$0xff]  }
0x10dd   :  { %15276 = vmatpush3.bf16.msra.mxu1 %v16808_v56  ;;  %15283 = vmatprep.subr.bf16.mxu0 %v16809_v58  ;;  %v16818_v56 = vld [vmem:[#allocation20 + $0x6e8] sm:$0xff]  }
0x10de   :  { %15305 = vmatprep.subr.bf16.mxu1 %v16810_v2 }
0x10df   :  { %v14991_v11 = vpop.f32.mrf.mxu0  ;;  %v15013_v4 = vpop.f32.mrf.mxu1  ;;  %14714 = vmatmul.mubr.msk.bf16.vlgmr.msra.gmra.mxu0 %vm17535_vm3, %v19049_v50 }
0x10e0   :  { %14720 = vmatmul.mubr.msk.bf16.vlgmr.msra.gmra.mxu1 %vm17535_vm3, %v19052_v28  ;;  %15284 = vmatpush3.bf16.msra.mxu0 %v16811_v23  ;;  %v16819_v23 = vld [vmem:[#allocation20 + $0x628] sm:$0xff]   ;;  %v16827_v28 = vld [vmem:[#allocation20 + $0x618] sm:$0xff]  }
0x10e1   :  { %11941 = vmatprep.mubr.bf16.mxu0 %v11252_v36  ;;  %15306 = vmatpush3.bf16.msra.mxu1 %v16812_v42  ;;  %v14992_v49 = vpop.f32.mrf.mxu0  ;;  %v15014_v37 = vpop.f32.mrf.mxu1  ;;  %v16820_v42 = vld [vmem:[#allocation20 + $0x6a8] sm:$0xff]  }
0x10e2   :  { %11982 = vmatprep.mubr.bf16.mxu1 %v11254_v20  ;;  %v14993_v8 = vadd.f32 %v14992_v49, %v14991_v11  ;;  %v15015_v31 = vadd.f32 %v15014_v37, %v15013_v4  ;;  %15285 = vmatprep.subr.bf16.mxu0 %v16813_v34  ;;  %v16822_v11 = vld [vmem:[#allocation20 + $0x6e0] sm:$0xff]   ;;  %v16828_v20 = vld [vmem:[#allocation20 + $0x698] sm:$0xff]   ;;  %v16830_v49 = vld [vmem:[#allocation20 + $0x6d0] sm:$0xff]  }
0x10e3   :  { %v14994_v58 = vpop.f32.mrf.mxu0  ;;  %v15016_v2 = vpop.f32.mrf.mxu1  ;;  %15307 = vmatprep.subr.bf16.mxu1 %v16814_v46  ;;  %v16823_v34 = vld [vmem:[#allocation20 + $0x620] sm:$0xff]   ;;  %v16831_v37 = vld [vmem:[#allocation20 + $0x610] sm:$0xff]  }
0x10e4   :  { %v18729_v24 = vadd.f32 %v15015_v31, %v14993_v8  ;;  %15286 = vmatpush3.bf16.msra.mxu0 %v16815_v0  ;;  %v16824_v46 = vld [vmem:[#allocation20 + $0x6a0] sm:$0xff]   ;;  %v16829_v0 = vld [vmem:[#allocation20 + $0x650] sm:$0xff]   ;;  %v16834_v8 = vld [vmem:[#allocation20 + $0x6c8] sm:$0xff]  }
0x10e5   :  { %15308 = vmatpush3.bf16.msra.mxu1 %v16816_v26  ;;  %v14995_v17 = vpop.f32.mrf.mxu0  ;;  %v15017_v40 = vpop.f32.mrf.mxu1  ;;  %15287 = vmatprep.subr.bf16.mxu0 %v16817_v25  ;;  %v16832_v26 = vld [vmem:[#allocation20 + $0x690] sm:$0xff]   ;;  %v16833_v25 = vld [vmem:[#allocation20 + $0x648] sm:$0xff]  }
0x10e6   :  { %v14996_v50 = vadd.f32 %v14995_v17, %v14994_v58  ;;  %v15018_v36 = vadd.f32 %v15017_v40, %v15016_v2  ;;  %15309 = vmatprep.subr.bf16.mxu1 %v16818_v56  ;;  %v16835_v31 = vld [vmem:[#allocation20 + $0x608] sm:$0xff]   ;;  %v16837_v58 = vld [vmem:[#allocation20 + $0x640] sm:$0xff]   ;;  %v16841_v40 = vld [vmem:[#allocation20 + $0xa78] sm:$0xff]  }
0x10e7   :  { %v16836_v56 = vld [vmem:[#allocation20 + $0x688] sm:$0xff]   ;;  %v16838_v2 = vld [vmem:[#allocation20 + $0x6c0] sm:$0xff]  }
0x10e8   :  { %v18731_v4 = vadd.f32 %v15018_v36, %v14996_v50  ;;  %15288 = vmatpush3.bf16.msra.mxu0 %v16819_v23  ;;  %v16839_v23 = vld [vmem:[#allocation20 + $0x600] sm:$0xff]   ;;  %v16844_v50 = vld [vmem:[#allocation20 + $0xab8] sm:$0xff]   ;;  %v16845_v36 = vld [vmem:[#allocation20 + $0xa70] sm:$0xff]  }
0x10e9   :  { %15310 = vmatpush3.bf16.msra.mxu1 %v16820_v42  ;;  %15289 = vmatprep.subr.bf16.mxu0 %v16821_v6  ;;  %v16840_v17 = vld [vmem:[#allocation20 + $0x680] sm:$0xff]   ;;  %v16842_v42 = vld [vmem:[#allocation20 + $0xaf8] sm:$0xff]  }
0x10ea   :  { %15311 = vmatprep.subr.bf16.mxu1 %v16822_v11  ;;  %v16843_v6 = vld [vmem:[#allocation20 + $0xa38] sm:$0xff]  }
0x10ec   :  { %15290 = vmatpush3.bf16.msra.mxu0 %v16823_v34  ;;  %v19053_v34 = vld [vmem:[#allocation64_spill] sm:$0xff] }
0x10ed   :  { %15312 = vmatpush3.bf16.msra.mxu1 %v16824_v46  ;;  %15291 = vmatprep.subr.bf16.mxu0 %v16825_v44  ;;  %v19054_v46 = vld [vmem:[#allocation62_spill] sm:$0xff] }
0x10ee   :  { %15313 = vmatprep.subr.bf16.mxu1 %v16826_v3  ;;  %v19055_v44 = vpack.c.bf16 %v19053_v34, %v19054_v46  ;;  %v16846_v3 = vld [vmem:[#allocation20 + $0xaf0] sm:$0xff]  }
0x10f0   :  { %15292 = vmatpush3.bf16.msra.mxu0 %v16827_v28 }
0x10f1   :  { %15314 = vmatpush3.bf16.msra.mxu1 %v16828_v20  ;;  %15293 = vmatprep.subr.bf16.mxu0 %v16829_v0  ;;  %v19056_v20 = vld [vmem:[#allocation65_spill] sm:$0xff]  ;;  %v19057_v0 = vld [vmem:[#allocation63_spill] sm:$0xff] }
0x10f2   :  { %15315 = vmatprep.subr.bf16.mxu1 %v16830_v49  ;;  %v19058_v49 = vpack.c.bf16 %v19056_v20, %v19057_v0 }
0x10f4   :  { %15294 = vmatpush3.bf16.msra.mxu0 %v16831_v37  ;;  %v16847_v37 = vld [vmem:[#allocation20 + $0xa30] sm:$0xff]  }
0x10f5   :  { %15316 = vmatpush3.bf16.msra.mxu1 %v16832_v26  ;;  %15295 = vmatprep.subr.bf16.mxu0 %v16833_v25  ;;  %v19059_v26 = vld [vmem:[#allocation79_spill] sm:$0xff]  ;;  %v19060_v25 = vld [vmem:[#allocation78_spill] sm:$0xff] }
0x10f6   :  { %15317 = vmatprep.subr.bf16.mxu1 %v16834_v8  ;;  %v19061_v8 = vpack.c.bf16 %v19059_v26, %v19060_v25  ;;  %v16853_v26 = vld [vmem:[#allocation20 + $0xa60] sm:$0xff]  }
0x10f8   :  { %15296 = vmatpush3.bf16.msra.mxu0 %v16835_v31 }
0x10f9   :  { %15318 = vmatpush3.bf16.msra.mxu1 %v16836_v56  ;;  %15297 = vmatprep.subr.bf16.mxu0 %v16837_v58  ;;  %v16848_v56 = vld [vmem:[#allocation20 + $0xab0] sm:$0xff]   ;;  %v16849_v58 = vld [vmem:[#allocation20 + $0xa68] sm:$0xff]  }
0x10fa   :  { %15319 = vmatprep.subr.bf16.mxu1 %v16838_v2  ;;  %v19062_v2 = vld [vmem:[#allocation81_spill] sm:$0xff] }
0x10fc   :  { %15298 = vmatpush3.bf16.msra.mxu0 %v16839_v23  ;;  %v19063_v23 = vld [vmem:[#allocation80_spill] sm:$0xff] }
0x10fd   :  { %15320 = vmatpush3.bf16.msra.mxu1 %v16840_v17  ;;  %15327 = vmatprep.subr.bf16.mxu0 %v16841_v40  ;;  %v19064_v17 = vpack.c.bf16 %v19062_v2, %v19063_v23  ;;  %v16859_v2 = vld [vmem:[#allocation20 + $0xa18] sm:$0xff]  }
0x10fe   :  { %15349 = vmatprep.subr.bf16.mxu1 %v16842_v42  ;;  %v16860_v23 = vld [vmem:[#allocation20 + $0xa98] sm:$0xff]  }
0x10ff   :  { %v15035_v11 = vpop.f32.mrf.mxu0  ;;  %11942 = vmatmul.mubr.bf16.vlgmr.msra.gmra.mxu0 %v19055_v44 }
0x1100   :  { %v15057_v28 = vpop.f32.mrf.mxu1  ;;  %11983 = vmatmul.mubr.bf16.vlgmr.msra.gmra.mxu1 %v19058_v49  ;;  %15328 = vmatpush3.bf16.msra.mxu0 %v16843_v6  ;;  %v16850_v6 = vld [vmem:[#allocation20 + $0xae8] sm:$0xff]  }
0x1101   :  { %14787 = vmatprep.mubr.msk.bf16.mxu0 %vm17554_vm7, %v19061_v8  ;;  %15350 = vmatpush3.bf16.msra.mxu1 %v16844_v50  ;;  %v15036_v31 = vpop.f32.mrf.mxu0  ;;  %v16851_v50 = vld [vmem:[#allocation20 + $0xa28] sm:$0xff]  }
0x1102   :  { %14793 = vmatprep.mubr.msk.bf16.mxu1 %vm17554_vm7, %v19064_v17  ;;  %v15037_v40 = vadd.f32 %v15036_v31, %v15035_v11  ;;  %v15058_v42 = vpop.f32.mrf.mxu1  ;;  %15329 = vmatprep.subr.bf16.mxu0 %v16845_v36  ;;  %v16852_v49 = vld [vmem:[#allocation20 + $0xaa8] sm:$0xff]   ;;  %v16854_v36 = vld [vmem:[#allocation20 + $0xae0] sm:$0xff]   ;;  %v16861_v17 = vld [vmem:[#allocation20 + $0xa50] sm:$0xff]  }
0x1103   :  { %v15038_v34 = vpop.f32.mrf.mxu0  ;;  %15351 = vmatprep.subr.bf16.mxu1 %v16846_v3  ;;  %v15059_v44 = vadd.f32 %v15058_v42, %v15057_v28  ;;  %v16856_v28 = vld [vmem:[#allocation20 + $0xaa0] sm:$0xff]   ;;  %v16864_v42 = vld [vmem:[#allocation20 + $0xa90] sm:$0xff]  }
0x1104   :  { %v9780_v46 = vadd.f32 %v15037_v40, %v18729_v24  ;;  %v15060_v20 = vpop.f32.mrf.mxu1  ;;  %15330 = vmatpush3.bf16.msra.mxu0 %v16847_v37  ;;  %v16855_v24 = vld [vmem:[#allocation20 + $0xa20] sm:$0xff]   ;;  %v16857_v37 = vld [vmem:[#allocation20 + $0xa58] sm:$0xff]   ;;  %v16862_v40 = vld [vmem:[#allocation20 + $0xad0] sm:$0xff]  }
0x1105   :  { %15352 = vmatpush3.bf16.msra.mxu1 %v16848_v56  ;;  %v15039_v0 = vpop.f32.mrf.mxu0  ;;  %15331 = vmatprep.subr.bf16.mxu0 %v16849_v58  ;;  %v16858_v58 = vld [vmem:[#allocation20 + $0xad8] sm:$0xff]  }
0x1106   :  { %v18750_v25 = vadd.f32 %v15059_v44, %v9780_v46  ;;  %v15040_v8 = vadd.f32 %v15039_v0, %v15038_v34  ;;  %v15061_v11 = vpop.f32.mrf.mxu1  ;;  %15353 = vmatprep.subr.bf16.mxu1 %v16850_v6  ;;  %v16865_v6 = vld [vmem:[#allocation20 + $0xa48] sm:$0xff]   ;;  %v16871_v0 = vld [vmem:[#allocation20 + $0xa00] sm:$0xff]  }
0x1107   :  { %v15062_v3 = vadd.f32 %v15061_v11, %v15060_v20  ;;  %v16866_v34 = vld [vmem:[#allocation20 + $0xac8] sm:$0xff]   ;;  %v16869_v20 = vld [vmem:[#allocation20 + $0xa40] sm:$0xff]   ;;  %v16875_v11 = vld [vmem:[#allocation20 + $0x338] sm:$0xff]  }
0x1108   :  { %v9783_v31 = vadd.f32 %v15040_v8, %v18731_v4  ;;  %15332 = vmatpush3.bf16.msra.mxu0 %v16851_v50  ;;  %v16863_v4 = vld [vmem:[#allocation20 + $0xa10] sm:$0xff]   ;;  %v16867_v46 = vld [vmem:[#allocation20 + $0xa08] sm:$0xff]   ;;  %v16870_v50 = vld [vmem:[#allocation20 + $0xac0] sm:$0xff]  }
0x1109   :  { %15354 = vmatpush3.bf16.msra.mxu1 %v16852_v49  ;;  %15333 = vmatprep.subr.bf16.mxu0 %v16853_v26  ;;  %v16868_v44 = vld [vmem:[#allocation20 + $0xa88] sm:$0xff]   ;;  %v16872_v49 = vld [vmem:[#allocation20 + $0xa80] sm:$0xff]   ;;  %v16873_v26 = vld [vmem:[#allocation20 + $0x378] sm:$0xff]  }
0x110a   :  { %v18753_v56 = vadd.f32 %v15062_v3, %v9783_v31  ;;  %15355 = vmatprep.subr.bf16.mxu1 %v16854_v36  ;;  %v16874_v8 = vld [vmem:[#allocation20 + $0x3f8] sm:$0xff]   ;;  %v16877_v31 = vld [vmem:[#allocation20 + $0x370] sm:$0xff]   ;;  %v19066_v3 = vld [vmem:[#allocation69_spill] sm:$0xff] }
0x110b   :  { %v16876_v36 = vld [vmem:[#allocation20 + $0x3b8] sm:$0xff]  }
0x110c   :  { %19065 = vst [vmem:[#allocation35_spill] sm:$0xff] %v18753_v56  ;;  %15334 = vmatpush3.bf16.msra.mxu0 %v16855_v24  ;;  %v19067_v24 = vld [vmem:[#allocation68_spill] sm:$0xff] }
0x110d   :  { %15356 = vmatpush3.bf16.msra.mxu1 %v16856_v28  ;;  %15335 = vmatprep.subr.bf16.mxu0 %v16857_v37  ;;  %v19068_v28 = vpack.c.bf16 %v19066_v3, %v19067_v24  ;;  %v16878_v37 = vld [vmem:[#allocation20 + $0x3f0] sm:$0xff]   ;;  %v16902_v3 = vld [vmem:[#allocation20 + $0x3c0] sm:$0xff]  }
0x110e   :  { %15357 = vmatprep.subr.bf16.mxu1 %v16858_v58  ;;  %v19069_v58 = vld [vmem:[#allocation73_spill] sm:$0xff] }
0x110f   :  { %v16903_v24 = vld [vmem:[#allocation20 + $0x300] sm:$0xff]  }
0x1110   :  { %15336 = vmatpush3.bf16.msra.mxu0 %v16859_v2  ;;  %v19070_v2 = vld [vmem:[#allocation72_spill] sm:$0xff] }
0x1111   :  { %15358 = vmatpush3.bf16.msra.mxu1 %v16860_v23  ;;  %15337 = vmatprep.subr.bf16.mxu0 %v16861_v17  ;;  %v19071_v23 = vpack.c.bf16 %v19069_v58, %v19070_v2  ;;  %v16879_v17 = vld [vmem:[#allocation20 + $0x330] sm:$0xff]   ;;  %v16906_v58 = vld [vmem:[#allocation20 + $0x7f8] sm:$0xff]  }
0x1112   :  { %15359 = vmatprep.subr.bf16.mxu1 %v16862_v40  ;;  %v16880_v40 = vld [vmem:[#allocation20 + $0x3b0] sm:$0xff]   ;;  %v16907_v2 = vld [vmem:[#allocation20 + $0x738] sm:$0xff]  }
0x1114   :  { %15338 = vmatpush3.bf16.msra.mxu0 %v16863_v4  ;;  %v16881_v4 = vld [vmem:[#allocation20 + $0x368] sm:$0xff]  }
0x1115   :  { %15360 = vmatpush3.bf16.msra.mxu1 %v16864_v42  ;;  %15339 = vmatprep.subr.bf16.mxu0 %v16865_v6  ;;  %v16882_v42 = vld [vmem:[#allocation20 + $0x3e8] sm:$0xff]  }
0x1116   :  { %15361 = vmatprep.subr.bf16.mxu1 %v16866_v34  ;;  %v16883_v6 = vld [vmem:[#allocation20 + $0x328] sm:$0xff]   ;;  %v16887_v34 = vld [vmem:[#allocation20 + $0x320] sm:$0xff]  }
0x1118   :  { %15340 = vmatpush3.bf16.msra.mxu0 %v16867_v46  ;;  %v16888_v46 = vld [vmem:[#allocation20 + $0x3a0] sm:$0xff]  }
0x1119   :  { %15362 = vmatpush3.bf16.msra.mxu1 %v16868_v44  ;;  %15341 = vmatprep.subr.bf16.mxu0 %v16869_v20  ;;  %v16892_v44 = vld [vmem:[#allocation20 + $0x398] sm:$0xff]   ;;  %v16893_v20 = vld [vmem:[#allocation20 + $0x350] sm:$0xff]  }
0x111a   :  { %15363 = vmatprep.subr.bf16.mxu1 %v16870_v50  ;;  %v16894_v50 = vld [vmem:[#allocation20 + $0x3d0] sm:$0xff]  }
0x111c   :  { %15342 = vmatpush3.bf16.msra.mxu0 %v16871_v0  ;;  %v16895_v0 = vld [vmem:[#allocation20 + $0x310] sm:$0xff]  }
0x111d   :  { %15364 = vmatpush3.bf16.msra.mxu1 %v16872_v49  ;;  %15371 = vmatprep.subr.bf16.mxu0 %v16873_v26  ;;  %v16896_v49 = vld [vmem:[#allocation20 + $0x390] sm:$0xff]   ;;  %v16897_v26 = vld [vmem:[#allocation20 + $0x348] sm:$0xff]  }
0x111e   :  { %15393 = vmatprep.subr.bf16.mxu1 %v16874_v8  ;;  %v16898_v8 = vld [vmem:[#allocation20 + $0x3c8] sm:$0xff]  }
0x111f   :  { %14790 = vmatmul.mubr.msk.bf16.vlgmr.msra.gmra.mxu0 %vm17554_vm7, %v19068_v28  ;;  %v16904_v28 = vld [vmem:[#allocation20 + $0x380] sm:$0xff]  }
0x1120   :  { %14796 = vmatmul.mubr.msk.bf16.vlgmr.msra.gmra.mxu1 %vm17554_vm7, %v19071_v23  ;;  %15372 = vmatpush3.bf16.msra.mxu0 %v16875_v11  ;;  %v16899_v11 = vld [vmem:[#allocation20 + $0x308] sm:$0xff]   ;;  %v16908_v23 = vld [vmem:[#allocation20 + $0x7b8] sm:$0xff]  }
0x1121   :  { %14831 = vmatprep.mubr.msk.bf16.mxu0 %vm17535_vm3, %v14830_v61  ;;  %15394 = vmatpush3.bf16.msra.mxu1 %v16876_v36  ;;  %v16886_v61 = vld [vmem:[#allocation20 + $0x3e0] sm:$0xff]   ;;  %v16900_v36 = vld [vmem:[#allocation20 + $0x388] sm:$0xff]  }
0x1122   :  { %14837 = vmatprep.mubr.msk.bf16.mxu1 %vm17535_vm3, %v14836_v15  ;;  %15373 = vmatprep.subr.bf16.mxu0 %v16877_v31  ;;  %v16891_v15 = vld [vmem:[#allocation20 + $0x318] sm:$0xff]   ;;  %v16901_v31 = vld [vmem:[#allocation20 + $0x340] sm:$0xff]  }
0x1123   :  { %15395 = vmatprep.subr.bf16.mxu1 %v16878_v37  ;;  %v16905_v37 = vld [vmem:[#allocation20 + $0x778] sm:$0xff]  }
0x1124   :  { %15374 = vmatpush3.bf16.msra.mxu0 %v16879_v17  ;;  %v16909_v17 = vld [vmem:[#allocation20 + $0x770] sm:$0xff]  }
0x1125   :  { %15396 = vmatpush3.bf16.msra.mxu1 %v16880_v40  ;;  %15375 = vmatprep.subr.bf16.mxu0 %v16881_v4  ;;  %v16910_v40 = vld [vmem:[#allocation20 + $0x7f0] sm:$0xff]  }
0x1126   :  { %15397 = vmatprep.subr.bf16.mxu1 %v16882_v42  ;;  %v16911_v4 = vld [vmem:[#allocation20 + $0x730] sm:$0xff]  }
0x1127   :  { %v16912_v42 = vld [vmem:[#allocation20 + $0x7b0] sm:$0xff]  }
0x1128   :  { %15376 = vmatpush3.bf16.msra.mxu0 %v16883_v6  ;;  %v16913_v6 = vld [vmem:[#allocation20 + $0x768] sm:$0xff]  }
0x1129   :  { %15398 = vmatpush3.bf16.msra.mxu1 %v16884_v32  ;;  %15377 = vmatprep.subr.bf16.mxu0 %v16885_v47  ;;  %v16927_v32 = vld [vmem:[#allocation20 + $0x710] sm:$0xff]  }
0x112a   :  { %15399 = vmatprep.subr.bf16.mxu1 %v16886_v61  ;;  %v16928_v47 = vld [vmem:[#allocation20 + $0x790] sm:$0xff]   ;;  %v16929_v61 = vld [vmem:[#allocation20 + $0x748] sm:$0xff]  }
0x112c   :  { %15378 = vmatpush3.bf16.msra.mxu0 %v16887_v34  ;;  %v16930_v34 = vld [vmem:[#allocation20 + $0x7c8] sm:$0xff]  }
0x112d   :  { %15400 = vmatpush3.bf16.msra.mxu1 %v16888_v46  ;;  %15379 = vmatprep.subr.bf16.mxu0 %v16889_v48  ;;  %v16931_v46 = vld [vmem:[#allocation20 + $0x708] sm:$0xff]  }
0x112e   :  { %15401 = vmatprep.subr.bf16.mxu1 %v16890_v54  ;;  %v16932_v48 = vld [vmem:[#allocation20 + $0x788] sm:$0xff]   ;;  %v16933_v54 = vld [vmem:[#allocation20 + $0x740] sm:$0xff]  }
0x1130   :  { %15380 = vmatpush3.bf16.msra.mxu0 %v16891_v15  ;;  %v16934_v15 = vld [vmem:[#allocation20 + $0x7c0] sm:$0xff]  }
0x1131   :  { %15402 = vmatpush3.bf16.msra.mxu1 %v16892_v44  ;;  %15381 = vmatprep.subr.bf16.mxu0 %v16893_v20  ;;  %v16935_v44 = vld [vmem:[#allocation20 + $0x700] sm:$0xff]  }
0x1132   :  { %15403 = vmatprep.subr.bf16.mxu1 %v16894_v50  ;;  %v16936_v20 = vld [vmem:[#allocation20 + $0x780] sm:$0xff]   ;;  %v16937_v50 = vld [vmem:[#allocation20 + $0xb78] sm:$0xff]  }
0x1134   :  { %15382 = vmatpush3.bf16.msra.mxu0 %v16895_v0  ;;  %v16938_v0 = vld [vmem:[#allocation20 + $0xbf8] sm:$0xff]  }
0x1135   :  { %15404 = vmatpush3.bf16.msra.mxu1 %v16896_v49  ;;  %15383 = vmatprep.subr.bf16.mxu0 %v16897_v26  ;;  %v16939_v49 = vld [vmem:[#allocation20 + $0xb38] sm:$0xff]  }
0x1136   :  { %15405 = vmatprep.subr.bf16.mxu1 %v16898_v8  ;;  %v16940_v26 = vld [vmem:[#allocation20 + $0xbb8] sm:$0xff]   ;;  %v16941_v8 = vld [vmem:[#allocation20 + $0xb70] sm:$0xff]  }
0x1138   :  { %15384 = vmatpush3.bf16.msra.mxu0 %v16899_v11  ;;  %v16942_v11 = vld [vmem:[#allocation20 + $0xbf0] sm:$0xff]  }
0x1139   :  { %15406 = vmatpush3.bf16.msra.mxu1 %v16900_v36  ;;  %15385 = vmatprep.subr.bf16.mxu0 %v16901_v31  ;;  %v16943_v36 = vld [vmem:[#allocation20 + $0xb30] sm:$0xff]  }
0x113a   :  { %15407 = vmatprep.subr.bf16.mxu1 %v16902_v3  ;;  %v16944_v31 = vld [vmem:[#allocation20 + $0xbb0] sm:$0xff]   ;;  %v16945_v3 = vld [vmem:[#allocation20 + $0xb68] sm:$0xff]  }
0x113c   :  { %15386 = vmatpush3.bf16.msra.mxu0 %v16903_v24  ;;  %v16958_v24 = vld [vmem:[#allocation20 + $0xbd0] sm:$0xff]  }
0x113d   :  { %15408 = vmatpush3.bf16.msra.mxu1 %v16904_v28  ;;  %15415 = vmatprep.subr.bf16.mxu0 %v16905_v37  ;;  %v16959_v28 = vld [vmem:[#allocation20 + $0xb10] sm:$0xff]  }
0x113e   :  { %15437 = vmatprep.subr.bf16.mxu1 %v16906_v58  ;;  %v16960_v37 = vld [vmem:[#allocation20 + $0xb90] sm:$0xff]   ;;  %v16961_v58 = vld [vmem:[#allocation20 + $0xb48] sm:$0xff]  }
0x113f   :  { %14834 = vmatmul.mubr.msk.bf16.vlgmr.msra.gmra.mxu0 %vm17535_vm3, %v14833_v35  ;;  %v16917_v35 = vld [vmem:[#allocation20 + $0x760] sm:$0xff]  }
0x1140   :  { %14840 = vmatmul.mubr.msk.bf16.vlgmr.msra.gmra.mxu1 %vm17535_vm3, %v14839_v29  ;;  %15416 = vmatpush3.bf16.msra.mxu0 %v16907_v2  ;;  %v16924_v29 = vld [vmem:[#allocation20 + $0x798] sm:$0xff]   ;;  %v16962_v2 = vld [vmem:[#allocation20 + $0xbc8] sm:$0xff]  }
0x1141   :  { %13024 = vmatprep.mubr.bf16.mxu0 %v12335_v39  ;;  %15438 = vmatpush3.bf16.msra.mxu1 %v16908_v23  ;;  %v16925_v39 = vld [vmem:[#allocation20 + $0x750] sm:$0xff]   ;;  %v16963_v23 = vld [vmem:[#allocation20 + $0xb08] sm:$0xff]  }
0x1142   :  { %13065 = vmatprep.mubr.bf16.mxu1 %v12337_v9  ;;  %15417 = vmatprep.subr.bf16.mxu0 %v16909_v17  ;;  %v16926_v9 = vld [vmem:[#allocation20 + $0x7d0] sm:$0xff]   ;;  %v16964_v17 = vld [vmem:[#allocation20 + $0xb88] sm:$0xff]  }
0x1143   :  { %15439 = vmatprep.subr.bf16.mxu1 %v16910_v40  ;;  %v16965_v40 = vld [vmem:[#allocation20 + $0xb40] sm:$0xff]  }
0x1144   :  { %15418 = vmatpush3.bf16.msra.mxu0 %v16911_v4  ;;  %v16966_v4 = vld [vmem:[#allocation20 + $0xbc0] sm:$0xff]  }
0x1145   :  { %15440 = vmatpush3.bf16.msra.mxu1 %v16912_v42  ;;  %15419 = vmatprep.subr.bf16.mxu0 %v16913_v6  ;;  %v16967_v42 = vld [vmem:[#allocation20 + $0xb00] sm:$0xff]  }
0x1146   :  { %15441 = vmatprep.subr.bf16.mxu1 %v16914_v30  ;;  %v16968_v6 = vld [vmem:[#allocation20 + $0xb80] sm:$0xff]   ;;  %v15079_v30 = vpop.f32.mrf.mxu0 }
0x1148   :  { %15420 = vmatpush3.bf16.msra.mxu0 %v16915_v59  ;;  %v15101_v59 = vpop.f32.mrf.mxu1 }
0x1149   :  { %15442 = vmatpush3.bf16.msra.mxu1 %v16916_v16  ;;  %15421 = vmatprep.subr.bf16.mxu0 %v16917_v35  ;;  %v15080_v16 = vpop.f32.mrf.mxu0 }
0x114a   :  { %15443 = vmatprep.subr.bf16.mxu1 %v16918_v52  ;;  %v15102_v35 = vpop.f32.mrf.mxu1 }
0x114b   :  { %v18817_v52 = vpop.f32.mrf.mxu0 }
0x114c   :  { %15422 = vmatpush3.bf16.msra.mxu0 %v16919_v41  ;;  %v18819_v41 = vpop.f32.mrf.mxu1 }
0x114d   :  { %15444 = vmatpush3.bf16.msra.mxu1 %v16920_v45  ;;  %15423 = vmatprep.subr.bf16.mxu0 %v16921_v5  ;;  %v15083_v45 = vpop.f32.mrf.mxu0 }
0x114e   :  { %15445 = vmatprep.subr.bf16.mxu1 %v16922_v22  ;;  %v15105_v5 = vpop.f32.mrf.mxu1 }
0x114f   :  { %v15123_v55 = vpop.f32.mrf.mxu0 }
0x1150   :  { %15424 = vmatpush3.bf16.msra.mxu0 %v16923_v53  ;;  %v15145_v21 = vpop.f32.mrf.mxu1 }
0x1151   :  { %15446 = vmatpush3.bf16.msra.mxu1 %v16924_v29  ;;  %15425 = vmatprep.subr.bf16.mxu0 %v16925_v39  ;;  %v15124_v22 = vpop.f32.mrf.mxu0 }
0x1152   :  { %15447 = vmatprep.subr.bf16.mxu1 %v16926_v9 }
0x1153   :  { %v15126_v53 = vpop.f32.mrf.mxu0 }
0x1154   :  { %15426 = vmatpush3.bf16.msra.mxu0 %v16927_v32 }
0x1155   :  { %15448 = vmatpush3.bf16.msra.mxu1 %v16928_v47  ;;  %15427 = vmatprep.subr.bf16.mxu0 %v16929_v61  ;;  %v15127_v51 = vpop.f32.mrf.mxu0 }
0x1156   :  { %15449 = vmatprep.subr.bf16.mxu1 %v16930_v34 }
0x1158   :  { %15428 = vmatpush3.bf16.msra.mxu0 %v16931_v46 }
0x1159   :  { %15450 = vmatpush3.bf16.msra.mxu1 %v16932_v48  ;;  %15429 = vmatprep.subr.bf16.mxu0 %v16933_v54 }
0x115a   :  { %15451 = vmatprep.subr.bf16.mxu1 %v16934_v15 }
0x115c   :  { %15430 = vmatpush3.bf16.msra.mxu0 %v16935_v44 }
0x115d   :  { %15452 = vmatpush3.bf16.msra.mxu1 %v16936_v20  ;;  %15459 = vmatprep.subr.bf16.mxu0 %v16937_v50 }
0x115e   :  { %15481 = vmatprep.subr.bf16.mxu1 %v16938_v0 }
0x115f   :  { %13025 = vmatmul.mubr.bf16.vlgmr.msra.gmra.mxu0 %v12334_v63  ;;  %v16950_v63 = vld [vmem:[#allocation20 + $0xbe0] sm:$0xff]   ;;  %v15167_v57 = vpop.f32.mrf.mxu0 }
0x1160   :  { %13066 = vmatmul.mubr.bf16.vlgmr.msra.gmra.mxu1 %v12336_v1  ;;  %15460 = vmatpush3.bf16.msra.mxu0 %v16939_v49  ;;  %v16951_v1 = vld [vmem:[#allocation20 + $0xb20] sm:$0xff]  }
0x1161   :  { %14907 = vmatprep.mubr.msk.bf16.mxu0 %vm17554_vm7, %v14906_v27  ;;  %15482 = vmatpush3.bf16.msra.mxu1 %v16940_v26  ;;  %v16956_v27 = vld [vmem:[#allocation20 + $0xb98] sm:$0xff]   ;;  %v15168_v39 = vpop.f32.mrf.mxu0 }
0x1162   :  { %14913 = vmatprep.mubr.msk.bf16.mxu1 %vm17554_vm7, %v14912_v62  ;;  %15461 = vmatprep.subr.bf16.mxu0 %v16941_v8  ;;  %v16957_v62 = vld [vmem:[#allocation20 + $0xb50] sm:$0xff]  }
0x1163   :  { %15483 = vmatprep.subr.bf16.mxu1 %v16942_v11  ;;  %v18821_v32 = vpop.f32.mrf.mxu0 }
0x1164   :  { %15462 = vmatpush3.bf16.msra.mxu0 %v16943_v36 }
0x1165   :  { %15484 = vmatpush3.bf16.msra.mxu1 %v16944_v31  ;;  %15463 = vmatprep.subr.bf16.mxu0 %v16945_v3  ;;  %v15171_v61 = vpop.f32.mrf.mxu0 }
0x1166   :  { %15485 = vmatprep.subr.bf16.mxu1 %v16946_v13 }
0x1168   :  { %15464 = vmatpush3.bf16.msra.mxu0 %v16947_v38 }
0x1169   :  { %15486 = vmatpush3.bf16.msra.mxu1 %v16948_v14  ;;  %15465 = vmatprep.subr.bf16.mxu0 %v16949_v43 }
0x116a   :  { %15487 = vmatprep.subr.bf16.mxu1 %v16950_v63 }
0x116c   :  { %15466 = vmatpush3.bf16.msra.mxu0 %v16951_v1 }
0x116d   :  { %15488 = vmatpush3.bf16.msra.mxu1 %v16952_v60  ;;  %15467 = vmatprep.subr.bf16.mxu0 %v16953_v33 }
0x116e   :  { %15489 = vmatprep.subr.bf16.mxu1 %v16954_v10 }
0x1170   :  { %15468 = vmatpush3.bf16.msra.mxu0 %v16955_v19 }
0x1171   :  { %15490 = vmatpush3.bf16.msra.mxu1 %v16956_v27  ;;  %15469 = vmatprep.subr.bf16.mxu0 %v16957_v62 }
0x1172   :  { %15491 = vmatprep.subr.bf16.mxu1 %v16958_v24 }
0x1174   :  { %15470 = vmatpush3.bf16.msra.mxu0 %v16959_v28 }
0x1175   :  { %15492 = vmatpush3.bf16.msra.mxu1 %v16960_v37  ;;  %15471 = vmatprep.subr.bf16.mxu0 %v16961_v58 }
0x1176   :  { %15493 = vmatprep.subr.bf16.mxu1 %v16962_v2 }
0x1178   :  { %15472 = vmatpush3.bf16.msra.mxu0 %v16963_v23 }
0x1179   :  { %15494 = vmatpush3.bf16.msra.mxu1 %v16964_v17  ;;  %15473 = vmatprep.subr.bf16.mxu0 %v16965_v40 }
0x117a   :  { %15495 = vmatprep.subr.bf16.mxu1 %v16966_v4 }
0x117c   :  { %15474 = vmatpush3.bf16.msra.mxu0 %v16967_v42  ;;  %v15081_v42 = vadd.f32 %v15080_v16, %v15079_v30 }
0x117d   :  { %15496 = vmatpush3.bf16.msra.mxu1 %v16968_v6  ;;  %v15103_v6 = vadd.f32 %v15102_v35, %v15101_v59 }
0x117f   :  { %14910 = vmatmul.mubr.msk.bf16.vlgmr.msra.gmra.mxu0 %vm17554_vm7, %v14909_v12  ;;  %v15146_v12 = vpop.f32.mrf.mxu1  ;;  %v15211_v46 = vpop.f32.mrf.mxu0 }
0x1180   :  { %14916 = vmatmul.mubr.msk.bf16.vlgmr.msra.gmra.mxu1 %vm17554_vm7, %v14915_v18 }
0x1181   :  { %v15148_v29 = vpop.f32.mrf.mxu1  ;;  %v15212_v54 = vpop.f32.mrf.mxu0 }
0x1182   :  { %v15213_v30 = vadd.f32 %v15212_v54, %v15211_v46  ;;  %v19088_v54 = vld [vmem:[#allocation35_spill] sm:$0xff] }
0x1183   :  { %v15149_v7 = vpop.f32.mrf.mxu1  ;;  %v18825_v44 = vpop.f32.mrf.mxu0 }
0x1184   :  { %19073 = vst [vmem:[#allocation57_spill] sm:$0xff] %v18825_v44  ;;  %v15128_v44 = vadd.f32 %v15127_v51, %v15126_v53 }
0x1185   :  { %v15189_v18 = vpop.f32.mrf.mxu1  ;;  %v15215_v50 = vpop.f32.mrf.mxu0 }
0x1187   :  { %v15190_v9 = vpop.f32.mrf.mxu1 }
0x1189   :  { %v18823_v47 = vpop.f32.mrf.mxu1 }
0x118a   :  { %19072 = vst [vmem:[#allocation55_spill] sm:$0xff] %v18823_v47  ;;  %v15150_v47 = vadd.f32 %v15149_v7, %v15148_v29 }
0x118b   :  { %v15193_v34 = vpop.f32.mrf.mxu1  ;;  %v19086_v53 = vld [vmem:[#allocation57_spill] sm:$0xff] }
0x118c   :  { %v15216_v29 = vadd.f32 %v15215_v50, %v19086_v53 }
0x118d   :  { %v15233_v48 = vpop.f32.mrf.mxu1 }
0x118f   :  { %v15234_v15 = vpop.f32.mrf.mxu1 }
0x1190   :  { %v15235_v59 = vadd.f32 %v15234_v15, %v15233_v48 }
0x1191   :  { %v18827_v20 = vpop.f32.mrf.mxu1 }
0x1192   :  { %19074 = vst [vmem:[#allocation54_spill] sm:$0xff] %v18827_v20 }
0x1193   :  { %v15237_v0 = vpop.f32.mrf.mxu1 }
0x1199   :  { %v19087_v51 = vld [vmem:[#allocation54_spill] sm:$0xff] }
0x119a   :  { %v15238_v7 = vadd.f32 %v15237_v0, %v19087_v51 }
0x119c   :  { %v11246_v50 = vadd.f32 %v15238_v7, %v15216_v29 }
0x119f   :  { %v15255_v49 = vpop.f32.mrf.mxu0 }
0x11a0   :  { %v15277_v26 = vpop.f32.mrf.mxu1 }
0x11a1   :  { %v15256_v8 = vpop.f32.mrf.mxu0 }
0x11a2   :  { %v15278_v11 = vpop.f32.mrf.mxu1 }
0x11a3   :  { %v18829_v36 = vpop.f32.mrf.mxu0 }
0x11a4   :  { %19075 = vst [vmem:[#allocation56_spill] sm:$0xff] %v18829_v36  ;;  %v18831_v31 = vpop.f32.mrf.mxu1  ;;  %v15191_v36 = vadd.f32 %v15190_v9, %v15189_v18  ;;  %v10564_v18 = vadd.f32 %v15150_v47, %v15128_v44 }
0x11a5   :  { %19076 = vst [vmem:[#allocation39_spill] sm:$0xff] %v18831_v31  ;;  %v15259_v3 = vpop.f32.mrf.mxu0  ;;  %v10160_v31 = vadd.f32 %v15103_v6, %v15081_v42 }
0x11a6   :  { %v15281_v13 = vpop.f32.mrf.mxu1 }
0x11a7   :  { %v10166_v35 = vadd.f32 %v10160_v31, %v18750_v25 }
0x11bf   :  { %v15299_v38 = vpop.f32.mrf.mxu0 }
0x11c0   :  { %v15321_v14 = vpop.f32.mrf.mxu1 }
0x11c1   :  { %v15300_v43 = vpop.f32.mrf.mxu0 }
0x11c2   :  { %v15322_v63 = vpop.f32.mrf.mxu1  ;;  %v15301_v46 = vadd.f32 %v15300_v43, %v15299_v38 }
0x11c3   :  { %v18833_v1 = vpop.f32.mrf.mxu0  ;;  %v15323_v48 = vadd.f32 %v15322_v63, %v15321_v14 }
0x11c4   :  { %19077 = vst [vmem:[#allocation38_spill] sm:$0xff] %v18833_v1  ;;  %v18835_v60 = vpop.f32.mrf.mxu1 }
0x11c5   :  { %19078 = vst [vmem:[#allocation41_spill] sm:$0xff] %v18835_v60  ;;  %v18837_v33 = vpop.f32.mrf.mxu0 }
0x11c6   :  { %19079 = vst [vmem:[#allocation40_spill] sm:$0xff] %v18837_v33  ;;  %v18839_v10 = vpop.f32.mrf.mxu1  ;;  %v15147_v33 = vadd.f32 %v15146_v12, %v15145_v21  ;;  %v15172_v12 = vadd.f32 %v15171_v61, %v18821_v32  ;;  %v19089_v61 = vld [vmem:[#allocation56_spill] sm:$0xff] }
0x11c7   :  { %19080 = vst [vmem:[#allocation46_spill] sm:$0xff] %v18839_v10  ;;  %v15125_v10 = vadd.f32 %v15124_v22, %v15123_v55 }
0x11c9   :  { %v10561_v56 = vadd.f32 %v15147_v33, %v15125_v10  ;;  %v11985_v33 = vadd.f32 %v15323_v48, %v15301_v46 }
0x11cb   :  { %v19091_v38 = vld [vmem:[#allocation38_spill] sm:$0xff] }
0x11cc   :  { %v19093_v63 = vld [vmem:[#allocation41_spill] sm:$0xff] }
0x11cd   :  { %v19092_v14 = vld [vmem:[#allocation40_spill] sm:$0xff] }
0x11ce   :  { %v15304_v43 = vadd.f32 %v19092_v14, %v19091_v38  ;;  %v19094_v10 = vld [vmem:[#allocation46_spill] sm:$0xff] }
0x11df   :  { %v15343_v19 = vpop.f32.mrf.mxu0 }
0x11e0   :  { %v15365_v27 = vpop.f32.mrf.mxu1 }
0x11e1   :  { %v15344_v62 = vpop.f32.mrf.mxu0 }
0x11e2   :  { %v15366_v24 = vpop.f32.mrf.mxu1 }
0x11e3   :  { %v18841_v28 = vpop.f32.mrf.mxu0  ;;  %v15367_v47 = vadd.f32 %v15366_v24, %v15365_v27 }
0x11e4   :  { %19081 = vst [vmem:[#allocation47_spill] sm:$0xff] %v18841_v28  ;;  %v18843_v37 = vpop.f32.mrf.mxu1  ;;  %v15084_v28 = vadd.f32 %v15083_v45, %v18817_v52  ;;  %v19085_v52 = vld [vmem:[#allocation55_spill] sm:$0xff] }
0x11e5   :  { %19082 = vst [vmem:[#allocation50_spill] sm:$0xff] %v18843_v37  ;;  %v18845_v58 = vpop.f32.mrf.mxu0  ;;  %v15106_v37 = vadd.f32 %v15105_v5, %v18819_v41  ;;  %v15194_v45 = vadd.f32 %v15193_v34, %v19085_v52  ;;  %v15257_v41 = vadd.f32 %v15256_v8, %v15255_v49  ;;  %v15279_v5 = vadd.f32 %v15278_v11, %v15277_v26  ;;  %v19090_v49 = vld [vmem:[#allocation39_spill] sm:$0xff] }
0x11e6   :  { %19083 = vst [vmem:[#allocation51_spill] sm:$0xff] %v18845_v58  ;;  %v18847_v2 = vpop.f32.mrf.mxu1  ;;  %v15169_v58 = vadd.f32 %v15168_v39, %v15167_v57  ;;  %v10567_v57 = vadd.f32 %v10561_v56, %v10166_v35  ;;  %v11243_v39 = vadd.f32 %v15235_v59, %v15213_v30  ;;  %v15260_v34 = vadd.f32 %v15259_v3, %v19089_v61 }
0x11e7   :  { %19084 = vst [vmem:[#allocation44_spill] sm:$0xff] %v18847_v2  ;;  %v10163_v55 = vadd.f32 %v15106_v37, %v15084_v28  ;;  %v10905_v31 = vadd.f32 %v15194_v45, %v15172_v12  ;;  %v11644_v32 = vadd.f32 %v15279_v5, %v15257_v41  ;;  %v15282_v26 = vadd.f32 %v15281_v13, %v19090_v49 }
0x11e8   :  { %v10902_v21 = vadd.f32 %v15191_v36, %v15169_v58  ;;  %v15345_v56 = vadd.f32 %v15344_v62, %v15343_v19  ;;  %v15326_v28 = vadd.f32 %v19094_v10, %v19093_v63 }
0x11e9   :  { %v10167_v15 = vadd.f32 %v10163_v55, %v19088_v54  ;;  %v11647_v6 = vadd.f32 %v15282_v26, %v15260_v34 }
0x11ea   :  { %v10908_v36 = vadd.f32 %v10902_v21, %v10567_v57  ;;  %v12326_v13 = vadd.f32 %v15367_v47, %v15345_v56  ;;  %v11988_v41 = vadd.f32 %v15326_v28, %v15304_v43  ;;  %v14917_v47 = vld [vmem:[#allocation22] ss:$0 sm:$0xff]  ;;  %v19100_v28 = vld [vmem:[#allocation37_spill] sm:$0xff] }
0x11eb   :  { %v10568_v8 = vadd.f32 %v10564_v18, %v10167_v15  ;;  %v19095_v19 = vld [vmem:[#allocation47_spill] sm:$0xff] }
0x11ec   :  { %v11249_v11 = vadd.f32 %v11243_v39, %v10908_v36  ;;  %v19097_v24 = vld [vmem:[#allocation50_spill] sm:$0xff] }
0x11ed   :  { %v10909_v42 = vadd.f32 %v10905_v31, %v10568_v8  ;;  %v19096_v27 = vld [vmem:[#allocation51_spill] sm:$0xff] }
0x11ee   :  { %v11650_v3 = vadd.f32 %v11644_v32, %v11249_v11  ;;  %v15348_v62 = vadd.f32 %v19096_v27, %v19095_v19  ;;  %v19098_v30 = vld [vmem:[#allocation44_spill] sm:$0xff] }
0x11ef   :  { %v15370_v59 = vadd.f32 %v19098_v30, %v19097_v24  ;;  %v11250_v12 = vadd.f32 %v11246_v50, %v10909_v42  ;;  %v14918_v11 = vld [vmem:[#allocation23] ss:$0 sm:$0xff] }
0x11f0   :  { %v11991_v52 = vadd.f32 %v11985_v33, %v11650_v3 }
0x11f1   :  { %v12329_v39 = vadd.f32 %v15370_v59, %v15348_v62 }
0x11f2   :  { %v12332_v57 = vadd.f32 %v12326_v13, %v11991_v52 }
0x11ff   :  { %v15387_v23 = vpop.f32.mrf.mxu0 }
0x1200   :  { %v15409_v17 = vpop.f32.mrf.mxu1 }
0x1201   :  { %v15388_v40 = vpop.f32.mrf.mxu0 }
0x1202   :  { %v15410_v4 = vpop.f32.mrf.mxu1  ;;  %v15389_v37 = vadd.f32 %v15388_v40, %v15387_v23 }
0x1203   :  { %v18849_v60 = vpop.f32.mrf.mxu0  ;;  %v15411_v58 = vadd.f32 %v15410_v4, %v15409_v17  ;;  %v11651_v4 = vadd.f32 %v11647_v6, %v11250_v12 }
0x1204   :  { %v18851_v1 = vpop.f32.mrf.mxu1 }
0x1205   :  { %v15391_v2 = vpop.f32.mrf.mxu0  ;;  %v12727_v5 = vadd.f32 %v15411_v58, %v15389_v37  ;;  %v11992_v7 = vadd.f32 %v11988_v41, %v11651_v4  ;;  %v272_v37 = vmul.f32 0.33333334, %v19100_v28 }
0x1206   :  { %v15413_v20 = vpop.f32.mrf.mxu1  ;;  %v15392_v23 = vadd.f32 %v15391_v2, %v18849_v60 }
0x1207   :  { %v15414_v17 = vadd.f32 %v15413_v20, %v18851_v1  ;;  %v12733_v46 = vadd.f32 %v12727_v5, %v12332_v57  ;;  %v12333_v60 = vadd.f32 %v12329_v39, %v11992_v7 }
0x1209   :  { %v12730_v48 = vadd.f32 %v15414_v17, %v15392_v23 }
0x120b   :  { %v12734_v61 = vadd.f32 %v12730_v48, %v12333_v60 }
0x121f   :  { %v15431_v16 = vpop.f32.mrf.mxu0 }
0x1220   :  { %v15453_v22 = vpop.f32.mrf.mxu1 }
0x1221   :  { %v15432_v9 = vpop.f32.mrf.mxu0 }
0x1222   :  { %v15454_v25 = vpop.f32.mrf.mxu1  ;;  %v15433_v35 = vadd.f32 %v15432_v9, %v15431_v16 }
0x1223   :  { %v15434_v44 = vpop.f32.mrf.mxu0  ;;  %v15455_v55 = vadd.f32 %v15454_v25, %v15453_v22 }
0x1224   :  { %v15456_v0 = vpop.f32.mrf.mxu1 }
0x1225   :  { %v15435_v21 = vpop.f32.mrf.mxu0  ;;  %v13068_v53 = vadd.f32 %v15455_v55, %v15433_v35 }
0x1226   :  { %v15457_v45 = vpop.f32.mrf.mxu1  ;;  %v15436_v29 = vadd.f32 %v15435_v21, %v15434_v44 }
0x1227   :  { %v15458_v51 = vadd.f32 %v15457_v45, %v15456_v0  ;;  %v13074_v2 = vadd.f32 %v13068_v53, %v12733_v46  ;;  %v19099_v0 = vld [vmem:[#allocation36_spill] sm:$0xff] }
0x1228   :  { %v271_v38 = vmul.f32 0.33333334, %v19099_v0 }
0x1229   :  { %v13071_v20 = vadd.f32 %v15458_v51, %v15436_v29 }
0x122b   :  { %v13075_v26 = vadd.f32 %v13071_v20, %v12734_v61 }
0x123f   :  { %v15475_v40 = vpop.f32.mrf.mxu0 }
0x1240   :  { %v15497_v18 = vpop.f32.mrf.mxu1 }
0x1241   :  { %v15476_v16 = vpop.f32.mrf.mxu0 }
0x1242   :  { %v15477_v22 = vadd.f32 %v15476_v16, %v15475_v40  ;;  %v15498_v9 = vpop.f32.mrf.mxu1 }
0x1243   :  { %v15499_v25 = vadd.f32 %v15498_v9, %v15497_v18  ;;  %v15478_v54 = vpop.f32.mrf.mxu0 }
0x1244   :  { %v15500_v15 = vpop.f32.mrf.mxu1 }
0x1245   :  { %v13409_v1 = vadd.f32 %v15499_v25, %v15477_v22  ;;  %v15479_v36 = vpop.f32.mrf.mxu0 }
0x1246   :  { %v15480_v31 = vadd.f32 %v15479_v36, %v15478_v54  ;;  %v15501_v32 = vpop.f32.mrf.mxu1 }
0x1247   :  { %v13415_v34 = vadd.f32 %v13409_v1, %v13074_v2  ;;  %v15502_v49 = vadd.f32 %v15501_v32, %v15500_v15 }
0x1249   :  { %vm13417_vm0 = vcmp.ge.f32.partialorder %v13415_v34, 0.0  ;;  %v13419_v56 = vmul.f32 0.05, %v13415_v34  ;;  %v13412_v44 = vadd.f32 %v15502_v49, %v15480_v31 }
0x124b   :  { %v13421_v8 = vsel %vm13417_vm0, %v13415_v34, %v13419_v56  ;;  %v13416_v50 = vadd.f32 %v13412_v44, %v13075_v26 }
0x124c   :  { %v13430_v33 = vmul.f32 %v14917_v47, %v13421_v8 }
0x124d   :  { %vm13418_vm3 = vcmp.ge.f32.partialorder %v13416_v50, 0.0  ;;  %v13420_v14 = vmul.f32 0.05, %v13416_v50 }
0x124e   :  { %v13439_v43 = vadd.f32 %v14918_v11, %v13430_v33 }
0x124f   :  { %v13422_v63 = vsel %vm13418_vm3, %v13416_v50, %v13420_v14 }
0x1250   :  { %v13431_v10 = vmul.f32 %v14917_v47, %v13422_v63  ;;  %v13441_v58 = vadd.f32 %v13439_v43, %v271_v38 }
0x1252   :  { %v13440_v42 = vadd.f32 %v14918_v11, %v13431_v10  ;;  %13443 = vst [vmem:[#allocation25] sm:$0xff] %v13441_v58 }
0x1254   :  { %v13442_v3 = vadd.f32 %v13440_v42, %v272_v37 }
0x1256   :  { %13444 = vst [vmem:[#allocation25 + $0x8] sm:$0xff] %v13442_v3 }
0x1257   :  { %17299 = shalt.err (!%p17296_p4)
}
0x1258   :  { %s17350_s20 = smov 128   ;;  %s17351_s7 = smov 8  }
0x1259   :  { %13456 = dma.vmem_to_hbm [thread:$0]  %s13451_s5, 256, %s18893_s15, [#allocation4], %s17350_s20, %s17350_s20, %s17351_s7  }
0x125a   :  { %17324 = dma.done.wait [#allocation4], 256  }
0x125b   :  { %17325 = vsyncadd [#allocation4], 4294967040 }
0x125c   :  { %13460 = vsyncpa [#allocation3], 1 }
0x125d   :  { %13461 = vsyncpa [#allocation6], 1 }
0x125e   :  { %13462 = vsyncpa [#allocation9], 1 }
0x125f   :  { %13463 = vsyncpa [#allocation12], 1 }
0x1260   :  { %13464 = vsyncpa [#allocation15], 1 }
0x1261   :  { %13465 = vsyncpa [#allocation18], 1 }
0x1262   :  { %13466 = vsyncpa [#allocation21], 1 }
0x1263   :  { %13467 = vsyncpa [#allocation24], 1 }
0x1264   :  { %13468 = vsyncpa [#allocation4], 1 }

</bundles_post_ra>
